<compile_context>
chip_gen: v7x
topology: tpu7x:2x2x1
jax: 0.10.0
libtpu: 0.0.40
codegen_flags: <defaults>
</compile_context>

<pallas_src>
import functools

import jax
import jax.numpy as jnp
from jax import lax
from jax.experimental import pallas as pl
from jax.experimental.pallas import tpu as pltpu

BN_EPS = 1e-5
EXPANSION = 4
VMEM_LIMIT = 48 * 1024 * 1024          # safe on v5e/v6e (128 MiB) and v7x (64 MiB)
ACT_DTYPE = jnp.bfloat16               # MXU-native activation / weight dtype


# ----------------------------- Pallas kernel -------------------------------

def _bottleneck_kernel(*refs, stride, has_proj):
    """Whole Bottleneck block for one image (grid step = one batch element)."""
    if has_proj:
        (x_ref, w1_ref, s1_ref, b1_ref,
         w2_ref, s2_ref, b2_ref,
         w3_ref, s3_ref, b3_ref,
         ws_ref, ss_ref, bs_ref,
         o_ref, h1_ref, acc_ref) = refs
    else:
        (x_ref, w1_ref, s1_ref, b1_ref,
         w2_ref, s2_ref, b2_ref,
         w3_ref, s3_ref, b3_ref,
         o_ref, h1_ref, acc_ref) = refs
        ws_ref = ss_ref = bs_ref = None

    _, h, w, cin = x_ref.shape
    planes = w1_ref.shape[1]
    _, ho, wo, cout = o_ref.shape

    # ---- stage 1: 1x1 conv + folded BN + ReLU -> padded VMEM scratch ----
    x2d = x_ref[0].reshape(h * w, cin)
    h1 = jnp.dot(x2d, w1_ref[...], preferred_element_type=jnp.float32)
    h1 = jnp.maximum(h1 * s1_ref[...] + b1_ref[...], 0.0)
    h1_ref[...] = jnp.zeros_like(h1_ref)                       # zero halo
    h1_ref[1:h + 1, 1:w + 1, :] = h1.reshape(h, w, planes).astype(h1_ref.dtype)

    # ---- stage 2: 3x3 conv (pad=1, stride) as 9 accumulated matmuls ----
    acc_ref[...] = jnp.zeros_like(acc_ref)
    span_h = (ho - 1) * stride + 1
    span_w = (wo - 1) * stride + 1
    for di in range(3):
        for dj in range(3):
            win = h1_ref[di:di + span_h, dj:dj + span_w, :]
            if stride > 1:
                # TODO(synk): stride>1 uses in-kernel strided slicing (not
                # exercised by the small test below).
                win = win[::stride, ::stride, :]
            acc_ref[...] += jnp.dot(win.reshape(ho * wo, planes),
                                    w2_ref[di, dj, :, :],
                                    preferred_element_type=jnp.float32)
    h2 = jnp.maximum(acc_ref[...] * s2_ref[...] + b2_ref[...], 0.0)
    h2 = h2.astype(ACT_DTYPE)

    # ---- stage 3: 1x1 conv + folded BN ----
    out = jnp.dot(h2, w3_ref[...], preferred_element_type=jnp.float32)
    out = out * s3_ref[...] + b3_ref[...]

    # ---- shortcut (projection fused, or identity) + residual + ReLU ----
    if has_proj:
        xs = x_ref[0]
        if stride > 1:
            xs = xs[::stride, ::stride, :]
        xs = xs.reshape(ho * wo, cin)
        sc = jnp.dot(xs, ws_ref[...], preferred_element_type=jnp.float32)
        sc = sc * ss_ref[...] + bs_ref[...]
    else:
        sc = x_ref[0].reshape(h * w, cin).astype(jnp.float32)

    res = jnp.maximum(out + sc, 0.0)
    o_ref[...] = res.reshape(1, ho, wo, cout).astype(o_ref.dtype)


# ----------------------------- kernel wrapper -------------------------------

def bottleneck_forward(x_nchw, params, stride):
    """NCHW in / NCHW out; entire block in a single pallas_call."""
    x = jnp.transpose(x_nchw, (0, 2, 3, 1)).astype(ACT_DTYPE)     # NHWC, bf16
    n, h, w, cin = x.shape
    planes = params["w1"].shape[1]
    cout = params["w3"].shape[1]
    ho = (h - 1) // stride + 1
    wo = (w - 1) // stride + 1
    has_proj = params["ws"] is not None
    if not has_proj:
        assert stride == 1 and cin == cout, \
            "identity shortcut requires stride==1 and Cin == 4*planes"

    def vec(v, c):
        return v.reshape(1, c).astype(jnp.float32)

    inputs = [
        x,
        params["w1"].astype(ACT_DTYPE), vec(params["s1"], planes), vec(params["b1"], planes),
        params["w2"].astype(ACT_DTYPE), vec(params["s2"], planes), vec(params["b2"], planes),
        params["w3"].astype(ACT_DTYPE), vec(params["s3"], cout), vec(params["b3"], cout),
    ]
    in_specs = [
        pl.BlockSpec((1, h, w, cin), lambda b: (b, 0, 0, 0)),         # image
        pl.BlockSpec((cin, planes), lambda b: (0, 0)),                # w1 (resident)
        pl.BlockSpec((1, planes), lambda b: (0, 0)),
        pl.BlockSpec((1, planes), lambda b: (0, 0)),
        pl.BlockSpec((3, 3, planes, planes), lambda b: (0, 0, 0, 0)), # w2 (resident)
        pl.BlockSpec((1, planes), lambda b: (0, 0)),
        pl.BlockSpec((1, planes), lambda b: (0, 0)),
        pl.BlockSpec((planes, cout), lambda b: (0, 0)),               # w3 (resident)
        pl.BlockSpec((1, cout), lambda b: (0, 0)),
        pl.BlockSpec((1, cout), lambda b: (0, 0)),
    ]
    if has_proj:
        inputs += [params["ws"].astype(ACT_DTYPE),
                   vec(params["ss"], cout), vec(params["bs"], cout)]
        in_specs += [
            pl.BlockSpec((cin, cout), lambda b: (0, 0)),              # ws (resident)
            pl.BlockSpec((1, cout), lambda b: (0, 0)),
            pl.BlockSpec((1, cout), lambda b: (0, 0)),
        ]

    flops_per_img = (2 * h * w * cin * planes
                     + 2 * ho * wo * 9 * planes * planes
                     + 2 * ho * wo * planes * cout)
    if has_proj:
        flops_per_img += 2 * ho * wo * cin * cout
    param_bytes = sum(int(a.size) * a.dtype.itemsize for a in inputs[1:])
    cost = pl.CostEstimate(
        flops=n * flops_per_img,
        transcendentals=0,
        bytes_accessed=n * h * w * cin * 2 + n * ho * wo * cout * 4 + param_bytes)

    out = pl.pallas_call(
        functools.partial(_bottleneck_kernel, stride=stride, has_proj=has_proj),
        out_shape=jax.ShapeDtypeStruct((n, ho, wo, cout), jnp.float32),
        grid=(n,),
        in_specs=in_specs,
        out_specs=pl.BlockSpec((1, ho, wo, cout), lambda b: (b, 0, 0, 0)),
        scratch_shapes=[
            pltpu.VMEM((h + 2, w + 2, planes), ACT_DTYPE),   # padded stage-1 out
            pltpu.VMEM((ho * wo, planes), jnp.float32),      # conv2 accumulator
        ],
        compiler_params=pltpu.CompilerParams(
            dimension_semantics=("parallel",),               # batch across TCs
            vmem_limit_bytes=VMEM_LIMIT),
        cost_estimate=cost,
    )(*inputs)
    return jnp.transpose(out, (0, 3, 1, 2))                  # back to NCHW


# ------------------------------- glue (JAX) --------------------------------

def _fold_bn(gamma, beta, mean, var, conv_bias):
    scale = gamma / jnp.sqrt(var + BN_EPS)
    bias = beta + scale * (conv_bias - mean)
    return scale, bias


def init_bottleneck_params(key, in_planes, planes, stride):
    """Deterministic synthetic parameters matching the torch module's shapes."""
    out_planes = EXPANSION * planes
    keys = jax.random.split(key, 12)

    def conv_w(k, cin, cout):                 # (Cin, Cout) for 1x1 conv matmul
        return 0.1 * jax.random.normal(k, (cin, cout), jnp.float32)

    def bn(k, c):
        k1, k2, k3, k4 = jax.random.split(k, 4)
        gamma = 1.0 + 0.1 * jax.random.normal(k1, (c,), jnp.float32)
        beta = 0.1 * jax.random.normal(k2, (c,), jnp.float32)
        mean = 0.1 * jax.random.normal(k3, (c,), jnp.float32)
        var = 1.0 + 0.1 * jax.random.uniform(k4, (c,), jnp.float32)
        return gamma, beta, mean, var

    p = {}
    # conv1: 1x1 in_planes -> planes
    p["w1"] = conv_w(keys[0], in_planes, planes)
    b1 = 0.1 * jax.random.normal(keys[1], (planes,), jnp.float32)
    p["s1"], p["b1"] = _fold_bn(*bn(keys[2], planes), b1)
    # conv2: 3x3 planes -> planes, weight stored (kh, kw, Cin, Cout)
    p["w2"] = 0.1 * jax.random.normal(keys[3], (3, 3, planes, planes), jnp.float32)
    b2 = 0.1 * jax.random.normal(keys[4], (planes,), jnp.float32)
    p["s2"], p["b2"] = _fold_bn(*bn(keys[5], planes), b2)
    # conv3: 1x1 planes -> 4*planes
    p["w3"] = conv_w(keys[6], planes, out_planes)
    b3 = 0.1 * jax.random.normal(keys[7], (out_planes,), jnp.float32)
    p["s3"], p["b3"] = _fold_bn(*bn(keys[8], out_planes), b3)
    # shortcut (1x1 stride conv + BN) only when shape mismatch
    if stride != 1 or in_planes != out_planes:
        p["ws"] = conv_w(keys[9], in_planes, out_planes)
        bsc = 0.1 * jax.random.normal(keys[10], (out_planes,), jnp.float32)
        p["ss"], p["bs"] = _fold_bn(*bn(keys[11], out_planes), bsc)
    else:
        p["ws"] = None
    return p


def bottleneck_reference(x_nchw, params, stride):
    """Pure-JAX (f32) reference of the same folded-BN forward pass."""
    x = jnp.transpose(x_nchw, (0, 2, 3, 1))

    def conv1x1(v, w, s=1):
        return jnp.einsum("nhwc,cd->nhwd", v[:, ::s, ::s, :], w)

    h = jnp.maximum(conv1x1(x, params["w1"]) * params["s1"] + params["b1"], 0.0)
    h = lax.conv_general_dilated(h, params["w2"], (stride, stride),
                                 ((1, 1), (1, 1)),
                                 dimension_numbers=("NHWC", "HWIO", "NHWC"))
    h = jnp.maximum(h * params["s2"] + params["b2"], 0.0)
    out = conv1x1(h, params["w3"]) * params["s3"] + params["b3"]
    if params["ws"] is not None:
        sc = conv1x1(x, params["ws"], s=stride) * params["ss"] + params["bs"]
    else:
        sc = x
    return jnp.transpose(jnp.maximum(out + sc, 0.0), (0, 3, 1, 2))


# --------------------------------- main ------------------------------------

if __name__ == "__main__":
    key = jax.random.PRNGKey(0)
    kx, kp, kp2 = jax.random.split(key, 3)

    # Config A: projection shortcut (in_planes != expansion*planes).
    batch, in_planes, planes, spatial, stride = 2, 4, 4, 16, 1
    x = jax.random.normal(kx, (batch, in_planes, spatial, spatial), jnp.float32)
    params = init_bottleneck_params(kp, in_planes, planes, stride)
    fwd = jax.jit(functools.partial(bottleneck_forward, stride=stride))
    y = jax.block_until_ready(fwd(x, params))
    ho = (spatial - 1) // stride + 1
    assert y.shape == (batch, EXPANSION * planes, ho, ho), y.shape
    assert bool(jnp.all(y >= 0.0))                           # final ReLU
    y_ref = bottleneck_reference(x, params, stride)
    err_a = float(jnp.max(jnp.abs(y - y_ref)))
    assert err_a < 0.1, err_a                                # bf16 tolerance

    # Config B: identity shortcut (in_planes == expansion*planes, stride=1).
    in_planes_b = EXPANSION * planes
    xb = jax.random.normal(kx, (batch, in_planes_b, spatial, spatial), jnp.float32)
    params_b = init_bottleneck_params(kp2, in_planes_b, planes, 1)
    fwd_b = jax.jit(functools.partial(bottleneck_forward, stride=1))
    yb = jax.block_until_ready(fwd_b(xb, params_b))
    assert yb.shape == (batch, EXPANSION * planes, spatial, spatial), yb.shape
    yb_ref = bottleneck_reference(xb, params_b, 1)
    err_b = float(jnp.max(jnp.abs(yb - yb_ref)))
    assert err_b < 0.1, err_b

    print("KERNEL_OK")
</pallas_src>

<mosaic_0001>
module attributes {stable_mosaic.version = 11 : i64} {
  func.func @_bottleneck_kernel(%arg0: i32, %arg1: memref<1x16x16x4xbf16, #tpu.memory_space<vmem>>, %arg2: memref<4x4xbf16, #tpu.memory_space<vmem>>, %arg3: memref<1x4xf32, #tpu.memory_space<vmem>>, %arg4: memref<1x4xf32, #tpu.memory_space<vmem>>, %arg5: memref<3x3x4x4xbf16, #tpu.memory_space<vmem>>, %arg6: memref<1x4xf32, #tpu.memory_space<vmem>>, %arg7: memref<1x4xf32, #tpu.memory_space<vmem>>, %arg8: memref<4x16xbf16, #tpu.memory_space<vmem>>, %arg9: memref<1x16xf32, #tpu.memory_space<vmem>>, %arg10: memref<1x16xf32, #tpu.memory_space<vmem>>, %arg11: memref<4x16xbf16, #tpu.memory_space<vmem>>, %arg12: memref<1x16xf32, #tpu.memory_space<vmem>>, %arg13: memref<1x16xf32, #tpu.memory_space<vmem>>, %arg14: memref<1x16x16x16xf32, #tpu.memory_space<vmem>>, %arg15: memref<18x18x4xbf16, #tpu.memory_space<vmem>>, %arg16: memref<256x4xf32, #tpu.memory_space<vmem>>) attributes {dimension_semantics = [#tpu.dimension_semantics<parallel>], iteration_bounds = array<i64: 2>, scalar_prefetch = 0 : i64, scratch_operands = 2 : i64, tpu.core_type = #tpu.core_type<tc>, window_params = [{transform_indices = @transform_0, window_bounds = array<i64: 1, 16, 16, 4>}, {pipeline_mode = #tpu.pipeline_mode<synchronous>, transform_indices = @transform_1, window_bounds = array<i64: 4, 4>}, {pipeline_mode = #tpu.pipeline_mode<synchronous>, transform_indices = @transform_2, window_bounds = array<i64: 1, 4>}, {pipeline_mode = #tpu.pipeline_mode<synchronous>, transform_indices = @transform_3, window_bounds = array<i64: 1, 4>}, {pipeline_mode = #tpu.pipeline_mode<synchronous>, transform_indices = @transform_4, window_bounds = array<i64: 3, 3, 4, 4>}, {pipeline_mode = #tpu.pipeline_mode<synchronous>, transform_indices = @transform_5, window_bounds = array<i64: 1, 4>}, {pipeline_mode = #tpu.pipeline_mode<synchronous>, transform_indices = @transform_6, window_bounds = array<i64: 1, 4>}, {pipeline_mode = #tpu.pipeline_mode<synchronous>, transform_indices = @transform_7, window_bounds = array<i64: 4, 16>}, {pipeline_mode = #tpu.pipeline_mode<synchronous>, transform_indices = @transform_8, window_bounds = array<i64: 1, 16>}, {pipeline_mode = #tpu.pipeline_mode<synchronous>, transform_indices = @transform_9, window_bounds = array<i64: 1, 16>}, {pipeline_mode = #tpu.pipeline_mode<synchronous>, transform_indices = @transform_10, window_bounds = array<i64: 4, 16>}, {pipeline_mode = #tpu.pipeline_mode<synchronous>, transform_indices = @transform_11, window_bounds = array<i64: 1, 16>}, {pipeline_mode = #tpu.pipeline_mode<synchronous>, transform_indices = @transform_12, window_bounds = array<i64: 1, 16>}, {transform_indices = @transform_13, window_bounds = array<i64: 1, 16, 16, 16>}]} {
    %c0 = arith.constant 0 : index
    %c0_0 = arith.constant 0 : index
    %c0_1 = arith.constant 0 : index
    %c0_2 = arith.constant 0 : index
    %0 = vector.load %arg1[%c0, %c0_0, %c0_1, %c0_2] : memref<1x16x16x4xbf16, #tpu.memory_space<vmem>>, vector<1x16x16x4xbf16>
    %1 = vector.shape_cast %0 : vector<1x16x16x4xbf16> to vector<16x16x4xbf16>
    %2 = vector.shape_cast %1 : vector<16x16x4xbf16> to vector<256x4xbf16>
    %c0_3 = arith.constant 0 : index
    %c0_4 = arith.constant 0 : index
    %3 = vector.load %arg2[%c0_3, %c0_4] : memref<4x4xbf16, #tpu.memory_space<vmem>>, vector<4x4xbf16>
    %cst = arith.constant dense<0.000000e+00> : vector<256x4xf32>
    %4 = tpu.matmul %2, %3, %cst {dimension_numbers = #tpu.dot_dimension_numbers<[1], [0], [0], [1], [0, 0, 1, 1], [], []>} : vector<256x4xbf16>, vector<4x4xbf16>, vector<256x4xf32> -> vector<256x4xf32>
    %c0_5 = arith.constant 0 : index
    %c0_6 = arith.constant 0 : index
    %5 = vector.load %arg3[%c0_5, %c0_6] : memref<1x4xf32, #tpu.memory_space<vmem>>, vector<1x4xf32>
    %6 = vector.broadcast %5 : vector<1x4xf32> to vector<256x4xf32>
    %7 = arith.mulf %4, %6 : vector<256x4xf32>
    %c0_7 = arith.constant 0 : index
    %c0_8 = arith.constant 0 : index
    %8 = vector.load %arg4[%c0_7, %c0_8] : memref<1x4xf32, #tpu.memory_space<vmem>>, vector<1x4xf32>
    %9 = vector.broadcast %8 : vector<1x4xf32> to vector<256x4xf32>
    %10 = arith.addf %7, %9 : vector<256x4xf32>
    %cst_9 = arith.constant 0.000000e+00 : f32
    %11 = vector.broadcast %cst_9 : f32 to vector<256x4xf32>
    %12 = arith.maximumf %10, %11 : vector<256x4xf32>
    %cst_10 = arith.constant 0.000000e+00 : bf16
    %13 = vector.broadcast %cst_10 : bf16 to vector<18x18x4xbf16>
    %c0_11 = arith.constant 0 : index
    %c0_12 = arith.constant 0 : index
    %c0_13 = arith.constant 0 : index
    %14 = vector.load %arg15[%c0_11, %c0_12, %c0_13] : memref<18x18x4xbf16, #tpu.memory_space<vmem>>, vector<18x18x4xbf16>
    tpu.vector_store %arg15[%c0_11, %c0_12, %c0_13], %13 {strides = array<i32>} : memref<18x18x4xbf16, #tpu.memory_space<vmem>>, vector<18x18x4xbf16>,
    %15 = vector.shape_cast %12 : vector<256x4xf32> to vector<16x16x4xf32>
    %16 = arith.truncf %15 : vector<16x16x4xf32> to vector<16x16x4xbf16>
    %c1 = arith.constant 1 : index
    %c1_14 = arith.constant 1 : index
    %c0_15 = arith.constant 0 : index
    %17 = vector.load %arg15[%c1, %c1_14, %c0_15] : memref<18x18x4xbf16, #tpu.memory_space<vmem>>, vector<16x16x4xbf16>
    tpu.vector_store %arg15[%c1, %c1_14, %c0_15], %16 {strides = array<i32>} : memref<18x18x4xbf16, #tpu.memory_space<vmem>>, vector<16x16x4xbf16>,
    %cst_16 = arith.constant 0.000000e+00 : f32
    %18 = vector.broadcast %cst_16 : f32 to vector<256x4xf32>
    %c0_17 = arith.constant 0 : index
    %c0_18 = arith.constant 0 : index
    %19 = vector.load %arg16[%c0_17, %c0_18] : memref<256x4xf32, #tpu.memory_space<vmem>>, vector<256x4xf32>
    tpu.vector_store %arg16[%c0_17, %c0_18], %18 {strides = array<i32>} : memref<256x4xf32, #tpu.memory_space<vmem>>, vector<256x4xf32>,
    %c0_19 = arith.constant 0 : index
    %c0_20 = arith.constant 0 : index
    %c0_21 = arith.constant 0 : index
    %20 = vector.load %arg15[%c0_19, %c0_20, %c0_21] : memref<18x18x4xbf16, #tpu.memory_space<vmem>>, vector<16x16x4xbf16>
    %c0_22 = arith.constant 0 : index
    %c0_23 = arith.constant 0 : index
    %21 = vector.load %arg16[%c0_22, %c0_23] : memref<256x4xf32, #tpu.memory_space<vmem>>, vector<256x4xf32>
    %22 = vector.shape_cast %20 : vector<16x16x4xbf16> to vector<256x4xbf16>
    %c0_24 = arith.constant 0 : index
    %c0_25 = arith.constant 0 : index
    %c0_26 = arith.constant 0 : index
    %c0_27 = arith.constant 0 : index
    %23 = vector.load %arg5[%c0_24, %c0_25, %c0_26, %c0_27] : memref<3x3x4x4xbf16, #tpu.memory_space<vmem>>, vector<1x1x4x4xbf16>
    %24 = vector.shape_cast %23 : vector<1x1x4x4xbf16> to vector<4x4xbf16>
    %cst_28 = arith.constant dense<0.000000e+00> : vector<256x4xf32>
    %25 = tpu.matmul %22, %24, %cst_28 {dimension_numbers = #tpu.dot_dimension_numbers<[1], [0], [0], [1], [0, 0, 1, 1], [], []>} : vector<256x4xbf16>, vector<4x4xbf16>, vector<256x4xf32> -> vector<256x4xf32>
    %26 = arith.addf %21, %25 : vector<256x4xf32>
    %c0_29 = arith.constant 0 : index
    %c0_30 = arith.constant 0 : index
    %27 = vector.load %arg16[%c0_29, %c0_30] : memref<256x4xf32, #tpu.memory_space<vmem>>, vector<256x4xf32>
    tpu.vector_store %arg16[%c0_29, %c0_30], %26 {strides = array<i32>} : memref<256x4xf32, #tpu.memory_space<vmem>>, vector<256x4xf32>,
    %c0_31 = arith.constant 0 : index
    %c1_32 = arith.constant 1 : index
    %c0_33 = arith.constant 0 : index
    %28 = vector.load %arg15[%c0_31, %c1_32, %c0_33] : memref<18x18x4xbf16, #tpu.memory_space<vmem>>, vector<16x16x4xbf16>
    %c0_34 = arith.constant 0 : index
    %c0_35 = arith.constant 0 : index
    %29 = vector.load %arg16[%c0_34, %c0_35] : memref<256x4xf32, #tpu.memory_space<vmem>>, vector<256x4xf32>
    %30 = vector.shape_cast %28 : vector<16x16x4xbf16> to vector<256x4xbf16>
    %c0_36 = arith.constant 0 : index
    %c1_37 = arith.constant 1 : index
    %c0_38 = arith.constant 0 : index
    %c0_39 = arith.constant 0 : index
    %31 = vector.load %arg5[%c0_36, %c1_37, %c0_38, %c0_39] : memref<3x3x4x4xbf16, #tpu.memory_space<vmem>>, vector<1x1x4x4xbf16>
    %32 = vector.shape_cast %31 : vector<1x1x4x4xbf16> to vector<4x4xbf16>
    %cst_40 = arith.constant dense<0.000000e+00> : vector<256x4xf32>
    %33 = tpu.matmul %30, %32, %cst_40 {dimension_numbers = #tpu.dot_dimension_numbers<[1], [0], [0], [1], [0, 0, 1, 1], [], []>} : vector<256x4xbf16>, vector<4x4xbf16>, vector<256x4xf32> -> vector<256x4xf32>
    %34 = arith.addf %29, %33 : vector<256x4xf32>
    %c0_41 = arith.constant 0 : index
    %c0_42 = arith.constant 0 : index
    %35 = vector.load %arg16[%c0_41, %c0_42] : memref<256x4xf32, #tpu.memory_space<vmem>>, vector<256x4xf32>
    tpu.vector_store %arg16[%c0_41, %c0_42], %34 {strides = array<i32>} : memref<256x4xf32, #tpu.memory_space<vmem>>, vector<256x4xf32>,
    %c0_43 = arith.constant 0 : index
    %c2 = arith.constant 2 : index
    %c0_44 = arith.constant 0 : index
    %36 = vector.load %arg15[%c0_43, %c2, %c0_44] : memref<18x18x4xbf16, #tpu.memory_space<vmem>>, vector<16x16x4xbf16>
    %c0_45 = arith.constant 0 : index
    %c0_46 = arith.constant 0 : index
    %37 = vector.load %arg16[%c0_45, %c0_46] : memref<256x4xf32, #tpu.memory_space<vmem>>, vector<256x4xf32>
    %38 = vector.shape_cast %36 : vector<16x16x4xbf16> to vector<256x4xbf16>
    %c0_47 = arith.constant 0 : index
    %c2_48 = arith.constant 2 : index
    %c0_49 = arith.constant 0 : index
    %c0_50 = arith.constant 0 : index
    %39 = vector.load %arg5[%c0_47, %c2_48, %c0_49, %c0_50] : memref<3x3x4x4xbf16, #tpu.memory_space<vmem>>, vector<1x1x4x4xbf16>
    %40 = vector.shape_cast %39 : vector<1x1x4x4xbf16> to vector<4x4xbf16>
    %cst_51 = arith.constant dense<0.000000e+00> : vector<256x4xf32>
    %41 = tpu.matmul %38, %40, %cst_51 {dimension_numbers = #tpu.dot_dimension_numbers<[1], [0], [0], [1], [0, 0, 1, 1], [], []>} : vector<256x4xbf16>, vector<4x4xbf16>, vector<256x4xf32> -> vector<256x4xf32>
    %42 = arith.addf %37, %41 : vector<256x4xf32>
    %c0_52 = arith.constant 0 : index
    %c0_53 = arith.constant 0 : index
    %43 = vector.load %arg16[%c0_52, %c0_53] : memref<256x4xf32, #tpu.memory_space<vmem>>, vector<256x4xf32>
    tpu.vector_store %arg16[%c0_52, %c0_53], %42 {strides = array<i32>} : memref<256x4xf32, #tpu.memory_space<vmem>>, vector<256x4xf32>,
    %c1_54 = arith.constant 1 : index
    %c0_55 = arith.constant 0 : index
    %c0_56 = arith.constant 0 : index
    %44 = vector.load %arg15[%c1_54, %c0_55, %c0_56] : memref<18x18x4xbf16, #tpu.memory_space<vmem>>, vector<16x16x4xbf16>
    %c0_57 = arith.constant 0 : index
    %c0_58 = arith.constant 0 : index
    %45 = vector.load %arg16[%c0_57, %c0_58] : memref<256x4xf32, #tpu.memory_space<vmem>>, vector<256x4xf32>
    %46 = vector.shape_cast %44 : vector<16x16x4xbf16> to vector<256x4xbf16>
    %c1_59 = arith.constant 1 : index
    %c0_60 = arith.constant 0 : index
    %c0_61 = arith.constant 0 : index
    %c0_62 = arith.constant 0 : index
    %47 = vector.load %arg5[%c1_59, %c0_60, %c0_61, %c0_62] : memref<3x3x4x4xbf16, #tpu.memory_space<vmem>>, vector<1x1x4x4xbf16>
    %48 = vector.shape_cast %47 : vector<1x1x4x4xbf16> to vector<4x4xbf16>
    %cst_63 = arith.constant dense<0.000000e+00> : vector<256x4xf32>
    %49 = tpu.matmul %46, %48, %cst_63 {dimension_numbers = #tpu.dot_dimension_numbers<[1], [0], [0], [1], [0, 0, 1, 1], [], []>} : vector<256x4xbf16>, vector<4x4xbf16>, vector<256x4xf32> -> vector<256x4xf32>
    %50 = arith.addf %45, %49 : vector<256x4xf32>
    %c0_64 = arith.constant 0 : index
    %c0_65 = arith.constant 0 : index
    %51 = vector.load %arg16[%c0_64, %c0_65] : memref<256x4xf32, #tpu.memory_space<vmem>>, vector<256x4xf32>
    tpu.vector_store %arg16[%c0_64, %c0_65], %50 {strides = array<i32>} : memref<256x4xf32, #tpu.memory_space<vmem>>, vector<256x4xf32>,
    %c1_66 = arith.constant 1 : index
    %c1_67 = arith.constant 1 : index
    %c0_68 = arith.constant 0 : index
    %52 = vector.load %arg15[%c1_66, %c1_67, %c0_68] : memref<18x18x4xbf16, #tpu.memory_space<vmem>>, vector<16x16x4xbf16>
    %c0_69 = arith.constant 0 : index
    %c0_70 = arith.constant 0 : index
    %53 = vector.load %arg16[%c0_69, %c0_70] : memref<256x4xf32, #tpu.memory_space<vmem>>, vector<256x4xf32>
    %54 = vector.shape_cast %52 : vector<16x16x4xbf16> to vector<256x4xbf16>
    %c1_71 = arith.constant 1 : index
    %c1_72 = arith.constant 1 : index
    %c0_73 = arith.constant 0 : index
    %c0_74 = arith.constant 0 : index
    %55 = vector.load %arg5[%c1_71, %c1_72, %c0_73, %c0_74] : memref<3x3x4x4xbf16, #tpu.memory_space<vmem>>, vector<1x1x4x4xbf16>
    %56 = vector.shape_cast %55 : vector<1x1x4x4xbf16> to vector<4x4xbf16>
    %cst_75 = arith.constant dense<0.000000e+00> : vector<256x4xf32>
    %57 = tpu.matmul %54, %56, %cst_75 {dimension_numbers = #tpu.dot_dimension_numbers<[1], [0], [0], [1], [0, 0, 1, 1], [], []>} : vector<256x4xbf16>, vector<4x4xbf16>, vector<256x4xf32> -> vector<256x4xf32>
    %58 = arith.addf %53, %57 : vector<256x4xf32>
    %c0_76 = arith.constant 0 : index
    %c0_77 = arith.constant 0 : index
    %59 = vector.load %arg16[%c0_76, %c0_77] : memref<256x4xf32, #tpu.memory_space<vmem>>, vector<256x4xf32>
    tpu.vector_store %arg16[%c0_76, %c0_77], %58 {strides = array<i32>} : memref<256x4xf32, #tpu.memory_space<vmem>>, vector<256x4xf32>,
    %c1_78 = arith.constant 1 : index
    %c2_79 = arith.constant 2 : index
    %c0_80 = arith.constant 0 : index
    %60 = vector.load %arg15[%c1_78, %c2_79, %c0_80] : memref<18x18x4xbf16, #tpu.memory_space<vmem>>, vector<16x16x4xbf16>
    %c0_81 = arith.constant 0 : index
    %c0_82 = arith.constant 0 : index
    %61 = vector.load %arg16[%c0_81, %c0_82] : memref<256x4xf32, #tpu.memory_space<vmem>>, vector<256x4xf32>
    %62 = vector.shape_cast %60 : vector<16x16x4xbf16> to vector<256x4xbf16>
    %c1_83 = arith.constant 1 : index
    %c2_84 = arith.constant 2 : index
    %c0_85 = arith.constant 0 : index
    %c0_86 = arith.constant 0 : index
    %63 = vector.load %arg5[%c1_83, %c2_84, %c0_85, %c0_86] : memref<3x3x4x4xbf16, #tpu.memory_space<vmem>>, vector<1x1x4x4xbf16>
    %64 = vector.shape_cast %63 : vector<1x1x4x4xbf16> to vector<4x4xbf16>
    %cst_87 = arith.constant dense<0.000000e+00> : vector<256x4xf32>
    %65 = tpu.matmul %62, %64, %cst_87 {dimension_numbers = #tpu.dot_dimension_numbers<[1], [0], [0], [1], [0, 0, 1, 1], [], []>} : vector<256x4xbf16>, vector<4x4xbf16>, vector<256x4xf32> -> vector<256x4xf32>
    %66 = arith.addf %61, %65 : vector<256x4xf32>
    %c0_88 = arith.constant 0 : index
    %c0_89 = arith.constant 0 : index
    %67 = vector.load %arg16[%c0_88, %c0_89] : memref<256x4xf32, #tpu.memory_space<vmem>>, vector<256x4xf32>
    tpu.vector_store %arg16[%c0_88, %c0_89], %66 {strides = array<i32>} : memref<256x4xf32, #tpu.memory_space<vmem>>, vector<256x4xf32>,
    %c2_90 = arith.constant 2 : index
    %c0_91 = arith.constant 0 : index
    %c0_92 = arith.constant 0 : index
    %68 = vector.load %arg15[%c2_90, %c0_91, %c0_92] : memref<18x18x4xbf16, #tpu.memory_space<vmem>>, vector<16x16x4xbf16>
    %c0_93 = arith.constant 0 : index
    %c0_94 = arith.constant 0 : index
    %69 = vector.load %arg16[%c0_93, %c0_94] : memref<256x4xf32, #tpu.memory_space<vmem>>, vector<256x4xf32>
    %70 = vector.shape_cast %68 : vector<16x16x4xbf16> to vector<256x4xbf16>
    %c2_95 = arith.constant 2 : index
    %c0_96 = arith.constant 0 : index
    %c0_97 = arith.constant 0 : index
    %c0_98 = arith.constant 0 : index
    %71 = vector.load %arg5[%c2_95, %c0_96, %c0_97, %c0_98] : memref<3x3x4x4xbf16, #tpu.memory_space<vmem>>, vector<1x1x4x4xbf16>
    %72 = vector.shape_cast %71 : vector<1x1x4x4xbf16> to vector<4x4xbf16>
    %cst_99 = arith.constant dense<0.000000e+00> : vector<256x4xf32>
    %73 = tpu.matmul %70, %72, %cst_99 {dimension_numbers = #tpu.dot_dimension_numbers<[1], [0], [0], [1], [0, 0, 1, 1], [], []>} : vector<256x4xbf16>, vector<4x4xbf16>, vector<256x4xf32> -> vector<256x4xf32>
    %74 = arith.addf %69, %73 : vector<256x4xf32>
    %c0_100 = arith.constant 0 : index
    %c0_101 = arith.constant 0 : index
    %75 = vector.load %arg16[%c0_100, %c0_101] : memref<256x4xf32, #tpu.memory_space<vmem>>, vector<256x4xf32>
    tpu.vector_store %arg16[%c0_100, %c0_101], %74 {strides = array<i32>} : memref<256x4xf32, #tpu.memory_space<vmem>>, vector<256x4xf32>,
    %c2_102 = arith.constant 2 : index
    %c1_103 = arith.constant 1 : index
    %c0_104 = arith.constant 0 : index
    %76 = vector.load %arg15[%c2_102, %c1_103, %c0_104] : memref<18x18x4xbf16, #tpu.memory_space<vmem>>, vector<16x16x4xbf16>
    %c0_105 = arith.constant 0 : index
    %c0_106 = arith.constant 0 : index
    %77 = vector.load %arg16[%c0_105, %c0_106] : memref<256x4xf32, #tpu.memory_space<vmem>>, vector<256x4xf32>
    %78 = vector.shape_cast %76 : vector<16x16x4xbf16> to vector<256x4xbf16>
    %c2_107 = arith.constant 2 : index
    %c1_108 = arith.constant 1 : index
    %c0_109 = arith.constant 0 : index
    %c0_110 = arith.constant 0 : index
    %79 = vector.load %arg5[%c2_107, %c1_108, %c0_109, %c0_110] : memref<3x3x4x4xbf16, #tpu.memory_space<vmem>>, vector<1x1x4x4xbf16>
    %80 = vector.shape_cast %79 : vector<1x1x4x4xbf16> to vector<4x4xbf16>
    %cst_111 = arith.constant dense<0.000000e+00> : vector<256x4xf32>
    %81 = tpu.matmul %78, %80, %cst_111 {dimension_numbers = #tpu.dot_dimension_numbers<[1], [0], [0], [1], [0, 0, 1, 1], [], []>} : vector<256x4xbf16>, vector<4x4xbf16>, vector<256x4xf32> -> vector<256x4xf32>
    %82 = arith.addf %77, %81 : vector<256x4xf32>
    %c0_112 = arith.constant 0 : index
    %c0_113 = arith.constant 0 : index
    %83 = vector.load %arg16[%c0_112, %c0_113] : memref<256x4xf32, #tpu.memory_space<vmem>>, vector<256x4xf32>
    tpu.vector_store %arg16[%c0_112, %c0_113], %82 {strides = array<i32>} : memref<256x4xf32, #tpu.memory_space<vmem>>, vector<256x4xf32>,
    %c2_114 = arith.constant 2 : index
    %c2_115 = arith.constant 2 : index
    %c0_116 = arith.constant 0 : index
    %84 = vector.load %arg15[%c2_114, %c2_115, %c0_116] : memref<18x18x4xbf16, #tpu.memory_space<vmem>>, vector<16x16x4xbf16>
    %c0_117 = arith.constant 0 : index
    %c0_118 = arith.constant 0 : index
    %85 = vector.load %arg16[%c0_117, %c0_118] : memref<256x4xf32, #tpu.memory_space<vmem>>, vector<256x4xf32>
    %86 = vector.shape_cast %84 : vector<16x16x4xbf16> to vector<256x4xbf16>
    %c2_119 = arith.constant 2 : index
    %c2_120 = arith.constant 2 : index
    %c0_121 = arith.constant 0 : index
    %c0_122 = arith.constant 0 : index
    %87 = vector.load %arg5[%c2_119, %c2_120, %c0_121, %c0_122] : memref<3x3x4x4xbf16, #tpu.memory_space<vmem>>, vector<1x1x4x4xbf16>
    %88 = vector.shape_cast %87 : vector<1x1x4x4xbf16> to vector<4x4xbf16>
    %cst_123 = arith.constant dense<0.000000e+00> : vector<256x4xf32>
    %89 = tpu.matmul %86, %88, %cst_123 {dimension_numbers = #tpu.dot_dimension_numbers<[1], [0], [0], [1], [0, 0, 1, 1], [], []>} : vector<256x4xbf16>, vector<4x4xbf16>, vector<256x4xf32> -> vector<256x4xf32>
    %90 = arith.addf %85, %89 : vector<256x4xf32>
    %c0_124 = arith.constant 0 : index
    %c0_125 = arith.constant 0 : index
    %91 = vector.load %arg16[%c0_124, %c0_125] : memref<256x4xf32, #tpu.memory_space<vmem>>, vector<256x4xf32>
    tpu.vector_store %arg16[%c0_124, %c0_125], %90 {strides = array<i32>} : memref<256x4xf32, #tpu.memory_space<vmem>>, vector<256x4xf32>,
    %c0_126 = arith.constant 0 : index
    %c0_127 = arith.constant 0 : index
    %92 = vector.load %arg16[%c0_126, %c0_127] : memref<256x4xf32, #tpu.memory_space<vmem>>, vector<256x4xf32>
    %c0_128 = arith.constant 0 : index
    %c0_129 = arith.constant 0 : index
    %93 = vector.load %arg6[%c0_128, %c0_129] : memref<1x4xf32, #tpu.memory_space<vmem>>, vector<1x4xf32>
    %94 = vector.broadcast %93 : vector<1x4xf32> to vector<256x4xf32>
    %95 = arith.mulf %92, %94 : vector<256x4xf32>
    %c0_130 = arith.constant 0 : index
    %c0_131 = arith.constant 0 : index
    %96 = vector.load %arg7[%c0_130, %c0_131] : memref<1x4xf32, #tpu.memory_space<vmem>>, vector<1x4xf32>
    %97 = vector.broadcast %96 : vector<1x4xf32> to vector<256x4xf32>
    %98 = arith.addf %95, %97 : vector<256x4xf32>
    %cst_132 = arith.constant 0.000000e+00 : f32
    %99 = vector.broadcast %cst_132 : f32 to vector<256x4xf32>
    %100 = arith.maximumf %98, %99 : vector<256x4xf32>
    %101 = arith.truncf %100 : vector<256x4xf32> to vector<256x4xbf16>
    %c0_133 = arith.constant 0 : index
    %c0_134 = arith.constant 0 : index
    %102 = vector.load %arg8[%c0_133, %c0_134] : memref<4x16xbf16, #tpu.memory_space<vmem>>, vector<4x16xbf16>
    %cst_135 = arith.constant dense<0.000000e+00> : vector<256x16xf32>
    %103 = tpu.matmul %101, %102, %cst_135 {dimension_numbers = #tpu.dot_dimension_numbers<[1], [0], [0], [1], [0, 0, 1, 1], [], []>} : vector<256x4xbf16>, vector<4x16xbf16>, vector<256x16xf32> -> vector<256x16xf32>
    %c0_136 = arith.constant 0 : index
    %c0_137 = arith.constant 0 : index
    %104 = vector.load %arg9[%c0_136, %c0_137] : memref<1x16xf32, #tpu.memory_space<vmem>>, vector<1x16xf32>
    %105 = vector.broadcast %104 : vector<1x16xf32> to vector<256x16xf32>
    %106 = arith.mulf %103, %105 : vector<256x16xf32>
    %c0_138 = arith.constant 0 : index
    %c0_139 = arith.constant 0 : index
    %107 = vector.load %arg10[%c0_138, %c0_139] : memref<1x16xf32, #tpu.memory_space<vmem>>, vector<1x16xf32>
    %108 = vector.broadcast %107 : vector<1x16xf32> to vector<256x16xf32>
    %109 = arith.addf %106, %108 : vector<256x16xf32>
    %c0_140 = arith.constant 0 : index
    %c0_141 = arith.constant 0 : index
    %c0_142 = arith.constant 0 : index
    %c0_143 = arith.constant 0 : index
    %110 = vector.load %arg1[%c0_140, %c0_141, %c0_142, %c0_143] : memref<1x16x16x4xbf16, #tpu.memory_space<vmem>>, vector<1x16x16x4xbf16>
    %111 = vector.shape_cast %110 : vector<1x16x16x4xbf16> to vector<16x16x4xbf16>
    %112 = vector.shape_cast %111 : vector<16x16x4xbf16> to vector<256x4xbf16>
    %c0_144 = arith.constant 0 : index
    %c0_145 = arith.constant 0 : index
    %113 = vector.load %arg11[%c0_144, %c0_145] : memref<4x16xbf16, #tpu.memory_space<vmem>>, vector<4x16xbf16>
    %cst_146 = arith.constant dense<0.000000e+00> : vector<256x16xf32>
    %114 = tpu.matmul %112, %113, %cst_146 {dimension_numbers = #tpu.dot_dimension_numbers<[1], [0], [0], [1], [0, 0, 1, 1], [], []>} : vector<256x4xbf16>, vector<4x16xbf16>, vector<256x16xf32> -> vector<256x16xf32>
    %c0_147 = arith.constant 0 : index
    %c0_148 = arith.constant 0 : index
    %115 = vector.load %arg12[%c0_147, %c0_148] : memref<1x16xf32, #tpu.memory_space<vmem>>, vector<1x16xf32>
    %116 = vector.broadcast %115 : vector<1x16xf32> to vector<256x16xf32>
    %117 = arith.mulf %114, %116 : vector<256x16xf32>
    %c0_149 = arith.constant 0 : index
    %c0_150 = arith.constant 0 : index
    %118 = vector.load %arg13[%c0_149, %c0_150] : memref<1x16xf32, #tpu.memory_space<vmem>>, vector<1x16xf32>
    %119 = vector.broadcast %118 : vector<1x16xf32> to vector<256x16xf32>
    %120 = arith.addf %117, %119 : vector<256x16xf32>
    %121 = arith.addf %109, %120 : vector<256x16xf32>
    %cst_151 = arith.constant 0.000000e+00 : f32
    %122 = vector.broadcast %cst_151 : f32 to vector<256x16xf32>
    %123 = arith.maximumf %121, %122 : vector<256x16xf32>
    %124 = vector.shape_cast %123 : vector<256x16xf32> to vector<1x16x16x16xf32>
    %c0_152 = arith.constant 0 : index
    %c0_153 = arith.constant 0 : index
    %c0_154 = arith.constant 0 : index
    %c0_155 = arith.constant 0 : index
    %125 = vector.load %arg14[%c0_152, %c0_153, %c0_154, %c0_155] : memref<1x16x16x16xf32, #tpu.memory_space<vmem>>, vector<1x16x16x16xf32>
    tpu.vector_store %arg14[%c0_152, %c0_153, %c0_154, %c0_155], %124 {strides = array<i32>} : memref<1x16x16x16xf32, #tpu.memory_space<vmem>>, vector<1x16x16x16xf32>,
    return
  }
  func.func @transform_0(%arg0: i32) -> (i32, i32, i32, i32) {
    %c0_i32 = arith.constant 0 : i32
    %c0_i32_0 = arith.constant 0 : i32
    %c0_i32_1 = arith.constant 0 : i32
    %c0_i32_2 = arith.constant 0 : i32
    return %arg0, %c0_i32, %c0_i32_0, %c0_i32_1 : i32, i32, i32, i32
  }
  func.func @transform_1(%arg0: i32) -> (i32, i32) {
    %c0_i32 = arith.constant 0 : i32
    %c0_i32_0 = arith.constant 0 : i32
    %c0_i32_1 = arith.constant 0 : i32
    return %c0_i32, %c0_i32_0 : i32, i32
  }
  func.func @transform_2(%arg0: i32) -> (i32, i32) {
    %c0_i32 = arith.constant 0 : i32
    %c0_i32_0 = arith.constant 0 : i32
    %c0_i32_1 = arith.constant 0 : i32
    return %c0_i32, %c0_i32_0 : i32, i32
  }
  func.func @transform_3(%arg0: i32) -> (i32, i32) {
    %c0_i32 = arith.constant 0 : i32
    %c0_i32_0 = arith.constant 0 : i32
    %c0_i32_1 = arith.constant 0 : i32
    return %c0_i32, %c0_i32_0 : i32, i32
  }
  func.func @transform_4(%arg0: i32) -> (i32, i32, i32, i32) {
    %c0_i32 = arith.constant 0 : i32
    %c0_i32_0 = arith.constant 0 : i32
    %c0_i32_1 = arith.constant 0 : i32
    %c0_i32_2 = arith.constant 0 : i32
    %c0_i32_3 = arith.constant 0 : i32
    return %c0_i32, %c0_i32_0, %c0_i32_1, %c0_i32_2 : i32, i32, i32, i32
  }
  func.func @transform_5(%arg0: i32) -> (i32, i32) {
    %c0_i32 = arith.constant 0 : i32
    %c0_i32_0 = arith.constant 0 : i32
    %c0_i32_1 = arith.constant 0 : i32
    return %c0_i32, %c0_i32_0 : i32, i32
  }
  func.func @transform_6(%arg0: i32) -> (i32, i32) {
    %c0_i32 = arith.constant 0 : i32
    %c0_i32_0 = arith.constant 0 : i32
    %c0_i32_1 = arith.constant 0 : i32
    return %c0_i32, %c0_i32_0 : i32, i32
  }
  func.func @transform_7(%arg0: i32) -> (i32, i32) {
    %c0_i32 = arith.constant 0 : i32
    %c0_i32_0 = arith.constant 0 : i32
    %c0_i32_1 = arith.constant 0 : i32
    return %c0_i32, %c0_i32_0 : i32, i32
  }
  func.func @transform_8(%arg0: i32) -> (i32, i32) {
    %c0_i32 = arith.constant 0 : i32
    %c0_i32_0 = arith.constant 0 : i32
    %c0_i32_1 = arith.constant 0 : i32
    return %c0_i32, %c0_i32_0 : i32, i32
  }
  func.func @transform_9(%arg0: i32) -> (i32, i32) {
    %c0_i32 = arith.constant 0 : i32
    %c0_i32_0 = arith.constant 0 : i32
    %c0_i32_1 = arith.constant 0 : i32
    return %c0_i32, %c0_i32_0 : i32, i32
  }
  func.func @transform_10(%arg0: i32) -> (i32, i32) {
    %c0_i32 = arith.constant 0 : i32
    %c0_i32_0 = arith.constant 0 : i32
    %c0_i32_1 = arith.constant 0 : i32
    return %c0_i32, %c0_i32_0 : i32, i32
  }
  func.func @transform_11(%arg0: i32) -> (i32, i32) {
    %c0_i32 = arith.constant 0 : i32
    %c0_i32_0 = arith.constant 0 : i32
    %c0_i32_1 = arith.constant 0 : i32
    return %c0_i32, %c0_i32_0 : i32, i32
  }
  func.func @transform_12(%arg0: i32) -> (i32, i32) {
    %c0_i32 = arith.constant 0 : i32
    %c0_i32_0 = arith.constant 0 : i32
    %c0_i32_1 = arith.constant 0 : i32
    return %c0_i32, %c0_i32_0 : i32, i32
  }
  func.func @transform_13(%arg0: i32) -> (i32, i32, i32, i32) {
    %c0_i32 = arith.constant 0 : i32
    %c0_i32_0 = arith.constant 0 : i32
    %c0_i32_1 = arith.constant 0 : i32
    %c0_i32_2 = arith.constant 0 : i32
    return %arg0, %c0_i32, %c0_i32_0, %c0_i32_1 : i32, i32, i32, i32
  }
}

</mosaic_0001>

<bundles_post_ra>
// kernel: bottleneck_forward.1
= control target key start
LH: loop header
LB: loop body
LE: loop exit
PB: predicated region body
PF: predicated region fallthrough
CT: control target
= control target key end

     0   :  { %s9155_s25 = smov 0   ;;  %s11376_s0 = inlined_call_operand.vmem [shape: bf16[2,16,16,4], index: 0, kind: input, shape index: {}]   ;;  %s11377_s1 = inlined_call_operand.vmem [shape: bf16[4,4], index: 1, kind: input, shape index: {}]   ;;  %s11378_s2 = inlined_call_operand.vmem [shape: f32[1,4], index: 2, kind: input, shape index: {}]   ;;  %s11379_s3 = inlined_call_operand.vmem [shape: f32[1,4], index: 3, kind: input, shape index: {}]   ;;  %s11380_s4 = inlined_call_operand.vmem [shape: bf16[3,3,4,4], index: 4, kind: input, shape index: {}]   ;;  %s11381_s5 = inlined_call_operand.vmem [shape: f32[1,4], index: 5, kind: input, shape index: {}]   ;;  %s11382_s6 = inlined_call_operand.vmem [shape: f32[1,4], index: 6, kind: input, shape index: {}]   ;;  %s11383_s7 = inlined_call_operand.vmem [shape: bf16[4,16], index: 7, kind: input, shape index: {}]   ;;  %s11384_s8 = inlined_call_operand.vmem [shape: f32[1,16], index: 8, kind: input, shape index: {}]   ;;  %s11385_s9 = inlined_call_operand.vmem [shape: f32[1,16], index: 9, kind: input, shape index: {}]   ;;  %s11386_s10 = inlined_call_operand.vmem [shape: bf16[4,16], index: 10, kind: input, shape index: {}]   ;;  %s11387_s11 = inlined_call_operand.vmem [shape: f32[1,16], index: 11, kind: input, shape index: {}]   ;;  %s11388_s12 = inlined_call_operand.vmem [shape: f32[1,16], index: 12, kind: input, shape index: {}]   ;;  %s11389_s13 = inlined_call_operand.vmem [shape: f32[2,16,16,16], index: 13, kind: output, shape index: {}]  }
   0x1 LB: > { %s7848_s26 = sadd.s32 4294967295, %s9081_s25   ;;  %p7852_p0 = scmp.ge.s32.totalorder %s9081_s25, 1  ;;  %s9081_s25 = sphi %s9155_s25, %s23_s25  }
   0x2   : > { %p387_p1 = scmp.lt.s32.totalorder %s9081_s25, 3 }
   0x4   : > { %p388_p2 = pnand %p7852_p0, %p387_p1 }
   0x5   : > { %v474_v0 = vld [vmem:[%s11377_s1] sm:$0x3] (!%p388_p2)  ;;  %vm604_vm0 = vcmask (!%p388_p2), 1041408   ;;  %p431_p3 = scmp.lt.s32.totalorder (!%p388_p2), %s7848_s26, 1  ;;  %vm555_vm1 = vcmask (!%p388_p2), 31744   ;;  %vm879_vm2 = vcmask (!%p388_p2), 27648  }
   0x6   : > { %391 = sbr.rel (%p388_p2) target bundleno = 1114 (0x45a), region = 72  ;;  %8969 = vmatprep.subr.msk.bf16.mxu0 (!%p388_p2), %vm604_vm0, %v474_v0  ;;  %v606_v1 = vsel (!%p388_p2), %vm604_vm0, %v474_v0, 0  ;;  %v9083_v18 = vmov (!%p388_p2), 0   ;;  %vm882_vm3 = vcmask (!%p388_p2), 24576   ;;  %v1568_v19 = vld [vmem:[%s11380_s4] sm:$0x3] (!%p388_p2) }
   0x7   : > { %8562 = vmatpush3.bf16.msra.mxu0 (!%p388_p2), %v606_v1  ;;  %887 = vst.msk [vmem:[#allocation2 + $0x18] sm:$0xf] (!%p388_p2), %vm879_vm2, %v9083_v18  ;;  %880 = vst.msk [vmem:[#allocation2] sm:$0xf] (!%p388_p2), %vm879_vm2, %v9083_v18  ;;  %8970 = vmatprep.subr.msk.bf16.mxu1 (!%p388_p2), %vm604_vm0, %v1568_v19  ;;  %v1698_v20 = vsel (!%p388_p2), %vm604_vm0, %v1568_v19, 0  ;;  %vm2846_vm13 = vcmask (!%p388_p2), 1042432  }
   0x8   : > { %881 = vst.msk [vmem:[#allocation2 + $0x4] sm:$0xf] (!%p388_p2), %vm879_vm2, %v9083_v18  ;;  %884 = vst.msk [vmem:[#allocation2 + $0xc] sm:$0xf] (!%p388_p2), %vm879_vm2, %v9083_v18  ;;  %8596 = vmatpush3.bf16.msra.mxu1 (!%p388_p2), %v1698_v20  ;;  %v7955_v28 = vld [vmem:[%s11380_s4 + $0x2] sm:$0x3] (!%p388_p2) }
   0x9   : > { %885 = vst.msk [vmem:[#allocation2 + $0x10] sm:$0xf] (!%p388_p2), %vm879_vm2, %v9083_v18  ;;  %888 = vst.msk [vmem:[#allocation2 + $0x1c] sm:$0xf] (!%p388_p2), %vm879_vm2, %v9083_v18  ;;  %8971 = vmatprep.subr.msk.bf16.mxu0 (!%p388_p2), %vm604_vm0, %v7955_v28  ;;  %v2491_v31 = vsel (!%p388_p2), %vm604_vm0, %v7955_v28, 0  ;;  %vm2847_vm14 = vcmask (!%p388_p2), 1046532  }
   0xa   : > { %890 = vst.msk [vmem:[#allocation2 + $0x24] sm:$0xf] (!%p388_p2), %vm879_vm2, %v9083_v18  ;;  %891 = vst.msk [vmem:[#allocation2 + $0x28] sm:$0xf] (!%p388_p2), %vm879_vm2, %v9083_v18  ;;  %vm2005_vm4 = vsmask.f32 (!%p388_p2), 3328 }
   0xb   : > { %893 = vst.msk [vmem:[#allocation2 + $0x30] sm:$0xf] (!%p388_p2), %vm879_vm2, %v9083_v18  ;;  %894 = vst.msk [vmem:[#allocation2 + $0x34] sm:$0xf] (!%p388_p2), %vm879_vm2, %v9083_v18  ;;  %vm2006_vm5 = vsmask.f32 (!%p388_p2), 7440 }
   0xc   : > { %896 = vst.msk [vmem:[#allocation2 + $0x3c] sm:$0xf] (!%p388_p2), %vm879_vm2, %v9083_v18  ;;  %897 = vst.msk [vmem:[#allocation2 + $0x40] sm:$0xf] (!%p388_p2), %vm879_vm2, %v9083_v18  ;;  %v8004_v45 = vld [vmem:[%s11380_s4 + $0x4] sm:$0x3] (!%p388_p2) }
   0xd   : > { %s11401_s26 = smov (!%p431_p3, %s7848_s26), 1  ;;  %899 = vst.msk [vmem:[#allocation2 + $0x48] sm:$0xf] %vm879_vm2, %v9083_v18  ;;  %900 = vst.msk [vmem:[#allocation2 + $0x4c] sm:$0xf] %vm879_vm2, %v9083_v18  ;;  %8972 = vmatprep.subr.msk.bf16.mxu1 %vm604_vm0, %v8004_v45 }
   0xe   : > { %s8323_s29 = sshll.u32 %s11401_s26, 7  ;;  %902 = vst.msk [vmem:[#allocation2 + $0x54] sm:$0xf] %vm879_vm2, %v9083_v18  ;;  %903 = vst.msk [vmem:[#allocation2 + $0x58] sm:$0xf] %vm879_vm2, %v9083_v18  ;;  %s8324_s19 = sshll.u32 %s11401_s26, 8 }
   0xf   : > { %s9174_s15 = scalar_lea.vmem %s11376_s0, %s8323_s29  ;;  %905 = vst.msk [vmem:[#allocation2 + $0x60] sm:$0xf] %vm879_vm2, %v9083_v18  ;;  %906 = vst.msk [vmem:[#allocation2 + $0x64] sm:$0xf] %vm879_vm2, %v9083_v18  ;;  %v9007_v21 = vld [vmem:[#allocation2] sm:$0xff]  }
  0x10   : > { %v8991_v2 = vld [vmem:[%s9174_s15] sm:$0xff]   ;;  %v8992_v3 = vld [vmem:[%s9174_s15 + $0x8] sm:$0xff]   ;;  %v8993_v4 = vld [vmem:[%s9174_s15 + $0x10] sm:$0xff]   ;;  %908 = vst.msk [vmem:[#allocation2 + $0x6c] sm:$0xf] %vm879_vm2, %v9083_v18  ;;  %8597 = vmatprep.mubr.msk.bf16.mxu1 %vm555_vm1, %v9007_v21 }
  0x11   : > { %8563 = vmatprep.mubr.msk.bf16.mxu0 %vm555_vm1, %v8991_v2  ;;  %v8994_v5 = vld [vmem:[%s9174_s15 + $0x18] sm:$0xff]   ;;  %v8995_v6 = vld [vmem:[%s9174_s15 + $0x20] sm:$0xff]   ;;  %v8996_v7 = vld [vmem:[%s9174_s15 + $0x28] sm:$0xff]   ;;  %909 = vst.msk [vmem:[#allocation2 + $0x70] sm:$0xf] %vm879_vm2, %v9083_v18 }
  0x12   : > { %8564 = vmatmul.mubr.msk.bf16.vlgmr.msra.gmra.mrb[0].mxu0 %vm555_vm1, %v8992_v3  ;;  %v8997_v8 = vld [vmem:[%s9174_s15 + $0x30] sm:$0xff]   ;;  %v8998_v9 = vld [vmem:[%s9174_s15 + $0x38] sm:$0xff]   ;;  %v8999_v10 = vld [vmem:[%s9174_s15 + $0x40] sm:$0xff]   ;;  %911 = vst.msk [vmem:[#allocation2 + $0x78] sm:$0xf] %vm879_vm2, %v9083_v18  ;;  %v9305_v3 = vsel %vm604_vm0, %v8004_v45, 0 }
  0x13   : > { %8567 = vmatprep.mubr.msk.bf16.mxu0 %vm555_vm1, %v8993_v4  ;;  %v9000_v11 = vld [vmem:[%s9174_s15 + $0x48] sm:$0xff]   ;;  %v9001_v12 = vld [vmem:[%s9174_s15 + $0x50] sm:$0xff]   ;;  %v9002_v13 = vld [vmem:[%s9174_s15 + $0x58] sm:$0xff]   ;;  %912 = vst.msk [vmem:[#allocation2 + $0x7c] sm:$0xf] %vm879_vm2, %v9083_v18  ;;  %8630 = vmatpush3.bf16.msra.mxu0 %v2491_v31 }
  0x14   : > { %v9003_v14 = vld [vmem:[%s9174_s15 + $0x60] sm:$0xff]   ;;  %v9004_v15 = vld [vmem:[%s9174_s15 + $0x68] sm:$0xff]   ;;  %v9005_v16 = vld [vmem:[%s9174_s15 + $0x70] sm:$0xff]   ;;  %914 = vst.msk [vmem:[#allocation2 + $0x84] sm:$0xf] %vm879_vm2, %v9083_v18 }
  0x15   : > { %v9006_v17 = vld [vmem:[%s9174_s15 + $0x78] sm:$0xff]   ;;  %915 = vst.msk [vmem:[#allocation2 + $0x88] sm:$0xf] %vm879_vm2, %v9083_v18  ;;  %917 = vst.msk [vmem:[#allocation2 + $0x90] sm:$0xf] %vm879_vm2, %v9083_v18 }
  0x16   : > { %918 = vst.msk [vmem:[#allocation2 + $0x94] sm:$0xf] %vm879_vm2, %v9083_v18  ;;  %920 = vst.msk [vmem:[#allocation2 + $0x9c] sm:$0xf] %vm879_vm2, %v9083_v18  ;;  %v1925_v22 = vld [vmem:[#allocation2] sm:$0xf] }
  0x17   : > { %921 = vst.msk [vmem:[#allocation2 + $0xa0] sm:$0xf] %vm879_vm2, %v9083_v18  ;;  %923 = vst.msk [vmem:[#allocation2 + $0xa8] sm:$0xf] %vm879_vm2, %v9083_v18  ;;  %v1926_v23 = vld [vmem:[#allocation2 + $0x4] sm:$0xf] }
  0x18   : > { %924 = vst.msk [vmem:[#allocation2 + $0xac] sm:$0xf] %vm879_vm2, %v9083_v18  ;;  %926 = vst.msk [vmem:[#allocation2 + $0xb4] sm:$0xf] %vm879_vm2, %v9083_v18  ;;  %v2009_v24 = vshrl.u32 %v1925_v22, 16  ;;  %v2012_v25 = vshll.u32 %v1925_v22, 16 }
  0x19   : > { %927 = vst.msk [vmem:[#allocation2 + $0xb8] sm:$0xf] %vm879_vm2, %v9083_v18  ;;  %929 = vst.msk [vmem:[#allocation2 + $0xc0] sm:$0xf] %vm879_vm2, %v9083_v18  ;;  %v2018_v26 = vshll.u32 %v1926_v23, 16  ;;  %v2022_v27 = vshrl.u32 %v1926_v23, 16 }
  0x1a   : > { %8568 = vmatmul.mubr.msk.bf16.gmra.mrb[4].mxu0 %vm555_vm1, %v8994_v5  ;;  %930 = vst.msk [vmem:[#allocation2 + $0xc4] sm:$0xf] %vm879_vm2, %v9083_v18  ;;  %932 = vst.msk [vmem:[#allocation2 + $0xcc] sm:$0xf] %vm879_vm2, %v9083_v18  ;;  %v2011_v29 = vrot.slane %v2009_v24, 4  ;;  %v2014_v30 = vrot.slane %v2012_v25, 5 }
  0x1b   : > { %8571 = vmatprep.mubr.msk.bf16.mxu0 %vm555_vm1, %v8995_v6  ;;  %933 = vst.msk [vmem:[#allocation2 + $0xd0] sm:$0xf] %vm879_vm2, %v9083_v18  ;;  %v2020_v33 = vrot.slane %v2018_v26, 5  ;;  %v2024_v34 = vrot.slane %v2022_v27, 4  ;;  %vm9273_vm6 = vmor %vm2005_vm4, %vm2006_vm5  ;;  %v9289_v46 = vld [vmem:[%s11378_s2] ss:$0 sm:$0xff] }
  0x1c   : > { %889 = vst.msk [vmem:[#allocation2 + $0x20] sm:$0x1] %vm882_vm3, %v9083_v18  ;;  %883 = vst.msk [vmem:[#allocation2 + $0x8] sm:$0x1] %vm882_vm3, %v9083_v18  ;;  %v2015_v35 = vor.u32 %v2014_v30, %v2011_v29  ;;  %v9294_v48 = vld [vmem:[%s11379_s3] ss:$0 sm:$0xff] }
  0x1d   : > { %886 = vst.msk [vmem:[#allocation2 + $0x14] sm:$0x1] %vm882_vm3, %v9083_v18  ;;  %892 = vst.msk [vmem:[#allocation2 + $0x2c] sm:$0x1] %vm882_vm3, %v9083_v18  ;;  %v2025_v36 = vor.u32 %v2024_v34, %v2020_v33  ;;  %vm1356_vm7 = vsmask.f32 7938 }
  0x1e   : > { %895 = vst.msk [vmem:[#allocation2 + $0x38] sm:$0x1] %vm882_vm3, %v9083_v18  ;;  %898 = vst.msk [vmem:[#allocation2 + $0x44] sm:$0x1] %vm882_vm3, %v9083_v18  ;;  %v2016_v38 = vrot.slane %v2015_v35, 4 }
  0x1f   : > { %901 = vst.msk [vmem:[#allocation2 + $0x50] sm:$0x1] %vm882_vm3, %v9083_v18  ;;  %904 = vst.msk [vmem:[#allocation2 + $0x5c] sm:$0x1] %vm882_vm3, %v9083_v18  ;;  %v2026_v40 = vrot.slane %v2025_v36, 4 }
  0x20   : > { %907 = vst.msk [vmem:[#allocation2 + $0x68] sm:$0x1] %vm882_vm3, %v9083_v18  ;;  %910 = vst.msk [vmem:[#allocation2 + $0x74] sm:$0x1] %vm882_vm3, %v9083_v18  ;;  %v2021_v42 = vsel %vm9273_vm6, %v2016_v38, %v2020_v33  ;;  %vm1031_vm8 = vsmask.f32 256 }
  0x21   : > { %913 = vst.msk [vmem:[#allocation2 + $0x80] sm:$0x1] %vm882_vm3, %v9083_v18  ;;  %916 = vst.msk [vmem:[#allocation2 + $0x8c] sm:$0x1] %vm882_vm3, %v9083_v18  ;;  %vm1032_vm9 = vsmask.f32 4368 }
  0x22   : > { %8572 = vmatmul.mubr.msk.bf16.gmra.mrb[8].mxu0 %vm555_vm1, %v8996_v7  ;;  %919 = vst.msk [vmem:[#allocation2 + $0x98] sm:$0x1] %vm882_vm3, %v9083_v18  ;;  %922 = vst.msk [vmem:[#allocation2 + $0xa4] sm:$0x1] %vm882_vm3, %v9083_v18  ;;  %v1367_v20 = vld [vmem:[#allocation2 + $0x18] sm:$0xf] }
  0x23   : > { %8575 = vmatprep.mubr.msk.bf16.mxu0 %vm555_vm1, %v8997_v8  ;;  %925 = vst.msk [vmem:[#allocation2 + $0xb0] sm:$0x1] %vm882_vm3, %v9083_v18  ;;  %928 = vst.msk [vmem:[#allocation2 + $0xbc] sm:$0x1] %vm882_vm3, %v9083_v18  ;;  %v1927_v32 = vld [vmem:[#allocation2 + $0x8] sm:$0x1] }
  0x24   : > { %931 = vst.msk [vmem:[#allocation2 + $0xc8] sm:$0x1] %vm882_vm3, %v9083_v18  ;;  %934 = vst.msk [vmem:[#allocation2 + $0xd4] sm:$0x1] %vm882_vm3, %v9083_v18  ;;  %v2028_v37 = vshll.u32 %v1927_v32, 16 }
  0x25   : > { %vm9312_vm10 = vmand %vm879_vm2, %vm1356_vm7  ;;  %v1358_v27 = vld [vmem:[#allocation2 + $0xc] sm:$0xf]  ;;  %v1371_v34 = vld [vmem:[#allocation2 + $0x20] sm:$0x1] }
  0x26   : > { %v2030_v41 = vrot.slane %v2028_v37, 5  ;;  %vm9319_vm11 = vmor %vm1031_vm8, %vm1032_vm9 }
  0x27   : > { %vm9325_vm12 = vmand %vm882_vm3, %vm1031_vm8 }
  0x28   : > { %v2031_v43 = vsel %vm9273_vm6, %v2026_v40, %v2030_v41  ;;  %v1364_v41 = vld [vmem:[#allocation2 + $0x14] sm:$0x1]  ;;  %vm9678_vm15 = vmor %vm2846_vm13, %vm2847_vm14 }
  0x29   : > { %v7956_v44 = vcombine.low %v2021_v42, %v2031_v43 }
  0x2a   : > { %8576 = vmatmul.mubr.msk.bf16.gmra.mrb[12].mxu0 %vm555_vm1, %v8998_v9 }
  0x2b   : > { %8579 = vmatprep.mubr.msk.bf16.mxu0 %vm555_vm1, %v8999_v10 }
  0x32   : > { %8580 = vmatmul.mubr.msk.bf16.gmra.mrb[16].mxu0 %vm555_vm1, %v9000_v11 }
  0x33   : > { %8583 = vmatprep.mubr.msk.bf16.mxu0 %vm555_vm1, %v9001_v12 }
  0x3a   : > { %8584 = vmatmul.mubr.msk.bf16.gmra.mrb[20].mxu0 %vm555_vm1, %v9002_v13 }
  0x3b   : > { %8587 = vmatprep.mubr.msk.bf16.mxu0 %vm555_vm1, %v9003_v14 }
  0x42   : > { %8588 = vmatmul.mubr.msk.bf16.gmra.mrb[24].mxu0 %vm555_vm1, %v9004_v15 }
  0x43   : > { %8591 = vmatprep.mubr.msk.bf16.mxu0 %vm555_vm1, %v9005_v16 }
  0x4a   : > { %8592 = vmatmul.mubr.msk.bf16.gmra.mrb[28].mxu0 %vm555_vm1, %v9006_v17 }
  0x4b   : > { %8631 = vmatprep.mubr.msk.bf16.mxu0 %vm555_vm1, %v7956_v44 }
  0xe5   : > { %v8565_v47 = vpop.f32.mrb[0].mxu0 }
  0xe6   : > { %v778_v49 = vmul.f32 %v8565_v47, %v9289_v46  ;;  %v642_v50 = vpop.f32.mrb[1].mxu0 }
  0xe7   : > { %v776_v51 = vmul.f32 %v9289_v46, %v642_v50  ;;  %v8566_v52 = vpop.f32.mrb[2].mxu0 }
  0xe8   : > { %v817_v53 = vadd.f32 %v9294_v48, %v778_v49  ;;  %v779_v54 = vmul.f32 %v8566_v52, %v9289_v46  ;;  %v645_v55 = vpop.f32.mrb[3].mxu0 }
  0xe9   : > { %v815_v56 = vadd.f32 %v9294_v48, %v776_v51  ;;  %v777_v57 = vmul.f32 %v9289_v46, %v645_v55  ;;  %v8037_v55 = vld [vmem:[%s11380_s4 + $0x6] sm:$0x3] }
  0xea   : > { %v849_v58 = vmax.f32 %v817_v53, 0.0  ;;  %v818_v59 = vadd.f32 %v9294_v48, %v779_v54  ;;  %8973 = vmatprep.subr.msk.bf16.mxu0 %vm604_vm0, %v8037_v55 }
  0xeb   : > { %v847_v60 = vmax.f32 %v815_v56, 0.0  ;;  %v816_v61 = vadd.f32 %v9294_v48, %v777_v57 }
  0xec   : > { %v8327_v62 = vpack.c.bf16 %v849_v58, %v849_v58  ;;  %v850_v63 = vmax.f32 %v818_v59, 0.0 }
  0xed   : > { %v8325_v0 = vpack.c.bf16 %v847_v60, %v847_v60  ;;  %v848_v1 = vmax.f32 %v816_v61, 0.0  ;;  %v8569_v2 = vpop.f32.mrb[4].mxu0 }
  0xee   : > { %v1052_v4 = vshrl.u32 %v8327_v62, 16  ;;  %v1055_v5 = vshll.u32 %v8327_v62, 16  ;;  %v8328_v6 = vpack.c.bf16 %v850_v63, %v850_v63  ;;  %v782_v7 = vmul.f32 %v8569_v2, %v9289_v46  ;;  %v658_v8 = vpop.f32.mrb[5].mxu0  ;;  %v1381_v2 = vld [vmem:[#allocation2 + $0x30] sm:$0xf] }
  0xef   : > { %v1035_v9 = vshrl.u32 %v8325_v0, 16  ;;  %v1038_v10 = vshll.u32 %v8325_v0, 16  ;;  %v8326_v11 = vpack.c.bf16 %v848_v1, %v848_v1  ;;  %v780_v12 = vmul.f32 %v9289_v46, %v658_v8  ;;  %v8570_v13 = vpop.f32.mrb[6].mxu0 }
  0xf0   : > { %v1054_v14 = vrot.slane %v1052_v4, 7  ;;  %v1060_v15 = vshrl.u32 %v8328_v6, 16  ;;  %v1063_v16 = vshll.u32 %v8328_v6, 16  ;;  %v821_v17 = vadd.f32 %v9294_v48, %v782_v7  ;;  %v661_v18 = vpop.f32.mrb[7].mxu0 }
  0xf1   : > { %v1037_v21 = vrot.slane %v1035_v9, 7  ;;  %v1043_v22 = vshrl.u32 %v8326_v11, 16  ;;  %v1046_v23 = vshll.u32 %v8326_v11, 16  ;;  %v819_v24 = vadd.f32 %v9294_v48, %v780_v12 }
  0xf2   : > { %v1057_v25 = vor.u32 %v1055_v5, %v1054_v14  ;;  %v1058_v26 = vrot.slane %v1054_v14, 4  ;;  %v1062_v29 = vrot.slane %v1060_v15, 7  ;;  %v853_v30 = vmax.f32 %v821_v17, 0.0 }
  0xf3   : > { %v1040_v31 = vor.u32 %v1038_v10, %v1037_v21  ;;  %v1041_v32 = vrot.slane %v1037_v21, 4  ;;  %v1045_v35 = vrot.slane %v1043_v22, 7  ;;  %v851_v36 = vmax.f32 %v819_v24, 0.0  ;;  %v1374_v10 = vld [vmem:[#allocation2 + $0x24] sm:$0xf] }
  0xf4   : > { %v1368_v37 = vsel %vm9312_vm10, %v1057_v25, %v1367_v20  ;;  %v1065_v38 = vor.u32 %v1063_v16, %v1062_v29  ;;  %v1067_v40 = vrot.slane %v1062_v29, 4  ;;  %v8331_v42 = vpack.c.bf16 %v853_v30, %v853_v30 }
  0xf5   : > { %1369 = vst [vmem:[#allocation2 + $0x18] sm:$0xf] %v1368_v37  ;;  %v1359_v43 = vsel %vm9312_vm10, %v1040_v31, %v1358_v27  ;;  %v1048_v44 = vor.u32 %v1046_v23, %v1045_v35  ;;  %v1050_v45 = vrot.slane %v1045_v35, 4  ;;  %v8329_v47 = vpack.c.bf16 %v851_v36, %v851_v36  ;;  %v8573_v49 = vpop.f32.mrb[8].mxu0 }
  0xf6   : > { %1360 = vst [vmem:[#allocation2 + $0xc] sm:$0xf] %v1359_v43  ;;  %v1066_v50 = vsel %vm9319_vm11, %v1058_v26, %v1065_v38  ;;  %v1372_v51 = vsel %vm9325_vm12, %v1067_v40, %v1371_v34  ;;  %v1086_v52 = vshrl.u32 %v8331_v42, 16  ;;  %v1089_v53 = vshll.u32 %v8331_v42, 16  ;;  %v674_v54 = vpop.f32.mrb[9].mxu0 }
  0xf7   : > { %1370 = vst.msk [vmem:[#allocation2 + $0x1c] sm:$0xf] %vm879_vm2, %v1066_v50  ;;  %1373 = vst [vmem:[#allocation2 + $0x20] sm:$0x1] %v1372_v51  ;;  %v1049_v56 = vsel %vm9319_vm11, %v1041_v32, %v1048_v44  ;;  %v1365_v57 = vsel %vm9325_vm12, %v1050_v45, %v1364_v41  ;;  %v1069_v58 = vshrl.u32 %v8329_v47, 16  ;;  %v1072_v59 = vshll.u32 %v8329_v47, 16 }
  0xf8   : > { %v8574_v60 = vpop.f32.mrb[10].mxu0  ;;  %1361 = vst.msk [vmem:[#allocation2 + $0x10] sm:$0xf] %vm879_vm2, %v1049_v56  ;;  %1366 = vst [vmem:[#allocation2 + $0x14] sm:$0x1] %v1365_v57  ;;  %v9347_v61 = vrot.slane %v1086_v52, 7  ;;  %v783_v62 = vmul.f32 %v8570_v13, %v9289_v46  ;;  %v781_v63 = vmul.f32 %v9289_v46, %v661_v18  ;;  %v786_v0 = vmul.f32 %v8573_v49, %v9289_v46 }
  0xf9   : > { %v677_v1 = vpop.f32.mrb[11].mxu0  ;;  %v9352_v4 = vrot.slane %v1069_v58, 7  ;;  %v784_v5 = vmul.f32 %v9289_v46, %v674_v54  ;;  %v787_v6 = vmul.f32 %v8574_v60, %v9289_v46  ;;  %v1385_v54 = vld [vmem:[#allocation2 + $0x38] sm:$0x1]  ;;  %v1378_v58 = vld [vmem:[#allocation2 + $0x2c] sm:$0x1] }
  0xfa   : > { %v785_v7 = vmul.f32 %v9289_v46, %v677_v1  ;;  %v1091_v8 = vor.u32 %v1089_v53, %v9347_v61  ;;  %v1092_v9 = vrot.slane %v9347_v61, 4  ;;  %v822_v11 = vadd.f32 %v9294_v48, %v783_v62  ;;  %v1395_v60 = vld [vmem:[#allocation2 + $0x48] sm:$0xf] }
  0xfb   : > { %v820_v12 = vadd.f32 %v9294_v48, %v781_v63  ;;  %v1074_v13 = vor.u32 %v1072_v59, %v9352_v4  ;;  %v1075_v14 = vrot.slane %v9352_v4, 4  ;;  %v825_v15 = vadd.f32 %v9294_v48, %v786_v0 }
  0xfc   : > { %v823_v16 = vadd.f32 %v9294_v48, %v784_v5  ;;  %v1382_v17 = vsel %vm9312_vm10, %v1091_v8, %v1381_v2  ;;  %v854_v18 = vmax.f32 %v822_v11, 0.0  ;;  %v826_v21 = vadd.f32 %v9294_v48, %v787_v6  ;;  %v1388_v6 = vld [vmem:[#allocation2 + $0x3c] sm:$0xf] }
  0xfd   : > { %v852_v20 = vmax.f32 %v820_v12, 0.0  ;;  %1383 = vst [vmem:[#allocation2 + $0x30] sm:$0xf] %v1382_v17  ;;  %v1375_v22 = vsel %vm9312_vm10, %v1074_v13, %v1374_v10  ;;  %v857_v23 = vmax.f32 %v825_v15, 0.0  ;;  %v824_v25 = vadd.f32 %v9294_v48, %v785_v7  ;;  %v8577_v26 = vpop.f32.mrb[12].mxu0 }
  0xfe   : > { %v855_v24 = vmax.f32 %v823_v16, 0.0  ;;  %1376 = vst [vmem:[#allocation2 + $0x24] sm:$0xf] %v1375_v22  ;;  %v8332_v27 = vpack.c.bf16 %v854_v18, %v854_v18  ;;  %v858_v30 = vmax.f32 %v826_v21, 0.0  ;;  %v790_v31 = vmul.f32 %v8577_v26, %v9289_v46  ;;  %v690_v32 = vpop.f32.mrb[13].mxu0  ;;  %v9009_v47 = vld [vmem:[#allocation2 + $0x18] sm:$0xff]  }
  0xff   : > { %v8330_v29 = vpack.c.bf16 %v852_v20, %v852_v20  ;;  %v8335_v34 = vpack.c.bf16 %v857_v23, %v857_v23  ;;  %v856_v36 = vmax.f32 %v824_v25, 0.0  ;;  %v788_v37 = vmul.f32 %v9289_v46, %v690_v32  ;;  %v8578_v38 = vpop.f32.mrb[14].mxu0  ;;  %v9008_v40 = vld [vmem:[#allocation2 + $0xc] sm:$0xff]  }
 0x100   : > { %v8333_v35 = vpack.c.bf16 %v855_v24, %v855_v24  ;;  %v1094_v41 = vshrl.u32 %v8332_v27, 16  ;;  %v1097_v42 = vshll.u32 %v8332_v27, 16  ;;  %v693_v45 = vpop.f32.mrb[15].mxu0  ;;  %8598 = vmatmul.mubr.msk.bf16.vlgmr.msra.gmra.mrb[0].mxu1 %vm555_vm1, %v9008_v40  ;;  %v8336_v56 = vpack.c.bf16 %v858_v30, %v858_v30  ;;  %v1399_v32 = vld [vmem:[#allocation2 + $0x50] sm:$0x1] }
 0x101   : > { %v1077_v43 = vshrl.u32 %v8330_v29, 16  ;;  %v1080_v44 = vshll.u32 %v8330_v29, 16  ;;  %v1120_v49 = vshrl.u32 %v8335_v34, 16  ;;  %v1123_v50 = vshll.u32 %v8335_v34, 16  ;;  %8664 = vmatpush3.bf16.msra.mxu1 %v9305_v3  ;;  %8601 = vmatprep.mubr.msk.bf16.mxu1 %vm555_vm1, %v9009_v47 }
 0x102   : > { %v1103_v51 = vshrl.u32 %v8333_v35, 16  ;;  %v1106_v52 = vshll.u32 %v8333_v35, 16  ;;  %v1096_v53 = vrot.slane %v1094_v41, 7  ;;  %v8334_v57 = vpack.c.bf16 %v856_v36, %v856_v36 }
 0x103   : > { %v1079_v55 = vrot.slane %v1077_v43, 7  ;;  %v1122_v59 = vrot.slane %v1120_v49, 7  ;;  %v829_v63 = vadd.f32 %v9294_v48, %v790_v31  ;;  %v827_v0 = vadd.f32 %v9294_v48, %v788_v37  ;;  %v8070_v31 = vld [vmem:[%s11380_s4 + $0x8] sm:$0x3] }
 0x104   : > { %v9376_v62 = vrot.slane %v1103_v51, 7  ;;  %v1099_v1 = vor.u32 %v1097_v42, %v1096_v53  ;;  %v1101_v2 = vrot.slane %v1096_v53, 4  ;;  %v1128_v18 = vshrl.u32 %v8336_v56, 16  ;;  %8974 = vmatprep.subr.msk.bf16.mxu1 %vm604_vm0, %v8070_v31  ;;  %v1392_v42 = vld [vmem:[#allocation2 + $0x44] sm:$0x1] }
 0x105   : > { %v1082_v4 = vor.u32 %v1080_v44, %v1079_v55  ;;  %v1084_v5 = vrot.slane %v1079_v55, 4  ;;  %v1125_v7 = vor.u32 %v1123_v50, %v1122_v59  ;;  %v1126_v8 = vrot.slane %v1122_v59, 4  ;;  %v8581_v11 = vpop.f32.mrb[16].mxu0  ;;  %v1402_v59 = vld [vmem:[#allocation2 + $0x54] sm:$0xf] }
 0x106   : > { %v1108_v3 = vor.u32 %v1106_v52, %v9376_v62  ;;  %v1109_v10 = vrot.slane %v9376_v62, 4  ;;  %v1100_v12 = vsel %vm9319_vm11, %v1092_v9, %v1099_v1  ;;  %v1386_v13 = vsel %vm9325_vm12, %v1101_v2, %v1385_v54  ;;  %v706_v17 = vpop.f32.mrb[17].mxu0  ;;  %v1409_v52 = vld [vmem:[#allocation2 + $0x60] sm:$0xf] }
 0x107   : > { %v1083_v15 = vsel %vm9319_vm11, %v1075_v14, %v1082_v4  ;;  %v1379_v16 = vsel %vm9325_vm12, %v1084_v5, %v1378_v58  ;;  %1384 = vst.msk [vmem:[#allocation2 + $0x34] sm:$0xf] %vm879_vm2, %v1100_v12  ;;  %1387 = vst [vmem:[#allocation2 + $0x38] sm:$0x1] %v1386_v13  ;;  %v1396_v61 = vsel %vm9312_vm10, %v1125_v7, %v1395_v60  ;;  %v1131_v20 = vshll.u32 %v8336_v56, 16  ;;  %v8582_v21 = vpop.f32.mrb[18].mxu0 }
 0x108   : > { %1377 = vst.msk [vmem:[#allocation2 + $0x28] sm:$0xf] %vm879_vm2, %v1083_v15  ;;  %1380 = vst [vmem:[#allocation2 + $0x2c] sm:$0x1] %v1379_v16  ;;  %v1389_v9 = vsel %vm9312_vm10, %v1108_v3, %v1388_v6  ;;  %v1111_v14 = vshrl.u32 %v8334_v57, 16  ;;  %v1114_v22 = vshll.u32 %v8334_v57, 16  ;;  %v791_v27 = vmul.f32 %v8578_v38, %v9289_v46 }
 0x109   : > { %1397 = vst [vmem:[#allocation2 + $0x48] sm:$0xf] %v1396_v61  ;;  %1390 = vst [vmem:[#allocation2 + $0x3c] sm:$0xf] %v1389_v9  ;;  %v861_v23 = vmax.f32 %v829_v63, 0.0  ;;  %v859_v24 = vmax.f32 %v827_v0, 0.0  ;;  %v789_v29 = vmul.f32 %v9289_v46, %v693_v45  ;;  %v794_v30 = vmul.f32 %v8581_v11, %v9289_v46 }
 0x10a   : > { %v9398_v25 = vpop.f32.mrb[19].mxu0  ;;  %v1130_v26 = vrot.slane %v1128_v18, 7  ;;  %v1113_v34 = vrot.slane %v1111_v14, 7  ;;  %v792_v37 = vmul.f32 %v9289_v46, %v706_v17  ;;  %v830_v38 = vadd.f32 %v9294_v48, %v791_v27  ;;  %v1406_v27 = vld [vmem:[#allocation2 + $0x5c] sm:$0x1] }
 0x10b   : > { %v8339_v35 = vpack.c.bf16 %v861_v23, %v861_v23  ;;  %v8337_v36 = vpack.c.bf16 %v859_v24, %v859_v24  ;;  %v828_v43 = vadd.f32 %v9294_v48, %v789_v29  ;;  %v833_v1 = vadd.f32 %v9294_v48, %v794_v30 }
 0x10c   : > { %v1133_v40 = vor.u32 %v1131_v20, %v1130_v26  ;;  %v1135_v41 = vrot.slane %v1130_v26, 4  ;;  %v1116_v44 = vor.u32 %v1114_v22, %v1113_v34  ;;  %v1118_v45 = vrot.slane %v1113_v34, 4  ;;  %v9439_v20 = vld [vmem:[#allocation2 + $0xc] sm:$0xf]  ;;  %v1413_v26 = vld [vmem:[#allocation2 + $0x68] sm:$0x1] }
 0x10d   : > { %v1154_v47 = vshrl.u32 %v8339_v35, 16  ;;  %v1157_v49 = vshll.u32 %v8339_v35, 16  ;;  %v1137_v53 = vshrl.u32 %v8337_v36, 16  ;;  %v1140_v54 = vshll.u32 %v8337_v36, 16  ;;  %v9414_v55 = vpop.f32.mrb[20].mxu0 }
 0x10e   : > { %v1134_v50 = vsel %vm9319_vm11, %v1126_v8, %v1133_v40  ;;  %v1400_v51 = vsel %vm9325_vm12, %v1135_v41, %v1399_v32  ;;  %v1117_v56 = vsel %vm9319_vm11, %v1109_v10, %v1116_v44  ;;  %v1393_v57 = vsel %vm9325_vm12, %v1118_v45, %v1392_v42  ;;  %v9011_v4 = vld [vmem:[#allocation2 + $0x30] sm:$0xff]   ;;  %v9426_v5 = vpop.f32.mrb[21].mxu0  ;;  %v1423_v41 = vld [vmem:[#allocation2 + $0x78] sm:$0xf] }
 0x10f   : > { %1398 = vst.msk [vmem:[#allocation2 + $0x4c] sm:$0xf] %vm879_vm2, %v1134_v50  ;;  %1401 = vst [vmem:[#allocation2 + $0x50] sm:$0x1] %v1400_v51  ;;  %v1156_v58 = vrot.slane %v1154_v47, 7  ;;  %v862_v60 = vmax.f32 %v830_v38, 0.0  ;;  %v831_v2 = vadd.f32 %v9294_v48, %v792_v37  ;;  %v795_v3 = vmul.f32 %v8582_v21, %v9289_v46 }
 0x110   : > { %v9010_v62 = vld [vmem:[#allocation2 + $0x24] sm:$0xff]   ;;  %1391 = vst.msk [vmem:[#allocation2 + $0x40] sm:$0xf] %vm879_vm2, %v1117_v56  ;;  %1394 = vst [vmem:[#allocation2 + $0x44] sm:$0x1] %v1393_v57  ;;  %v9422_v63 = vrot.slane %v1137_v53, 7  ;;  %v793_v31 = vmul.f32 %v9289_v46, %v9398_v25 }
 0x111   : > { %v860_v0 = vmax.f32 %v828_v43, 0.0  ;;  %v1159_v6 = vor.u32 %v1157_v49, %v1156_v58  ;;  %v1160_v7 = vrot.slane %v1156_v58, 4  ;;  %v8340_v8 = vpack.c.bf16 %v862_v60, %v862_v60  ;;  %8602 = vmatmul.mubr.msk.bf16.gmra.mrb[4].mxu1 %vm555_vm1, %v9010_v62  ;;  %v9430_v10 = vpop.f32.mrb[22].mxu0  ;;  %v1929_v57 = vld [vmem:[#allocation2 + $0x10] sm:$0xf] }
 0x112   : > { %v1142_v11 = vor.u32 %v1140_v54, %v9422_v63  ;;  %v1143_v12 = vrot.slane %v9422_v63, 4  ;;  %v865_v15 = vmax.f32 %v833_v1, 0.0  ;;  %8605 = vmatprep.mubr.msk.bf16.mxu1 %vm555_vm1, %v9011_v4  ;;  %v9435_v16 = vpop.f32.mrb[23].mxu0  ;;  %v863_v18 = vmax.f32 %v831_v2, 0.0  ;;  %v1416_v54 = vld [vmem:[#allocation2 + $0x6c] sm:$0xf] }
 0x113   : > { %v8338_v13 = vpack.c.bf16 %v860_v0, %v860_v0  ;;  %v1410_v17 = vsel %vm9312_vm10, %v1159_v6, %v1409_v52  ;;  %v1162_v61 = vshrl.u32 %v8340_v8, 16  ;;  %v1165_v9 = vshll.u32 %v8340_v8, 16  ;;  %v1930_v0 = vld [vmem:[#allocation2 + $0x14] sm:$0x1]  ;;  %v1931_v1 = vld [vmem:[#allocation2 + $0x18] sm:$0xf] }
 0x114   : > { %1411 = vst [vmem:[#allocation2 + $0x60] sm:$0xf] %v1410_v17  ;;  %v1403_v21 = vsel %vm9312_vm10, %v1142_v11, %v1402_v59  ;;  %v8343_v23 = vpack.c.bf16 %v865_v15, %v865_v15  ;;  %v8341_v29 = vpack.c.bf16 %v863_v18, %v863_v18  ;;  %v834_v30 = vadd.f32 %v9294_v48, %v795_v3 }
 0x115   : > { %v1145_v14 = vshrl.u32 %v8338_v13, 16  ;;  %v1148_v22 = vshll.u32 %v8338_v13, 16  ;;  %1404 = vst [vmem:[#allocation2 + $0x54] sm:$0xf] %v1403_v21  ;;  %v1164_v24 = vrot.slane %v1162_v61, 7  ;;  %v2033_v36 = vshrl.u32 %v9439_v20, 16 }
 0x116   : > { %v1188_v34 = vshrl.u32 %v8343_v23, 16  ;;  %v1191_v35 = vshll.u32 %v8343_v23, 16  ;;  %v1171_v42 = vshrl.u32 %v8341_v29, 16  ;;  %v1174_v38 = vshll.u32 %v8341_v29, 16  ;;  %v9013_v50 = vld [vmem:[#allocation2 + $0x48] sm:$0xff]   ;;  %v9449_v51 = vpop.f32.mrb[24].mxu0 }
 0x117   : > { %v1147_v32 = vrot.slane %v1145_v14, 7  ;;  %v1167_v37 = vor.u32 %v1165_v9, %v1164_v24  ;;  %v1169_v40 = vrot.slane %v1164_v24, 4  ;;  %v9012_v43 = vld [vmem:[#allocation2 + $0x3c] sm:$0xff]   ;;  %v866_v49 = vmax.f32 %v834_v30, 0.0  ;;  %v9459_v58 = vpop.f32.mrb[25].mxu0 }
 0x118   : > { %v9447_v47 = vrot.slane %v1188_v34, 7  ;;  %v9455_v53 = vrot.slane %v1171_v42, 7  ;;  %v832_v56 = vadd.f32 %v9294_v48, %v793_v31  ;;  %v9469_v2 = vpop.f32.mrb[26].mxu0  ;;  %v2036_v13 = vshll.u32 %v9439_v20, 16  ;;  %v1932_v21 = vld [vmem:[#allocation2 + $0x1c] sm:$0xf] }
 0x119   : > { %v1150_v44 = vor.u32 %v1148_v22, %v1147_v32  ;;  %v1152_v45 = vrot.slane %v1147_v32, 4  ;;  %v1168_v25 = vsel %vm9319_vm11, %v1160_v7, %v1167_v37  ;;  %v1414_v52 = vsel %vm9325_vm12, %v1169_v40, %v1413_v26  ;;  %8606 = vmatmul.mubr.msk.bf16.gmra.mrb[8].mxu1 %vm555_vm1, %v9012_v43  ;;  %v9474_v3 = vpop.f32.mrb[27].mxu0  ;;  %v1427_v14 = vld [vmem:[#allocation2 + $0x80] sm:$0x1]  ;;  %v1420_v34 = vld [vmem:[#allocation2 + $0x74] sm:$0x1] }
 0x11a   : > { %1412 = vst.msk [vmem:[#allocation2 + $0x64] sm:$0xf] %vm879_vm2, %v1168_v25  ;;  %1415 = vst [vmem:[#allocation2 + $0x68] sm:$0x1] %v1414_v52  ;;  %v1193_v62 = vor.u32 %v1191_v35, %v9447_v47  ;;  %v1194_v63 = vrot.slane %v9447_v47, 4  ;;  %8609 = vmatprep.mubr.msk.bf16.mxu1 %vm555_vm1, %v9013_v50  ;;  %v1176_v4 = vor.u32 %v1174_v38, %v9455_v53  ;;  %v1177_v6 = vrot.slane %v9455_v53, 4 }
 0x11b   : > { %v1151_v59 = vsel %vm9319_vm11, %v1143_v12, %v1150_v44  ;;  %v1407_v60 = vsel %vm9325_vm12, %v1152_v45, %v1406_v27  ;;  %v8344_v7 = vpack.c.bf16 %v866_v49, %v866_v49  ;;  %v864_v8 = vmax.f32 %v832_v56, 0.0  ;;  %v1933_v40 = vld [vmem:[#allocation2 + $0x20] sm:$0x1] }
 0x11c   : > { %1405 = vst.msk [vmem:[#allocation2 + $0x58] sm:$0xf] %vm879_vm2, %v1151_v59  ;;  %1408 = vst [vmem:[#allocation2 + $0x5c] sm:$0x1] %v1407_v60  ;;  %v1424_v11 = vsel %vm9312_vm10, %v1193_v62, %v1423_v41  ;;  %v2035_v12 = vrot.slane %v2033_v36, 4  ;;  %v2042_v15 = vshll.u32 %v1929_v57, 16  ;;  %v1417_v17 = vsel %vm9312_vm10, %v1176_v4, %v1416_v54 }
 0x11d   : > { %1425 = vst [vmem:[#allocation2 + $0x78] sm:$0xf] %v1424_v11  ;;  %v1196_v61 = vshrl.u32 %v8344_v7, 16  ;;  %v1199_v9 = vshll.u32 %v8344_v7, 16  ;;  %v8342_v18 = vpack.c.bf16 %v864_v8, %v864_v8  ;;  %1418 = vst [vmem:[#allocation2 + $0x6c] sm:$0xf] %v1417_v17 }
 0x11e   : > { %v2038_v22 = vrot.slane %v2036_v13, 5  ;;  %v2044_v23 = vrot.slane %v2042_v15, 5  ;;  %v2046_v24 = vshrl.u32 %v1929_v57, 16  ;;  %v2052_v26 = vshll.u32 %v1930_v0, 16  ;;  %v9481_v27 = vpop.f32.mrb[28].mxu0 }
 0x11f   : > { %v1198_v29 = vrot.slane %v1196_v61, 7  ;;  %v1179_v30 = vshrl.u32 %v8342_v18, 16  ;;  %v1182_v20 = vshll.u32 %v8342_v18, 16  ;;  %v2057_v31 = vshrl.u32 %v1931_v1, 16  ;;  %v9483_v32 = vpop.f32.mrb[29].mxu0 }
 0x120   : > { %v2039_v35 = vor.u32 %v2038_v22, %v2035_v12  ;;  %v2048_v36 = vrot.slane %v2046_v24, 4  ;;  %v2054_v37 = vrot.slane %v2052_v26, 5  ;;  %v2060_v41 = vshll.u32 %v1931_v1, 16  ;;  %v9485_v42 = vpop.f32.mrb[30].mxu0  ;;  %v1934_v17 = vld [vmem:[#allocation2 + $0x24] sm:$0xf] }
 0x121   : > { %v1201_v38 = vor.u32 %v1199_v9, %v1198_v29  ;;  %v1203_v43 = vrot.slane %v1198_v29, 4  ;;  %v1181_v44 = vrot.slane %v1179_v30, 7  ;;  %v2059_v45 = vrot.slane %v2057_v31, 4  ;;  %v9015_v59 = vld [vmem:[#allocation2 + $0x60] sm:$0xff]   ;;  %v9491_v60 = vpop.f32.mrb[31].mxu0 }
 0x122   : > { %v2040_v47 = vrot.slane %v2039_v35, 4  ;;  %v2049_v49 = vor.u32 %v2048_v36, %v2044_v23  ;;  %v2062_v50 = vrot.slane %v2060_v41, 5  ;;  %v2066_v25 = vshll.u32 %v1932_v21, 16 }
 0x123   : > { %v9014_v52 = vld [vmem:[#allocation2 + $0x54] sm:$0xff]   ;;  %v1202_v53 = vsel %vm9319_vm11, %v1194_v63, %v1201_v38  ;;  %v1428_v54 = vsel %vm9325_vm12, %v1203_v43, %v1427_v14  ;;  %v1184_v56 = vor.u32 %v1182_v20, %v1181_v44  ;;  %v1186_v57 = vrot.slane %v1181_v44, 4  ;;  %v1935_v14 = vld [vmem:[#allocation2 + $0x28] sm:$0xf] }
 0x124   : > { %1426 = vst.msk [vmem:[#allocation2 + $0x7c] sm:$0xf] %vm879_vm2, %v1202_v53  ;;  %1429 = vst [vmem:[#allocation2 + $0x80] sm:$0x1] %v1428_v54  ;;  %v2045_v62 = vsel %vm9273_vm6, %v2040_v47, %v2044_v23  ;;  %v2050_v0 = vrot.slane %v2049_v49, 4  ;;  %v2063_v1 = vor.u32 %v2062_v50, %v2059_v45  ;;  %v2068_v4 = vrot.slane %v2066_v25, 5  ;;  %8610 = vmatmul.mubr.msk.bf16.gmra.mrb[12].mxu1 %vm555_vm1, %v9014_v52 }
 0x125   : > { %v1185_v63 = vsel %vm9319_vm11, %v1177_v6, %v1184_v56  ;;  %v1421_v7 = vsel %vm9325_vm12, %v1186_v57, %v1420_v34  ;;  %v2070_v8 = vshrl.u32 %v1932_v21, 16  ;;  %v2076_v11 = vshll.u32 %v1933_v40, 16  ;;  %8613 = vmatprep.mubr.msk.bf16.mxu1 %vm555_vm1, %v9015_v59  ;;  %v1936_v56 = vld [vmem:[#allocation2 + $0x2c] sm:$0x1]  ;;  %v1437_v59 = vld [vmem:[#allocation2 + $0x90] sm:$0xf] }
 0x126   : > { %1419 = vst.msk [vmem:[#allocation2 + $0x70] sm:$0xf] %vm879_vm2, %v1185_v63  ;;  %1422 = vst [vmem:[#allocation2 + $0x74] sm:$0x1] %v1421_v7  ;;  %v2055_v12 = vsel %vm9273_vm6, %v2050_v0, %v2054_v37  ;;  %v2064_v13 = vrot.slane %v2063_v1, 4  ;;  %v798_v15 = vmul.f32 %v9414_v55, %v9289_v46  ;;  %v796_v6 = vmul.f32 %v9289_v46, %v9426_v5 }
 0x127   : > { %v7957_v61 = vcombine.low %v2045_v62, %v2055_v12  ;;  %v2072_v9 = vrot.slane %v2070_v8, 4  ;;  %v2078_v18 = vrot.slane %v2076_v11, 5  ;;  %v799_v21 = vmul.f32 %v9430_v10, %v9289_v46  ;;  %v1430_v0 = vld [vmem:[#allocation2 + $0x84] sm:$0xf] }
 0x128   : > { %v2069_v22 = vsel %vm9273_vm6, %v2064_v13, %v2068_v4  ;;  %v837_v23 = vadd.f32 %v9294_v48, %v798_v15  ;;  %v835_v24 = vadd.f32 %v9294_v48, %v796_v6  ;;  %v797_v55 = vmul.f32 %v9289_v46, %v9435_v16 }
 0x129   : > { %8632 = vmatmul.mubr.msk.bf16.vlgmr.msra.gmra.mrb[32].mxu0 %vm555_vm1, %v7957_v61  ;;  %v2073_v5 = vor.u32 %v2072_v9, %v2068_v4  ;;  %v838_v26 = vadd.f32 %v9294_v48, %v799_v21  ;;  %v2081_v29 = vshrl.u32 %v1934_v17, 16  ;;  %v2084_v30 = vshll.u32 %v1934_v17, 16 }
 0x12a   : > { %v869_v20 = vmax.f32 %v837_v23, 0.0  ;;  %v867_v10 = vmax.f32 %v835_v24, 0.0  ;;  %v836_v31 = vadd.f32 %v9294_v48, %v797_v55  ;;  %v2090_v34 = vshll.u32 %v1935_v14, 16 }
 0x12b   : > { %v2074_v35 = vrot.slane %v2073_v5, 4  ;;  %v870_v36 = vmax.f32 %v838_v26, 0.0  ;;  %v2083_v37 = vrot.slane %v2081_v29, 4  ;;  %v2086_v40 = vrot.slane %v2084_v30, 5  ;;  %v9017_v57 = vld [vmem:[#allocation2 + $0x78] sm:$0xff]  }
 0x12c   : > { %v8347_v41 = vpack.c.bf16 %v869_v20, %v869_v20  ;;  %v8345_v38 = vpack.c.bf16 %v867_v10, %v867_v10  ;;  %v868_v43 = vmax.f32 %v836_v31, 0.0  ;;  %v9520_v16 = vrot.slane %v2090_v34, 5  ;;  %v1937_v5 = vld [vmem:[#allocation2 + $0x30] sm:$0xf]  ;;  %v1938_v26 = vld [vmem:[#allocation2 + $0x34] sm:$0xf] }
 0x12d   : > { %v2079_v44 = vsel %vm9273_vm6, %v2074_v35, %v2078_v18  ;;  %v8348_v45 = vpack.c.bf16 %v870_v36, %v870_v36  ;;  %v2087_v47 = vor.u32 %v2086_v40, %v2083_v37  ;;  %v2094_v49 = vshrl.u32 %v1935_v14, 16  ;;  %v9016_v50 = vld [vmem:[#allocation2 + $0x6c] sm:$0xff]   ;;  %v1441_v14 = vld [vmem:[#allocation2 + $0x98] sm:$0x1] }
 0x12e   : > { %v7958_v25 = vcombine.low %v2069_v22, %v2079_v44  ;;  %v1222_v52 = vshrl.u32 %v8347_v41, 16  ;;  %v1225_v53 = vshll.u32 %v8347_v41, 16  ;;  %v1205_v54 = vshrl.u32 %v8345_v38, 16  ;;  %8614 = vmatmul.mubr.msk.bf16.gmra.mrb[16].mxu1 %vm555_vm1, %v9016_v50  ;;  %v1434_v20 = vld [vmem:[#allocation2 + $0x8c] sm:$0x1] }
 0x12f   : > { %v1208_v62 = vshll.u32 %v8345_v38, 16  ;;  %v1230_v1 = vshrl.u32 %v8348_v45, 16  ;;  %v1233_v4 = vshll.u32 %v8348_v45, 16  ;;  %v8346_v63 = vpack.c.bf16 %v868_v43, %v868_v43  ;;  %8617 = vmatprep.mubr.msk.bf16.mxu1 %vm555_vm1, %v9017_v57  ;;  %v1939_v34 = vld [vmem:[#allocation2 + $0x38] sm:$0x1] }
 0x130   : > { %8635 = vmatprep.mubr.msk.bf16.mxu0 %vm555_vm1, %v7958_v25  ;;  %v1224_v7 = vrot.slane %v1222_v52, 7  ;;  %v1207_v8 = vrot.slane %v1205_v54, 7  ;;  %v2088_v11 = vrot.slane %v2087_v47, 4  ;;  %v2096_v12 = vrot.slane %v2094_v49, 4  ;;  %v1940_v54 = vld [vmem:[#allocation2 + $0x3c] sm:$0xf] }
 0x131   : > { %v1232_v13 = vrot.slane %v1230_v1, 7  ;;  %v1213_v15 = vshrl.u32 %v8346_v63, 16  ;;  %v1216_v6 = vshll.u32 %v8346_v63, 16  ;;  %v2100_v17 = vshll.u32 %v1936_v56, 16 }
 0x132   : > { %v1227_v61 = vor.u32 %v1225_v53, %v1224_v7  ;;  %v1228_v9 = vrot.slane %v1224_v7, 4  ;;  %v1210_v18 = vor.u32 %v1208_v62, %v1207_v8  ;;  %v1211_v21 = vrot.slane %v1207_v8, 4  ;;  %v9555_v7 = vld [vmem:[#allocation2 + $0x40] sm:$0xf] }
 0x133   : > { %v1235_v22 = vor.u32 %v1233_v4, %v1232_v13  ;;  %v1237_v23 = vrot.slane %v1232_v13, 4  ;;  %v1215_v24 = vrot.slane %v1213_v15, 7  ;;  %v2093_v55 = vsel %vm9273_vm6, %v2088_v11, %v9520_v16 }
 0x134   : > { %v1438_v29 = vsel %vm9312_vm10, %v1227_v61, %v1437_v59  ;;  %v1431_v30 = vsel %vm9312_vm10, %v1210_v18, %v1430_v0  ;;  %v2097_v10 = vor.u32 %v2096_v12, %v9520_v16  ;;  %v2102_v31 = vrot.slane %v2100_v17, 5 }
 0x135   : > { %1439 = vst [vmem:[#allocation2 + $0x90] sm:$0xf] %v1438_v29  ;;  %1432 = vst [vmem:[#allocation2 + $0x84] sm:$0xf] %v1431_v30  ;;  %v1236_v35 = vsel %vm9319_vm11, %v1228_v9, %v1235_v22  ;;  %v1442_v36 = vsel %vm9325_vm12, %v1237_v23, %v1441_v14  ;;  %v1218_v37 = vor.u32 %v1216_v6, %v1215_v24  ;;  %v1220_v40 = vrot.slane %v1215_v24, 4 }
 0x136   : > { %1440 = vst.msk [vmem:[#allocation2 + $0x94] sm:$0xf] %vm879_vm2, %v1236_v35  ;;  %1443 = vst [vmem:[#allocation2 + $0x98] sm:$0x1] %v1442_v36  ;;  %v2098_v41 = vrot.slane %v2097_v10, 4  ;;  %v2105_v38 = vshrl.u32 %v1937_v5, 16  ;;  %v802_v62 = vmul.f32 %v9449_v51, %v9289_v46  ;;  %v800_v1 = vmul.f32 %v9289_v46, %v9459_v58 }
 0x137   : > { %v2108_v43 = vshll.u32 %v1937_v5, 16  ;;  %v2114_v44 = vshll.u32 %v1938_v26, 16  ;;  %v1219_v16 = vsel %vm9319_vm11, %v1211_v21, %v1218_v37  ;;  %v1435_v45 = vsel %vm9325_vm12, %v1220_v40, %v1434_v20  ;;  %v9567_v30 = vld [vmem:[#allocation2 + $0x48] sm:$0xf] }
 0x138   : > { %v2118_v47 = vshrl.u32 %v1938_v26, 16  ;;  %v2124_v49 = vshll.u32 %v1939_v34, 16  ;;  %1433 = vst.msk [vmem:[#allocation2 + $0x88] sm:$0xf] %vm879_vm2, %v1219_v16  ;;  %1436 = vst [vmem:[#allocation2 + $0x8c] sm:$0x1] %v1435_v45  ;;  %v2103_v50 = vsel %vm9273_vm6, %v2098_v41, %v2102_v31  ;;  %v803_v4 = vmul.f32 %v9469_v2, %v9289_v46 }
 0x139   : > { %v2107_v25 = vrot.slane %v2105_v38, 4  ;;  %v2110_v52 = vrot.slane %v2108_v43, 5  ;;  %v2116_v53 = vrot.slane %v2114_v44, 5  ;;  %v7959_v56 = vcombine.low %v2093_v55, %v2103_v50  ;;  %v1942_v34 = vld [vmem:[#allocation2 + $0x44] sm:$0x1] }
 0x13a   : > { %v2120_v57 = vrot.slane %v2118_v47, 4  ;;  %v2126_v59 = vrot.slane %v2124_v49, 5  ;;  %v801_v63 = vmul.f32 %v9289_v46, %v9474_v3  ;;  %v841_v11 = vadd.f32 %v9294_v48, %v802_v62  ;;  %v1451_v37 = vld [vmem:[#allocation2 + $0xa8] sm:$0xf]  ;;  %v1444_v50 = vld [vmem:[#allocation2 + $0x9c] sm:$0xf] }
 0x13b   : > { %v2111_v0 = vor.u32 %v2110_v52, %v2107_v25  ;;  %8636 = vmatmul.mubr.msk.bf16.gmra.mrb[36].mxu0 %vm555_vm1, %v7959_v56  ;;  %v2129_v12 = vshrl.u32 %v1940_v54, 16  ;;  %v2132_v13 = vshll.u32 %v1940_v54, 16  ;;  %v839_v15 = vadd.f32 %v9294_v48, %v800_v1 }
 0x13c   : > { %v2121_v8 = vor.u32 %v2120_v57, %v2116_v53  ;;  %v842_v58 = vadd.f32 %v9294_v48, %v803_v4  ;;  %v840_v6 = vadd.f32 %v9294_v48, %v801_v63  ;;  %v873_v17 = vmax.f32 %v841_v11, 0.0  ;;  %v1455_v57 = vld [vmem:[#allocation2 + $0xb0] sm:$0x1] }
 0x13d   : > { %v2112_v51 = vrot.slane %v2111_v0, 4  ;;  %v2131_v61 = vrot.slane %v2129_v12, 4  ;;  %v2134_v46 = vrot.slane %v2132_v13, 5  ;;  %v871_v9 = vmax.f32 %v839_v15, 0.0  ;;  %v9019_v20 = vld [vmem:[#allocation2 + $0x90] sm:$0xff]  }
 0x13e   : > { %v2122_v2 = vrot.slane %v2121_v8, 4  ;;  %v874_v18 = vmax.f32 %v842_v58, 0.0  ;;  %v872_v21 = vmax.f32 %v840_v6, 0.0  ;;  %v8351_v22 = vpack.c.bf16 %v873_v17, %v873_v17  ;;  %v1448_v8 = vld [vmem:[#allocation2 + $0xa4] sm:$0x1] }
 0x13f   : > { %v2117_v3 = vsel %vm9273_vm6, %v2112_v51, %v2116_v53  ;;  %v2135_v23 = vor.u32 %v2134_v46, %v2131_v61  ;;  %v2138_v24 = vshll.u32 %v9555_v7, 16  ;;  %v9018_v55 = vld [vmem:[#allocation2 + $0x84] sm:$0xff]   ;;  %v8349_v48 = vpack.c.bf16 %v871_v9, %v871_v9  ;;  %v1944_v15 = vld [vmem:[#allocation2 + $0x4c] sm:$0xf] }
 0x140   : > { %v2127_v14 = vsel %vm9273_vm6, %v2122_v2, %v2126_v59  ;;  %v8352_v26 = vpack.c.bf16 %v874_v18, %v874_v18  ;;  %v8350_v29 = vpack.c.bf16 %v872_v21, %v872_v21  ;;  %v1256_v10 = vshrl.u32 %v8351_v22, 16  ;;  %8618 = vmatmul.mubr.msk.bf16.gmra.mrb[20].mxu1 %vm555_vm1, %v9018_v55 }
 0x141   : > { %v7960_v5 = vcombine.low %v2117_v3, %v2127_v14  ;;  %v1259_v31 = vshll.u32 %v8351_v22, 16  ;;  %v9569_v35 = vrot.slane %v2135_v23, 4  ;;  %v9571_v36 = vrot.slane %v2138_v24, 5  ;;  %8621 = vmatprep.mubr.msk.bf16.mxu1 %vm555_vm1, %v9019_v20  ;;  %v9071_v24 = vld [vmem:[%s11378_s2] ss:$0 sm:$0xff] }
 0x142   : > { %v1239_v40 = vshrl.u32 %v8349_v48, 16  ;;  %v1242_v41 = vshll.u32 %v8349_v48, 16  ;;  %v1264_v38 = vshrl.u32 %v8352_v26, 16  ;;  %v1267_v43 = vshll.u32 %v8352_v26, 16 }
 0x143   : > { %8639 = vmatprep.mubr.msk.bf16.mxu0 %vm555_vm1, %v7960_v5  ;;  %v1258_v44 = vrot.slane %v1256_v10, 7  ;;  %v1247_v16 = vshrl.u32 %v8350_v29, 16  ;;  %v1250_v45 = vshll.u32 %v8350_v29, 16  ;;  %v2141_v47 = vsel %vm9273_vm6, %v9569_v35, %v9571_v36 }
 0x144   : > { %v1241_v49 = vrot.slane %v1239_v40, 7  ;;  %v1266_v25 = vrot.slane %v1264_v38, 7  ;;  %v2142_v52 = vshrl.u32 %v9555_v7, 16  ;;  %v2148_v53 = vshll.u32 %v1942_v34, 16  ;;  %v1945_v7 = vld [vmem:[#allocation2 + $0x50] sm:$0x1] }
 0x145   : > { %v1261_v54 = vor.u32 %v1259_v31, %v1258_v44  ;;  %v1262_v56 = vrot.slane %v1258_v44, 4  ;;  %v1249_v59 = vrot.slane %v1247_v16, 7  ;;  %v2153_v62 = vshrl.u32 %v9567_v30, 16  ;;  %v1946_v31 = vld [vmem:[#allocation2 + $0x54] sm:$0xf] }
 0x146   : > { %v1244_v0 = vor.u32 %v1242_v41, %v1241_v49  ;;  %v1245_v1 = vrot.slane %v1241_v49, 4  ;;  %v1269_v4 = vor.u32 %v1267_v43, %v1266_v25  ;;  %v1271_v63 = vrot.slane %v1266_v25, 4  ;;  %v9072_v34 = vld [vmem:[%s11379_s3] ss:$0 sm:$0xff] }
 0x147   : > { %v1452_v11 = vsel %vm9312_vm10, %v1261_v54, %v1451_v37  ;;  %v1252_v12 = vor.u32 %v1250_v45, %v1249_v59  ;;  %v1254_v13 = vrot.slane %v1249_v59, 4  ;;  %v2144_v51 = vrot.slane %v2142_v52, 4  ;;  %v1947_v59 = vld [vmem:[#allocation2 + $0x58] sm:$0xf] }
 0x148   : > { %1453 = vst [vmem:[#allocation2 + $0xa8] sm:$0xf] %v1452_v11  ;;  %v1445_v58 = vsel %vm9312_vm10, %v1244_v0, %v1444_v50  ;;  %v1270_v6 = vsel %vm9319_vm11, %v1262_v56, %v1269_v4  ;;  %v1456_v2 = vsel %vm9325_vm12, %v1271_v63, %v1455_v57  ;;  %v2150_v17 = vrot.slane %v2148_v53, 5  ;;  %v1465_v11 = vld [vmem:[#allocation2 + $0xc0] sm:$0xf] }
 0x149   : > { %1446 = vst [vmem:[#allocation2 + $0x9c] sm:$0xf] %v1445_v58  ;;  %1454 = vst.msk [vmem:[#allocation2 + $0xac] sm:$0xf] %vm879_vm2, %v1270_v6  ;;  %v1253_v61 = vsel %vm9319_vm11, %v1245_v1, %v1252_v12  ;;  %v1449_v46 = vsel %vm9325_vm12, %v1254_v13, %v1448_v8  ;;  %v2145_v3 = vor.u32 %v2144_v51, %v9571_v36  ;;  %v2155_v9 = vrot.slane %v2153_v62, 4 }
 0x14a   : > { %1457 = vst [vmem:[#allocation2 + $0xb0] sm:$0x1] %v1456_v2  ;;  %1447 = vst.msk [vmem:[#allocation2 + $0xa0] sm:$0xf] %vm879_vm2, %v1253_v61  ;;  %v2156_v18 = vshll.u32 %v9567_v30, 16  ;;  %v2162_v21 = vshll.u32 %v1944_v15, 16  ;;  %v806_v55 = vmul.f32 %v9071_v24, %v9481_v27  ;;  %v804_v5 = vmul.f32 %v9071_v24, %v9483_v32 }
 0x14b   : > { %1450 = vst [vmem:[#allocation2 + $0xa4] sm:$0x1] %v1449_v46  ;;  %v2166_v14 = vshrl.u32 %v1944_v15, 16  ;;  %v2172_v22 = vshll.u32 %v1945_v7, 16  ;;  %v2146_v23 = vrot.slane %v2145_v3, 4  ;;  %v807_v48 = vmul.f32 %v9071_v24, %v9485_v42 }
 0x14c   : > { %v2158_v26 = vrot.slane %v2156_v18, 5  ;;  %v2164_v29 = vrot.slane %v2162_v21, 5  ;;  %v845_v35 = vadd.f32 %v9072_v34, %v806_v55  ;;  %v843_v36 = vadd.f32 %v9072_v34, %v804_v5  ;;  %v1458_v6 = vld [vmem:[#allocation2 + $0xb4] sm:$0xf]  ;;  %v1469_v46 = vld [vmem:[#allocation2 + $0xc8] sm:$0x1] }
 0x14d   : > { %v2168_v20 = vrot.slane %v2166_v14, 4  ;;  %v2174_v10 = vrot.slane %v2172_v22, 5  ;;  %v2151_v30 = vsel %vm9273_vm6, %v2146_v23, %v2150_v17  ;;  %v846_v37 = vadd.f32 %v9072_v34, %v807_v48  ;;  %v1949_v55 = vld [vmem:[#allocation2 + $0x60] sm:$0xf] }
 0x14e   : > { %v7961_v27 = vcombine.low %v2141_v47, %v2151_v30  ;;  %v2159_v40 = vor.u32 %v2158_v26, %v2155_v9  ;;  %v805_v42 = vmul.f32 %v9071_v24, %v9491_v60  ;;  %v877_v41 = vmax.f32 %v845_v35, 0.0  ;;  %v1462_v24 = vld [vmem:[#allocation2 + $0xbc] sm:$0x1]  ;;  %v1950_v35 = vld [vmem:[#allocation2 + $0x64] sm:$0xf] }
 0x14f   : > { %v2169_v32 = vor.u32 %v2168_v20, %v2164_v29  ;;  %v875_v38 = vmax.f32 %v843_v36, 0.0  ;;  %v878_v43 = vmax.f32 %v846_v37, 0.0  ;;  %v2177_v44 = vshrl.u32 %v1946_v31, 16  ;;  %v1951_v36 = vld [vmem:[#allocation2 + $0x68] sm:$0x1] }
 0x150   : > { %8640 = vmatmul.mubr.msk.bf16.gmra.mrb[40].mxu0 %vm555_vm1, %v7961_v27  ;;  %v2160_v16 = vrot.slane %v2159_v40, 4  ;;  %v844_v49 = vadd.f32 %v9072_v34, %v805_v42  ;;  %v2180_v50 = vshll.u32 %v1946_v31, 16  ;;  %v8355_v25 = vpack.c.bf16 %v877_v41, %v877_v41  ;;  %v9021_v0 = vld [vmem:[#allocation2 + $0xa8] sm:$0xff]  }
 0x151   : > { %v2170_v45 = vrot.slane %v2169_v32, 4  ;;  %v8353_v52 = vpack.c.bf16 %v875_v38, %v875_v38  ;;  %v8356_v53 = vpack.c.bf16 %v878_v43, %v878_v43  ;;  %v2179_v54 = vrot.slane %v2177_v44, 4  ;;  %v9020_v56 = vld [vmem:[#allocation2 + $0x9c] sm:$0xff]   ;;  %v1952_v42 = vld [vmem:[#allocation2 + $0x6c] sm:$0xf] }
 0x152   : > { %v2165_v47 = vsel %vm9273_vm6, %v2160_v16, %v2164_v29  ;;  %v876_v57 = vmax.f32 %v844_v49, 0.0  ;;  %v2182_v62 = vrot.slane %v2180_v50, 5  ;;  %v1290_v4 = vshrl.u32 %v8355_v25, 16  ;;  %8622 = vmatmul.mubr.msk.bf16.gmra.mrb[24].mxu1 %vm555_vm1, %v9020_v56  ;;  %v1948_v29 = vld [vmem:[#allocation2 + $0x5c] sm:$0x1] }
 0x153   : > { %v2175_v60 = vsel %vm9273_vm6, %v2170_v45, %v2174_v10  ;;  %v1293_v63 = vshll.u32 %v8355_v25, 16  ;;  %v1273_v8 = vshrl.u32 %v8353_v52, 16  ;;  %v1276_v12 = vshll.u32 %v8353_v52, 16  ;;  %8625 = vmatprep.mubr.msk.bf16.mxu1 %vm555_vm1, %v9021_v0  ;;  %v1953_v50 = vld [vmem:[#allocation2 + $0x70] sm:$0xf] }
 0x154   : > { %v7962_v1 = vcombine.low %v2165_v47, %v2175_v60  ;;  %v1298_v13 = vshrl.u32 %v8356_v53, 16  ;;  %v1301_v51 = vshll.u32 %v8356_v53, 16  ;;  %v8354_v15 = vpack.c.bf16 %v876_v57, %v876_v57  ;;  %v1955_v56 = vld [vmem:[#allocation2 + $0x78] sm:$0xf] }
 0x155   : > { %v1292_v7 = vrot.slane %v1290_v4, 7  ;;  %v1275_v58 = vrot.slane %v1273_v8, 7  ;;  %v2183_v2 = vor.u32 %v2182_v62, %v2179_v54  ;;  %v2186_v17 = vshll.u32 %v1947_v59, 16  ;;  %v1954_v62 = vld [vmem:[#allocation2 + $0x74] sm:$0x1] }
 0x156   : > { %8643 = vmatprep.mubr.msk.bf16.mxu0 %vm555_vm1, %v7962_v1  ;;  %v1300_v61 = vrot.slane %v1298_v13, 7  ;;  %v1281_v3 = vshrl.u32 %v8354_v15, 16  ;;  %v1284_v9 = vshll.u32 %v8354_v15, 16  ;;  %v2190_v18 = vshrl.u32 %v1947_v59, 16 }
 0x157   : > { %v1295_v21 = vor.u32 %v1293_v63, %v1292_v7  ;;  %v1296_v14 = vrot.slane %v1292_v7, 4  ;;  %v1278_v22 = vor.u32 %v1276_v12, %v1275_v58  ;;  %v1279_v23 = vrot.slane %v1275_v58, 4  ;;  %v1956_v12 = vld [vmem:[#allocation2 + $0x7c] sm:$0xf] }
 0x158   : > { %v1303_v5 = vor.u32 %v1301_v51, %v1300_v61  ;;  %v1305_v48 = vrot.slane %v1300_v61, 4  ;;  %v1283_v26 = vrot.slane %v1281_v3, 7  ;;  %v2184_v20 = vrot.slane %v2183_v2, 4  ;;  %v1957_v2 = vld [vmem:[#allocation2 + $0x80] sm:$0x1] }
 0x159   : > { %v1466_v10 = vsel %vm9312_vm10, %v1295_v21, %v1465_v11  ;;  %v1459_v31 = vsel %vm9312_vm10, %v1278_v22, %v1458_v6  ;;  %v2188_v30 = vrot.slane %v2186_v17, 5  ;;  %v2192_v34 = vrot.slane %v2190_v18, 4  ;;  %v1958_v21 = vld [vmem:[#allocation2 + $0x84] sm:$0xf] }
 0x15a   : > { %1467 = vst [vmem:[#allocation2 + $0xc0] sm:$0xf] %v1466_v10  ;;  %1460 = vst [vmem:[#allocation2 + $0xb4] sm:$0xf] %v1459_v31  ;;  %v1304_v37 = vsel %vm9319_vm11, %v1296_v14, %v1303_v5  ;;  %v1470_v27 = vsel %vm9325_vm12, %v1305_v48, %v1469_v46  ;;  %v1286_v40 = vor.u32 %v1284_v9, %v1283_v26  ;;  %v1288_v32 = vrot.slane %v1283_v26, 4 }
 0x15b   : > { %1468 = vst.msk [vmem:[#allocation2 + $0xc4] sm:$0xf] %vm879_vm2, %v1304_v37  ;;  %1471 = vst [vmem:[#allocation2 + $0xc8] sm:$0x1] %v1470_v27  ;;  %v2189_v19 = vsel %vm9273_vm6, %v2184_v20, %v2188_v30  ;;  %v2193_v41 = vor.u32 %v2192_v34, %v2188_v30  ;;  %v2196_v38 = vshll.u32 %v1948_v29, 16  ;;  %v2201_v43 = vshrl.u32 %v1949_v55, 16 }
 0x15c   : > { %v1287_v44 = vsel %vm9319_vm11, %v1279_v23, %v1286_v40  ;;  %v1463_v16 = vsel %vm9325_vm12, %v1288_v32, %v1462_v24  ;;  %v2204_v45 = vshll.u32 %v1949_v55, 16  ;;  %v2210_v49 = vshll.u32 %v1950_v35, 16  ;;  %v1959_v20 = vld [vmem:[#allocation2 + $0x88] sm:$0xf] }
 0x15d   : > { %1461 = vst.msk [vmem:[#allocation2 + $0xb8] sm:$0xf] %vm879_vm2, %v1287_v44  ;;  %1464 = vst [vmem:[#allocation2 + $0xbc] sm:$0x1] %v1463_v16  ;;  %v2194_v25 = vrot.slane %v2193_v41, 4  ;;  %v2198_v52 = vrot.slane %v2196_v38, 5 }
 0x15e   : > { %v2203_v53 = vrot.slane %v2201_v43, 4  ;;  %v2214_v54 = vshrl.u32 %v1950_v35, 16  ;;  %v2206_v47 = vrot.slane %v2204_v45, 5  ;;  %v2212_v60 = vrot.slane %v2210_v49, 5  ;;  %v1960_v35 = vld [vmem:[#allocation2 + $0x8c] sm:$0x1] }
 0x15f   : > { %v2220_v57 = vshll.u32 %v1951_v36, 16  ;;  %v2225_v59 = vshrl.u32 %v1952_v42, 16  ;;  %v2199_v28 = vsel %vm9273_vm6, %v2194_v25, %v2198_v52  ;;  %v2228_v0 = vshll.u32 %v1952_v42, 16  ;;  %v1961_v36 = vld [vmem:[#allocation2 + $0x90] sm:$0xf] }
 0x160   : > { %v2216_v33 = vrot.slane %v2214_v54, 4  ;;  %v2234_v1 = vshll.u32 %v1953_v50, 16  ;;  %v7963_v4 = vcombine.low %v2189_v19, %v2199_v28  ;;  %v2207_v63 = vor.u32 %v2206_v47, %v2203_v53  ;;  %v1962_v49 = vld [vmem:[#allocation2 + $0x94] sm:$0xf]  ;;  %v1963_v54 = vld [vmem:[#allocation2 + $0x98] sm:$0x1] }
 0x161   : > { %v2222_v8 = vrot.slane %v2220_v57, 5  ;;  %v2227_v11 = vrot.slane %v2225_v59, 4  ;;  %v2230_v51 = vrot.slane %v2228_v0, 5  ;;  %v2238_v7 = vshrl.u32 %v1953_v50, 16  ;;  %v1964_v59 = vld [vmem:[#allocation2 + $0x9c] sm:$0xf] }
 0x162   : > { %v2217_v13 = vor.u32 %v2216_v33, %v2212_v60  ;;  %v2236_v15 = vrot.slane %v2234_v1, 5  ;;  %8644 = vmatmul.mubr.msk.bf16.gmra.mrb[44].mxu0 %vm555_vm1, %v7963_v4  ;;  %v2208_v58 = vrot.slane %v2207_v63, 4  ;;  %v2244_v6 = vshll.u32 %v1954_v62, 16 }
 0x163   : > { %v2249_v17 = vshrl.u32 %v1955_v56, 16  ;;  %v2252_v61 = vshll.u32 %v1955_v56, 16  ;;  %v2231_v3 = vor.u32 %v2230_v51, %v2227_v11  ;;  %v2240_v9 = vrot.slane %v2238_v7, 4 }
 0x164   : > { %v2218_v46 = vrot.slane %v2217_v13, 4  ;;  %v2258_v18 = vshll.u32 %v1956_v12, 16  ;;  %v2213_v14 = vsel %vm9273_vm6, %v2208_v58, %v2212_v60  ;;  %v2246_v22 = vrot.slane %v2244_v6, 5  ;;  %v9022_v55 = vld [vmem:[#allocation2 + $0xb4] sm:$0xff]  }
 0x165   : > { %v2251_v23 = vrot.slane %v2249_v17, 4  ;;  %v2254_v24 = vrot.slane %v2252_v61, 5  ;;  %v2232_v48 = vrot.slane %v2231_v3, 4  ;;  %v2241_v26 = vor.u32 %v2240_v9, %v2236_v15  ;;  %8626 = vmatmul.mubr.msk.bf16.gmra.mrb[28].mxu1 %vm555_vm1, %v9022_v55  ;;  %v9657_v17 = vld [vmem:[%s11380_s4 + $0xa] sm:$0x3] }
 0x166   : > { %v2223_v5 = vsel %vm9273_vm6, %v2218_v46, %v2222_v8  ;;  %v2260_v29 = vrot.slane %v2258_v18, 5  ;;  %v2262_v30 = vshrl.u32 %v1956_v12, 16  ;;  %v2268_v34 = vshll.u32 %v1957_v2, 16  ;;  %v9073_v3 = vld [vmem:[%s11380_s4 + $0x6] sm:$0x3] }
 0x167   : > { %v7964_v10 = vcombine.low %v2213_v14, %v2223_v5  ;;  %v2255_v31 = vor.u32 %v2254_v24, %v2251_v23  ;;  %v2237_v37 = vsel %vm9273_vm6, %v2232_v48, %v2236_v15  ;;  %v2242_v27 = vrot.slane %v2241_v26, 4  ;;  %v1965_v15 = vld [vmem:[#allocation2 + $0xa0] sm:$0xf]  ;;  %v1966_v18 = vld [vmem:[#allocation2 + $0xa4] sm:$0x1] }
 0x168   : > { %v2273_v40 = vshrl.u32 %v1958_v21, 16  ;;  %v2276_v32 = vshll.u32 %v1958_v21, 16  ;;  %v2264_v19 = vrot.slane %v2262_v30, 4  ;;  %v2270_v41 = vrot.slane %v2268_v34, 5  ;;  %v1967_v55 = vld [vmem:[#allocation2 + $0xa8] sm:$0xf] }
 0x169   : > { %8647 = vmatprep.mubr.msk.bf16.mxu0 %vm555_vm1, %v7964_v10  ;;  %v2256_v42 = vrot.slane %v2255_v31, 4  ;;  %v2282_v38 = vshll.u32 %v1959_v20, 16  ;;  %v2247_v43 = vsel %vm9273_vm6, %v2242_v27, %v2246_v22  ;;  %v2286_v45 = vshrl.u32 %v1959_v20, 16  ;;  %v1968_v34 = vld [vmem:[#allocation2 + $0xac] sm:$0xf] }
 0x16a   : > { %v2275_v44 = vrot.slane %v2273_v40, 4  ;;  %v2278_v16 = vrot.slane %v2276_v32, 5  ;;  %v7965_v50 = vcombine.low %v2237_v37, %v2247_v43  ;;  %v2265_v52 = vor.u32 %v2264_v19, %v2260_v29  ;;  %v1969_v37 = vld [vmem:[#allocation2 + $0xb0] sm:$0x1]  ;;  %v2718_v32 = vld [vmem:[#allocation2] sm:$0xe] }
 0x16b   : > { %v2261_v25 = vsel %vm9273_vm6, %v2256_v42, %v2260_v29  ;;  %v2284_v53 = vrot.slane %v2282_v38, 5  ;;  %v2288_v47 = vrot.slane %v2286_v45, 4  ;;  %v2292_v60 = vshll.u32 %v1960_v35, 16  ;;  %v2719_v43 = vld [vmem:[#allocation2 + $0x4] sm:$0xf] }
 0x16c   : > { %v2279_v56 = vor.u32 %v2278_v16, %v2275_v44  ;;  %v2297_v57 = vshrl.u32 %v1961_v36, 16  ;;  %8648 = vmatmul.mubr.msk.bf16.gmra.mrb[48].mxu0 %vm555_vm1, %v7965_v50  ;;  %v2266_v28 = vrot.slane %v2265_v52, 4  ;;  %v2300_v33 = vshll.u32 %v1961_v36, 16  ;;  %v2720_v44 = vld [vmem:[#allocation2 + $0x8] sm:$0x1] }
 0x16d   : > { %v2306_v62 = vshll.u32 %v1962_v49, 16  ;;  %v2310_v0 = vshrl.u32 %v1962_v49, 16  ;;  %v2289_v4 = vor.u32 %v2288_v47, %v2284_v53  ;;  %v2294_v63 = vrot.slane %v2292_v60, 5  ;;  %v2722_v47 = vld [vmem:[#allocation2 + $0x10] sm:$0xf] }
 0x16e   : > { %v2280_v1 = vrot.slane %v2279_v56, 4  ;;  %v2299_v8 = vrot.slane %v2297_v57, 4  ;;  %v2271_v11 = vsel %vm9273_vm6, %v2266_v28, %v2270_v41  ;;  %v2302_v12 = vrot.slane %v2300_v33, 5  ;;  %v2723_v33 = vld [vmem:[#allocation2 + $0x14] sm:$0x1] }
 0x16f   : > { %v2308_v13 = vrot.slane %v2306_v62, 5  ;;  %v2312_v51 = vrot.slane %v2310_v0, 4  ;;  %v7966_v7 = vcombine.low %v2261_v25, %v2271_v11  ;;  %v2290_v6 = vrot.slane %v2289_v4, 4  ;;  %v2721_v25 = vld [vmem:[#allocation2 + $0xc] sm:$0xe] }
 0x170   : > { %v2285_v58 = vsel %vm9273_vm6, %v2280_v1, %v2284_v53  ;;  %v2316_v2 = vshll.u32 %v1963_v54, 16  ;;  %v2303_v61 = vor.u32 %v2302_v12, %v2299_v8  ;;  %v3482_v9 = vsel %vm604_vm0, %v9073_v3, 0 }
 0x171   : > { %v2313_v46 = vor.u32 %v2312_v51, %v2308_v13  ;;  %v2321_v21 = vshrl.u32 %v1964_v59, 16  ;;  %8651 = vmatprep.mubr.msk.bf16.mxu0 %vm555_vm1, %v7966_v7  ;;  %v2295_v14 = vsel %vm9273_vm6, %v2290_v6, %v2294_v63  ;;  %8698 = vmatpush3.bf16.msra.mxu0 %v3482_v9  ;;  %v2324_v23 = vshll.u32 %v1964_v59, 16  ;;  %v1970_v51 = vld [vmem:[#allocation2 + $0xb4] sm:$0xf] }
 0x172   : > { %v2318_v22 = vrot.slane %v2316_v2, 5  ;;  %v2330_v24 = vshll.u32 %v1965_v15, 16  ;;  %v7967_v5 = vcombine.low %v2285_v58, %v2295_v14  ;;  %v2304_v48 = vrot.slane %v2303_v61, 4  ;;  %8975 = vmatprep.subr.msk.bf16.mxu0 %vm604_vm0, %v9657_v17  ;;  %v1971_v2 = vld [vmem:[#allocation2 + $0xb8] sm:$0xf] }
 0x173   : > { %v2314_v26 = vrot.slane %v2313_v46, 4  ;;  %v2323_v29 = vrot.slane %v2321_v21, 4  ;;  %v2326_v20 = vrot.slane %v2324_v23, 5  ;;  %v2334_v31 = vshrl.u32 %v1965_v15, 16  ;;  %v9074_v23 = vld [vmem:[%s11380_s4 + $0x8] sm:$0x3] }
 0x174   : > { %v2332_v10 = vrot.slane %v2330_v24, 5  ;;  %v2340_v30 = vshll.u32 %v1966_v18, 16  ;;  %8652 = vmatmul.mubr.msk.bf16.gmra.mrb[52].mxu0 %vm555_vm1, %v7967_v5  ;;  %v2309_v35 = vsel %vm9273_vm6, %v2304_v48, %v2308_v13  ;;  %v2345_v27 = vshrl.u32 %v1967_v55, 16  ;;  %v1972_v18 = vld [vmem:[#allocation2 + $0xbc] sm:$0x1] }
 0x175   : > { %v2319_v36 = vsel %vm9273_vm6, %v2314_v26, %v2318_v22  ;;  %v2348_v40 = vshll.u32 %v1967_v55, 16  ;;  %v2327_v19 = vor.u32 %v2326_v20, %v2323_v29  ;;  %v2336_v41 = vrot.slane %v2334_v31, 4  ;;  %v2724_v55 = vld [vmem:[#allocation2 + $0x18] sm:$0xe]  ;;  %v2725_v5 = vld [vmem:[#allocation2 + $0x1c] sm:$0xf] }
 0x176   : > { %v7968_v42 = vcombine.low %v2309_v35, %v2319_v36  ;;  %v2342_v38 = vrot.slane %v2340_v30, 5  ;;  %v2347_v16 = vrot.slane %v2345_v27, 4  ;;  %v2354_v49 = vshll.u32 %v1968_v34, 16  ;;  %v2727_v31 = vld [vmem:[#allocation2 + $0x24] sm:$0xe] }
 0x177   : > { %v2350_v45 = vrot.slane %v2348_v40, 5  ;;  %v2358_v50 = vshrl.u32 %v1968_v34, 16  ;;  %v2328_v52 = vrot.slane %v2327_v19, 4  ;;  %v2337_v53 = vor.u32 %v2336_v41, %v2332_v10  ;;  %v2729_v27 = vld [vmem:[#allocation2 + $0x2c] sm:$0x1] }
 0x178   : > { %8655 = vmatprep.mubr.msk.bf16.mxu0 %vm555_vm1, %v7968_v42  ;;  %v2364_v54 = vshll.u32 %v1969_v37, 16  ;;  %v7988_v56 = vrot.slane %v2718_v32, 9  ;;  %v2356_v57 = vrot.slane %v2354_v49, 5  ;;  %v2851_v28 = vrot.slane %v2719_v43, 5  ;;  %v2728_v37 = vld [vmem:[#allocation2 + $0x28] sm:$0xf] }
 0x179   : > { %v2351_v60 = vor.u32 %v2350_v45, %v2347_v16  ;;  %v2360_v59 = vrot.slane %v2358_v50, 4  ;;  %v2333_v62 = vsel %vm9273_vm6, %v2328_v52, %v2332_v10  ;;  %v2338_v0 = vrot.slane %v2337_v53, 4  ;;  %v2726_v10 = vld [vmem:[#allocation2 + $0x20] sm:$0x1]  ;;  %v2730_v41 = vld [vmem:[#allocation2 + $0x30] sm:$0xe] }
 0x17a   : > { %v2366_v1 = vrot.slane %v2364_v54, 5  ;;  %v2854_v63 = vrot.slane %v2720_v44, 5  ;;  %v2852_v12 = vsel %vm9678_vm15, %v7988_v56, %v2851_v28  ;;  %v2853_v13 = vrot.slane %v2851_v28, 4  ;;  %v2732_v45 = vld [vmem:[#allocation2 + $0x38] sm:$0x1] }
 0x17b   : > { %v2352_v8 = vrot.slane %v2351_v60, 4  ;;  %v2361_v11 = vor.u32 %v2360_v59, %v2356_v57  ;;  %v2343_v15 = vsel %vm9273_vm6, %v2338_v0, %v2342_v38  ;;  %v7989_v7 = vrot.slane %v2721_v25, 9  ;;  %v2731_v38 = vld [vmem:[#allocation2 + $0x34] sm:$0xf]  ;;  %v9706_v49 = vld [vmem:[%s11380_s4 + $0xc] sm:$0x3] }
 0x17c   : > { %v2858_v58 = vrot.slane %v2722_v47, 5  ;;  %v2861_v6 = vrot.slane %v2723_v33, 5  ;;  %v7969_v61 = vcombine.low %v2333_v62, %v2343_v15  ;;  %v2855_v9 = vsel %vm9678_vm15, %v2853_v13, %v2854_v63  ;;  %v2733_v54 = vld [vmem:[#allocation2 + $0x3c] sm:$0xe]  ;;  %v2734_v59 = vld [vmem:[#allocation2 + $0x40] sm:$0xf] }
 0x17d   : > { %v2357_v46 = vsel %vm9273_vm6, %v2352_v8, %v2356_v57  ;;  %v2362_v3 = vrot.slane %v2361_v11, 4  ;;  %v8005_v21 = vcombine.low %v2852_v12, %v2855_v9  ;;  %v4272_v24 = vsel %vm604_vm0, %v9074_v23, 0  ;;  %v2735_v28 = vld [vmem:[#allocation2 + $0x44] sm:$0x1]  ;;  %v2736_v63 = vld [vmem:[#allocation2 + $0x48] sm:$0xe] }
 0x17e   : > { %v2859_v14 = vsel %vm9678_vm15, %v7989_v7, %v2858_v58  ;;  %v2860_v22 = vrot.slane %v2858_v58, 4  ;;  %8656 = vmatmul.mubr.msk.bf16.gmra.mrb[56].mxu0 %vm555_vm1, %v7969_v61  ;;  %v2369_v26 = vshrl.u32 %v1970_v51, 16  ;;  %v2372_v29 = vshll.u32 %v1970_v51, 16  ;;  %v2737_v51 = vld [vmem:[#allocation2 + $0x4c] sm:$0xf] }
 0x17f   : > { %v2367_v48 = vsel %vm9273_vm6, %v2362_v3, %v2366_v1  ;;  %v2378_v20 = vshll.u32 %v1971_v2, 16  ;;  %8665 = vmatprep.mubr.msk.bf16.mxu1 %vm555_vm1, %v8005_v21  ;;  %v2382_v35 = vshrl.u32 %v1971_v2, 16  ;;  %v2388_v36 = vshll.u32 %v1972_v18, 16  ;;  %v2738_v2 = vld [vmem:[#allocation2 + $0x50] sm:$0x1] }
 0x180   : > { %v7970_v30 = vcombine.low %v2357_v46, %v2367_v48  ;;  %v2862_v34 = vsel %vm9678_vm15, %v2860_v22, %v2861_v6  ;;  %v2371_v32 = vrot.slane %v2369_v26, 4  ;;  %v2374_v42 = vrot.slane %v2372_v29, 5  ;;  %v2739_v61 = vld [vmem:[#allocation2 + $0x54] sm:$0xe]  ;;  %v2740_v21 = vld [vmem:[#allocation2 + $0x58] sm:$0xf] }
 0x181   : > { %v8006_v40 = vcombine.low %v2859_v14, %v2862_v34  ;;  %v2380_v19 = vrot.slane %v2378_v20, 5  ;;  %v2384_v43 = vrot.slane %v2382_v35, 4  ;;  %v7990_v44 = vrot.slane %v2724_v55, 9  ;;  %v2741_v14 = vld [vmem:[#allocation2 + $0x5c] sm:$0x1]  ;;  %v9023_v26 = vld [vmem:[#allocation2 + $0xc] sm:$0xff]  }
 0x182   : > { %8659 = vmatprep.mubr.msk.bf16.mxu0 %vm555_vm1, %v7970_v30  ;;  %v2865_v16 = vrot.slane %v2725_v5, 5  ;;  %v2375_v50 = vor.u32 %v2374_v42, %v2371_v32  ;;  %v2390_v25 = vrot.slane %v2388_v36, 5  ;;  %v7991_v52 = vrot.slane %v2727_v31, 9  ;;  %v2742_v5 = vld [vmem:[#allocation2 + $0x60] sm:$0xe] }
 0x183   : > { %8666 = vmatmul.mubr.msk.bf16.vlgmr.msra.gmra.mrb[32].mxu1 %vm555_vm1, %v8006_v40  ;;  %v2872_v53 = vrot.slane %v2728_v37, 5  ;;  %v2385_v56 = vor.u32 %v2384_v43, %v2380_v19  ;;  %v2868_v57 = vrot.slane %v2726_v10, 5  ;;  %v2875_v1 = vrot.slane %v2729_v27, 5  ;;  %v2743_v48 = vld [vmem:[#allocation2 + $0x64] sm:$0xf] }
 0x184   : > { %8732 = vmatpush3.bf16.msra.mxu1 %v4272_v24  ;;  %v2866_v47 = vsel %vm9678_vm15, %v7990_v44, %v2865_v16  ;;  %v2867_v60 = vrot.slane %v2865_v16, 4  ;;  %v2376_v33 = vrot.slane %v2375_v50, 4  ;;  %v7992_v12 = vrot.slane %v2730_v41, 9  ;;  %v2744_v30 = vld [vmem:[#allocation2 + $0x68] sm:$0x1] }
 0x185   : > { %v2873_v62 = vsel %vm9678_vm15, %v7991_v52, %v2872_v53  ;;  %v2874_v0 = vrot.slane %v2872_v53, 4  ;;  %8976 = vmatprep.subr.msk.bf16.mxu1 %vm604_vm0, %v9706_v49  ;;  %v2386_v8 = vrot.slane %v2385_v56, 4  ;;  %v2879_v13 = vrot.slane %v2731_v38, 5  ;;  %v2745_v27 = vld [vmem:[#allocation2 + $0x6c] sm:$0xe] }
 0x186   : > { %v2869_v11 = vsel %vm9678_vm15, %v2867_v60, %v2868_v57  ;;  %v2381_v15 = vsel %vm9273_vm6, %v2376_v33, %v2380_v19  ;;  %v2882_v6 = vrot.slane %v2732_v45, 5  ;;  %v7993_v18 = vrot.slane %v2733_v54, 9  ;;  %v2746_v41 = vld [vmem:[#allocation2 + $0x70] sm:$0xf]  ;;  %v2747_v38 = vld [vmem:[#allocation2 + $0x74] sm:$0x1] }
 0x187   : > { %v8007_v7 = vcombine.low %v2866_v47, %v2869_v11  ;;  %v2876_v58 = vsel %vm9678_vm15, %v2874_v0, %v2875_v1  ;;  %v2391_v46 = vsel %vm9273_vm6, %v2386_v8, %v2390_v25  ;;  %v2881_v9 = vrot.slane %v2879_v13, 4  ;;  %v2748_v50 = vld [vmem:[#allocation2 + $0x78] sm:$0xe]  ;;  %v2749_v56 = vld [vmem:[#allocation2 + $0x7c] sm:$0xf] }
 0x188   : > { %v8008_v3 = vcombine.low %v2873_v62, %v2876_v58  ;;  %v7971_v22 = vcombine.low %v2381_v15, %v2391_v46  ;;  %v2880_v23 = vsel %vm9678_vm15, %v7992_v12, %v2879_v13  ;;  %v2886_v24 = vrot.slane %v2734_v59, 5  ;;  %v2750_v47 = vld [vmem:[#allocation2 + $0x80] sm:$0x1]  ;;  %v2751_v33 = vld [vmem:[#allocation2 + $0x84] sm:$0xe]  ;;  %v9024_v13 = vld [vmem:[#allocation2 + $0x18] sm:$0xff]  }
 0x189   : > { %8669 = vmatprep.mubr.msk.bf16.mxu1 %vm555_vm1, %v8007_v7  ;;  %v2889_v55 = vrot.slane %v2735_v28, 5  ;;  %v2883_v29 = vsel %vm9678_vm15, %v2881_v9, %v2882_v6  ;;  %v7994_v20 = vrot.slane %v2736_v63, 9  ;;  %v2893_v10 = vrot.slane %v2737_v51, 5  ;;  %v2752_v62 = vld [vmem:[#allocation2 + $0x88] sm:$0xf] }
 0x18a   : > { %v2896_v31 = vrot.slane %v2738_v2, 5  ;;  %8660 = vmatmul.mubr.msk.bf16.gmra.mrb[60].mxu0 %vm555_vm1, %v7971_v22  ;;  %v8009_v34 = vcombine.low %v2880_v23, %v2883_v29  ;;  %v2888_v35 = vrot.slane %v2886_v24, 4  ;;  %v7995_v36 = vrot.slane %v2739_v61, 9  ;;  %v2753_v11 = vld [vmem:[#allocation2 + $0x8c] sm:$0x1]  ;;  %v9025_v2 = vld [vmem:[#allocation2 + $0x24] sm:$0xff]  }
 0x18b   : > { %8670 = vmatmul.mubr.msk.bf16.gmra.mrb[36].mxu1 %vm555_vm1, %v8008_v3  ;;  %v2900_v37 = vrot.slane %v2740_v21, 5  ;;  %8699 = vmatprep.mubr.msk.bf16.mxu0 %vm555_vm1, %v9023_v26  ;;  %v2887_v40 = vsel %vm9678_vm15, %v7993_v18, %v2886_v24  ;;  %v2894_v32 = vsel %vm9678_vm15, %v7994_v20, %v2893_v10  ;;  %v2895_v42 = vrot.slane %v2893_v10, 4  ;;  %v2754_v12 = vld [vmem:[#allocation2 + $0x90] sm:$0xe]  ;;  %v2755_v6 = vld [vmem:[#allocation2 + $0x94] sm:$0xf] }
 0x18c   : > { %v2903_v19 = vrot.slane %v2741_v14, 5  ;;  %8673 = vmatprep.mubr.msk.bf16.mxu1 %vm555_vm1, %v8009_v34  ;;  %v2890_v43 = vsel %vm9678_vm15, %v2888_v35, %v2889_v55  ;;  %v7996_v16 = vrot.slane %v2742_v5, 9  ;;  %v2907_v45 = vrot.slane %v2743_v48, 5  ;;  %v2756_v18 = vld [vmem:[#allocation2 + $0x98] sm:$0x1] }
 0x18d   : > { %v2902_v44 = vrot.slane %v2900_v37, 4  ;;  %v8010_v25 = vcombine.low %v2887_v40, %v2890_v43  ;;  %v2897_v52 = vsel %vm9678_vm15, %v2895_v42, %v2896_v31  ;;  %v9742_v53 = vsel %vm9678_vm15, %v7995_v36, %v2900_v37  ;;  %v2757_v24 = vld [vmem:[#allocation2 + $0x9c] sm:$0xe]  ;;  %v2758_v55 = vld [vmem:[#allocation2 + $0xa0] sm:$0xf] }
 0x18e   : > { %v2910_v54 = vrot.slane %v2744_v30, 5  ;;  %v8011_v60 = vcombine.low %v2894_v32, %v2897_v52  ;;  %v2909_v59 = vrot.slane %v2907_v45, 4  ;;  %v7997_v28 = vrot.slane %v2745_v27, 9  ;;  %v2759_v20 = vld [vmem:[#allocation2 + $0xa4] sm:$0x1] }
 0x18f   : > { %v9746_v57 = vsel %vm9678_vm15, %v2902_v44, %v2903_v19  ;;  %v9752_v1 = vsel %vm9678_vm15, %v7996_v16, %v2907_v45  ;;  %v2914_v63 = vrot.slane %v2746_v41, 5  ;;  %v2917_v8 = vrot.slane %v2747_v38, 5  ;;  %v2760_v35 = vld [vmem:[#allocation2 + $0xa8] sm:$0xe]  ;;  %v2761_v36 = vld [vmem:[#allocation2 + $0xac] sm:$0xf] }
 0x190   : > { %v8012_v0 = vcombine.low %v9742_v53, %v9746_v57  ;;  %v9756_v51 = vsel %vm9678_vm15, %v2909_v59, %v2910_v54  ;;  %v7998_v15 = vrot.slane %v2748_v50, 9  ;;  %v2921_v7 = vrot.slane %v2749_v56, 5  ;;  %v2762_v42 = vld [vmem:[#allocation2 + $0xb0] sm:$0x1]  ;;  %v3709_v19 = vld [vmem:[#allocation2 + $0xc] sm:$0xf] }
 0x191   : > { %v2924_v58 = vrot.slane %v2750_v47, 5  ;;  %v8013_v61 = vcombine.low %v9752_v1, %v9756_v51  ;;  %v2916_v46 = vrot.slane %v2914_v63, 4  ;;  %v7999_v3 = vrot.slane %v2751_v33, 9  ;;  %v2763_v16 = vld [vmem:[#allocation2 + $0xb4] sm:$0xe] }
 0x192   : > { %v2928_v9 = vrot.slane %v2752_v62, 5  ;;  %8700 = vmatmul.mubr.msk.bf16.vlgmr.msra.gmra.mrb[64].mxu0 %vm555_vm1, %v9024_v13  ;;  %v9764_v21 = vsel %vm9678_vm15, %v7997_v28, %v2914_v63  ;;  %v9768_v14 = vsel %vm9678_vm15, %v7998_v15, %v2921_v7  ;;  %v2923_v22 = vrot.slane %v2921_v7, 4  ;;  %v2764_v45 = vld [vmem:[#allocation2 + $0xb8] sm:$0xf]  ;;  %v3710_v56 = vld [vmem:[#allocation2 + $0x10] sm:$0xf] }
 0x193   : > { %8674 = vmatmul.mubr.msk.bf16.gmra.mrb[40].mxu1 %vm555_vm1, %v8010_v25  ;;  %v2931_v23 = vrot.slane %v2753_v11, 5  ;;  %8703 = vmatprep.mubr.msk.bf16.mxu0 %vm555_vm1, %v9025_v2  ;;  %v9774_v5 = vsel %vm9678_vm15, %v2916_v46, %v2917_v8  ;;  %v8000_v26 = vrot.slane %v2754_v12, 9  ;;  %v2935_v29 = vrot.slane %v2755_v6, 5  ;;  %v9026_v47 = vld [vmem:[#allocation2 + $0x30] sm:$0xff]   ;;  %v2765_v62 = vld [vmem:[#allocation2 + $0xbc] sm:$0x1] }
 0x194   : > { %8677 = vmatprep.mubr.msk.bf16.mxu1 %vm555_vm1, %v8011_v60  ;;  %v2930_v48 = vrot.slane %v2928_v9, 4  ;;  %v8014_v10 = vcombine.low %v9764_v21, %v9774_v5  ;;  %v9780_v31 = vsel %vm9678_vm15, %v2923_v22, %v2924_v58  ;;  %v9784_v30 = vsel %vm9678_vm15, %v7999_v3, %v2928_v9  ;;  %v9027_v63 = vld [vmem:[#allocation2 + $0x3c] sm:$0xff]   ;;  %v3711_v13 = vld [vmem:[#allocation2 + $0x14] sm:$0x1]  ;;  %v3712_v2 = vld [vmem:[#allocation2 + $0x18] sm:$0xf] }
 0x195   : > { %v2938_v34 = vrot.slane %v2756_v18, 5  ;;  %v8015_v37 = vcombine.low %v9768_v14, %v9780_v31  ;;  %v2937_v40 = vrot.slane %v2935_v29, 4  ;;  %v8001_v32 = vrot.slane %v2757_v24, 9  ;;  %v3713_v3 = vld [vmem:[#allocation2 + $0x1c] sm:$0xf] }
 0x196   : > { %v9790_v27 = vsel %vm9678_vm15, %v2930_v48, %v2931_v23  ;;  %v9796_v38 = vsel %vm9678_vm15, %v8000_v26, %v2935_v29  ;;  %v2942_v43 = vrot.slane %v2758_v55, 5  ;;  %v2945_v44 = vrot.slane %v2759_v20, 5  ;;  %v3714_v26 = vld [vmem:[#allocation2 + $0x20] sm:$0x1]  ;;  %v9867_v14 = vld [vmem:[%s11380_s4 + $0xe] sm:$0x3] }
 0x197   : > { %v8016_v41 = vcombine.low %v9784_v30, %v9790_v27  ;;  %v9800_v50 = vsel %vm9678_vm15, %v2937_v40, %v2938_v34  ;;  %v8002_v25 = vrot.slane %v2760_v35, 9  ;;  %v2949_v52 = vrot.slane %v2761_v36, 5  ;;  %v3715_v34 = vld [vmem:[#allocation2 + $0x24] sm:$0xf]  ;;  %v9028_v35 = vld [vmem:[#allocation2 + $0x48] sm:$0xff]  }
 0x198   : > { %v4838_v54 = vsel %vm604_vm0, %v9657_v17, 0  ;;  %v8017_v60 = vcombine.low %v9796_v38, %v9800_v50  ;;  %v9808_v59 = vsel %vm9678_vm15, %v8001_v32, %v2942_v43  ;;  %v2944_v28 = vrot.slane %v2942_v43, 4 }
 0x199   : > { %v2952_v33 = vrot.slane %v2762_v42, 5  ;;  %8766 = vmatpush3.bf16.msra.mxu0 %v4838_v54  ;;  %v9812_v8 = vsel %vm9678_vm15, %v8002_v25, %v2949_v52  ;;  %v2951_v11 = vrot.slane %v2949_v52, 4  ;;  %v8003_v17 = vrot.slane %v2763_v16, 9  ;;  %v9029_v25 = vld [vmem:[#allocation2 + $0x54] sm:$0xff]  }
 0x19a   : > { %v2956_v12 = vrot.slane %v2764_v45, 5  ;;  %8704 = vmatmul.mubr.msk.bf16.gmra.mrb[68].mxu0 %vm555_vm1, %v9026_v47  ;;  %v9821_v15 = vsel %vm9678_vm15, %v2944_v28, %v2945_v44  ;;  %v3790_v7 = vshrl.u32 %v3709_v19, 16  ;;  %v3793_v58 = vshll.u32 %v3709_v19, 16  ;;  %v3716_v45 = vld [vmem:[#allocation2 + $0x28] sm:$0xf]  ;;  %8977 = vmatprep.subr.msk.bf16.mxu0 %vm604_vm0, %v9867_v14 }
 0x19b   : > { %8678 = vmatmul.mubr.msk.bf16.gmra.mrb[44].mxu1 %vm555_vm1, %v8012_v0  ;;  %v3799_v6 = vshll.u32 %v3710_v56, 16  ;;  %8707 = vmatprep.mubr.msk.bf16.mxu0 %vm555_vm1, %v9027_v63  ;;  %v8018_v53 = vcombine.low %v9808_v59, %v9821_v15  ;;  %v9832_v57 = vsel %vm9678_vm15, %v2951_v11, %v2952_v33  ;;  %v2959_v46 = vrot.slane %v2765_v62, 5  ;;  %v3717_v47 = vld [vmem:[#allocation2 + $0x2c] sm:$0x1] }
 0x19c   : > { %8681 = vmatprep.mubr.msk.bf16.mxu1 %vm555_vm1, %v8013_v61  ;;  %v2958_v0 = vrot.slane %v2956_v12, 4  ;;  %v9836_v9 = vsel %vm9678_vm15, %v8003_v17, %v2956_v12  ;;  %v3792_v18 = vrot.slane %v3790_v7, 4  ;;  %v3795_v22 = vrot.slane %v3793_v58, 5  ;;  %v4499_v17 = vld [vmem:[#allocation2 + $0xc] sm:$0xe] }
 0x19d   : > { %v3801_v23 = vrot.slane %v3799_v6, 5  ;;  %v3803_v51 = vshrl.u32 %v3710_v56, 16  ;;  %v3809_v61 = vshll.u32 %v3711_v13, 16  ;;  %v3814_v24 = vshrl.u32 %v3712_v2, 16  ;;  %v4500_v12 = vld [vmem:[#allocation2 + $0x10] sm:$0xf] }
 0x19e   : > { %v9840_v1 = vsel %vm9678_vm15, %v2958_v0, %v2959_v46  ;;  %v8019_v55 = vcombine.low %v9812_v8, %v9832_v57  ;;  %v3796_v48 = vor.u32 %v3795_v22, %v3792_v18  ;;  %v3817_v29 = vshll.u32 %v3712_v2, 16  ;;  %v4501_v7 = vld [vmem:[#allocation2 + $0x14] sm:$0x1]  ;;  %v3718_v0 = vld [vmem:[#allocation2 + $0x30] sm:$0xf] }
 0x19f   : > { %v3823_v20 = vshll.u32 %v3713_v3, 16  ;;  %v8020_v36 = vcombine.low %v9836_v9, %v9840_v1  ;;  %v3805_v40 = vrot.slane %v3803_v51, 4  ;;  %v3816_v32 = vrot.slane %v3814_v24, 4  ;;  %v3728_v8 = vld [vmem:[#allocation2 + $0x58] sm:$0xf] }
 0x1a0   : > { %v3827_v42 = vshrl.u32 %v3713_v3, 16  ;;  %v3797_v19 = vrot.slane %v3796_v48, 4  ;;  %v3811_v43 = vrot.slane %v3809_v61, 5  ;;  %v3819_v44 = vrot.slane %v3817_v29, 5  ;;  %v3719_v61 = vld [vmem:[#allocation2 + $0x34] sm:$0xf] }
 0x1a1   : > { %v3825_v16 = vrot.slane %v3823_v20, 5  ;;  %v3806_v52 = vor.u32 %v3805_v40, %v3801_v23  ;;  %v3833_v56 = vshll.u32 %v3714_v26, 16  ;;  %v3838_v28 = vshrl.u32 %v3715_v34, 16  ;;  %v3720_v20 = vld [vmem:[#allocation2 + $0x38] sm:$0x1] }
 0x1a2   : > { %v3829_v54 = vrot.slane %v3827_v42, 4  ;;  %8708 = vmatmul.mubr.msk.bf16.gmra.mrb[72].mxu0 %vm555_vm1, %v9028_v35  ;;  %v3802_v33 = vsel %vm9273_vm6, %v3797_v19, %v3801_v23  ;;  %v3820_v62 = vor.u32 %v3819_v44, %v3816_v32  ;;  %v9855_v63 = vsel %vm604_vm0, %v9706_v49, 0  ;;  %v3721_v19 = vld [vmem:[#allocation2 + $0x3c] sm:$0xf] }
 0x1a3   : > { %8682 = vmatmul.mubr.msk.bf16.gmra.mrb[48].mxu1 %vm555_vm1, %v8014_v10  ;;  %v3841_v11 = vshll.u32 %v3715_v34, 16  ;;  %8711 = vmatprep.mubr.msk.bf16.mxu0 %vm555_vm1, %v9029_v25  ;;  %v3807_v21 = vrot.slane %v3806_v52, 4  ;;  %v3840_v10 = vrot.slane %v3838_v28, 4  ;;  %v3847_v13 = vshll.u32 %v3716_v45, 16  ;;  %v9030_v34 = vld [vmem:[#allocation2 + $0x60] sm:$0xff]  }
 0x1a4   : > { %8685 = vmatprep.mubr.msk.bf16.mxu1 %vm555_vm1, %v8015_v37  ;;  %v3830_v5 = vor.u32 %v3829_v54, %v3825_v16  ;;  %v3821_v58 = vrot.slane %v3820_v62, 4  ;;  %v3851_v2 = vshrl.u32 %v3716_v45, 16  ;;  %v3857_v49 = vshll.u32 %v3717_v47, 16  ;;  %v3722_v54 = vld [vmem:[#allocation2 + $0x40] sm:$0xf] }
 0x1a5   : > { %v3843_v6 = vrot.slane %v3841_v11, 5  ;;  %v3812_v46 = vsel %vm9273_vm6, %v3807_v21, %v3811_v43  ;;  %v3835_v18 = vrot.slane %v3833_v56, 5  ;;  %v3849_v22 = vrot.slane %v3847_v13, 5  ;;  %v9031_v43 = vld [vmem:[#allocation2 + $0x6c] sm:$0xff]   ;;  %v4503_v13 = vld [vmem:[#allocation2 + $0x1c] sm:$0xf] }
 0x1a6   : > { %v3831_v3 = vrot.slane %v3830_v5, 4  ;;  %v9869_v31 = vcombine.low %v3802_v33, %v3812_v46  ;;  %v3853_v23 = vrot.slane %v3851_v2, 4  ;;  %v8103_v51 = vrot.slane %v4499_v17, 9  ;;  %v4502_v5 = vld [vmem:[#allocation2 + $0x18] sm:$0xe] }
 0x1a7   : > { %v3844_v37 = vor.u32 %v3843_v6, %v3840_v10  ;;  %v3826_v24 = vsel %vm9273_vm6, %v3821_v58, %v3825_v16  ;;  %v3859_v26 = vrot.slane %v3857_v49, 5  ;;  %v4629_v29 = vrot.slane %v4500_v12, 5  ;;  %v3723_v12 = vld [vmem:[#allocation2 + $0x44] sm:$0x1]  ;;  %v9032_v58 = vld [vmem:[#allocation2 + $0x78] sm:$0xff]  }
 0x1a8   : > { %v3836_v48 = vsel %vm9273_vm6, %v3831_v3, %v3835_v18  ;;  %v3854_v40 = vor.u32 %v3853_v23, %v3849_v22  ;;  %v4632_v32 = vrot.slane %v4501_v7, 5  ;;  %v3862_v42 = vshrl.u32 %v3718_v0, 16  ;;  %v4504_v7 = vld [vmem:[#allocation2 + $0x20] sm:$0x1]  ;;  %v4506_v46 = vld [vmem:[#allocation2 + $0x28] sm:$0xf] }
 0x1a9   : > { %v3845_v35 = vrot.slane %v3844_v37, 4  ;;  %v9877_v44 = vcombine.low %v3826_v24, %v3836_v48  ;;  %v4631_v45 = vrot.slane %v4629_v29, 4  ;;  %v3865_v25 = vshll.u32 %v3718_v0, 16  ;;  %v9033_v3 = vld [vmem:[#allocation2 + $0x84] sm:$0xff]  }
 0x1aa   : > { %v3871_v52 = vshll.u32 %v3719_v61, 16  ;;  %8712 = vmatmul.mubr.msk.bf16.gmra.mrb[76].mxu0 %vm555_vm1, %v9030_v34  ;;  %v3855_v16 = vrot.slane %v3854_v40, 4  ;;  %v9886_v56 = vsel %vm9678_vm15, %v8103_v51, %v4629_v29  ;;  %v3864_v47 = vrot.slane %v3862_v42, 4  ;;  %v4505_v51 = vld [vmem:[#allocation2 + $0x24] sm:$0xe] }
 0x1ab   : > { %8686 = vmatmul.mubr.msk.bf16.gmra.mrb[52].mxu1 %vm555_vm1, %v8016_v41  ;;  %v3875_v28 = vshrl.u32 %v3719_v61, 16  ;;  %8715 = vmatprep.mubr.msk.bf16.mxu0 %vm555_vm1, %v9031_v43  ;;  %v9895_v33 = vsel %vm9678_vm15, %v4631_v45, %v4632_v32  ;;  %v3867_v30 = vrot.slane %v3865_v25, 5  ;;  %v3881_v41 = vshll.u32 %v3720_v20, 16  ;;  %v4507_v29 = vld [vmem:[#allocation2 + $0x2c] sm:$0x1] }
 0x1ac   : > { %8689 = vmatprep.mubr.msk.bf16.mxu1 %vm555_vm1, %v8017_v60  ;;  %v3873_v27 = vrot.slane %v3871_v52, 5  ;;  %v3850_v62 = vsel %vm9273_vm6, %v3845_v35, %v3849_v22  ;;  %v3860_v11 = vsel %vm9273_vm6, %v3855_v16, %v3859_v26  ;;  %v3886_v21 = vshrl.u32 %v3721_v19, 16  ;;  %v3724_v32 = vld [vmem:[#allocation2 + $0x48] sm:$0xf]  ;;  %v3725_v42 = vld [vmem:[#allocation2 + $0x4c] sm:$0xf] }
 0x1ad   : > { %v3877_v17 = vrot.slane %v3875_v28, 4  ;;  %v9901_v38 = vcombine.low %v3850_v62, %v3860_v11  ;;  %v8120_v50 = vcombine.low %v9886_v56, %v9895_v33  ;;  %v3868_v60 = vor.u32 %v3867_v30, %v3864_v47  ;;  %v3727_v16 = vld [vmem:[#allocation2 + $0x54] sm:$0xf]  ;;  %v3729_v11 = vld [vmem:[#allocation2 + $0x5c] sm:$0x1] }
 0x1ae   : > { %v3889_v10 = vshll.u32 %v3721_v19, 16  ;;  %v3888_v2 = vrot.slane %v3886_v21, 4  ;;  %v3895_v49 = vshll.u32 %v3722_v54, 16  ;;  %v3899_v0 = vshrl.u32 %v3722_v54, 16 }
 0x1af   : > { %v3878_v6 = vor.u32 %v3877_v17, %v3873_v27  ;;  %v3869_v18 = vrot.slane %v3868_v60, 4  ;;  %v3883_v22 = vrot.slane %v3881_v41, 5  ;;  %v3905_v23 = vshll.u32 %v3723_v12, 16 }
 0x1b0   : > { %v3891_v37 = vrot.slane %v3889_v10, 5  ;;  %v3897_v24 = vrot.slane %v3895_v49, 5  ;;  %v3901_v48 = vrot.slane %v3899_v0, 4  ;;  %v4636_v26 = vrot.slane %v4503_v13, 5 }
 0x1b1   : > { %v3879_v61 = vrot.slane %v3878_v6, 4  ;;  %v3874_v20 = vsel %vm9273_vm6, %v3869_v18, %v3873_v27  ;;  %v3907_v35 = vrot.slane %v3905_v23, 5  ;;  %v8104_v40 = vrot.slane %v4502_v5, 9  ;;  %v4509_v6 = vld [vmem:[#allocation2 + $0x34] sm:$0xf] }
 0x1b2   : > { %v3892_v34 = vor.u32 %v3891_v37, %v3888_v2  ;;  %8716 = vmatmul.mubr.msk.bf16.gmra.mrb[80].mxu0 %vm555_vm1, %v9032_v58  ;;  %v3902_v43 = vor.u32 %v3901_v48, %v3897_v24  ;;  %v4638_v45 = vrot.slane %v4636_v26, 4  ;;  %v4639_v25 = vrot.slane %v4504_v7, 5  ;;  %v4508_v58 = vld [vmem:[#allocation2 + $0x30] sm:$0xe]  ;;  %v4510_v18 = vld [vmem:[#allocation2 + $0x38] sm:$0x1] }
 0x1b3   : > { %8690 = vmatmul.mubr.msk.bf16.gmra.mrb[56].mxu1 %vm555_vm1, %v8018_v53  ;;  %v3884_v19 = vsel %vm9273_vm6, %v3879_v61, %v3883_v22  ;;  %8719 = vmatprep.mubr.msk.bf16.mxu0 %vm555_vm1, %v9033_v3  ;;  %v9923_v59 = vsel %vm9678_vm15, %v8104_v40, %v4636_v26  ;;  %v4643_v15 = vrot.slane %v4506_v46, 5  ;;  %v3726_v53 = vld [vmem:[#allocation2 + $0x50] sm:$0x1]  ;;  %v8105_v30 = vrot.slane %v4505_v51, 9  ;;  %v9035_v22 = vld [vmem:[#allocation2 + $0x9c] sm:$0xff]  }
 0x1b4   : > { %8693 = vmatprep.mubr.msk.bf16.mxu1 %vm555_vm1, %v8019_v55  ;;  %v9919_v52 = vcombine.low %v3874_v20, %v3884_v19  ;;  %v3893_v54 = vrot.slane %v3892_v34, 4  ;;  %v3903_v47 = vrot.slane %v3902_v43, 4  ;;  %v9927_v28 = vsel %vm9678_vm15, %v4638_v45, %v4639_v25  ;;  %v9034_v2 = vld [vmem:[#allocation2 + $0x90] sm:$0xff]   ;;  %v4512_v34 = vld [vmem:[#allocation2 + $0x40] sm:$0xf] }
 0x1b5   : > { %v3910_v27 = vshrl.u32 %v3724_v32, 16  ;;  %v8121_v55 = vcombine.low %v9923_v59, %v9927_v28  ;;  %v4645_v41 = vrot.slane %v4643_v15, 4  ;;  %v4646_v62 = vrot.slane %v4507_v29, 5  ;;  %v4513_v19 = vld [vmem:[#allocation2 + $0x44] sm:$0x1] }
 0x1b6   : > { %v3898_v57 = vsel %vm9273_vm6, %v3893_v54, %v3897_v24  ;;  %v3908_v17 = vsel %vm9273_vm6, %v3903_v47, %v3907_v35  ;;  %v3913_v21 = vshll.u32 %v3724_v32, 16  ;;  %v3919_v5 = vshll.u32 %v3725_v42, 16  ;;  %v4511_v24 = vld [vmem:[#allocation2 + $0x3c] sm:$0xe] }
 0x1b7   : > { %v3912_v12 = vrot.slane %v3910_v27, 4  ;;  %v9937_v60 = vsel %vm9678_vm15, %v8105_v30, %v4643_v15  ;;  %v9941_v10 = vsel %vm9678_vm15, %v4645_v41, %v4646_v62  ;;  %v3923_v13 = vshrl.u32 %v3725_v42, 16 }
 0x1b8   : > { %v3929_v7 = vshll.u32 %v3726_v53, 16  ;;  %v9943_v49 = vcombine.low %v3898_v57, %v3908_v17  ;;  %v3915_v0 = vrot.slane %v3913_v21, 5  ;;  %v3921_v46 = vrot.slane %v3919_v5, 5  ;;  %v3733_v17 = vld [vmem:[#allocation2 + $0x6c] sm:$0xf] }
 0x1b9   : > { %v3934_v3 = vshrl.u32 %v3727_v16, 16  ;;  %v8122_v37 = vcombine.low %v9937_v60, %v9941_v10  ;;  %v3925_v23 = vrot.slane %v3923_v13, 4  ;;  %v3937_v51 = vshll.u32 %v3727_v16, 16  ;;  %v3731_v16 = vld [vmem:[#allocation2 + $0x64] sm:$0xf] }
 0x1ba   : > { %v3943_v61 = vshll.u32 %v3728_v8, 16  ;;  %8720 = vmatmul.mubr.msk.bf16.gmra.mrb[84].mxu0 %vm555_vm1, %v9034_v2  ;;  %v3916_v48 = vor.u32 %v3915_v0, %v3912_v12  ;;  %v3947_v29 = vshrl.u32 %v3728_v8, 16  ;;  %v3953_v20 = vshll.u32 %v3729_v11, 16  ;;  %v3732_v8 = vld [vmem:[#allocation2 + $0x68] sm:$0x1] }
 0x1bb   : > { %8694 = vmatmul.mubr.msk.bf16.gmra.mrb[60].mxu1 %vm555_vm1, %v8020_v36  ;;  %v3936_v26 = vrot.slane %v3934_v3, 4  ;;  %8723 = vmatprep.mubr.msk.bf16.mxu0 %vm555_vm1, %v9035_v22  ;;  %v3926_v35 = vor.u32 %v3925_v23, %v3921_v46  ;;  %v3931_v40 = vrot.slane %v3929_v7, 5  ;;  %v3939_v32 = vrot.slane %v3937_v51, 5  ;;  %v3730_v36 = vld [vmem:[#allocation2 + $0x60] sm:$0xf]  ;;  %v9036_v12 = vld [vmem:[#allocation2 + $0xa8] sm:$0xff]  }
 0x1bc   : > { %8733 = vmatprep.mubr.msk.bf16.mxu1 %vm555_vm1, %v9869_v31  ;;  %v3945_v42 = vrot.slane %v3943_v61, 5  ;;  %v3917_v43 = vrot.slane %v3916_v48, 4  ;;  %v3949_v45 = vrot.slane %v3947_v29, 4  ;;  %v8106_v9 = vrot.slane %v4508_v58, 9  ;;  %v9037_v58 = vld [vmem:[#allocation2 + $0xb4] sm:$0xff]  }
 0x1bd   : > { %v4650_v1 = vrot.slane %v4509_v6, 5  ;;  %v3927_v25 = vrot.slane %v3926_v35, 4  ;;  %v3940_v54 = vor.u32 %v3939_v32, %v3936_v26  ;;  %v3955_v15 = vrot.slane %v3953_v20, 5  ;;  %v3734_v3 = vld [vmem:[#allocation2 + $0x70] sm:$0xf] }
 0x1be   : > { %v4653_v53 = vrot.slane %v4510_v18, 5  ;;  %v3922_v47 = vsel %vm9273_vm6, %v3917_v43, %v3921_v46  ;;  %v3950_v30 = vor.u32 %v3949_v45, %v3945_v42  ;;  %v8107_v27 = vrot.slane %v4511_v24, 9  ;;  %v9976_v18 = vld [vmem:[%s11380_s4 + $0x10] sm:$0x3]  ;;  %v3735_v24 = vld [vmem:[#allocation2 + $0x74] sm:$0x1] }
 0x1bf   : > { %v4652_v31 = vrot.slane %v4650_v1, 4  ;;  %v3932_v57 = vsel %vm9273_vm6, %v3927_v25, %v3931_v40  ;;  %v3941_v41 = vrot.slane %v3940_v54, 4  ;;  %v9961_v62 = vsel %vm9678_vm15, %v8106_v9, %v4650_v1  ;;  %v4514_v20 = vld [vmem:[#allocation2 + $0x48] sm:$0xe]  ;;  %v4517_v1 = vld [vmem:[#allocation2 + $0x54] sm:$0xe] }
 0x1c0   : > { %v4657_v11 = vrot.slane %v4512_v34, 5  ;;  %v3951_v21 = vrot.slane %v3950_v30, 4  ;;  %v4660_v13 = vrot.slane %v4513_v19, 5  ;;  %v3958_v7 = vshrl.u32 %v3730_v36, 16  ;;  %v4515_v34 = vld [vmem:[#allocation2 + $0x4c] sm:$0xf] }
 0x1c1   : > { %v9965_v5 = vsel %vm9678_vm15, %v4652_v31, %v4653_v53  ;;  %v9967_v6 = vcombine.low %v3922_v47, %v3932_v57  ;;  %v3946_v2 = vsel %vm9273_vm6, %v3941_v41, %v3945_v42  ;;  %v3961_v51 = vshll.u32 %v3730_v36, 16  ;;  %v4516_v42 = vld [vmem:[#allocation2 + $0x50] sm:$0x1]  ;;  %v9038_v53 = vld [vmem:[#allocation2 + $0xc0] sm:$0xff]  }
 0x1c2   : > { %v8123_v0 = vcombine.low %v9961_v62, %v9965_v5  ;;  %v4659_v46 = vrot.slane %v4657_v11, 4  ;;  %8724 = vmatmul.mubr.msk.bf16.gmra.mrb[88].mxu0 %vm555_vm1, %v9036_v12  ;;  %v3956_v22 = vsel %vm9273_vm6, %v3951_v21, %v3955_v15  ;;  %v3960_v23 = vrot.slane %v3958_v7, 4  ;;  %v4518_v15 = vld [vmem:[#allocation2 + $0x58] sm:$0xf] }
 0x1c3   : > { %8734 = vmatmul.mubr.msk.bf16.vlgmr.msra.gmra.mrb[64].mxu1 %vm555_vm1, %v9877_v44  ;;  %v3967_v61 = vshll.u32 %v3731_v16, 16  ;;  %8727 = vmatprep.mubr.msk.bf16.mxu0 %vm555_vm1, %v9037_v58  ;;  %v9987_v48 = vsel %vm9678_vm15, %v8107_v27, %v4657_v11  ;;  %v3971_v44 = vshrl.u32 %v3731_v16, 16  ;;  %v3977_v29 = vshll.u32 %v3732_v8, 16  ;;  %v4519_v11 = vld [vmem:[#allocation2 + $0x5c] sm:$0x1] }
 0x1c4   : > { %8800 = vmatpush3.bf16.msra.mxu1 %v9855_v63  ;;  %v9991_v26 = vsel %vm9678_vm15, %v4659_v46, %v4660_v13  ;;  %8737 = vmatprep.mubr.msk.bf16.mxu1 %vm555_vm1, %v9901_v38  ;;  %v9995_v35 = vcombine.low %v3946_v2, %v3956_v22  ;;  %v3963_v40 = vrot.slane %v3961_v51, 5  ;;  %v3982_v63 = vshrl.u32 %v3733_v17, 16  ;;  %v3736_v7 = vld [vmem:[#allocation2 + $0x78] sm:$0xf]  ;;  %v3737_v22 = vld [vmem:[#allocation2 + $0x7c] sm:$0xf] }
 0x1c5   : > { %v3969_v32 = vrot.slane %v3967_v61, 5  ;;  %8978 = vmatprep.subr.msk.bf16.mxu1 %vm604_vm0, %v9976_v18  ;;  %v8124_v19 = vcombine.low %v9987_v48, %v9991_v26  ;;  %v3973_v43 = vrot.slane %v3971_v44, 4  ;;  %v3985_v45 = vshll.u32 %v3733_v17, 16  ;;  %v3739_v44 = vld [vmem:[#allocation2 + $0x84] sm:$0xf] }
 0x1c6   : > { %v3991_v9 = vshll.u32 %v3734_v3, 16  ;;  %v3964_v36 = vor.u32 %v3963_v40, %v3960_v23  ;;  %v3984_v25 = vrot.slane %v3982_v63, 4  ;;  %v3995_v54 = vshrl.u32 %v3734_v3, 16  ;;  %v3741_v63 = vld [vmem:[#allocation2 + $0x8c] sm:$0x1] }
 0x1c7   : > { %v4001_v38 = vshll.u32 %v3735_v24, 16  ;;  %v3974_v16 = vor.u32 %v3973_v43, %v3969_v32  ;;  %v3979_v47 = vrot.slane %v3977_v29, 5  ;;  %v3987_v30 = vrot.slane %v3985_v45, 5  ;;  %v3738_v24 = vld [vmem:[#allocation2 + $0x80] sm:$0x1] }
 0x1c8   : > { %v3993_v31 = vrot.slane %v3991_v9, 5  ;;  %v3965_v27 = vrot.slane %v3964_v36, 4  ;;  %v3997_v8 = vrot.slane %v3995_v54, 4  ;;  %v8108_v57 = vrot.slane %v4514_v20, 9  ;;  %v3740_v20 = vld [vmem:[#allocation2 + $0x88] sm:$0xf] }
 0x1c9   : > { %v4664_v41 = vrot.slane %v4515_v34, 5  ;;  %v3975_v12 = vrot.slane %v3974_v16, 4  ;;  %v3988_v21 = vor.u32 %v3987_v30, %v3984_v25  ;;  %v4003_v17 = vrot.slane %v4001_v38, 5  ;;  %v4520_v38 = vld [vmem:[#allocation2 + $0x60] sm:$0xe] }
 0x1ca   : > { %v4667_v13 = vrot.slane %v4516_v42, 5  ;;  %8728 = vmatmul.mubr.msk.bf16.gmra.mrb[92].mxu0 %vm555_vm1, %v9038_v53  ;;  %v3970_v58 = vsel %vm9273_vm6, %v3965_v27, %v3969_v32  ;;  %v3998_v2 = vor.u32 %v3997_v8, %v3993_v31  ;;  %v8109_v3 = vrot.slane %v4517_v1, 9 }
 0x1cb   : > { %8738 = vmatmul.mubr.msk.bf16.gmra.mrb[68].mxu1 %vm555_vm1, %v9919_v52  ;;  %v4666_v46 = vrot.slane %v4664_v41, 4  ;;  %8767 = vmatprep.mubr.msk.bf16.mxu0 %vm555_vm1, %v8120_v50  ;;  %v3980_v23 = vsel %vm9273_vm6, %v3975_v12, %v3979_v47  ;;  %v3989_v51 = vrot.slane %v3988_v21, 4  ;;  %v10016_v52 = vsel %vm9678_vm15, %v8108_v57, %v4664_v41 }
 0x1cc   : > { %8741 = vmatprep.mubr.msk.bf16.mxu1 %vm555_vm1, %v9943_v49  ;;  %v4671_v61 = vrot.slane %v4518_v15, 5  ;;  %v3999_v29 = vrot.slane %v3998_v2, 4  ;;  %v4674_v33 = vrot.slane %v4519_v11, 5  ;;  %v4006_v50 = vshrl.u32 %v3736_v7, 16  ;;  %v4521_v15 = vld [vmem:[#allocation2 + $0x64] sm:$0xf] }
 0x1cd   : > { %v10020_v56 = vsel %vm9678_vm15, %v4666_v46, %v4667_v13  ;;  %v10022_v49 = vcombine.low %v3970_v58, %v3980_v23  ;;  %v3994_v34 = vsel %vm9273_vm6, %v3989_v51, %v3993_v31  ;;  %v4009_v45 = vshll.u32 %v3736_v7, 16  ;;  %v4522_v31 = vld [vmem:[#allocation2 + $0x68] sm:$0x1]  ;;  %v4523_v11 = vld [vmem:[#allocation2 + $0x6c] sm:$0xe] }
 0x1ce   : > { %v8125_v40 = vcombine.low %v10016_v52, %v10020_v56  ;;  %v4673_v32 = vrot.slane %v4671_v61, 4  ;;  %v4004_v42 = vsel %vm9273_vm6, %v3999_v29, %v4003_v17  ;;  %v4008_v43 = vrot.slane %v4006_v50, 4  ;;  %v4524_v7 = vld [vmem:[#allocation2 + $0x70] sm:$0xf]  ;;  %v4525_v2 = vld [vmem:[#allocation2 + $0x74] sm:$0x1] }
 0x1cf   : > { %v4015_v9 = vshll.u32 %v3737_v22, 16  ;;  %v10030_v1 = vcombine.low %v3994_v34, %v4004_v42  ;;  %v10034_v36 = vsel %vm9678_vm15, %v8109_v3, %v4671_v61  ;;  %v4019_v25 = vshrl.u32 %v3737_v22, 16  ;;  %v3742_v46 = vld [vmem:[#allocation2 + $0x90] sm:$0xf] }
 0x1d0   : > { %v4025_v54 = vshll.u32 %v3738_v24, 16  ;;  %v10038_v53 = vsel %vm9678_vm15, %v4673_v32, %v4674_v33  ;;  %v4011_v16 = vrot.slane %v4009_v45, 5  ;;  %v4030_v30 = vshrl.u32 %v3739_v44, 16 }
 0x1d1   : > { %v4017_v47 = vrot.slane %v4015_v9, 5  ;;  %v4021_v27 = vrot.slane %v4019_v25, 4  ;;  %v4033_v57 = vshll.u32 %v3739_v44, 16  ;;  %v4039_v41 = vshll.u32 %v3740_v20, 16  ;;  %v3744_v25 = vld [vmem:[#allocation2 + $0x98] sm:$0x1] }
 0x1d2   : > { %v4027_v8 = vrot.slane %v4025_v54, 5  ;;  %8768 = vmatmul.mubr.msk.bf16.vlgmr.msra.gmra.mrb[96].mxu0 %vm555_vm1, %v8121_v55  ;;  %v4012_v12 = vor.u32 %v4011_v16, %v4008_v43  ;;  %v4032_v21 = vrot.slane %v4030_v30, 4  ;;  %v4043_v17 = vshrl.u32 %v3740_v20, 16 }
 0x1d3   : > { %8742 = vmatmul.mubr.msk.bf16.gmra.mrb[72].mxu1 %vm555_vm1, %v9967_v6  ;;  %v4049_v13 = vshll.u32 %v3741_v63, 16  ;;  %8771 = vmatprep.mubr.msk.bf16.mxu0 %vm555_vm1, %v8122_v37  ;;  %v4022_v58 = vor.u32 %v4021_v27, %v4017_v47  ;;  %v4035_v59 = vrot.slane %v4033_v57, 5  ;;  %v4041_v28 = vrot.slane %v4039_v41, 5  ;;  %v10052_v60 = vpop.f32.mrb[0].mxu1  ;;  %v3743_v63 = vld [vmem:[#allocation2 + $0x94] sm:$0xf] }
 0x1d4   : > { %8745 = vmatprep.mubr.msk.bf16.mxu1 %vm555_vm1, %v9995_v35  ;;  %v8110_v55 = vrot.slane %v4520_v38, 9  ;;  %v4013_v6 = vrot.slane %v4012_v12, 4  ;;  %v4045_v3 = vrot.slane %v4043_v17, 4  ;;  %v4678_v23 = vrot.slane %v4521_v15, 5  ;;  %v10058_v33 = vpop.f32.mrb[1].mxu1 }
 0x1d5   : > { %v4051_v22 = vrot.slane %v4049_v13, 5  ;;  %v4023_v51 = vrot.slane %v4022_v58, 4  ;;  %v4036_v61 = vor.u32 %v4035_v59, %v4032_v21  ;;  %v4681_v24 = vrot.slane %v4522_v31, 5  ;;  %v10066_v42 = vpop.f32.mrb[2].mxu1  ;;  %v3745_v31 = vld [vmem:[#allocation2 + $0x9c] sm:$0xf] }
 0x1d6   : > { %v8111_v44 = vrot.slane %v4523_v11, 9  ;;  %v8126_v10 = vcombine.low %v10034_v36, %v10038_v53  ;;  %v4018_v37 = vsel %vm9273_vm6, %v4013_v6, %v4017_v47  ;;  %v4046_v35 = vor.u32 %v4045_v3, %v4041_v28  ;;  %v10072_v38 = vpop.f32.mrb[3].mxu1  ;;  %v3746_v27 = vld [vmem:[#allocation2 + $0xa0] sm:$0xf]  ;;  %v3747_v12 = vld [vmem:[#allocation2 + $0xa4] sm:$0x1] }
 0x1d7   : > { %v4680_v29 = vrot.slane %v4678_v23, 4  ;;  %v4028_v50 = vsel %vm9273_vm6, %v4023_v51, %v4027_v8  ;;  %v4037_v20 = vrot.slane %v4036_v61, 4  ;;  %v10064_v34 = vsel %vm9678_vm15, %v8110_v55, %v4678_v23  ;;  %v4526_v21 = vld [vmem:[#allocation2 + $0x78] sm:$0xe]  ;;  %v4527_v17 = vld [vmem:[#allocation2 + $0x7c] sm:$0xf] }
 0x1d8   : > { %v4685_v32 = vrot.slane %v4524_v7, 5  ;;  %v4047_v43 = vrot.slane %v4046_v35, 4  ;;  %v4688_v9 = vrot.slane %v4525_v2, 5  ;;  %v4054_v54 = vshrl.u32 %v3742_v46, 16  ;;  %v4529_v55 = vld [vmem:[#allocation2 + $0x84] sm:$0xe] }
 0x1d9   : > { %v10070_v45 = vsel %vm9678_vm15, %v4680_v29, %v4681_v24  ;;  %v8080_v15 = vcombine.low %v4018_v37, %v4028_v50  ;;  %v4042_v16 = vsel %vm9273_vm6, %v4037_v20, %v4041_v28  ;;  %v4057_v41 = vshll.u32 %v3742_v46, 16  ;;  %v4530_v24 = vld [vmem:[#allocation2 + $0x88] sm:$0xf]  ;;  %v4531_v50 = vld [vmem:[#allocation2 + $0x8c] sm:$0x1] }
 0x1da   : > { %v8127_v47 = vcombine.low %v10064_v34, %v10070_v45  ;;  %v4687_v30 = vrot.slane %v4685_v32, 4  ;;  %8772 = vmatmul.mubr.msk.bf16.gmra.mrb[100].mxu0 %vm555_vm1, %v8123_v0  ;;  %v4052_v8 = vsel %vm9273_vm6, %v4047_v43, %v4051_v22  ;;  %v4056_v57 = vrot.slane %v4054_v54, 4  ;;  %v3750_v53 = vld [vmem:[#allocation2 + $0xb0] sm:$0x1]  ;;  %v4536_v45 = vld [vmem:[#allocation2 + $0xa0] sm:$0xf] }
 0x1db   : > { %8746 = vmatmul.mubr.msk.bf16.gmra.mrb[76].mxu1 %vm555_vm1, %v10022_v49  ;;  %v4063_v11 = vshll.u32 %v3743_v63, 16  ;;  %8775 = vmatprep.mubr.msk.bf16.mxu0 %vm555_vm1, %v8124_v19  ;;  %v10094_v62 = vsel %vm9678_vm15, %v8111_v44, %v4685_v32  ;;  %v4067_v0 = vshrl.u32 %v3743_v63, 16  ;;  %v4073_v49 = vshll.u32 %v3744_v25, 16  ;;  %v4528_v19 = vld [vmem:[#allocation2 + $0x80] sm:$0x1] }
 0x1dc   : > { %8749 = vmatprep.mubr.msk.bf16.mxu1 %vm555_vm1, %v10030_v1  ;;  %v10098_v5 = vsel %vm9678_vm15, %v4687_v30, %v4688_v9  ;;  %v8081_v13 = vcombine.low %v4042_v16, %v4052_v8  ;;  %v4059_v7 = vrot.slane %v4057_v41, 5  ;;  %v4078_v26 = vshrl.u32 %v3745_v31, 16  ;;  %v3748_v9 = vld [vmem:[#allocation2 + $0xa8] sm:$0xf] }
 0x1dd   : > { %v4065_v48 = vrot.slane %v4063_v11, 5  ;;  %v8128_v1 = vcombine.low %v10094_v62, %v10098_v5  ;;  %v4069_v58 = vrot.slane %v4067_v0, 4  ;;  %v4081_v59 = vshll.u32 %v3745_v31, 16  ;;  %v3749_v31 = vld [vmem:[#allocation2 + $0xac] sm:$0xf] }
 0x1de   : > { %v4087_v28 = vshll.u32 %v3746_v27, 16  ;;  %v4060_v2 = vor.u32 %v4059_v7, %v4056_v57  ;;  %v4080_v46 = vrot.slane %v4078_v26, 4  ;;  %v4091_v6 = vshrl.u32 %v3746_v27, 16  ;;  %v4537_v62 = vld [vmem:[#allocation2 + $0xa4] sm:$0x1] }
 0x1df   : > { %v4097_v3 = vshll.u32 %v3747_v12, 16  ;;  %v4070_v22 = vor.u32 %v4069_v58, %v4065_v48  ;;  %v4075_v23 = vrot.slane %v4073_v49, 5  ;;  %v4083_v51 = vrot.slane %v4081_v59, 5  ;;  %v3751_v49 = vld [vmem:[#allocation2 + $0xb4] sm:$0xf] }
 0x1e0   : > { %v4089_v61 = vrot.slane %v4087_v28, 5  ;;  %v4061_v44 = vrot.slane %v4060_v2, 4  ;;  %v4093_v37 = vrot.slane %v4091_v6, 4  ;;  %v8112_v35 = vrot.slane %v4526_v21, 9  ;;  %v3752_v21 = vld [vmem:[#allocation2 + $0xb8] sm:$0xf] }
 0x1e1   : > { %v4692_v29 = vrot.slane %v4527_v17, 5  ;;  %v4071_v20 = vrot.slane %v4070_v22, 4  ;;  %v4084_v32 = vor.u32 %v4083_v51, %v4080_v46  ;;  %v4099_v63 = vrot.slane %v4097_v3, 5  ;;  %v4532_v46 = vld [vmem:[#allocation2 + $0x90] sm:$0xe] }
 0x1e2   : > { %v4695_v43 = vrot.slane %v4528_v19, 5  ;;  %8776 = vmatmul.mubr.msk.bf16.gmra.mrb[104].mxu0 %vm555_vm1, %v8125_v40  ;;  %v4066_v25 = vsel %vm9273_vm6, %v4061_v44, %v4065_v48  ;;  %v4094_v54 = vor.u32 %v4093_v37, %v4089_v61  ;;  %v8113_v30 = vrot.slane %v4529_v55, 9  ;;  %v3753_v19 = vld [vmem:[#allocation2 + $0xbc] sm:$0x1] }
 0x1e3   : > { %8750 = vmatmul.mubr.msk.bf16.gmra.mrb[80].mxu1 %vm555_vm1, %v8080_v15  ;;  %v4694_v16 = vrot.slane %v4692_v29, 4  ;;  %8779 = vmatprep.mubr.msk.bf16.mxu0 %vm555_vm1, %v8126_v10  ;;  %v4076_v52 = vsel %vm9273_vm6, %v4071_v20, %v4075_v23  ;;  %v4085_v56 = vrot.slane %v4084_v32, 4  ;;  %v10118_v40 = vsel %vm9678_vm15, %v8112_v35, %v4692_v29  ;;  %v4534_v29 = vld [vmem:[#allocation2 + $0x98] sm:$0x1] }
 0x1e4   : > { %8753 = vmatprep.mubr.msk.bf16.mxu1 %vm555_vm1, %v8081_v13  ;;  %v4699_v15 = vrot.slane %v4530_v24, 5  ;;  %v4095_v27 = vrot.slane %v4094_v54, 4  ;;  %v4702_v36 = vrot.slane %v4531_v50, 5  ;;  %v4102_v10 = vshrl.u32 %v3748_v9, 16  ;;  %v10124_v57 = vpop.f32.mrb[4].mxu1 }
 0x1e5   : > { %v10122_v8 = vsel %vm9678_vm15, %v4694_v16, %v4695_v43  ;;  %v8082_v41 = vcombine.low %v4066_v25, %v4076_v52  ;;  %v4090_v11 = vsel %vm9273_vm6, %v4085_v56, %v4089_v61  ;;  %v10130_v17 = vpop.f32.mrb[5].mxu1  ;;  %v4105_v48 = vshll.u32 %v3748_v9, 16  ;;  %v4533_v61 = vld [vmem:[#allocation2 + $0x94] sm:$0xf]  ;;  %v4535_v43 = vld [vmem:[#allocation2 + $0x9c] sm:$0xe] }
 0x1e6   : > { %v8129_v12 = vcombine.low %v10118_v40, %v10122_v8  ;;  %v4701_v0 = vrot.slane %v4699_v15, 4  ;;  %v4100_v13 = vsel %vm9273_vm6, %v4095_v27, %v4099_v63  ;;  %v4104_v7 = vrot.slane %v4102_v10, 4  ;;  %v10134_v58 = vpop.f32.mrb[6].mxu1  ;;  %v4541_v40 = vld [vmem:[#allocation2 + $0xb4] sm:$0xe] }
 0x1e7   : > { %v4111_v26 = vshll.u32 %v3749_v31, 16  ;;  %v10138_v59 = vsel %vm9678_vm15, %v8113_v30, %v4699_v15  ;;  %v4115_v55 = vshrl.u32 %v3749_v31, 16  ;;  %v4121_v2 = vshll.u32 %v3750_v53, 16  ;;  %v10144_v6 = vpop.f32.mrb[7].mxu1  ;;  %v4542_v8 = vld [vmem:[#allocation2 + $0xb8] sm:$0xf] }
 0x1e8   : > { %v10142_v28 = vsel %vm9678_vm15, %v4701_v0, %v4702_v36  ;;  %v8083_v3 = vcombine.low %v4090_v11, %v4100_v13  ;;  %v4107_v22 = vrot.slane %v4105_v48, 5  ;;  %v4126_v51 = vshrl.u32 %v3751_v49, 16  ;;  %v3754_v11 = vld [vmem:[#allocation2 + $0xc0] sm:$0xf]  ;;  %v3755_v48 = vld [vmem:[#allocation2 + $0xc4] sm:$0xf] }
 0x1e9   : > { %v4113_v23 = vrot.slane %v4111_v26, 5  ;;  %v8130_v24 = vcombine.low %v10138_v59, %v10142_v28  ;;  %v4117_v44 = vrot.slane %v4115_v55, 4  ;;  %v4129_v37 = vshll.u32 %v3751_v49, 16 }
 0x1ea   : > { %v4135_v35 = vshll.u32 %v3752_v21, 16  ;;  %8780 = vmatmul.mubr.msk.bf16.gmra.mrb[108].mxu0 %vm555_vm1, %v8127_v47  ;;  %v4108_v50 = vor.u32 %v4107_v22, %v4104_v7  ;;  %v4128_v20 = vrot.slane %v4126_v51, 4  ;;  %v4139_v32 = vshrl.u32 %v3752_v21, 16  ;;  %v4538_v51 = vld [vmem:[#allocation2 + $0xa8] sm:$0xe] }
 0x1eb   : > { %8754 = vmatmul.mubr.msk.bf16.gmra.mrb[84].mxu1 %vm555_vm1, %v8082_v41  ;;  %v4145_v63 = vshll.u32 %v3753_v19, 16  ;;  %8783 = vmatprep.mubr.msk.bf16.mxu0 %vm555_vm1, %v8128_v1  ;;  %v4118_v9 = vor.u32 %v4117_v44, %v4113_v23  ;;  %v4123_v25 = vrot.slane %v4121_v2, 5  ;;  %v4131_v54 = vrot.slane %v4129_v37, 5  ;;  %v3756_v2 = vld [vmem:[#allocation2 + $0xc8] sm:$0x1] }
 0x1ec   : > { %8757 = vmatprep.mubr.msk.bf16.mxu1 %vm555_vm1, %v8083_v3  ;;  %v4137_v34 = vrot.slane %v4135_v35, 5  ;;  %v4109_v47 = vrot.slane %v4108_v50, 4  ;;  %v4141_v16 = vrot.slane %v4139_v32, 4  ;;  %v8114_v30 = vrot.slane %v4532_v46, 9  ;;  %v10158_v56 = vpop.f32.mrb[8].mxu1 }
 0x1ed   : > { %v4706_v52 = vrot.slane %v4533_v61, 5  ;;  %v4119_v15 = vrot.slane %v4118_v9, 4  ;;  %v4132_v31 = vor.u32 %v4131_v54, %v4128_v20  ;;  %v4147_v27 = vrot.slane %v4145_v63, 5  ;;  %v10160_v5 = vpop.f32.mrb[9].mxu1  ;;  %v4539_v61 = vld [vmem:[#allocation2 + $0xac] sm:$0xf] }
 0x1ee   : > { %v4709_v36 = vrot.slane %v4534_v29, 5  ;;  %v4114_v1 = vsel %vm9273_vm6, %v4109_v47, %v4113_v23  ;;  %v4142_v53 = vor.u32 %v4141_v16, %v4137_v34  ;;  %v8115_v41 = vrot.slane %v4535_v43, 9  ;;  %v10164_v0 = vpop.f32.mrb[10].mxu1  ;;  %v4540_v29 = vld [vmem:[#allocation2 + $0xb0] sm:$0x1] }
 0x1ef   : > { %v4708_v10 = vrot.slane %v4706_v52, 4  ;;  %v4124_v49 = vsel %vm9273_vm6, %v4119_v15, %v4123_v25  ;;  %v4133_v21 = vrot.slane %v4132_v31, 4  ;;  %v10170_v13 = vsel %vm9678_vm15, %v8114_v30, %v4706_v52  ;;  %v10172_v26 = vpop.f32.mrb[11].mxu1  ;;  %v4543_v54 = vld [vmem:[#allocation2 + $0xbc] sm:$0x1] }
 0x1f0   : > { %v4713_v7 = vrot.slane %v4536_v45, 5  ;;  %v8084_v19 = vcombine.low %v4114_v1, %v4124_v49  ;;  %v4143_v59 = vrot.slane %v4142_v53, 4  ;;  %v6051_v55 = vsel %vm604_vm0, %v9867_v14, 0  ;;  %v4544_v16 = vld [vmem:[#allocation2 + $0xc0] sm:$0xe] }
 0x1f1   : > { %v4710_v28 = vsel %vm9678_vm15, %v4708_v10, %v4709_v36  ;;  %v4138_v46 = vsel %vm9273_vm6, %v4133_v21, %v4137_v34  ;;  %v4716_v23 = vrot.slane %v4537_v62, 5  ;;  %8834 = vmatpush3.bf16.msra.mxu0 %v6051_v55  ;;  %v4150_v44 = vshrl.u32 %v3754_v11, 16  ;;  %v4546_v10 = vld [vmem:[#allocation2 + $0xc8] sm:$0x1] }
 0x1f2   : > { %v8131_v3 = vcombine.low %v10170_v13, %v4710_v28  ;;  %v4715_v22 = vrot.slane %v4713_v7, 4  ;;  %8784 = vmatmul.mubr.msk.bf16.gmra.mrb[112].mxu0 %vm555_vm1, %v8129_v12  ;;  %v4148_v14 = vsel %vm9273_vm6, %v4143_v59, %v4147_v27  ;;  %v4153_v37 = vshll.u32 %v3754_v11, 16  ;;  %v4545_v27 = vld [vmem:[#allocation2 + $0xc4] sm:$0xf] }
 0x1f3   : > { %8758 = vmatmul.mubr.msk.bf16.gmra.mrb[88].mxu1 %vm555_vm1, %v8084_v19  ;;  %v4159_v35 = vshll.u32 %v3755_v48, 16  ;;  %8787 = vmatprep.mubr.msk.bf16.mxu0 %vm555_vm1, %v8130_v24  ;;  %v8085_v50 = vcombine.low %v4138_v46, %v4148_v14  ;;  %v4163_v32 = vshrl.u32 %v3755_v48, 16  ;;  %v4169_v63 = vshll.u32 %v3756_v2, 16  ;;  %v5489_v2 = vld [vmem:[#allocation2 + $0x1c] sm:$0xf] }
 0x1f4   : > { %v4717_v20 = vsel %vm9678_vm15, %v4715_v22, %v4716_v23  ;;  %v4714_v12 = vsel %vm9678_vm15, %v8115_v41, %v4713_v7  ;;  %v4152_v43 = vrot.slane %v4150_v44, 4  ;;  %v4155_v9 = vrot.slane %v4153_v37, 5  ;;  %v5488_v7 = vld [vmem:[#allocation2 + $0x18] sm:$0xf]  ;;  %v5491_v14 = vld [vmem:[#allocation2 + $0x24] sm:$0xf] }
 0x1f5   : > { %v4161_v25 = vrot.slane %v4159_v35, 5  ;;  %8761 = vmatprep.mubr.msk.bf16.mxu1 %vm555_vm1, %v8085_v50  ;;  %v8132_v34 = vcombine.low %v4714_v12, %v4717_v20  ;;  %v4165_v45 = vrot.slane %v4163_v32, 4  ;;  %v8116_v24 = vrot.slane %v4538_v51, 9  ;;  %v5492_v50 = vld [vmem:[#allocation2 + $0x28] sm:$0xf] }
 0x1f6   : > { %v4720_v47 = vrot.slane %v4539_v61, 5  ;;  %v4156_v30 = vor.u32 %v4155_v9, %v4152_v43  ;;  %v4171_v52 = vrot.slane %v4169_v63, 5  ;;  %v8117_v15 = vrot.slane %v4541_v40, 9  ;;  %v9039_v43 = vld [vmem:[#allocation2 + $0x18] sm:$0xff]  }
 0x1f7   : > { %v4727_v31 = vrot.slane %v4542_v8, 5  ;;  %v4166_v36 = vor.u32 %v4165_v45, %v4161_v25  ;;  %v4723_v53 = vrot.slane %v4540_v29, 5  ;;  %v10198_v41 = vpop.f32.mrb[12].mxu1  ;;  %v4730_v13 = vrot.slane %v4543_v54, 5  ;;  %v5490_v29 = vld [vmem:[#allocation2 + $0x20] sm:$0x1] }
 0x1f8   : > { %v10196_v62 = vsel %vm9678_vm15, %v8116_v24, %v4720_v47  ;;  %v4722_v1 = vrot.slane %v4720_v47, 4  ;;  %v4157_v11 = vrot.slane %v4156_v30, 4  ;;  %v10204_v48 = vpop.f32.mrb[13].mxu1  ;;  %v10210_v28 = vsel %vm604_vm0, %v9976_v18, 0  ;;  %v5493_v8 = vld [vmem:[#allocation2 + $0x2c] sm:$0x1] }
 0x1f9   : > { %v10202_v49 = vsel %vm9678_vm15, %v8117_v15, %v4727_v31  ;;  %v4729_v21 = vrot.slane %v4727_v31, 4  ;;  %v4167_v19 = vrot.slane %v4166_v36, 4  ;;  %v4734_v55 = vrot.slane %v4545_v27, 5  ;;  %v10212_v46 = vpop.f32.mrb[14].mxu1  ;;  %v5494_v45 = vld [vmem:[#allocation2 + $0x30] sm:$0xf] }
 0x1fa   : > { %v4724_v59 = vsel %vm9678_vm15, %v4722_v1, %v4723_v53  ;;  %8788 = vmatmul.mubr.msk.bf16.gmra.mrb[116].mxu0 %vm555_vm1, %v8131_v3  ;;  %v4162_v22 = vsel %vm9273_vm6, %v4157_v11, %v4161_v25  ;;  %v8118_v61 = vrot.slane %v4544_v16, 9  ;;  %v10220_v44 = vpop.f32.mrb[15].mxu1  ;;  %v4737_v35 = vrot.slane %v4546_v10, 5 }
 0x1fb   : > { %v8133_v23 = vcombine.low %v10196_v62, %v4724_v59  ;;  %v4731_v51 = vsel %vm9678_vm15, %v4729_v21, %v4730_v13  ;;  %8791 = vmatprep.mubr.msk.bf16.mxu0 %vm555_vm1, %v8132_v34  ;;  %v4172_v18 = vsel %vm9273_vm6, %v4167_v19, %v4171_v52  ;;  %v4736_v3 = vrot.slane %v4734_v55, 4  ;;  %v5495_v21 = vld [vmem:[#allocation2 + $0x34] sm:$0xf]  ;;  %v5496_v19 = vld [vmem:[#allocation2 + $0x38] sm:$0x1] }
 0x1fc   : > { %v8134_v37 = vcombine.low %v10202_v49, %v4731_v51  ;;  %v8086_v20 = vcombine.low %v4162_v22, %v4172_v18  ;;  %v5569_v32 = vshrl.u32 %v5488_v7, 16  ;;  %v5572_v63 = vshll.u32 %v5488_v7, 16  ;;  %v10226_v12 = vpop.f32.mrb[32].mxu0 }
 0x1fd   : > { %v5578_v40 = vshll.u32 %v5489_v2, 16  ;;  %v10230_v9 = vsel %vm9678_vm15, %v8118_v61, %v4734_v55  ;;  %v10234_v25 = vsel %vm9678_vm15, %v4736_v3, %v4737_v35  ;;  %v5582_v54 = vshrl.u32 %v5489_v2, 16  ;;  %v10236_v24 = vpop.f32.mrb[33].mxu0 }
 0x1fe   : > { %v5593_v34 = vshrl.u32 %v5491_v14, 16  ;;  %8762 = vmatmul.mubr.msk.bf16.gmra.mrb[92].mxu1 %vm555_vm1, %v8086_v20  ;;  %v5571_v47 = vrot.slane %v5569_v32, 4  ;;  %v5574_v16 = vrot.slane %v5572_v63, 5  ;;  %v5588_v52 = vshll.u32 %v5490_v29, 16  ;;  %v10239_v15 = vpop.f32.mrb[34].mxu0 }
 0x1ff   : > { %v5580_v30 = vrot.slane %v5578_v40, 5  ;;  %8801 = vmatprep.mubr.msk.bf16.mxu1 %vm555_vm1, %v9039_v43  ;;  %v8135_v31 = vcombine.low %v10230_v9, %v10234_v25  ;;  %v5584_v27 = vrot.slane %v5582_v54, 4  ;;  %v5596_v62 = vshll.u32 %v5491_v14, 16  ;;  %v10244_v1 = vpop.f32.mrb[35].mxu0  ;;  %v9040_v14 = vld [vmem:[#allocation2 + $0x24] sm:$0xff]   ;;  %v9041_v54 = vld [vmem:[#allocation2 + $0x30] sm:$0xff]  }
 0x200   : > { %v5595_v36 = vrot.slane %v5593_v34, 4  ;;  %v5575_v53 = vor.u32 %v5574_v16, %v5571_v47  ;;  %v5602_v10 = vshll.u32 %v5492_v50, 16  ;;  %v5606_v11 = vshrl.u32 %v5492_v50, 16  ;;  %v5498_v16 = vld [vmem:[#allocation2 + $0x40] sm:$0xf] }
 0x201   : > { %v5612_v49 = vshll.u32 %v5493_v8, 16  ;;  %v5585_v13 = vor.u32 %v5584_v27, %v5580_v30  ;;  %v5598_v7 = vrot.slane %v5596_v62, 5  ;;  %v5617_v59 = vshrl.u32 %v5494_v45, 16  ;;  %v10247_v18 = vpop.f32.mrb[16].mxu1 }
 0x202   : > { %v5620_v55 = vshll.u32 %v5494_v45, 16  ;;  %8792 = vmatmul.mubr.msk.bf16.gmra.mrb[120].mxu0 %vm555_vm1, %v8133_v23  ;;  %v5576_v2 = vrot.slane %v5575_v53, 4  ;;  %v5590_v22 = vrot.slane %v5588_v52, 5  ;;  %v5604_v51 = vrot.slane %v5602_v10, 5  ;;  %v10250_v20 = vpop.f32.mrb[17].mxu1 }
 0x203   : > { %v5608_v61 = vrot.slane %v5606_v11, 4  ;;  %8795 = vmatprep.mubr.msk.bf16.mxu0 %vm555_vm1, %v8134_v37  ;;  %v5586_v3 = vrot.slane %v5585_v13, 4  ;;  %v5599_v35 = vor.u32 %v5598_v7, %v5595_v36  ;;  %v5619_v29 = vrot.slane %v5617_v59, 4  ;;  %v5497_v23 = vld [vmem:[#allocation2 + $0x3c] sm:$0xf]  ;;  %v10252_v43 = vpop.f32.mrb[18].mxu1 }
 0x204   : > { %v5622_v50 = vrot.slane %v5620_v55, 5  ;;  %v5614_v63 = vrot.slane %v5612_v49, 5  ;;  %v5626_v40 = vshll.u32 %v5495_v21, 16  ;;  %v5630_v8 = vshrl.u32 %v5495_v21, 16  ;;  %v10256_v52 = vpop.f32.mrb[19].mxu1 }
 0x205   : > { %v5609_v32 = vor.u32 %v5608_v61, %v5604_v51  ;;  %v5591_v34 = vsel %vm9273_vm6, %v5586_v3, %v5590_v22  ;;  %v5600_v45 = vrot.slane %v5599_v35, 4  ;;  %v5636_v47 = vshll.u32 %v5496_v19, 16  ;;  %v5499_v21 = vld [vmem:[#allocation2 + $0x44] sm:$0x1]  ;;  %v5500_v55 = vld [vmem:[#allocation2 + $0x48] sm:$0xf] }
 0x206   : > { %v5623_v37 = vor.u32 %v5622_v50, %v5619_v29  ;;  %8802 = vmatmul.mubr.msk.bf16.vlgmr.msra.gmra.mrb[96].mxu1 %vm555_vm1, %v9040_v14  ;;  %v5581_v27 = vsel %vm9273_vm6, %v5576_v2, %v5580_v30  ;;  %v5628_v62 = vrot.slane %v5626_v40, 5  ;;  %v5632_v53 = vrot.slane %v5630_v8, 4  ;;  %v5501_v2 = vld [vmem:[#allocation2 + $0x4c] sm:$0xf] }
 0x207   : > { %v5610_v36 = vrot.slane %v5609_v32, 4  ;;  %8868 = vmatpush3.bf16.msra.mxu1 %v10210_v28  ;;  %8805 = vmatprep.mubr.msk.bf16.mxu1 %vm555_vm1, %v9041_v54  ;;  %v8186_v10 = vcombine.low %v5581_v27, %v5591_v34  ;;  %v5605_v11 = vsel %vm9273_vm6, %v5600_v45, %v5604_v51  ;;  %v5641_v13 = vshrl.u32 %v5497_v23, 16  ;;  %v10276_v32 = vld [vmem:[#allocation2 + $0x50] sm:$0x1]  ;;  %v10282_v34 = vld [vmem:[#allocation2 + $0x54] sm:$0xf] }
 0x208   : > { %v5624_v49 = vrot.slane %v5623_v37, 4  ;;  %v5633_v19 = vor.u32 %v5632_v53, %v5628_v62  ;;  %v5644_v59 = vshll.u32 %v5497_v23, 16  ;;  %v5650_v30 = vshll.u32 %v5498_v16, 16  ;;  %v9042_v23 = vld [vmem:[#allocation2 + $0x3c] sm:$0xff]   ;;  %v9043_v45 = vld [vmem:[#allocation2 + $0x48] sm:$0xff]  }
 0x209   : > { %v5615_v7 = vsel %vm9273_vm6, %v5610_v36, %v5614_v63  ;;  %v5638_v28 = vrot.slane %v5636_v47, 5  ;;  %v5643_v61 = vrot.slane %v5641_v13, 4  ;;  %v5654_v14 = vshrl.u32 %v5498_v16, 16  ;;  %v10287_v36 = vld [vmem:[#allocation2 + $0x58] sm:$0xf] }
 0x20a   : > { %v10267_v22 = vcombine.low %v5605_v11, %v5615_v7  ;;  %8796 = vmatmul.mubr.msk.bf16.gmra.mrb[124].mxu0 %vm555_vm1, %v8135_v31  ;;  %v5634_v51 = vrot.slane %v5633_v19, 4  ;;  %v5646_v3 = vrot.slane %v5644_v59, 5  ;;  %v10273_v35 = vrot.slane %v5650_v30, 5 }
 0x20b   : > { %v5660_v29 = vshll.u32 %v5499_v21, 16  ;;  %8835 = vmatprep.mubr.msk.bf16.mxu0 %vm555_vm1, %v8186_v10  ;;  %v5656_v50 = vrot.slane %v5654_v14, 4  ;;  %v5665_v63 = vshrl.u32 %v5500_v55, 16  ;;  %v5668_v40 = vshll.u32 %v5500_v55, 16  ;;  %v5506_v14 = vld [vmem:[#allocation2 + $0x60] sm:$0xf] }
 0x20c   : > { %v5674_v8 = vshll.u32 %v5501_v2, 16  ;;  %v5629_v54 = vsel %vm9273_vm6, %v5624_v49, %v5628_v62  ;;  %v5639_v9 = vsel %vm9273_vm6, %v5634_v51, %v5638_v28  ;;  %v5647_v25 = vor.u32 %v5646_v3, %v5643_v61  ;;  %v5505_v28 = vld [vmem:[#allocation2 + $0x5c] sm:$0x1] }
 0x20d   : > { %v5678_v31 = vshrl.u32 %v5501_v2, 16  ;;  %v5657_v37 = vor.u32 %v5656_v50, %v10273_v35  ;;  %v10285_v47 = vrot.slane %v5660_v29, 5  ;;  %v5667_v16 = vrot.slane %v5665_v63, 4 }
 0x20e   : > { %v5670_v27 = vrot.slane %v5668_v40, 5  ;;  %8806 = vmatmul.mubr.msk.bf16.gmra.mrb[100].mxu1 %vm555_vm1, %v9042_v23  ;;  %v10290_v53 = vrot.slane %v5647_v25, 4  ;;  %v10292_v62 = vrot.slane %v5674_v8, 5  ;;  %v5684_v11 = vshll.u32 %v10276_v32, 16  ;;  %v10295_v49 = vpop.f32.mrb[36].mxu0 }
 0x20f   : > { %v5680_v10 = vrot.slane %v5678_v31, 4  ;;  %8809 = vmatprep.mubr.msk.bf16.mxu1 %vm555_vm1, %v9043_v45  ;;  %v5658_v21 = vrot.slane %v5657_v37, 4  ;;  %v5689_v7 = vshrl.u32 %v10282_v34, 16  ;;  %v10299_v19 = vpop.f32.mrb[37].mxu0  ;;  %v8188_v59 = vcombine.low %v5629_v54, %v5639_v9  ;;  %v5507_v54 = vld [vmem:[#allocation2 + $0x64] sm:$0xf] }
 0x210   : > { %v5671_v13 = vor.u32 %v5670_v27, %v5667_v16  ;;  %v5653_v30 = vsel %vm9273_vm6, %v10290_v53, %v10273_v35  ;;  %v9084_v2 = vmov 0.0   ;;  %v5692_v61 = vshll.u32 %v10282_v34, 16  ;;  %v10339_v51 = vpop.f32.mrb[38].mxu0  ;;  %v5508_v34 = vld [vmem:[#allocation2 + $0x68] sm:$0x1]  ;;  %v9044_v37 = vld [vmem:[#allocation2 + $0x54] sm:$0xff]  }
 0x211   : > { %v5681_v55 = vor.u32 %v5680_v10, %v10292_v62  ;;  %1474 = vst.msk [vmem:[#allocation3 + $0x10] sm:$0xff] %vm555_vm1, %v9084_v2  ;;  %1472 = vst.msk [vmem:[#allocation3] sm:$0xff] %vm555_vm1, %v9084_v2  ;;  %v5663_v3 = vsel %vm9273_vm6, %v5658_v21, %v10285_v47  ;;  %v5691_v29 = vrot.slane %v5689_v7, 4  ;;  %v5698_v50 = vshll.u32 %v10287_v36, 16  ;;  %v10345_v32 = vpop.f32.mrb[39].mxu0 }
 0x212   : > { %1473 = vst.msk [vmem:[#allocation3 + $0x8] sm:$0xff] %vm555_vm1, %v9084_v2  ;;  %1475 = vst.msk [vmem:[#allocation3 + $0x18] sm:$0xff] %vm555_vm1, %v9084_v2  ;;  %v5672_v35 = vrot.slane %v5671_v13, 4  ;;  %8836 = vmatmul.mubr.msk.bf16.vlgmr.msra.gmra.mrb[128].mxu0 %vm555_vm1, %v10267_v22  ;;  %v5686_v40 = vrot.slane %v5684_v11, 5  ;;  %v5694_v8 = vrot.slane %v5692_v61, 5  ;;  %v5702_v23 = vshrl.u32 %v10287_v36, 16 }
 0x213   : > { %1476 = vst.msk [vmem:[#allocation3 + $0x20] sm:$0xff] %vm555_vm1, %v9084_v2  ;;  %1477 = vst.msk [vmem:[#allocation3 + $0x28] sm:$0xff] %vm555_vm1, %v9084_v2  ;;  %v5682_v63 = vrot.slane %v5681_v55, 4  ;;  %8839 = vmatprep.mubr.msk.bf16.mxu0 %vm555_vm1, %v8188_v59  ;;  %v8189_v9 = vcombine.low %v5653_v30, %v5663_v3  ;;  %v10351_v25 = vrot.slane %v5698_v50, 5  ;;  %v5708_v31 = vshll.u32 %v5505_v28, 16  ;;  %v10357_v10 = vpop.f32.mrb[20].mxu1 }
 0x214   : > { %1478 = vst.msk [vmem:[#allocation3 + $0x30] sm:$0xff] %vm555_vm1, %v9084_v2  ;;  %1479 = vst.msk [vmem:[#allocation3 + $0x38] sm:$0xff] %vm555_vm1, %v9084_v2  ;;  %v5713_v45 = vshrl.u32 %v5506_v14, 16  ;;  %v5695_v16 = vor.u32 %v5694_v8, %v5691_v29  ;;  %v5704_v22 = vrot.slane %v5702_v23, 4  ;;  %v5716_v27 = vshll.u32 %v5506_v14, 16  ;;  %v9045_v36 = vld [vmem:[#allocation2 + $0x60] sm:$0xff]  }
 0x215   : > { %1480 = vst.msk [vmem:[#allocation3 + $0x40] sm:$0xff] %vm555_vm1, %v9084_v2  ;;  %1481 = vst.msk [vmem:[#allocation3 + $0x48] sm:$0xff] %vm555_vm1, %v9084_v2  ;;  %v5687_v47 = vsel %vm9273_vm6, %v5682_v63, %v5686_v40  ;;  %v10355_v53 = vld [vmem:[#allocation2 + $0x6c] sm:$0xf]  ;;  %v5677_v11 = vsel %vm9273_vm6, %v5672_v35, %v10292_v62  ;;  %v5710_v21 = vrot.slane %v5708_v31, 5  ;;  %v5722_v7 = vshll.u32 %v5507_v54, 16 }
 0x216   : > { %1482 = vst.msk [vmem:[#allocation3 + $0x50] sm:$0xff] %vm555_vm1, %v9084_v2  ;;  %1483 = vst.msk [vmem:[#allocation3 + $0x58] sm:$0xff] %vm555_vm1, %v9084_v2  ;;  %v5715_v13 = vrot.slane %v5713_v45, 4  ;;  %v10362_v59 = vpop.f32.mrb[21].mxu1  ;;  %8810 = vmatmul.mubr.msk.bf16.gmra.mrb[104].mxu1 %vm555_vm1, %v9044_v37  ;;  %v5696_v30 = vrot.slane %v5695_v16, 4  ;;  %v5705_v55 = vor.u32 %v5704_v22, %v10351_v25  ;;  %v5726_v28 = vshrl.u32 %v5507_v54, 16 }
 0x217   : > { %1484 = vst.msk [vmem:[#allocation3 + $0x60] sm:$0xff] %vm555_vm1, %v9084_v2  ;;  %1485 = vst.msk [vmem:[#allocation3 + $0x68] sm:$0xff] %vm555_vm1, %v9084_v2  ;;  %v10366_v61 = vpop.f32.mrb[22].mxu1  ;;  %8813 = vmatprep.mubr.msk.bf16.mxu1 %vm555_vm1, %v9045_v36  ;;  %v8190_v14 = vcombine.low %v5677_v11, %v5687_v47  ;;  %v5724_v35 = vrot.slane %v5722_v7, 5  ;;  %v5732_v50 = vshll.u32 %v5508_v34, 16  ;;  %v5737_v63 = vshrl.u32 %v10355_v53, 16 }
 0x218   : > { %1486 = vst.msk [vmem:[#allocation3 + $0x70] sm:$0xff] %vm555_vm1, %v9084_v2  ;;  %1487 = vst.msk [vmem:[#allocation3 + $0x78] sm:$0xff] %vm555_vm1, %v9084_v2  ;;  %v1538_v3 = vld [vmem:[#allocation3 + $0x10] sm:$0xff]  ;;  %v1536_v29 = vld [vmem:[#allocation3] sm:$0xff]  ;;  %v5701_v54 = vsel %vm9273_vm6, %v5696_v30, %v10351_v25  ;;  %v10376_v47 = vpop.f32.mrb[23].mxu1  ;;  %v5706_v34 = vrot.slane %v5705_v55, 4 }
 0x219   : > { %1488 = vst.msk [vmem:[#allocation3 + $0x80] sm:$0xff] %vm555_vm1, %v9084_v2  ;;  %1489 = vst.msk [vmem:[#allocation3 + $0x88] sm:$0xff] %vm555_vm1, %v9084_v2  ;;  %v1539_v62 = vld [vmem:[#allocation3 + $0x18] sm:$0xff]  ;;  %v1863_v40 = vadd.f32 %v10052_v60, %v1538_v3  ;;  %v1861_v8 = vadd.f32 %v10058_v33, %v1536_v29  ;;  %v1537_v31 = vld [vmem:[#allocation3 + $0x8] sm:$0xff]  ;;  %v5734_v33 = vrot.slane %v5732_v50, 5 }
 0x21a   : > { %1490 = vst.msk [vmem:[#allocation3 + $0x90] sm:$0xff] %vm555_vm1, %v9084_v2  ;;  %1491 = vst.msk [vmem:[#allocation3 + $0x98] sm:$0xff] %vm555_vm1, %v9084_v2  ;;  %v1864_v23 = vadd.f32 %v10066_v42, %v1539_v62  ;;  %v1540_v37 = vld [vmem:[#allocation3 + $0x20] sm:$0xff]  ;;  %v1862_v16 = vadd.f32 %v10072_v38, %v1537_v31  ;;  %v1541_v60 = vld [vmem:[#allocation3 + $0x28] sm:$0xff]  ;;  %8840 = vmatmul.mubr.msk.bf16.gmra.mrb[132].mxu0 %vm555_vm1, %v8189_v9  ;;  %v5711_v9 = vsel %vm9273_vm6, %v5706_v34, %v5710_v21 }
 0x21b   : > { %1492 = vst.msk [vmem:[#allocation3 + $0xa0] sm:$0xff] %vm555_vm1, %v9084_v2  ;;  %1493 = vst.msk [vmem:[#allocation3 + $0xa8] sm:$0xff] %vm555_vm1, %v9084_v2  ;;  %v1542_v45 = vld [vmem:[#allocation3 + $0x30] sm:$0xff]  ;;  %v1543_v36 = vld [vmem:[#allocation3 + $0x38] sm:$0xff]  ;;  %v1865_v25 = vadd.f32 %v10130_v17, %v1540_v37  ;;  %8843 = vmatprep.mubr.msk.bf16.mxu0 %vm555_vm1, %v8190_v14  ;;  %v1866_v55 = vadd.f32 %v10144_v6, %v1541_v60  ;;  %v8191_v3 = vcombine.low %v5701_v54, %v5711_v9 }
 0x21c   : > { %1494 = vst.msk [vmem:[#allocation3 + $0xb0] sm:$0xff] %vm555_vm1, %v9084_v2  ;;  %1495 = vst.msk [vmem:[#allocation3 + $0xb8] sm:$0xff] %vm555_vm1, %v9084_v2  ;;  %v5510_v11 = vld [vmem:[#allocation2 + $0x70] sm:$0xf]  ;;  %v1867_v42 = vadd.f32 %v10124_v57, %v1542_v45  ;;  %v1868_v38 = vadd.f32 %v10134_v58, %v1543_v36  ;;  %v5739_v57 = vrot.slane %v5737_v63, 4  ;;  %v5740_v17 = vshll.u32 %v10355_v53, 16 }
 0x21d   : > { %1496 = vst.msk [vmem:[#allocation3 + $0xc0] sm:$0xff] %vm555_vm1, %v9084_v2  ;;  %1497 = vst.msk [vmem:[#allocation3 + $0xc8] sm:$0xff] %vm555_vm1, %v9084_v2  ;;  %v5746_v58 = vshll.u32 %v5510_v11, 16  ;;  %v5513_v14 = vld [vmem:[#allocation2 + $0x7c] sm:$0xf]  ;;  %v5750_v6 = vshrl.u32 %v5510_v11, 16 }
 0x21e   : > { %1498 = vst.msk [vmem:[#allocation3 + $0xd0] sm:$0xff] %vm555_vm1, %v9084_v2  ;;  %1499 = vst.msk [vmem:[#allocation3 + $0xd8] sm:$0xff] %vm555_vm1, %v9084_v2  ;;  %v9047_v29 = vld [vmem:[#allocation2 + $0x78] sm:$0xff]  }
 0x21f   : > { %1500 = vst.msk [vmem:[#allocation3 + $0xe0] sm:$0xff] %vm555_vm1, %v9084_v2  ;;  %1501 = vst.msk [vmem:[#allocation3 + $0xe8] sm:$0xff] %vm555_vm1, %v9084_v2  ;;  %v5752_v54 = vrot.slane %v5750_v6, 4  ;;  %v1544_v36 = vld [vmem:[#allocation3 + $0x40] sm:$0xff] }
 0x220   : > { %1502 = vst.msk [vmem:[#allocation3 + $0xf0] sm:$0xff] %vm555_vm1, %v9084_v2  ;;  %1503 = vst.msk [vmem:[#allocation3 + $0xf8] sm:$0xff] %vm555_vm1, %v9084_v2  ;;  %v5718_v2 = vrot.slane %v5716_v27, 5  ;;  %v5728_v27 = vrot.slane %v5726_v28, 4  ;;  %v9046_v28 = vld [vmem:[#allocation2 + $0x6c] sm:$0xff]  }
 0x221   : > { %1895 = vst.msk [vmem:[#allocation3 + $0x10] sm:$0xff] %vm555_vm1, %v1863_v40  ;;  %1893 = vst.msk [vmem:[#allocation3] sm:$0xff] %vm555_vm1, %v1861_v8  ;;  %8814 = vmatmul.mubr.msk.bf16.gmra.mrb[108].mxu1 %vm555_vm1, %v9046_v28  ;;  %v5742_v40 = vrot.slane %v5740_v17, 5  ;;  %v5748_v8 = vrot.slane %v5746_v58, 5 }
 0x222   : > { %v5719_v22 = vor.u32 %v5718_v2, %v5715_v13  ;;  %1896 = vst.msk [vmem:[#allocation3 + $0x18] sm:$0xff] %vm555_vm1, %v1864_v23  ;;  %v5511_v13 = vld [vmem:[#allocation2 + $0x74] sm:$0x1]  ;;  %1894 = vst.msk [vmem:[#allocation3 + $0x8] sm:$0xff] %vm555_vm1, %v1862_v16  ;;  %v5729_v30 = vor.u32 %v5728_v27, %v5724_v35  ;;  %v5512_v2 = vld [vmem:[#allocation2 + $0x78] sm:$0xf]  ;;  %8817 = vmatprep.mubr.msk.bf16.mxu1 %vm555_vm1, %v9047_v29  ;;  %8844 = vmatmul.mubr.msk.bf16.gmra.mrb[136].mxu0 %vm555_vm1, %v8191_v3 }
 0x223   : > { %1899 = vst.msk [vmem:[#allocation3 + $0x30] sm:$0xff] %vm555_vm1, %v1867_v42  ;;  %1897 = vst.msk [vmem:[#allocation3 + $0x20] sm:$0xff] %vm555_vm1, %v1865_v25  ;;  %v5756_v50 = vshll.u32 %v5511_v13, 16  ;;  %v5514_v23 = vld [vmem:[#allocation2 + $0x80] sm:$0x1]  ;;  %v5761_v31 = vshrl.u32 %v5512_v2, 16  ;;  %v5743_v16 = vor.u32 %v5742_v40, %v5739_v57  ;;  %v5753_v25 = vor.u32 %v5752_v54, %v5748_v8 }
 0x224   : > { %v5720_v7 = vrot.slane %v5719_v22, 4  ;;  %1900 = vst.msk [vmem:[#allocation3 + $0x38] sm:$0xff] %vm555_vm1, %v1868_v38  ;;  %v5730_v62 = vrot.slane %v5729_v30, 4  ;;  %1898 = vst.msk [vmem:[#allocation3 + $0x28] sm:$0xff] %vm555_vm1, %v1866_v55  ;;  %v5764_v63 = vshll.u32 %v5512_v2, 16  ;;  %v1546_v27 = vld [vmem:[#allocation3 + $0x50] sm:$0xff] }
 0x225   : > { %v5758_v45 = vrot.slane %v5756_v50, 5  ;;  %v5763_v34 = vrot.slane %v5761_v31, 4  ;;  %v5774_v13 = vshrl.u32 %v5513_v14, 16  ;;  %v5780_v9 = vshll.u32 %v5514_v23, 16  ;;  %v9048_v2 = vld [vmem:[#allocation2 + $0x84] sm:$0xff]   ;;  %v1547_v57 = vld [vmem:[#allocation3 + $0x58] sm:$0xff] }
 0x226   : > { %v5725_v21 = vsel %vm9273_vm6, %v5720_v7, %v5724_v35  ;;  %v5735_v53 = vsel %vm9273_vm6, %v5730_v62, %v5734_v33  ;;  %v5770_v35 = vshll.u32 %v5513_v14, 16  ;;  %v5766_v22 = vrot.slane %v5764_v63, 5  ;;  %v1545_v3 = vld [vmem:[#allocation3 + $0x48] sm:$0xff]  ;;  %v10410_v6 = vpop.f32.mrb[40].mxu0 }
 0x227   : > { %v8192_v37 = vcombine.low %v5725_v21, %v5735_v53  ;;  %v5744_v28 = vrot.slane %v5743_v16, 4  ;;  %v5754_v58 = vrot.slane %v5753_v25, 4  ;;  %v5776_v14 = vrot.slane %v5774_v13, 4  ;;  %v10419_v31 = vpop.f32.mrb[41].mxu0 }
 0x228   : > { %v1975_v60 = vld [vmem:[#allocation3 + $0x10] sm:$0xff]  ;;  %v1973_v11 = vld [vmem:[#allocation3] sm:$0xff]  ;;  %v10402_v38 = vrot.slane %v5770_v35, 5  ;;  %v5767_v29 = vor.u32 %v5766_v22, %v5763_v34  ;;  %v1869_v50 = vadd.f32 %v10160_v5, %v1544_v36  ;;  %v10426_v16 = vpop.f32.mrb[42].mxu0  ;;  %v1872_v5 = vadd.f32 %v10164_v0, %v1547_v57  ;;  %v10436_v36 = vpop.f32.mrb[24].mxu1 }
 0x229   : > { %v1976_v42 = vld [vmem:[#allocation3 + $0x18] sm:$0xff]  ;;  %v2656_v33 = vadd.f32 %v10226_v12, %v1975_v60  ;;  %v2654_v7 = vadd.f32 %v10236_v24, %v1973_v11  ;;  %v1974_v55 = vld [vmem:[#allocation3 + $0x8] sm:$0xff]  ;;  %8847 = vmatprep.mubr.msk.bf16.mxu0 %vm555_vm1, %v8192_v37  ;;  %v5749_v24 = vsel %vm9273_vm6, %v5744_v28, %v5748_v8  ;;  %v5759_v63 = vsel %vm9273_vm6, %v5754_v58, %v5758_v45  ;;  %v5516_v37 = vld [vmem:[#allocation2 + $0x88] sm:$0xf] }
 0x22a   : > { %v2657_v30 = vadd.f32 %v10239_v15, %v1976_v42  ;;  %v2655_v17 = vadd.f32 %v10244_v1, %v1974_v55  ;;  %v1979_v21 = vld [vmem:[#allocation3 + $0x30] sm:$0xff]  ;;  %v1977_v62 = vld [vmem:[#allocation3 + $0x20] sm:$0xff]  ;;  %v9049_v12 = vld [vmem:[#allocation2 + $0x90] sm:$0xff]   ;;  %v5782_v15 = vrot.slane %v5780_v9, 5  ;;  %v1871_v1 = vadd.f32 %v10158_v56, %v1546_v27  ;;  %8818 = vmatmul.mubr.msk.bf16.gmra.mrb[112].mxu1 %vm555_vm1, %v9048_v2  ;;  %1901 = vst.msk [vmem:[#allocation3 + $0x40] sm:$0xff] %vm555_vm1, %v1869_v50  ;;  %v10445_v42 = vpop.f32.mrb[25].mxu1 }
 0x22b   : > { %2688 = vst.msk [vmem:[#allocation3 + $0x10] sm:$0xff] %vm555_vm1, %v2656_v33  ;;  %2686 = vst.msk [vmem:[#allocation3] sm:$0xff] %vm555_vm1, %v2654_v7  ;;  %v1980_v40 = vld [vmem:[#allocation3 + $0x38] sm:$0xff]  ;;  %v1978_v23 = vld [vmem:[#allocation3 + $0x28] sm:$0xff]  ;;  %v5768_v53 = vrot.slane %v5767_v29, 4  ;;  %v5777_v54 = vor.u32 %v5776_v14, %v10402_v38  ;;  %v2660_v35 = vadd.f32 %v10295_v49, %v1979_v21  ;;  %v8193_v56 = vcombine.low %v5749_v24, %v5759_v63  ;;  %v10434_v49 = vpop.f32.mrb[43].mxu0 }
 0x22c   : > { %2689 = vst.msk [vmem:[#allocation3 + $0x18] sm:$0xff] %vm555_vm1, %v2657_v30  ;;  %2687 = vst.msk [vmem:[#allocation3 + $0x8] sm:$0xff] %vm555_vm1, %v2655_v17  ;;  %v5515_v8 = vld [vmem:[#allocation2 + $0x84] sm:$0xf]  ;;  %v2658_v45 = vadd.f32 %v10299_v19, %v1977_v62  ;;  %v1870_v34 = vadd.f32 %v10172_v26, %v1545_v3  ;;  %v5517_v22 = vld [vmem:[#allocation2 + $0x8c] sm:$0x1]  ;;  %8821 = vmatprep.mubr.msk.bf16.mxu1 %vm555_vm1, %v9049_v12  ;;  %v2661_v0 = vadd.f32 %v10339_v51, %v1980_v40 }
 0x22d   : > { %1903 = vst.msk [vmem:[#allocation3 + $0x50] sm:$0xff] %vm555_vm1, %v1871_v1  ;;  %v5518_v27 = vld [vmem:[#allocation2 + $0x90] sm:$0xf]  ;;  %v5773_v60 = vsel %vm9273_vm6, %v5768_v53, %v10402_v38  ;;  %v5778_v11 = vrot.slane %v5777_v54, 4  ;;  %2692 = vst.msk [vmem:[#allocation3 + $0x30] sm:$0xff] %vm555_vm1, %v2660_v35  ;;  %v2659_v19 = vadd.f32 %v10345_v32, %v1978_v23  ;;  %v5785_v25 = vshrl.u32 %v5515_v8, 16  ;;  %8848 = vmatmul.mubr.msk.bf16.gmra.mrb[140].mxu0 %vm555_vm1, %v8193_v56 }
 0x22e   : > { %v5519_v26 = vld [vmem:[#allocation2 + $0x94] sm:$0xf]  ;;  %1904 = vst.msk [vmem:[#allocation3 + $0x58] sm:$0xff] %vm555_vm1, %v1872_v5  ;;  %2690 = vst.msk [vmem:[#allocation3 + $0x20] sm:$0xff] %vm555_vm1, %v2658_v45  ;;  %v5788_v13 = vshll.u32 %v5515_v8, 16  ;;  %v5794_v9 = vshll.u32 %v5516_v37, 16 }
 0x22f   : > { %1902 = vst.msk [vmem:[#allocation3 + $0x48] sm:$0xff] %vm555_vm1, %v1870_v34  ;;  %v5798_v38 = vshrl.u32 %v5516_v37, 16  ;;  %v10450_v33 = vpop.f32.mrb[26].mxu1  ;;  %v5783_v51 = vsel %vm9273_vm6, %v5778_v11, %v5782_v15  ;;  %2693 = vst.msk [vmem:[#allocation3 + $0x38] sm:$0xff] %vm555_vm1, %v2661_v0  ;;  %v5804_v32 = vshll.u32 %v5517_v22, 16  ;;  %v5809_v30 = vshrl.u32 %v5518_v27, 16 }
 0x230   : > { %2691 = vst.msk [vmem:[#allocation3 + $0x28] sm:$0xff] %vm555_vm1, %v2659_v19  ;;  %v5520_v7 = vld [vmem:[#allocation2 + $0x98] sm:$0x1]  ;;  %v5812_v55 = vshll.u32 %v5518_v27, 16  ;;  %v10456_v2 = vpop.f32.mrb[27].mxu1  ;;  %v8194_v28 = vcombine.low %v5773_v60, %v5783_v51  ;;  %v5787_v57 = vrot.slane %v5785_v25, 4 }
 0x231   : > { %v5790_v17 = vrot.slane %v5788_v13, 5  ;;  %v5796_v58 = vrot.slane %v5794_v9, 5  ;;  %v1550_v29 = vld [vmem:[#allocation3 + $0x70] sm:$0xff]  ;;  %v1548_v14 = vld [vmem:[#allocation3 + $0x60] sm:$0xff]  ;;  %v5800_v21 = vrot.slane %v5798_v38, 4  ;;  %v5806_v62 = vrot.slane %v5804_v32, 5 }
 0x232   : > { %v5811_v3 = vrot.slane %v5809_v30, 4  ;;  %v5814_v12 = vrot.slane %v5812_v55, 5  ;;  %8851 = vmatprep.mubr.msk.bf16.mxu0 %vm555_vm1, %v8194_v28  ;;  %v9050_v24 = vld [vmem:[#allocation2 + $0x9c] sm:$0xff]   ;;  %v9051_v15 = vld [vmem:[#allocation2 + $0xa8] sm:$0xff]   ;;  %v5818_v50 = vshll.u32 %v5519_v26, 16  ;;  %v5822_v40 = vshrl.u32 %v5519_v26, 16 }
 0x233   : > { %v5791_v1 = vor.u32 %v5790_v17, %v5787_v57  ;;  %v5828_v23 = vshll.u32 %v5520_v7, 16  ;;  %v1551_v63 = vld [vmem:[#allocation3 + $0x78] sm:$0xff]  ;;  %v5801_v53 = vor.u32 %v5800_v21, %v5796_v58  ;;  %v1875_v35 = vadd.f32 %v10198_v41, %v1550_v29  ;;  %v1981_v56 = vld [vmem:[#allocation3 + $0x40] sm:$0xff]  ;;  %v1549_v5 = vld [vmem:[#allocation3 + $0x68] sm:$0xff]  ;;  %8822 = vmatmul.mubr.msk.bf16.gmra.mrb[116].mxu1 %vm555_vm1, %v9050_v24 }
 0x234   : > { %v5815_v54 = vor.u32 %v5814_v12, %v5811_v3  ;;  %v1873_v8 = vadd.f32 %v10204_v48, %v1548_v14  ;;  %v1983_v37 = vld [vmem:[#allocation3 + $0x50] sm:$0xff]  ;;  %v5820_v34 = vrot.slane %v5818_v50, 5  ;;  %v5824_v22 = vrot.slane %v5822_v40, 4  ;;  %8825 = vmatprep.mubr.msk.bf16.mxu1 %vm555_vm1, %v9051_v15  ;;  %v5521_v26 = vld [vmem:[#allocation2 + $0x9c] sm:$0xf]  ;;  %v9053_v50 = vld [vmem:[#allocation2 + $0xc0] sm:$0xff]  }
 0x235   : > { %v5792_v45 = vrot.slane %v5791_v1, 4  ;;  %v5830_v27 = vrot.slane %v5828_v23, 5  ;;  %v5802_v60 = vrot.slane %v5801_v53, 4  ;;  %1907 = vst.msk [vmem:[#allocation3 + $0x70] sm:$0xff] %vm555_vm1, %v1875_v35  ;;  %v2664_v41 = vadd.f32 %v10410_v6, %v1983_v37  ;;  %v1984_v0 = vld [vmem:[#allocation3 + $0x58] sm:$0xff]  ;;  %v1554_v15 = vld [vmem:[#allocation3 + $0x90] sm:$0xff] }
 0x236   : > { %v5816_v11 = vrot.slane %v5815_v54, 4  ;;  %1905 = vst.msk [vmem:[#allocation3 + $0x60] sm:$0xff] %vm555_vm1, %v1873_v8  ;;  %v1876_v48 = vadd.f32 %v10212_v46, %v1551_v63  ;;  %v1982_v19 = vld [vmem:[#allocation3 + $0x48] sm:$0xff]  ;;  %v5825_v13 = vor.u32 %v5824_v22, %v5820_v34  ;;  %v2662_v9 = vadd.f32 %v10419_v31, %v1981_v56  ;;  %v5524_v7 = vld [vmem:[#allocation2 + $0xa8] sm:$0xf]  ;;  %v1552_v53 = vld [vmem:[#allocation3 + $0x80] sm:$0xff] }
 0x237   : > { %v5797_v25 = vsel %vm9273_vm6, %v5792_v45, %v5796_v58  ;;  %v1874_v38 = vadd.f32 %v10220_v44, %v1549_v5  ;;  %v5522_v51 = vld [vmem:[#allocation2 + $0xa0] sm:$0xf]  ;;  %v5523_v32 = vld [vmem:[#allocation2 + $0xa4] sm:$0x1]  ;;  %v5807_v30 = vsel %vm9273_vm6, %v5802_v60, %v5806_v62  ;;  %2696 = vst.msk [vmem:[#allocation3 + $0x50] sm:$0xff] %vm555_vm1, %v2664_v41  ;;  %v2665_v6 = vadd.f32 %v10426_v16, %v1984_v0  ;;  %v9052_v44 = vld [vmem:[#allocation2 + $0xb4] sm:$0xff]  }
 0x238   : > { %v5821_v46 = vsel %vm9273_vm6, %v5816_v11, %v5820_v34  ;;  %1908 = vst.msk [vmem:[#allocation3 + $0x78] sm:$0xff] %vm555_vm1, %v1876_v48  ;;  %v2663_v55 = vadd.f32 %v10434_v49, %v1982_v19  ;;  %v8195_v31 = vcombine.low %v5797_v25, %v5807_v30  ;;  %v5826_v28 = vrot.slane %v5825_v13, 4  ;;  %2694 = vst.msk [vmem:[#allocation3 + $0x40] sm:$0xff] %vm555_vm1, %v2662_v9  ;;  %v5525_v21 = vld [vmem:[#allocation2 + $0xac] sm:$0xf]  ;;  %v8645_v54 = vpop.f32.mrb[44].mxu0 }
 0x239   : > { %1906 = vst.msk [vmem:[#allocation3 + $0x68] sm:$0xff] %vm555_vm1, %v1874_v38  ;;  %v5833_v57 = vshrl.u32 %v5521_v26, 16  ;;  %v5836_v17 = vshll.u32 %v5521_v26, 16  ;;  %2697 = vst.msk [vmem:[#allocation3 + $0x58] sm:$0xff] %vm555_vm1, %v2665_v6  ;;  %v5842_v58 = vshll.u32 %v5522_v51, 16  ;;  %v5846_v29 = vshrl.u32 %v5522_v51, 16 }
 0x23a   : > { %2695 = vst.msk [vmem:[#allocation3 + $0x48] sm:$0xff] %vm555_vm1, %v2663_v55  ;;  %v5852_v14 = vshll.u32 %v5523_v32, 16  ;;  %v5857_v16 = vshrl.u32 %v5524_v7, 16  ;;  %8852 = vmatmul.mubr.msk.bf16.gmra.mrb[144].mxu0 %vm555_vm1, %v8195_v31  ;;  %v5831_v49 = vsel %vm9273_vm6, %v5826_v28, %v5830_v27  ;;  %v5526_v12 = vld [vmem:[#allocation2 + $0xb0] sm:$0x1]  ;;  %v5860_v24 = vshll.u32 %v5524_v7, 16 }
 0x23b   : > { %v5835_v62 = vrot.slane %v5833_v57, 4  ;;  %v5838_v3 = vrot.slane %v5836_v17, 5  ;;  %v8196_v1 = vcombine.low %v5821_v46, %v5831_v49  ;;  %v5844_v40 = vrot.slane %v5842_v58, 5  ;;  %8826 = vmatmul.mubr.msk.bf16.gmra.mrb[120].mxu1 %vm555_vm1, %v9052_v44  ;;  %v2575_v45 = vpop.f32.mrb[45].mxu0  ;;  %v1555_v11 = vld [vmem:[#allocation3 + $0x98] sm:$0xff]  ;;  %v1553_v9 = vld [vmem:[#allocation3 + $0x88] sm:$0xff] }
 0x23c   : > { %v5848_v23 = vrot.slane %v5846_v29, 4  ;;  %v5854_v63 = vrot.slane %v5852_v14, 5  ;;  %v5859_v8 = vrot.slane %v5857_v16, 4  ;;  %v5862_v37 = vrot.slane %v5860_v24, 5  ;;  %v1987_v5 = vld [vmem:[#allocation3 + $0x70] sm:$0xff]  ;;  %8829 = vmatprep.mubr.msk.bf16.mxu1 %vm555_vm1, %v9053_v50  ;;  %v8646_v48 = vpop.f32.mrb[46].mxu0 }
 0x23d   : > { %v5839_v35 = vor.u32 %v5838_v3, %v5835_v62  ;;  %v5866_v56 = vshll.u32 %v5525_v21, 16  ;;  %8855 = vmatprep.mubr.msk.bf16.mxu0 %vm555_vm1, %v8196_v1  ;;  %v5870_v22 = vshrl.u32 %v5525_v21, 16  ;;  %v5876_v27 = vshll.u32 %v5526_v12, 16  ;;  %v1985_v41 = vld [vmem:[#allocation3 + $0x60] sm:$0xff]  ;;  %v5527_v0 = vld [vmem:[#allocation2 + $0xb4] sm:$0xf] }
 0x23e   : > { %v5849_v34 = vor.u32 %v5848_v23, %v5844_v40  ;;  %v1879_v60 = vadd.f32 %v10247_v18, %v1554_v15  ;;  %v5863_v26 = vor.u32 %v5862_v37, %v5859_v8  ;;  %v1877_v13 = vadd.f32 %v10250_v20, %v1552_v53  ;;  %v2578_v51 = vpop.f32.mrb[47].mxu0  ;;  %v9054_v18 = vld [vmem:[#allocation2 + $0xcc] sm:$0xff]   ;;  %v10493_v55 = vpop.f32.mrb[28].mxu1  ;;  %v5528_v57 = vld [vmem:[#allocation2 + $0xb8] sm:$0xf] }
 0x23f   : > { %v5840_v19 = vrot.slane %v5839_v35, 4  ;;  %v5868_v25 = vrot.slane %v5866_v56, 5  ;;  %v1988_v38 = vld [vmem:[#allocation3 + $0x78] sm:$0xff]  ;;  %v5872_v7 = vrot.slane %v5870_v22, 4  ;;  %v5878_v30 = vrot.slane %v5876_v27, 5  ;;  %v10499_v58 = vpop.f32.mrb[29].mxu1 }
 0x240   : > { %v5850_v32 = vrot.slane %v5849_v34, 4  ;;  %1911 = vst.msk [vmem:[#allocation3 + $0x90] sm:$0xff] %vm555_vm1, %v1879_v60  ;;  %v2668_v46 = vadd.f32 %v8645_v54, %v1987_v5  ;;  %v1986_v6 = vld [vmem:[#allocation3 + $0x68] sm:$0xff]  ;;  %v5864_v28 = vrot.slane %v5863_v26, 4  ;;  %1909 = vst.msk [vmem:[#allocation3 + $0x80] sm:$0xff] %vm555_vm1, %v1877_v13  ;;  %v1880_v20 = vadd.f32 %v10252_v43, %v1555_v11  ;;  %v10505_v3 = vpop.f32.mrb[30].mxu1 }
 0x241   : > { %v5845_v31 = vsel %vm9273_vm6, %v5840_v19, %v5844_v40  ;;  %v2666_v44 = vadd.f32 %v2575_v45, %v1985_v41  ;;  %v5529_v17 = vld [vmem:[#allocation2 + $0xbc] sm:$0x1]  ;;  %v5873_v14 = vor.u32 %v5872_v7, %v5868_v25  ;;  %v1878_v21 = vadd.f32 %v10256_v52, %v1553_v9  ;;  %v6278_v49 = vld [vmem:[#allocation2 + $0x18] sm:$0xe]  ;;  %v6280_v1 = vld [vmem:[#allocation2 + $0x20] sm:$0x1] }
 0x242   : > { %v5855_v29 = vsel %vm9273_vm6, %v5850_v32, %v5854_v63  ;;  %2700 = vst.msk [vmem:[#allocation3 + $0x70] sm:$0xff] %vm555_vm1, %v2668_v46  ;;  %v2669_v16 = vadd.f32 %v8646_v48, %v1988_v38  ;;  %v6279_v62 = vld [vmem:[#allocation2 + $0x1c] sm:$0xf]  ;;  %v5869_v43 = vsel %vm9273_vm6, %v5864_v28, %v5868_v25  ;;  %1912 = vst.msk [vmem:[#allocation3 + $0x98] sm:$0xff] %vm555_vm1, %v1880_v20  ;;  %v5881_v15 = vshrl.u32 %v5527_v0, 16  ;;  %v10511_v50 = vpop.f32.mrb[31].mxu1 }
 0x243   : > { %v8197_v12 = vcombine.low %v5845_v31, %v5855_v29  ;;  %2698 = vst.msk [vmem:[#allocation3 + $0x60] sm:$0xff] %vm555_vm1, %v2666_v44  ;;  %v2667_v24 = vadd.f32 %v2578_v51, %v1986_v6  ;;  %v5874_v40 = vrot.slane %v5873_v14, 4  ;;  %1910 = vst.msk [vmem:[#allocation3 + $0x88] sm:$0xff] %vm555_vm1, %v1878_v21  ;;  %v5884_v52 = vshll.u32 %v5527_v0, 16  ;;  %v5530_v53 = vld [vmem:[#allocation2 + $0xc0] sm:$0xf]  ;;  %8830 = vmatmul.mubr.msk.bf16.gmra.mrb[124].mxu1 %vm555_vm1, %v9054_v18 }
 0x244   : > { %2701 = vst.msk [vmem:[#allocation3 + $0x78] sm:$0xff] %vm555_vm1, %v2669_v16  ;;  %v5890_v23 = vshll.u32 %v5528_v57, 16  ;;  %v5894_v63 = vshrl.u32 %v5528_v57, 16  ;;  %v5883_v54 = vrot.slane %v5881_v15, 4  ;;  %v5900_v35 = vshll.u32 %v5529_v17, 16  ;;  %v8649_v60 = vpop.f32.mrb[48].mxu0 }
 0x245   : > { %8856 = vmatmul.mubr.msk.bf16.gmra.mrb[148].mxu0 %vm555_vm1, %v8197_v12  ;;  %2699 = vst.msk [vmem:[#allocation3 + $0x68] sm:$0xff] %vm555_vm1, %v2667_v24  ;;  %v8218_v8 = vrot.slane %v6278_v49, 9  ;;  %v6408_v37 = vrot.slane %v6279_v62, 5  ;;  %v5531_v56 = vld [vmem:[#allocation2 + $0xc4] sm:$0xf]  ;;  %v5879_v5 = vsel %vm9273_vm6, %v5874_v40, %v5878_v30  ;;  %v5886_v45 = vrot.slane %v5884_v52, 5 }
 0x246   : > { %v5892_v34 = vrot.slane %v5890_v23, 5  ;;  %v5896_v22 = vrot.slane %v5894_v63, 4  ;;  %v5532_v27 = vld [vmem:[#allocation2 + $0xc8] sm:$0x1]  ;;  %v8198_v11 = vcombine.low %v5869_v43, %v5879_v5  ;;  %v5902_v41 = vrot.slane %v5900_v35, 5  ;;  %v2591_v19 = vpop.f32.mrb[49].mxu0 }
 0x247   : > { %v6409_v48 = vsel %vm9678_vm15, %v8218_v8, %v6408_v37  ;;  %v6410_v0 = vrot.slane %v6408_v37, 4  ;;  %v5887_v26 = vor.u32 %v5886_v45, %v5883_v54  ;;  %v6411_v13 = vrot.slane %v6280_v1, 5  ;;  %v8650_v38 = vpop.f32.mrb[50].mxu0  ;;  %v1558_v46 = vld [vmem:[#allocation3 + $0xb0] sm:$0xff]  ;;  %v1556_v44 = vld [vmem:[#allocation3 + $0xa0] sm:$0xff]  ;;  %v1559_v57 = vld [vmem:[#allocation3 + $0xb8] sm:$0xff] }
 0x248   : > { %v5897_v25 = vor.u32 %v5896_v22, %v5892_v34  ;;  %v5905_v9 = vshrl.u32 %v5530_v53, 16  ;;  %8859 = vmatprep.mubr.msk.bf16.mxu0 %vm555_vm1, %v8198_v11  ;;  %v5908_v51 = vshll.u32 %v5530_v53, 16  ;;  %v5914_v32 = vshll.u32 %v5531_v56, 16  ;;  %v2594_v6 = vpop.f32.mrb[51].mxu0  ;;  %v1991_v16 = vld [vmem:[#allocation3 + $0x90] sm:$0xff]  ;;  %v1989_v49 = vld [vmem:[#allocation3 + $0x80] sm:$0xff] }
 0x249   : > { %v5918_v7 = vshrl.u32 %v5531_v56, 16  ;;  %v5924_v30 = vshll.u32 %v5532_v27, 16  ;;  %v5888_v18 = vrot.slane %v5887_v26, 4  ;;  %v6412_v28 = vsel %vm9678_vm15, %v6410_v0, %v6411_v13  ;;  %v1557_v62 = vld [vmem:[#allocation3 + $0xa8] sm:$0xff]  ;;  %v1992_v40 = vld [vmem:[#allocation3 + $0x98] sm:$0xff]  ;;  %v8653_v11 = vpop.f32.mrb[52].mxu0 }
 0x24a   : > { %v5898_v31 = vrot.slane %v5897_v25, 4  ;;  %v5907_v20 = vrot.slane %v5905_v9, 4  ;;  %v8235_v17 = vcombine.low %v6409_v48, %v6412_v28  ;;  %v5910_v29 = vrot.slane %v5908_v51, 5  ;;  %v6281_v12 = vld [vmem:[#allocation2 + $0x24] sm:$0xe]  ;;  %v2607_v25 = vpop.f32.mrb[53].mxu0 }
 0x24b   : > { %v5916_v14 = vrot.slane %v5914_v32, 5  ;;  %v5920_v21 = vrot.slane %v5918_v7, 4  ;;  %v5893_v43 = vsel %vm9273_vm6, %v5888_v18, %v5892_v34  ;;  %v5926_v15 = vrot.slane %v5924_v30, 5  ;;  %v1990_v52 = vld [vmem:[#allocation3 + $0x88] sm:$0xff]  ;;  %v6282_v23 = vld [vmem:[#allocation2 + $0x28] sm:$0xf] }
 0x24c   : > { %v5903_v24 = vsel %vm9273_vm6, %v5898_v31, %v5902_v41  ;;  %v1883_v1 = vadd.f32 %v10357_v10, %v1558_v46  ;;  %8869 = vmatprep.mubr.msk.bf16.mxu1 %vm555_vm1, %v8235_v17  ;;  %v5911_v53 = vor.u32 %v5910_v29, %v5907_v20  ;;  %v1881_v35 = vadd.f32 %v10362_v59, %v1556_v44  ;;  %v6283_v8 = vld [vmem:[#allocation2 + $0x2c] sm:$0x1]  ;;  %v6284_v37 = vld [vmem:[#allocation2 + $0x30] sm:$0xe]  ;;  %v6285_v56 = vld [vmem:[#allocation2 + $0x34] sm:$0xf] }
 0x24d   : > { %v8199_v63 = vcombine.low %v5893_v43, %v5903_v24  ;;  %v5921_v54 = vor.u32 %v5920_v21, %v5916_v14  ;;  %v2672_v5 = vadd.f32 %v8649_v60, %v1991_v16  ;;  %v1884_v45 = vadd.f32 %v10366_v61, %v1559_v57  ;;  %v6286_v22 = vld [vmem:[#allocation2 + $0x38] sm:$0x1]  ;;  %v5533_v27 = vld [vmem:[#allocation2 + $0xcc] sm:$0xf]  ;;  %v5534_v26 = vld [vmem:[#allocation2 + $0xd0] sm:$0xf] }
 0x24e   : > { %1915 = vst.msk [vmem:[#allocation3 + $0xb0] sm:$0xff] %vm555_vm1, %v1883_v1  ;;  %v2670_v34 = vadd.f32 %v2591_v19, %v1989_v49  ;;  %v1882_v10 = vadd.f32 %v10376_v47, %v1557_v62  ;;  %v5912_v41 = vrot.slane %v5911_v53, 4  ;;  %1913 = vst.msk [vmem:[#allocation3 + $0xa0] sm:$0xff] %vm555_vm1, %v1881_v35  ;;  %v2673_v59 = vadd.f32 %v8650_v38, %v1992_v40  ;;  %v8654_v13 = vpop.f32.mrb[54].mxu0  ;;  %v5535_v7 = vld [vmem:[#allocation2 + $0xd4] sm:$0x1] }
 0x24f   : > { %8860 = vmatmul.mubr.msk.bf16.gmra.mrb[152].mxu0 %vm555_vm1, %v8199_v63  ;;  %v5922_v48 = vrot.slane %v5921_v54, 4  ;;  %v2671_v0 = vadd.f32 %v2594_v6, %v1990_v52  ;;  %2704 = vst.msk [vmem:[#allocation3 + $0x90] sm:$0xff] %vm555_vm1, %v2672_v5  ;;  %1916 = vst.msk [vmem:[#allocation3 + $0xb8] sm:$0xff] %vm555_vm1, %v1884_v45  ;;  %v8219_v61 = vrot.slane %v6281_v12, 9  ;;  %v6415_v47 = vrot.slane %v6282_v23, 5  ;;  %v2610_v30 = vpop.f32.mrb[55].mxu0 }
 0x250   : > { %2702 = vst.msk [vmem:[#allocation3 + $0x80] sm:$0xff] %vm555_vm1, %v2670_v34  ;;  %1914 = vst.msk [vmem:[#allocation3 + $0xa8] sm:$0xff] %vm555_vm1, %v1882_v10  ;;  %v6418_v60 = vrot.slane %v6283_v8, 5  ;;  %v8220_v19 = vrot.slane %v6284_v37, 9  ;;  %v5917_v9 = vsel %vm9273_vm6, %v5912_v41, %v5916_v14  ;;  %v6422_v51 = vrot.slane %v6285_v56, 5  ;;  %v1562_v17 = vld [vmem:[#allocation3 + $0xd0] sm:$0xff] }
 0x251   : > { %v5927_v38 = vsel %vm9273_vm6, %v5922_v48, %v5926_v15  ;;  %2705 = vst.msk [vmem:[#allocation3 + $0x98] sm:$0xff] %vm555_vm1, %v2673_v59  ;;  %2703 = vst.msk [vmem:[#allocation3 + $0x88] sm:$0xff] %vm555_vm1, %v2671_v0  ;;  %v6425_v32 = vrot.slane %v6286_v22, 5  ;;  %v6416_v6 = vsel %vm9678_vm15, %v8219_v61, %v6415_v47  ;;  %v6417_v18 = vrot.slane %v6415_v47, 4  ;;  %v1560_v49 = vld [vmem:[#allocation3 + $0xc0] sm:$0xff]  ;;  %v1563_v62 = vld [vmem:[#allocation3 + $0xd8] sm:$0xff] }
 0x252   : > { %v8200_v46 = vcombine.low %v5917_v9, %v5927_v38  ;;  %v5929_v31 = vshrl.u32 %v5533_v27, 16  ;;  %v6423_v28 = vsel %vm9678_vm15, %v8220_v19, %v6422_v51  ;;  %v6424_v20 = vrot.slane %v6422_v51, 4  ;;  %v6287_v12 = vld [vmem:[#allocation2 + $0x3c] sm:$0xe]  ;;  %v1561_v52 = vld [vmem:[#allocation3 + $0xc8] sm:$0xff]  ;;  %v8657_v61 = vpop.f32.mrb[56].mxu0 }
 0x253   : > { %v5932_v44 = vshll.u32 %v5533_v27, 16  ;;  %v5938_v57 = vshll.u32 %v5534_v26, 16  ;;  %v6419_v29 = vsel %vm9678_vm15, %v6417_v18, %v6418_v60  ;;  %v5942_v21 = vshrl.u32 %v5534_v26, 16  ;;  %v6288_v23 = vld [vmem:[#allocation2 + $0x40] sm:$0xf]  ;;  %v1566_v60 = vld [vmem:[#allocation3 + $0xf0] sm:$0xff] }
 0x254   : > { %8863 = vmatprep.mubr.msk.bf16.mxu0 %vm555_vm1, %v8200_v46  ;;  %v5931_v14 = vrot.slane %v5929_v31, 4  ;;  %v5948_v16 = vshll.u32 %v5535_v7, 16  ;;  %v8236_v43 = vcombine.low %v6416_v6, %v6419_v29  ;;  %v6426_v24 = vsel %vm9678_vm15, %v6424_v20, %v6425_v32  ;;  %v6289_v37 = vld [vmem:[#allocation2 + $0x44] sm:$0x1]  ;;  %v6291_v27 = vld [vmem:[#allocation2 + $0x4c] sm:$0xf] }
 0x255   : > { %v5934_v15 = vrot.slane %v5932_v44, 5  ;;  %v5940_v1 = vrot.slane %v5938_v57, 5  ;;  %v1995_v40 = vld [vmem:[#allocation3 + $0xb0] sm:$0xff]  ;;  %v8237_v63 = vcombine.low %v6423_v28, %v6426_v24  ;;  %v5944_v53 = vrot.slane %v5942_v21, 4  ;;  %v1993_v8 = vld [vmem:[#allocation3 + $0xa0] sm:$0xff]  ;;  %v2623_v19 = vpop.f32.mrb[57].mxu0 }
 0x256   : > { %v5950_v54 = vrot.slane %v5948_v16, 5  ;;  %v1887_v35 = vadd.f32 %v10436_v36, %v1562_v17  ;;  %8870 = vmatmul.mubr.msk.bf16.vlgmr.msra.gmra.mrb[128].mxu1 %vm555_vm1, %v8236_v43  ;;  %v1885_v5 = vadd.f32 %v10445_v42, %v1560_v49  ;;  %v2676_v45 = vadd.f32 %v8653_v11, %v1995_v40  ;;  %v1996_v10 = vld [vmem:[#allocation3 + $0xb8] sm:$0xff]  ;;  %v6290_v0 = vld [vmem:[#allocation2 + $0x48] sm:$0xe]  ;;  %v8658_v51 = vpop.f32.mrb[58].mxu0  ;;  %v1565_v6 = vld [vmem:[#allocation3 + $0xe8] sm:$0xff] }
 0x257   : > { %v5935_v56 = vor.u32 %v5934_v15, %v5931_v14  ;;  %v1888_v34 = vadd.f32 %v10450_v33, %v1563_v62  ;;  %v1994_v22 = vld [vmem:[#allocation3 + $0xa8] sm:$0xff]  ;;  %8873 = vmatprep.mubr.msk.bf16.mxu1 %vm555_vm1, %v8237_v63  ;;  %v5945_v41 = vor.u32 %v5944_v53, %v5940_v1  ;;  %v2674_v48 = vadd.f32 %v2607_v25, %v1993_v8  ;;  %v6292_v26 = vld [vmem:[#allocation2 + $0x50] sm:$0x1]  ;;  %v2626_v18 = vpop.f32.mrb[59].mxu0  ;;  %v10577_v57 = vld [vmem:[#allocation2 + $0x58] sm:$0xf] }
 0x258   : > { %1919 = vst.msk [vmem:[#allocation3 + $0xd0] sm:$0xff] %vm555_vm1, %v1887_v35  ;;  %v1886_v36 = vadd.f32 %v10456_v2, %v1561_v52  ;;  %v2677_v59 = vadd.f32 %v8654_v13, %v1996_v10  ;;  %1917 = vst.msk [vmem:[#allocation3 + $0xc0] sm:$0xff] %vm555_vm1, %v1885_v5  ;;  %v2675_v42 = vadd.f32 %v2610_v30, %v1994_v22  ;;  %v8221_v33 = vrot.slane %v6287_v12, 9  ;;  %v1564_v13 = vld [vmem:[#allocation3 + $0xe0] sm:$0xff]  ;;  %v1567_v38 = vld [vmem:[#allocation3 + $0xf8] sm:$0xff]  ;;  %v8667_v17 = vpop.f32.mrb[32].mxu1 }
 0x259   : > { %v5936_v47 = vrot.slane %v5935_v56, 4  ;;  %2708 = vst.msk [vmem:[#allocation3 + $0xb0] sm:$0xff] %vm555_vm1, %v2676_v45  ;;  %1920 = vst.msk [vmem:[#allocation3 + $0xd8] sm:$0xff] %vm555_vm1, %v1888_v34  ;;  %v6429_v11 = vrot.slane %v6288_v23, 5  ;;  %v5946_v9 = vrot.slane %v5945_v41, 4  ;;  %v6432_v2 = vrot.slane %v6289_v37, 5 }
 0x25a   : > { %2706 = vst.msk [vmem:[#allocation3 + $0xa0] sm:$0xff] %vm555_vm1, %v2674_v48  ;;  %1918 = vst.msk [vmem:[#allocation3 + $0xc8] sm:$0xff] %vm555_vm1, %v1886_v36  ;;  %v6436_v25 = vrot.slane %v6291_v27, 5  ;;  %v8222_v46 = vrot.slane %v6290_v0, 9  ;;  %v6439_v20 = vrot.slane %v6292_v26, 5  ;;  %v1891_v44 = vadd.f32 %v10493_v55, %v1566_v60  ;;  %v3096_v62 = vpop.f32.mrb[33].mxu1 }
 0x25b   : > { %2709 = vst.msk [vmem:[#allocation3 + $0xb8] sm:$0xff] %vm555_vm1, %v2677_v59  ;;  %v5941_v32 = vsel %vm9273_vm6, %v5936_v47, %v5940_v1  ;;  %2707 = vst.msk [vmem:[#allocation3 + $0xa8] sm:$0xff] %vm555_vm1, %v2675_v42  ;;  %v6430_v7 = vsel %vm9678_vm15, %v8221_v33, %v6429_v11  ;;  %v6431_v30 = vrot.slane %v6429_v11, 4  ;;  %v5951_v31 = vsel %vm9273_vm6, %v5946_v9, %v5950_v54  ;;  %v10583_v49 = vld [vmem:[#allocation2 + $0x64] sm:$0xf]  ;;  %v8668_v1 = vpop.f32.mrb[34].mxu1 }
 0x25c   : > { %v6438_v28 = vrot.slane %v6436_v25, 4  ;;  %v8201_v29 = vcombine.low %v5941_v32, %v5951_v31  ;;  %v1889_v21 = vadd.f32 %v10499_v58, %v1564_v13  ;;  %v1892_v16 = vadd.f32 %v10505_v3, %v1567_v38  ;;  %1923 = vst.msk [vmem:[#allocation3 + $0xf0] sm:$0xff] %vm555_vm1, %v1891_v44  ;;  %v6293_v24 = vld [vmem:[#allocation2 + $0x54] sm:$0xe]  ;;  %v6295_v15 = vld [vmem:[#allocation2 + $0x5c] sm:$0x1] }
 0x25d   : > { %v6433_v14 = vsel %vm9678_vm15, %v6431_v30, %v6432_v2  ;;  %v6437_v12 = vsel %vm9678_vm15, %v8222_v46, %v6436_v25  ;;  %v1890_v43 = vadd.f32 %v10511_v50, %v1565_v6  ;;  %v6443_v40 = vrot.slane %v10577_v57, 5  ;;  %v6298_v52 = vld [vmem:[#allocation2 + $0x68] sm:$0x1]  ;;  %v3099_v63 = vpop.f32.mrb[35].mxu1  ;;  %v6296_v35 = vld [vmem:[#allocation2 + $0x60] sm:$0xe] }
 0x25e   : > { %v8238_v39 = vcombine.low %v6430_v7, %v6433_v14  ;;  %v6440_v55 = vsel %vm9678_vm15, %v6438_v28, %v6439_v20  ;;  %8864 = vmatmul.mubr.msk.bf16.gmra.mrb[156].mxu0 %vm555_vm1, %v8201_v29  ;;  %1921 = vst.msk [vmem:[#allocation3 + $0xe0] sm:$0xff] %vm555_vm1, %v1889_v21  ;;  %1924 = vst.msk [vmem:[#allocation3 + $0xf8] sm:$0xff] %vm555_vm1, %v1892_v16  ;;  %v2768_v23 = vld [vmem:[#allocation3 + $0x10] sm:$0xff]  ;;  %v6450_v8 = vrot.slane %v10583_v49, 5  ;;  %v6446_v10 = vrot.slane %v6295_v15, 5  ;;  %v2766_v22 = vld [vmem:[#allocation3] sm:$0xff] }
 0x25f   : > { %v8239_v58 = vcombine.low %v6437_v12, %v6440_v55  ;;  %v1999_v3 = vld [vmem:[#allocation3 + $0xd0] sm:$0xff]  ;;  %v1997_v50 = vld [vmem:[#allocation3 + $0xc0] sm:$0xff]  ;;  %1922 = vst.msk [vmem:[#allocation3 + $0xe8] sm:$0xff] %vm555_vm1, %v1890_v43  ;;  %v3225_v37 = vadd.f32 %v8667_v17, %v2768_v23  ;;  %v6445_v34 = vrot.slane %v6443_v40, 4  ;;  %v10599_v27 = vld [vmem:[#allocation2 + $0x70] sm:$0xf]  ;;  %v3223_v59 = vadd.f32 %v3096_v62, %v2766_v22 }
 0x260   : > { %8874 = vmatmul.mubr.msk.bf16.gmra.mrb[132].mxu1 %vm555_vm1, %v8238_v39  ;;  %v2680_v53 = vadd.f32 %v8657_v61, %v1999_v3  ;;  %v2000_v54 = vld [vmem:[#allocation3 + $0xd8] sm:$0xff]  ;;  %v2678_v56 = vadd.f32 %v2623_v19, %v1997_v50  ;;  %v6452_v48 = vrot.slane %v6450_v8, 4  ;;  %v6453_v36 = vrot.slane %v6298_v52, 5  ;;  %v2767_v26 = vld [vmem:[#allocation3 + $0x8] sm:$0xff]  ;;  %v10603_v61 = vld [vmem:[#allocation2 + $0x7c] sm:$0xf] }
 0x261   : > { %8877 = vmatprep.mubr.msk.bf16.mxu1 %vm555_vm1, %v8239_v58  ;;  %v2681_v5 = vadd.f32 %v8658_v51, %v2000_v54  ;;  %v1998_v45 = vld [vmem:[#allocation3 + $0xc8] sm:$0xff]  ;;  %3257 = vst.msk [vmem:[#allocation3 + $0x10] sm:$0xff] %vm555_vm1, %v3225_v37  ;;  %v2769_v0 = vld [vmem:[#allocation3 + $0x18] sm:$0xff]  ;;  %v8223_v47 = vrot.slane %v6293_v24, 9  ;;  %v6447_v42 = vsel %vm9678_vm15, %v6445_v34, %v6446_v10  ;;  %v3224_v11 = vadd.f32 %v3099_v63, %v2767_v26  ;;  %v8661_v9 = vpop.f32.mrb[60].mxu0  ;;  %v8671_v13 = vpop.f32.mrb[36].mxu1 }
 0x262   : > { %2712 = vst.msk [vmem:[#allocation3 + $0xd0] sm:$0xff] %vm555_vm1, %v2680_v53  ;;  %v2679_v41 = vadd.f32 %v2626_v18, %v1998_v45  ;;  %2710 = vst.msk [vmem:[#allocation3 + $0xc0] sm:$0xff] %vm555_vm1, %v2678_v56  ;;  %v3226_v33 = vadd.f32 %v8668_v1, %v2769_v0  ;;  %v8224_v60 = vrot.slane %v6296_v35, 9  ;;  %v6454_v19 = vsel %vm9678_vm15, %v6452_v48, %v6453_v36  ;;  %v6301_v2 = vld [vmem:[#allocation2 + $0x74] sm:$0x1]  ;;  %v2639_v32 = vpop.f32.mrb[61].mxu0 }
 0x263   : > { %2713 = vst.msk [vmem:[#allocation3 + $0xd8] sm:$0xff] %vm555_vm1, %v2681_v5  ;;  %3255 = vst.msk [vmem:[#allocation3] sm:$0xff] %vm555_vm1, %v3223_v59  ;;  %v6457_v25 = vrot.slane %v10599_v27, 5  ;;  %v6444_v38 = vsel %vm9678_vm15, %v8223_v47, %v6443_v40  ;;  %v2003_v51 = vld [vmem:[#allocation3 + $0xf0] sm:$0xff]  ;;  %v6464_v7 = vrot.slane %v10603_v61, 5  ;;  %v3112_v46 = vpop.f32.mrb[37].mxu1 }
 0x264   : > { %2711 = vst.msk [vmem:[#allocation3 + $0xc8] sm:$0xff] %vm555_vm1, %v2679_v41  ;;  %3258 = vst.msk [vmem:[#allocation3 + $0x18] sm:$0xff] %vm555_vm1, %v3226_v33  ;;  %v2772_v30 = vld [vmem:[#allocation3 + $0x30] sm:$0xff]  ;;  %v8240_v6 = vcombine.low %v6444_v38, %v6447_v42  ;;  %v6451_v18 = vsel %vm9678_vm15, %v8224_v60, %v6450_v8  ;;  %v2684_v31 = vadd.f32 %v8661_v9, %v2003_v51  ;;  %v8662_v44 = vpop.f32.mrb[62].mxu0  ;;  %v6304_v57 = vld [vmem:[#allocation2 + $0x80] sm:$0x1] }
 0x265   : > { %3256 = vst.msk [vmem:[#allocation3 + $0x8] sm:$0xff] %vm555_vm1, %v3224_v11  ;;  %v2001_v28 = vld [vmem:[#allocation3 + $0xe0] sm:$0xff]  ;;  %v2004_v20 = vld [vmem:[#allocation3 + $0xf8] sm:$0xff]  ;;  %v3229_v17 = vadd.f32 %v8671_v13, %v2772_v30  ;;  %v8672_v29 = vpop.f32.mrb[38].mxu1  ;;  %v8241_v14 = vcombine.low %v6451_v18, %v6454_v19  ;;  %v2642_v62 = vpop.f32.mrb[63].mxu0  ;;  %v6459_v39 = vrot.slane %v6457_v25, 4 }
 0x266   : > { %v2682_v21 = vadd.f32 %v2639_v32, %v2001_v28  ;;  %v2685_v16 = vadd.f32 %v8662_v44, %v2004_v20  ;;  %v2002_v49 = vld [vmem:[#allocation3 + $0xe8] sm:$0xff]  ;;  %v2770_v12 = vld [vmem:[#allocation3 + $0x20] sm:$0xff]  ;;  %v2773_v55 = vld [vmem:[#allocation3 + $0x38] sm:$0xff]  ;;  %v3115_v43 = vpop.f32.mrb[39].mxu1  ;;  %2716 = vst.msk [vmem:[#allocation3 + $0xf0] sm:$0xff] %vm555_vm1, %v2684_v31  ;;  %v6466_v1 = vrot.slane %v6464_v7, 4 }
 0x267   : > { %v2683_v24 = vadd.f32 %v2642_v62, %v2002_v49  ;;  %v6299_v15 = vld [vmem:[#allocation2 + $0x6c] sm:$0xe]  ;;  %3261 = vst.msk [vmem:[#allocation3 + $0x30] sm:$0xff] %vm555_vm1, %v3229_v17  ;;  %v3227_v58 = vadd.f32 %v3112_v46, %v2770_v12  ;;  %v3230_v3 = vadd.f32 %v8672_v29, %v2773_v55  ;;  %v2771_v40 = vld [vmem:[#allocation3 + $0x28] sm:$0xff]  ;;  %v10628_v52 = vld [vmem:[#allocation2 + $0x88] sm:$0xf] }
 0x268   : > { %8878 = vmatmul.mubr.msk.bf16.gmra.mrb[136].mxu1 %vm555_vm1, %v8240_v6  ;;  %2714 = vst.msk [vmem:[#allocation3 + $0xe0] sm:$0xff] %vm555_vm1, %v2682_v21  ;;  %2717 = vst.msk [vmem:[#allocation3 + $0xf8] sm:$0xff] %vm555_vm1, %v2685_v16  ;;  %v6460_v23 = vrot.slane %v6301_v2, 5  ;;  %v6302_v63 = vld [vmem:[#allocation2 + $0x78] sm:$0xe]  ;;  %v3228_v53 = vadd.f32 %v3115_v43, %v2771_v40  ;;  %v6467_v54 = vrot.slane %v6304_v57, 5 }
 0x269   : > { %8881 = vmatprep.mubr.msk.bf16.mxu1 %vm555_vm1, %v8241_v14  ;;  %v10633_v50 = vld [vmem:[#allocation2 + $0x94] sm:$0xf]  ;;  %2715 = vst.msk [vmem:[#allocation3 + $0xe8] sm:$0xff] %vm555_vm1, %v2683_v24  ;;  %3259 = vst.msk [vmem:[#allocation3 + $0x20] sm:$0xff] %vm555_vm1, %v3227_v58  ;;  %v3321_v35 = vld [vmem:[#allocation3 + $0x10] sm:$0xff]  ;;  %v8225_v8 = vrot.slane %v6299_v15, 9 }
 0x26a   : > { %3262 = vst.msk [vmem:[#allocation3 + $0x38] sm:$0xff] %vm555_vm1, %v3230_v3  ;;  %v6461_v37 = vsel %vm9678_vm15, %v6459_v39, %v6460_v23  ;;  %v3319_v56 = vld [vmem:[#allocation3] sm:$0xff]  ;;  %3260 = vst.msk [vmem:[#allocation3 + $0x28] sm:$0xff] %vm555_vm1, %v3228_v53  ;;  %v6471_v5 = vrot.slane %v10628_v52, 5  ;;  %v8226_v45 = vrot.slane %v6302_v63, 9  ;;  %v6468_v34 = vsel %vm9678_vm15, %v6466_v1, %v6467_v54  ;;  %v8701_v10 = vpop.f32.mrb[64].mxu0 }
 0x26b   : > { %v3322_v22 = vld [vmem:[#allocation3 + $0x18] sm:$0xff]  ;;  %v6478_v41 = vrot.slane %v10633_v50, 5  ;;  %v2776_v48 = vld [vmem:[#allocation3 + $0x50] sm:$0xff]  ;;  %v8675_v36 = vpop.f32.mrb[40].mxu1  ;;  %v6458_v59 = vsel %vm9678_vm15, %v8225_v8, %v6457_v25  ;;  %v3647_v0 = vadd.f32 %v8701_v10, %v3321_v35  ;;  %v3518_v26 = vpop.f32.mrb[65].mxu0  ;;  %v2774_v33 = vld [vmem:[#allocation3 + $0x40] sm:$0xff] }
 0x26c   : > { %v3320_v47 = vld [vmem:[#allocation3 + $0x8] sm:$0xff]  ;;  %v3233_v42 = vadd.f32 %v8675_v36, %v2776_v48  ;;  %v3128_v11 = vpop.f32.mrb[41].mxu1  ;;  %v8242_v60 = vcombine.low %v6458_v59, %v6461_v37  ;;  %v6465_v19 = vsel %vm9678_vm15, %v8226_v45, %v6464_v7  ;;  %v3645_v9 = vadd.f32 %v3518_v26, %v3319_v56  ;;  %v8702_v2 = vpop.f32.mrb[66].mxu0  ;;  %v6307_v13 = vld [vmem:[#allocation2 + $0x8c] sm:$0x1]  ;;  %v2777_v27 = vld [vmem:[#allocation3 + $0x58] sm:$0xff] }
 0x26d   : > { %v3231_v38 = vadd.f32 %v3128_v11, %v2774_v33  ;;  %v8676_v51 = vpop.f32.mrb[42].mxu1  ;;  %v8243_v32 = vcombine.low %v6465_v19, %v6468_v34  ;;  %3679 = vst.msk [vmem:[#allocation3 + $0x10] sm:$0xff] %vm555_vm1, %v3647_v0  ;;  %v3648_v25 = vadd.f32 %v8702_v2, %v3322_v22  ;;  %v3521_v30 = vpop.f32.mrb[67].mxu0  ;;  %v6473_v46 = vrot.slane %v6471_v5, 4  ;;  %v6310_v6 = vld [vmem:[#allocation2 + $0x98] sm:$0x1] }
 0x26e   : > { %3265 = vst.msk [vmem:[#allocation3 + $0x50] sm:$0xff] %vm555_vm1, %v3233_v42  ;;  %v3234_v61 = vadd.f32 %v8676_v51, %v2777_v27  ;;  %v2775_v18 = vld [vmem:[#allocation3 + $0x48] sm:$0xff]  ;;  %v3131_v7 = vpop.f32.mrb[43].mxu1  ;;  %3677 = vst.msk [vmem:[#allocation3] sm:$0xff] %vm555_vm1, %v3645_v9  ;;  %v3646_v31 = vadd.f32 %v3521_v30, %v3320_v47  ;;  %v6480_v20 = vrot.slane %v6478_v41, 4  ;;  %v6474_v17 = vrot.slane %v6307_v13, 5 }
 0x26f   : > { %v6305_v28 = vld [vmem:[#allocation2 + $0x84] sm:$0xe]  ;;  %3263 = vst.msk [vmem:[#allocation3 + $0x40] sm:$0xff] %vm555_vm1, %v3231_v38  ;;  %v3232_v44 = vadd.f32 %v3131_v7, %v2775_v18  ;;  %v10662_v57 = vld [vmem:[#allocation2 + $0xa0] sm:$0xf]  ;;  %3680 = vst.msk [vmem:[#allocation3 + $0x18] sm:$0xff] %vm555_vm1, %v3648_v25 }
 0x270   : > { %8882 = vmatmul.mubr.msk.bf16.gmra.mrb[140].mxu1 %vm555_vm1, %v8242_v60  ;;  %v6308_v29 = vld [vmem:[#allocation2 + $0x90] sm:$0xe]  ;;  %3266 = vst.msk [vmem:[#allocation3 + $0x58] sm:$0xff] %vm555_vm1, %v3234_v61  ;;  %v10667_v14 = vld [vmem:[#allocation2 + $0xac] sm:$0xf]  ;;  %3678 = vst.msk [vmem:[#allocation3 + $0x8] sm:$0xff] %vm555_vm1, %v3646_v31  ;;  %v6475_v62 = vsel %vm9678_vm15, %v6473_v46, %v6474_v17 }
 0x271   : > { %8885 = vmatprep.mubr.msk.bf16.mxu1 %vm555_vm1, %v8243_v32  ;;  %v6481_v21 = vrot.slane %v6310_v6, 5  ;;  %v3325_v16 = vld [vmem:[#allocation3 + $0x30] sm:$0xff]  ;;  %3264 = vst.msk [vmem:[#allocation3 + $0x48] sm:$0xff] %vm555_vm1, %v3232_v44  ;;  %v8227_v49 = vrot.slane %v6305_v28, 9  ;;  %v3323_v39 = vld [vmem:[#allocation3 + $0x20] sm:$0xff]  ;;  %v6485_v12 = vrot.slane %v10662_v57, 5 }
 0x272   : > { %v8228_v55 = vrot.slane %v6308_v29, 9  ;;  %v8705_v24 = vpop.f32.mrb[68].mxu0  ;;  %v3326_v15 = vld [vmem:[#allocation3 + $0x38] sm:$0xff]  ;;  %v6492_v1 = vrot.slane %v10667_v14, 5  ;;  %v2780_v58 = vld [vmem:[#allocation3 + $0x70] sm:$0xff]  ;;  %v8679_v3 = vpop.f32.mrb[44].mxu1 }
 0x273   : > { %v6482_v43 = vsel %vm9678_vm15, %v6480_v20, %v6481_v21  ;;  %v6472_v40 = vsel %vm9678_vm15, %v8227_v49, %v6471_v5  ;;  %v3651_v23 = vadd.f32 %v8705_v24, %v3325_v16  ;;  %v3534_v63 = vpop.f32.mrb[69].mxu0  ;;  %v3324_v53 = vld [vmem:[#allocation3 + $0x28] sm:$0xff]  ;;  %v6311_v54 = vld [vmem:[#allocation2 + $0x9c] sm:$0xe]  ;;  %v3237_v35 = vadd.f32 %v8679_v3, %v2780_v58  ;;  %v3144_v37 = vpop.f32.mrb[45].mxu1  ;;  %v2781_v48 = vld [vmem:[#allocation3 + $0x78] sm:$0xff] }
 0x274   : > { %v2778_v8 = vld [vmem:[#allocation3 + $0x60] sm:$0xff]  ;;  %v8244_v56 = vcombine.low %v6472_v40, %v6475_v62  ;;  %v6479_v45 = vsel %vm9678_vm15, %v8228_v55, %v6478_v41  ;;  %v3649_v34 = vadd.f32 %v3534_v63, %v3323_v39  ;;  %v8706_v10 = vpop.f32.mrb[70].mxu0  ;;  %v6313_v22 = vld [vmem:[#allocation2 + $0xa4] sm:$0x1]  ;;  %v8680_v36 = vpop.f32.mrb[46].mxu1  ;;  %v6487_v26 = vrot.slane %v6485_v12, 4 }
 0x275   : > { %v3235_v52 = vadd.f32 %v3144_v37, %v2778_v8  ;;  %v8245_v5 = vcombine.low %v6479_v45, %v6482_v43  ;;  %3683 = vst.msk [vmem:[#allocation3 + $0x30] sm:$0xff] %vm555_vm1, %v3651_v23  ;;  %v3652_v59 = vadd.f32 %v8706_v10, %v3326_v15  ;;  %v3537_v0 = vpop.f32.mrb[71].mxu0  ;;  %v6316_v47 = vld [vmem:[#allocation2 + $0xb0] sm:$0x1]  ;;  %3269 = vst.msk [vmem:[#allocation3 + $0x70] sm:$0xff] %vm555_vm1, %v3237_v35  ;;  %v2779_v42 = vld [vmem:[#allocation3 + $0x68] sm:$0xff] }
 0x276   : > { %v3238_v50 = vadd.f32 %v8680_v36, %v2781_v48  ;;  %v3147_v41 = vpop.f32.mrb[47].mxu1  ;;  %3681 = vst.msk [vmem:[#allocation3 + $0x20] sm:$0xff] %vm555_vm1, %v3649_v34  ;;  %v3650_v33 = vadd.f32 %v3537_v0, %v3324_v53  ;;  %v6494_v11 = vrot.slane %v6492_v1, 4  ;;  %v10694_v19 = vld [vmem:[#allocation2 + $0xb8] sm:$0xf]  ;;  %v8229_v9 = vrot.slane %v6311_v54, 9 }
 0x277   : > { %3267 = vst.msk [vmem:[#allocation3 + $0x60] sm:$0xff] %vm555_vm1, %v3235_v52  ;;  %v3236_v60 = vadd.f32 %v3147_v41, %v2779_v42  ;;  %3684 = vst.msk [vmem:[#allocation3 + $0x38] sm:$0xff] %vm555_vm1, %v3652_v59  ;;  %v6488_v2 = vrot.slane %v6313_v22, 5  ;;  %v6314_v13 = vld [vmem:[#allocation2 + $0xa8] sm:$0xe]  ;;  %v6495_v27 = vrot.slane %v6316_v47, 5 }
 0x278   : > { %8886 = vmatmul.mubr.msk.bf16.gmra.mrb[144].mxu1 %vm555_vm1, %v8244_v56  ;;  %3270 = vst.msk [vmem:[#allocation3 + $0x78] sm:$0xff] %vm555_vm1, %v3238_v50  ;;  %v10699_v38 = vld [vmem:[#allocation2 + $0xc4] sm:$0xf]  ;;  %3682 = vst.msk [vmem:[#allocation3 + $0x28] sm:$0xff] %vm555_vm1, %v3650_v33  ;;  %v3329_v51 = vld [vmem:[#allocation3 + $0x50] sm:$0xff]  ;;  %v6499_v6 = vrot.slane %v10694_v19, 5  ;;  %v6486_v21 = vsel %vm9678_vm15, %v8229_v9, %v6485_v12 }
 0x279   : > { %8889 = vmatprep.mubr.msk.bf16.mxu1 %vm555_vm1, %v8245_v5  ;;  %3268 = vst.msk [vmem:[#allocation3 + $0x68] sm:$0xff] %vm555_vm1, %v3236_v60  ;;  %v7002_v32 = vld [vmem:[%s11383_s7] sm:$0x3]  ;;  %v6489_v30 = vsel %vm9678_vm15, %v6487_v26, %v6488_v2  ;;  %v3327_v46 = vld [vmem:[#allocation3 + $0x40] sm:$0xff]  ;;  %v8230_v7 = vrot.slane %v6314_v13, 9  ;;  %v6496_v31 = vsel %vm9678_vm15, %v6494_v11, %v6495_v27  ;;  %v8709_v28 = vpop.f32.mrb[72].mxu0 }
 0x27a   : > { %v7325_v25 = vld [vmem:[%s11386_s10] sm:$0x3]  ;;  %8979 = vmatprep.subr.msk.bf16.mxu0 %vm604_vm0, %v7002_v32  ;;  %v7052_v61 = vsel %vm604_vm0, %v7002_v32, 0  ;;  %v3330_v20 = vld [vmem:[#allocation3 + $0x58] sm:$0xff]  ;;  %v6506_v44 = vrot.slane %v10699_v38, 5  ;;  %v2784_v17 = vld [vmem:[#allocation3 + $0x90] sm:$0xff]  ;;  %v3655_v16 = vadd.f32 %v8709_v28, %v3329_v51  ;;  %v8246_v58 = vcombine.low %v6486_v21, %v6489_v30 }
 0x27b   : > { %8980 = vmatprep.subr.msk.bf16.mxu1 %vm604_vm0, %v7325_v25  ;;  %v7455_v18 = vsel %vm604_vm0, %v7325_v25, 0  ;;  %v8683_v29 = vpop.f32.mrb[48].mxu1  ;;  %8902 = vmatpush3.bf16.msra.mxu0 %v7052_v61  ;;  %v3550_v49 = vpop.f32.mrb[73].mxu0  ;;  %v3328_v62 = vld [vmem:[#allocation3 + $0x48] sm:$0xff]  ;;  %v6317_v39 = vld [vmem:[#allocation2 + $0xb4] sm:$0xe]  ;;  %v6493_v3 = vsel %vm9678_vm15, %v8230_v7, %v6492_v1 }
 0x27c   : > { %8936 = vmatpush3.bf16.msra.mxu1 %v7455_v18  ;;  %v6319_v55 = vld [vmem:[#allocation2 + $0xbc] sm:$0x1]  ;;  %v3241_v43 = vadd.f32 %v8683_v29, %v2784_v17  ;;  %v3160_v15 = vpop.f32.mrb[49].mxu1  ;;  %v3653_v40 = vadd.f32 %v3550_v49, %v3327_v46  ;;  %v8710_v23 = vpop.f32.mrb[74].mxu0  ;;  %v2785_v63 = vld [vmem:[#allocation3 + $0x98] sm:$0xff]  ;;  %v8247_v54 = vcombine.low %v6493_v3, %v6496_v31  ;;  %3687 = vst.msk [vmem:[#allocation3 + $0x50] sm:$0xff] %vm555_vm1, %v3655_v16 }
 0x27d   : > { %v2782_v24 = vld [vmem:[#allocation3 + $0x80] sm:$0xff]  ;;  %v8684_v53 = vpop.f32.mrb[50].mxu1  ;;  %v10727_v12 = vld [vmem:[#allocation2 + $0xd0] sm:$0xf]  ;;  %v3656_v35 = vadd.f32 %v8710_v23, %v3330_v20  ;;  %v3553_v8 = vpop.f32.mrb[75].mxu0  ;;  %v6501_v37 = vrot.slane %v6499_v6, 4 }
 0x27e   : > { %v3239_v57 = vadd.f32 %v3160_v15, %v2782_v24  ;;  %v6322_v56 = vld [vmem:[#allocation2 + $0xc8] sm:$0x1]  ;;  %3273 = vst.msk [vmem:[#allocation3 + $0x90] sm:$0xff] %vm555_vm1, %v3241_v43  ;;  %v3242_v14 = vadd.f32 %v8684_v53, %v2785_v63  ;;  %v2783_v1 = vld [vmem:[#allocation3 + $0x88] sm:$0xff]  ;;  %v3163_v45 = vpop.f32.mrb[51].mxu1  ;;  %3685 = vst.msk [vmem:[#allocation3 + $0x40] sm:$0xff] %vm555_vm1, %v3653_v40  ;;  %v3654_v34 = vadd.f32 %v3553_v8, %v3328_v62 }
 0x27f   : > { %v6508_v10 = vrot.slane %v6506_v44, 4  ;;  %v3240_v22 = vadd.f32 %v3163_v45, %v2783_v1  ;;  %3688 = vst.msk [vmem:[#allocation3 + $0x58] sm:$0xff] %vm555_vm1, %v3656_v35  ;;  %v6502_v52 = vrot.slane %v6319_v55, 5  ;;  %v6320_v48 = vld [vmem:[#allocation2 + $0xc0] sm:$0xe]  ;;  %v6513_v5 = vrot.slane %v10727_v12, 5 }
 0x280   : > { %8890 = vmatmul.mubr.msk.bf16.gmra.mrb[148].mxu1 %vm555_vm1, %v8246_v58  ;;  %3271 = vst.msk [vmem:[#allocation3 + $0x80] sm:$0xff] %vm555_vm1, %v3239_v57  ;;  %3274 = vst.msk [vmem:[#allocation3 + $0x98] sm:$0xff] %vm555_vm1, %v3242_v14  ;;  %v6323_v36 = vld [vmem:[#allocation2 + $0xcc] sm:$0xe]  ;;  %v8231_v59 = vrot.slane %v6317_v39, 9  ;;  %v6509_v0 = vrot.slane %v6322_v56, 5 }
 0x281   : > { %8893 = vmatprep.mubr.msk.bf16.mxu1 %vm555_vm1, %v8247_v54  ;;  %3686 = vst.msk [vmem:[#allocation3 + $0x48] sm:$0xff] %vm555_vm1, %v3654_v34  ;;  %v3333_v26 = vld [vmem:[#allocation3 + $0x70] sm:$0xff]  ;;  %3272 = vst.msk [vmem:[#allocation3 + $0x88] sm:$0xff] %vm555_vm1, %v3240_v22  ;;  %v6325_v47 = vld [vmem:[#allocation2 + $0xd4] sm:$0x1]  ;;  %v6503_v50 = vsel %vm9678_vm15, %v6501_v37, %v6502_v52  ;;  %v8232_v33 = vrot.slane %v6320_v48, 9 }
 0x282   : > { %v3331_v42 = vld [vmem:[#allocation3 + $0x60] sm:$0xff]  ;;  %v6500_v41 = vsel %vm9678_vm15, %v8231_v59, %v6499_v6  ;;  %v6510_v11 = vsel %vm9678_vm15, %v6508_v10, %v6509_v0  ;;  %v8713_v60 = vpop.f32.mrb[76].mxu0  ;;  %v3334_v9 = vld [vmem:[#allocation3 + $0x78] sm:$0xff]  ;;  %v8233_v2 = vrot.slane %v6323_v36, 9  ;;  %v2788_v13 = vld [vmem:[#allocation3 + $0xb0] sm:$0xff]  ;;  %v8687_v27 = vpop.f32.mrb[52].mxu1 }
 0x283   : > { %v3659_v51 = vadd.f32 %v8713_v60, %v3333_v26  ;;  %v3566_v32 = vpop.f32.mrb[77].mxu0  ;;  %v3332_v25 = vld [vmem:[#allocation3 + $0x68] sm:$0xff]  ;;  %v6515_v30 = vrot.slane %v6513_v5, 4  ;;  %v6516_v46 = vrot.slane %v6325_v47, 5  ;;  %v3245_v61 = vadd.f32 %v8687_v27, %v2788_v13  ;;  %v2786_v18 = vld [vmem:[#allocation3 + $0xa0] sm:$0xff]  ;;  %v3176_v19 = vpop.f32.mrb[53].mxu1 }
 0x284   : > { %v8248_v7 = vcombine.low %v6500_v41, %v6503_v50  ;;  %v6507_v6 = vsel %vm9678_vm15, %v8232_v33, %v6506_v44  ;;  %v3657_v31 = vadd.f32 %v3566_v32, %v3331_v42  ;;  %v8714_v28 = vpop.f32.mrb[78].mxu0  ;;  %v3243_v20 = vadd.f32 %v3176_v19, %v2786_v18  ;;  %v2789_v17 = vld [vmem:[#allocation3 + $0xb8] sm:$0xff]  ;;  %v8688_v29 = vpop.f32.mrb[54].mxu1  ;;  %v2787_v39 = vld [vmem:[#allocation3 + $0xa8] sm:$0xff]  ;;  %v2792_v57 = vld [vmem:[#allocation3 + $0xd0] sm:$0xff] }
 0x285   : > { %v8249_v21 = vcombine.low %v6507_v6, %v6510_v11  ;;  %3691 = vst.msk [vmem:[#allocation3 + $0x70] sm:$0xff] %vm555_vm1, %v3659_v51  ;;  %v3660_v16 = vadd.f32 %v8714_v28, %v3334_v9  ;;  %v3569_v49 = vpop.f32.mrb[79].mxu0  ;;  %3277 = vst.msk [vmem:[#allocation3 + $0xb0] sm:$0xff] %vm555_vm1, %v3245_v61  ;;  %v3246_v62 = vadd.f32 %v8688_v29, %v2789_v17  ;;  %v3179_v55 = vpop.f32.mrb[55].mxu1  ;;  %v3337_v15 = vld [vmem:[#allocation3 + $0x90] sm:$0xff]  ;;  %v2790_v8 = vld [vmem:[#allocation3 + $0xc0] sm:$0xff] }
 0x286   : > { %3689 = vst.msk [vmem:[#allocation3 + $0x60] sm:$0xff] %vm555_vm1, %v3657_v31  ;;  %v3658_v38 = vadd.f32 %v3569_v49, %v3332_v25  ;;  %3275 = vst.msk [vmem:[#allocation3 + $0xa0] sm:$0xff] %vm555_vm1, %v3243_v20  ;;  %v3244_v44 = vadd.f32 %v3179_v55, %v2787_v39  ;;  %v6514_v43 = vsel %vm9678_vm15, %v8233_v2, %v6513_v5  ;;  %v8717_v40 = vpop.f32.mrb[80].mxu0  ;;  %v8691_v63 = vpop.f32.mrb[56].mxu1  ;;  %v2793_v1 = vld [vmem:[#allocation3 + $0xd8] sm:$0xff]  ;;  %v2791_v52 = vld [vmem:[#allocation3 + $0xc8] sm:$0xff] }
 0x287   : > { %3692 = vst.msk [vmem:[#allocation3 + $0x78] sm:$0xff] %vm555_vm1, %v3660_v16  ;;  %v6517_v24 = vsel %vm9678_vm15, %v6515_v30, %v6516_v46  ;;  %3278 = vst.msk [vmem:[#allocation3 + $0xb8] sm:$0xff] %vm555_vm1, %v3246_v62  ;;  %v3335_v58 = vld [vmem:[#allocation3 + $0x80] sm:$0xff]  ;;  %v3338_v23 = vld [vmem:[#allocation3 + $0x98] sm:$0xff]  ;;  %v3663_v53 = vadd.f32 %v8717_v40, %v3337_v15  ;;  %v3582_v12 = vpop.f32.mrb[81].mxu0  ;;  %v3249_v35 = vadd.f32 %v8691_v63, %v2792_v57  ;;  %v3192_v4 = vpop.f32.mrb[57].mxu1 }
 0x288   : > { %8894 = vmatmul.mubr.msk.bf16.gmra.mrb[152].mxu1 %vm555_vm1, %v8248_v7  ;;  %3690 = vst.msk [vmem:[#allocation3 + $0x68] sm:$0xff] %vm555_vm1, %v3658_v38  ;;  %3276 = vst.msk [vmem:[#allocation3 + $0xa8] sm:$0xff] %vm555_vm1, %v3244_v44  ;;  %v8250_v3 = vcombine.low %v6514_v43, %v6517_v24  ;;  %v3336_v54 = vld [vmem:[#allocation3 + $0x88] sm:$0xff]  ;;  %v3661_v37 = vadd.f32 %v3582_v12, %v3335_v58  ;;  %v8718_v56 = vpop.f32.mrb[82].mxu0  ;;  %v3247_v14 = vadd.f32 %v3192_v4, %v2790_v8  ;;  %v8692_v45 = vpop.f32.mrb[58].mxu1  ;;  %v2796_v50 = vld [vmem:[#allocation3 + $0xf0] sm:$0xff] }
 0x289   : > { %8897 = vmatprep.mubr.msk.bf16.mxu1 %vm555_vm1, %v8249_v21  ;;  %3695 = vst.msk [vmem:[#allocation3 + $0x90] sm:$0xff] %vm555_vm1, %v3663_v53  ;;  %v3664_v34 = vadd.f32 %v8718_v56, %v3338_v23  ;;  %v3585_v10 = vpop.f32.mrb[83].mxu0  ;;  %3281 = vst.msk [vmem:[#allocation3 + $0xd0] sm:$0xff] %vm555_vm1, %v3249_v35  ;;  %v3250_v22 = vadd.f32 %v8692_v45, %v2793_v1  ;;  %v3195_v48 = vpop.f32.mrb[59].mxu1  ;;  %v2794_v9 = vld [vmem:[#allocation3 + $0xe0] sm:$0xff]  ;;  %v2797_v32 = vld [vmem:[#allocation3 + $0xf8] sm:$0xff] }
 0x28a   : > { %3693 = vst.msk [vmem:[#allocation3 + $0x80] sm:$0xff] %vm555_vm1, %v3661_v37  ;;  %v3662_v36 = vadd.f32 %v3585_v10, %v3336_v54  ;;  %3279 = vst.msk [vmem:[#allocation3 + $0xc0] sm:$0xff] %vm555_vm1, %v3247_v14  ;;  %v3248_v5 = vadd.f32 %v3195_v48, %v2791_v52  ;;  %v2795_v18 = vld [vmem:[#allocation3 + $0xe8] sm:$0xff]  ;;  %v3759_v29 = vld [vmem:[#allocation3 + $0x10] sm:$0xff]  ;;  %vm7760_vm0 = vcmask 130048  }
 0x28b   : > { %3696 = vst.msk [vmem:[#allocation3 + $0x98] sm:$0xff] %vm555_vm1, %v3664_v34  ;;  %3282 = vst.msk [vmem:[#allocation3 + $0xd8] sm:$0xff] %vm555_vm1, %v3250_v22  ;;  %v3757_v55 = vld [vmem:[#allocation3] sm:$0xff]  ;;  %v3760_v15 = vld [vmem:[#allocation3 + $0x18] sm:$0xff] }
 0x28c   : > { %3694 = vst.msk [vmem:[#allocation3 + $0x88] sm:$0xff] %vm555_vm1, %v3662_v36  ;;  %v3341_v59 = vld [vmem:[#allocation3 + $0xb0] sm:$0xff]  ;;  %3280 = vst.msk [vmem:[#allocation3 + $0xc8] sm:$0xff] %vm555_vm1, %v3248_v5  ;;  %v3758_v57 = vld [vmem:[#allocation3 + $0x8] sm:$0xff] }
 0x28d   : > { %v3339_v0 = vld [vmem:[#allocation3 + $0xa0] sm:$0xff]  ;;  %v8721_v26 = vpop.f32.mrb[84].mxu0  ;;  %v3763_v37 = vld [vmem:[#allocation3 + $0x30] sm:$0xff]  ;;  %v3764_v5 = vld [vmem:[#allocation3 + $0x38] sm:$0xff] }
 0x28e   : > { %v3342_v47 = vld [vmem:[#allocation3 + $0xb8] sm:$0xff]  ;;  %v8695_v42 = vpop.f32.mrb[60].mxu1  ;;  %v3667_v41 = vadd.f32 %v8721_v26, %v3341_v59  ;;  %v3598_v33 = vpop.f32.mrb[85].mxu0  ;;  %v3761_v10 = vld [vmem:[#allocation3 + $0x20] sm:$0xff] }
 0x28f   : > { %v3340_v11 = vld [vmem:[#allocation3 + $0xa8] sm:$0xff]  ;;  %v3253_v60 = vadd.f32 %v8695_v42, %v2796_v50  ;;  %v3208_v2 = vpop.f32.mrb[61].mxu1  ;;  %v3665_v13 = vadd.f32 %v3598_v33, %v3339_v0  ;;  %v8722_v27 = vpop.f32.mrb[86].mxu0 }
 0x290   : > { %8898 = vmatmul.mubr.msk.bf16.gmra.mrb[156].mxu1 %vm555_vm1, %v8250_v3  ;;  %v3251_v51 = vadd.f32 %v3208_v2, %v2794_v9  ;;  %v8696_v25 = vpop.f32.mrb[62].mxu1  ;;  %3699 = vst.msk [vmem:[#allocation3 + $0xb0] sm:$0xff] %vm555_vm1, %v3667_v41  ;;  %v3668_v30 = vadd.f32 %v8722_v27, %v3342_v47  ;;  %v3601_v46 = vpop.f32.mrb[87].mxu0  ;;  %v3345_v31 = vld [vmem:[#allocation3 + $0xd0] sm:$0xff]  ;;  %v3762_v50 = vld [vmem:[#allocation3 + $0x28] sm:$0xff] }
 0x291   : > { %3285 = vst.msk [vmem:[#allocation3 + $0xf0] sm:$0xff] %vm555_vm1, %v3253_v60  ;;  %v3254_v61 = vadd.f32 %v8696_v25, %v2797_v32  ;;  %v3211_v19 = vpop.f32.mrb[63].mxu1  ;;  %3697 = vst.msk [vmem:[#allocation3 + $0xa0] sm:$0xff] %vm555_vm1, %v3665_v13  ;;  %v3666_v7 = vadd.f32 %v3601_v46, %v3340_v11  ;;  %v3343_v28 = vld [vmem:[#allocation3 + $0xc0] sm:$0xff]  ;;  %v3767_v13 = vld [vmem:[#allocation3 + $0x50] sm:$0xff] }
 0x292   : > { %3283 = vst.msk [vmem:[#allocation3 + $0xe0] sm:$0xff] %vm555_vm1, %v3251_v51  ;;  %v3252_v6 = vadd.f32 %v3211_v19, %v2795_v18  ;;  %3700 = vst.msk [vmem:[#allocation3 + $0xb8] sm:$0xff] %vm555_vm1, %v3668_v30  ;;  %v3346_v17 = vld [vmem:[#allocation3 + $0xd8] sm:$0xff]  ;;  %v3765_v46 = vld [vmem:[#allocation3 + $0x40] sm:$0xff] }
 0x293   : > { %3286 = vst.msk [vmem:[#allocation3 + $0xf8] sm:$0xff] %vm555_vm1, %v3254_v61  ;;  %3698 = vst.msk [vmem:[#allocation3 + $0xa8] sm:$0xff] %vm555_vm1, %v3666_v7  ;;  %v3344_v62 = vld [vmem:[#allocation3 + $0xc8] sm:$0xff] }
 0x294   : > { %3284 = vst.msk [vmem:[#allocation3 + $0xe8] sm:$0xff] %vm555_vm1, %v3252_v6  ;;  %v3768_v6 = vld [vmem:[#allocation3 + $0x58] sm:$0xff] }
 0x295   : > { %v8725_v20 = vpop.f32.mrb[88].mxu0 }
 0x296   : > { %v8735_v21 = vpop.f32.mrb[64].mxu1  ;;  %v3671_v16 = vadd.f32 %v8725_v20, %v3345_v31  ;;  %v3614_v49 = vpop.f32.mrb[89].mxu0 }
 0x297   : > { %v4437_v39 = vadd.f32 %v8735_v21, %v3759_v29  ;;  %v4308_v38 = vpop.f32.mrb[65].mxu1  ;;  %v3669_v44 = vadd.f32 %v3614_v49, %v3343_v28  ;;  %v8726_v43 = vpop.f32.mrb[90].mxu0  ;;  %v3766_v29 = vld [vmem:[#allocation3 + $0x48] sm:$0xff] }
 0x298   : > { %v4435_v24 = vadd.f32 %v4308_v38, %v3757_v55  ;;  %v8736_v58 = vpop.f32.mrb[66].mxu1  ;;  %3703 = vst.msk [vmem:[#allocation3 + $0xd0] sm:$0xff] %vm555_vm1, %v3671_v16  ;;  %v3672_v3 = vadd.f32 %v8726_v43, %v3346_v17  ;;  %v3617_v40 = vpop.f32.mrb[91].mxu0  ;;  %v3349_v54 = vld [vmem:[#allocation3 + $0xf0] sm:$0xff] }
 0x299   : > { %4469 = vst.msk [vmem:[#allocation3 + $0x10] sm:$0xff] %vm555_vm1, %v4437_v39  ;;  %v4438_v23 = vadd.f32 %v8736_v58, %v3760_v15  ;;  %v4311_v63 = vpop.f32.mrb[67].mxu1  ;;  %3701 = vst.msk [vmem:[#allocation3 + $0xc0] sm:$0xff] %vm555_vm1, %v3669_v44  ;;  %v3670_v53 = vadd.f32 %v3617_v40, %v3344_v62  ;;  %v3347_v35 = vld [vmem:[#allocation3 + $0xe0] sm:$0xff]  ;;  %v3771_v44 = vld [vmem:[#allocation3 + $0x70] sm:$0xff] }
 0x29a   : > { %4467 = vst.msk [vmem:[#allocation3] sm:$0xff] %vm555_vm1, %v4435_v24  ;;  %v4436_v12 = vadd.f32 %v4311_v63, %v3758_v57  ;;  %3704 = vst.msk [vmem:[#allocation3 + $0xd8] sm:$0xff] %vm555_vm1, %v3672_v3  ;;  %v3350_v4 = vld [vmem:[#allocation3 + $0xf8] sm:$0xff]  ;;  %v3769_v40 = vld [vmem:[#allocation3 + $0x60] sm:$0xff] }
 0x29b   : > { %4470 = vst.msk [vmem:[#allocation3 + $0x18] sm:$0xff] %vm555_vm1, %v4438_v23  ;;  %3702 = vst.msk [vmem:[#allocation3 + $0xc8] sm:$0xff] %vm555_vm1, %v3670_v53  ;;  %v3348_v45 = vld [vmem:[#allocation3 + $0xe8] sm:$0xff] }
 0x29c   : > { %4468 = vst.msk [vmem:[#allocation3 + $0x8] sm:$0xff] %vm555_vm1, %v4436_v12  ;;  %v3772_v12 = vld [vmem:[#allocation3 + $0x78] sm:$0xff] }
 0x29d   : > { %v8729_v8 = vpop.f32.mrb[92].mxu0 }
 0x29e   : > { %v8739_v56 = vpop.f32.mrb[68].mxu1  ;;  %v3675_v14 = vadd.f32 %v8729_v8, %v3349_v54  ;;  %v3630_v1 = vpop.f32.mrb[93].mxu0 }
 0x29f   : > { %v4441_v34 = vadd.f32 %v8739_v56, %v3763_v37  ;;  %v4324_v22 = vpop.f32.mrb[69].mxu1  ;;  %v3673_v52 = vadd.f32 %v3630_v1, %v3347_v35  ;;  %v8730_v48 = vpop.f32.mrb[94].mxu0  ;;  %v3770_v37 = vld [vmem:[#allocation3 + $0x68] sm:$0xff] }
 0x2a0   : > { %v4439_v36 = vadd.f32 %v4324_v22, %v3761_v10  ;;  %v8740_v59 = vpop.f32.mrb[70].mxu1  ;;  %3707 = vst.msk [vmem:[#allocation3 + $0xf0] sm:$0xff] %vm555_vm1, %v3675_v14  ;;  %v3676_v0 = vadd.f32 %v8730_v48, %v3350_v4  ;;  %v3633_v26 = vpop.f32.mrb[95].mxu0  ;;  %v4549_v11 = vld [vmem:[#allocation3 + $0x10] sm:$0xff] }
 0x2a1   : > { %4473 = vst.msk [vmem:[#allocation3 + $0x30] sm:$0xff] %vm555_vm1, %v4441_v34  ;;  %v4442_v47 = vadd.f32 %v8740_v59, %v3764_v5  ;;  %v4327_v42 = vpop.f32.mrb[71].mxu1  ;;  %3705 = vst.msk [vmem:[#allocation3 + $0xe0] sm:$0xff] %vm555_vm1, %v3673_v52  ;;  %v3674_v41 = vadd.f32 %v3633_v26, %v3348_v45  ;;  %v4547_v60 = vld [vmem:[#allocation3] sm:$0xff]  ;;  %v3775_v52 = vld [vmem:[#allocation3 + $0x90] sm:$0xff] }
 0x2a2   : > { %4471 = vst.msk [vmem:[#allocation3 + $0x20] sm:$0xff] %vm555_vm1, %v4439_v36  ;;  %v4440_v33 = vadd.f32 %v4327_v42, %v3762_v50  ;;  %3708 = vst.msk [vmem:[#allocation3 + $0xf8] sm:$0xff] %vm555_vm1, %v3676_v0  ;;  %v4550_v2 = vld [vmem:[#allocation3 + $0x18] sm:$0xff]  ;;  %v3773_v26 = vld [vmem:[#allocation3 + $0x80] sm:$0xff] }
 0x2a3   : > { %4474 = vst.msk [vmem:[#allocation3 + $0x38] sm:$0xff] %vm555_vm1, %v4442_v47  ;;  %3706 = vst.msk [vmem:[#allocation3 + $0xe8] sm:$0xff] %vm555_vm1, %v3674_v41  ;;  %v4548_v25 = vld [vmem:[#allocation3 + $0x8] sm:$0xff] }
 0x2a4   : > { %4472 = vst.msk [vmem:[#allocation3 + $0x28] sm:$0xff] %vm555_vm1, %v4440_v33  ;;  %v3776_v33 = vld [vmem:[#allocation3 + $0x98] sm:$0xff] }
 0x2a5   : > { %v8769_v9 = vpop.f32.mrb[96].mxu0 }
 0x2a6   : > { %v8743_v27 = vpop.f32.mrb[72].mxu1  ;;  %v5003_v51 = vadd.f32 %v8769_v9, %v4549_v11  ;;  %v4874_v32 = vpop.f32.mrb[97].mxu0 }
 0x2a7   : > { %v4445_v30 = vadd.f32 %v8743_v27, %v3767_v13  ;;  %v4340_v61 = vpop.f32.mrb[73].mxu1  ;;  %v5001_v18 = vadd.f32 %v4874_v32, %v4547_v60  ;;  %v8770_v19 = vpop.f32.mrb[98].mxu0  ;;  %v3774_v13 = vld [vmem:[#allocation3 + $0x88] sm:$0xff] }
 0x2a8   : > { %v4443_v7 = vadd.f32 %v4340_v61, %v3765_v46  ;;  %v8744_v31 = vpop.f32.mrb[74].mxu1  ;;  %5035 = vst.msk [vmem:[#allocation3 + $0x10] sm:$0xff] %vm555_vm1, %v5003_v51  ;;  %v5004_v28 = vadd.f32 %v8770_v19, %v4550_v2  ;;  %v4877_v20 = vpop.f32.mrb[99].mxu0  ;;  %v4553_v62 = vld [vmem:[#allocation3 + $0x30] sm:$0xff] }
 0x2a9   : > { %4477 = vst.msk [vmem:[#allocation3 + $0x50] sm:$0xff] %vm555_vm1, %v4445_v30  ;;  %v4446_v17 = vadd.f32 %v8744_v31, %v3768_v6  ;;  %v4343_v21 = vpop.f32.mrb[75].mxu1  ;;  %5033 = vst.msk [vmem:[#allocation3] sm:$0xff] %vm555_vm1, %v5001_v18  ;;  %v5002_v16 = vadd.f32 %v4877_v20, %v4548_v25  ;;  %v4551_v39 = vld [vmem:[#allocation3 + $0x20] sm:$0xff]  ;;  %v9055_v25 = vld [vmem:[%s9174_s15] sm:$0xff]  }
 0x2aa   : > { %4475 = vst.msk [vmem:[#allocation3 + $0x40] sm:$0xff] %vm555_vm1, %v4443_v7  ;;  %v4444_v49 = vadd.f32 %v4343_v21, %v3766_v29  ;;  %5036 = vst.msk [vmem:[#allocation3 + $0x18] sm:$0xff] %vm555_vm1, %v5004_v28  ;;  %v4554_v38 = vld [vmem:[#allocation3 + $0x38] sm:$0xff]  ;;  %v9056_v46 = vld [vmem:[%s9174_s15 + $0x8] sm:$0xff]   ;;  %8937 = vmatprep.mubr.msk.bf16.mxu1 %vm555_vm1, %v9055_v25 }
 0x2ab   : > { %4478 = vst.msk [vmem:[#allocation3 + $0x58] sm:$0xff] %vm555_vm1, %v4446_v17  ;;  %5034 = vst.msk [vmem:[#allocation3 + $0x8] sm:$0xff] %vm555_vm1, %v5002_v16  ;;  %v4552_v58 = vld [vmem:[#allocation3 + $0x28] sm:$0xff]  ;;  %v3779_v7 = vld [vmem:[#allocation3 + $0xb0] sm:$0xff]  ;;  %8938 = vmatmul.mubr.msk.bf16.vlgmr.msra.gmra.mrb[160].mxu1 %vm555_vm1, %v9056_v46 }
 0x2ac   : > { %4476 = vst.msk [vmem:[#allocation3 + $0x48] sm:$0xff] %vm555_vm1, %v4444_v49  ;;  %v3777_v29 = vld [vmem:[#allocation3 + $0xa0] sm:$0xff]  ;;  %v3787_v46 = vld [vmem:[#allocation3 + $0xf0] sm:$0xff] }
 0x2ad   : > { %v8773_v55 = vpop.f32.mrb[100].mxu0 }
 0x2ae   : > { %v8747_v43 = vpop.f32.mrb[76].mxu1  ;;  %v5007_v24 = vadd.f32 %v8773_v55, %v4553_v62  ;;  %v4890_v15 = vpop.f32.mrb[101].mxu0 }
 0x2af   : > { %v4449_v3 = vadd.f32 %v8747_v43, %v3771_v44  ;;  %v4356_v23 = vpop.f32.mrb[77].mxu1  ;;  %v5005_v57 = vadd.f32 %v4890_v15, %v4551_v39  ;;  %v8774_v63 = vpop.f32.mrb[102].mxu0  ;;  %v3780_v39 = vld [vmem:[#allocation3 + $0xb8] sm:$0xff] }
 0x2b0   : > { %v4447_v53 = vadd.f32 %v4356_v23, %v3769_v40  ;;  %v8748_v54 = vpop.f32.mrb[78].mxu1  ;;  %5039 = vst.msk [vmem:[#allocation3 + $0x30] sm:$0xff] %vm555_vm1, %v5007_v24  ;;  %v5008_v35 = vadd.f32 %v8774_v63, %v4554_v38  ;;  %v4893_v8 = vpop.f32.mrb[103].mxu0  ;;  %v4557_v45 = vld [vmem:[#allocation3 + $0x50] sm:$0xff]  ;;  %v3778_v24 = vld [vmem:[#allocation3 + $0xa8] sm:$0xff]  ;;  %v9057_v40 = vld [vmem:[%s9174_s15 + $0x10] sm:$0xff]  }
 0x2b1   : > { %4481 = vst.msk [vmem:[#allocation3 + $0x70] sm:$0xff] %vm555_vm1, %v4449_v3  ;;  %v4450_v4 = vadd.f32 %v8748_v54, %v3772_v12  ;;  %v4359_v56 = vpop.f32.mrb[79].mxu1  ;;  %5037 = vst.msk [vmem:[#allocation3 + $0x20] sm:$0xff] %vm555_vm1, %v5005_v57  ;;  %v5006_v14 = vadd.f32 %v4893_v8, %v4552_v58  ;;  %v4555_v34 = vld [vmem:[#allocation3 + $0x40] sm:$0xff]  ;;  %8941 = vmatprep.mubr.msk.bf16.mxu1 %vm555_vm1, %v9057_v40  ;;  %v3783_v54 = vld [vmem:[#allocation3 + $0xd0] sm:$0xff] }
 0x2b2   : > { %4479 = vst.msk [vmem:[#allocation3 + $0x60] sm:$0xff] %vm555_vm1, %v4447_v53  ;;  %v4448_v1 = vadd.f32 %v4359_v56, %v3770_v37  ;;  %5040 = vst.msk [vmem:[#allocation3 + $0x38] sm:$0xff] %vm555_vm1, %v5008_v35  ;;  %v4558_v22 = vld [vmem:[#allocation3 + $0x58] sm:$0xff]  ;;  %v9058_v57 = vld [vmem:[%s9174_s15 + $0x18] sm:$0xff]  }
 0x2b3   : > { %4482 = vst.msk [vmem:[#allocation3 + $0x78] sm:$0xff] %vm555_vm1, %v4450_v4  ;;  %5038 = vst.msk [vmem:[#allocation3 + $0x28] sm:$0xff] %vm555_vm1, %v5006_v14  ;;  %v4556_v59 = vld [vmem:[#allocation3 + $0x48] sm:$0xff]  ;;  %8942 = vmatmul.mubr.msk.bf16.gmra.mrb[164].mxu1 %vm555_vm1, %v9058_v57  ;;  %v3781_v14 = vld [vmem:[#allocation3 + $0xc0] sm:$0xff] }
 0x2b4   : > { %4480 = vst.msk [vmem:[#allocation3 + $0x68] sm:$0xff] %vm555_vm1, %v4448_v1  ;;  %v5100_v57 = vld [vmem:[#allocation3 + $0x10] sm:$0xff] }
 0x2b5   : > { %v8777_v10 = vpop.f32.mrb[104].mxu0 }
 0x2b6   : > { %v8751_v48 = vpop.f32.mrb[80].mxu1  ;;  %v5011_v36 = vadd.f32 %v8777_v10, %v4557_v45  ;;  %v4906_v5 = vpop.f32.mrb[105].mxu0 }
 0x2b7   : > { %v4453_v0 = vadd.f32 %v8751_v48, %v3775_v52  ;;  %v4372_v47 = vpop.f32.mrb[81].mxu1  ;;  %v5009_v50 = vadd.f32 %v4906_v5, %v4555_v34  ;;  %v8778_v42 = vpop.f32.mrb[106].mxu0 }
 0x2b8   : > { %v4451_v41 = vadd.f32 %v4372_v47, %v3773_v26  ;;  %v8752_v11 = vpop.f32.mrb[82].mxu1  ;;  %5043 = vst.msk [vmem:[#allocation3 + $0x50] sm:$0xff] %vm555_vm1, %v5011_v36  ;;  %v5012_v60 = vadd.f32 %v8778_v42, %v4558_v22  ;;  %v4909_v9 = vpop.f32.mrb[107].mxu0  ;;  %v4561_v30 = vld [vmem:[#allocation3 + $0x70] sm:$0xff]  ;;  %v3784_v22 = vld [vmem:[#allocation3 + $0xd8] sm:$0xff] }
 0x2b9   : > { %4485 = vst.msk [vmem:[#allocation3 + $0x90] sm:$0xff] %vm555_vm1, %v4453_v0  ;;  %v4454_v2 = vadd.f32 %v8752_v11, %v3776_v33  ;;  %v4375_v27 = vpop.f32.mrb[83].mxu1  ;;  %5041 = vst.msk [vmem:[#allocation3 + $0x40] sm:$0xff] %vm555_vm1, %v5009_v50  ;;  %v5010_v51 = vadd.f32 %v4909_v9, %v4556_v59  ;;  %v4559_v61 = vld [vmem:[#allocation3 + $0x60] sm:$0xff]  ;;  %v3782_v59 = vld [vmem:[#allocation3 + $0xc8] sm:$0xff] }
 0x2ba   : > { %4483 = vst.msk [vmem:[#allocation3 + $0x80] sm:$0xff] %vm555_vm1, %v4451_v41  ;;  %v4452_v32 = vadd.f32 %v4375_v27, %v3774_v13  ;;  %5044 = vst.msk [vmem:[#allocation3 + $0x58] sm:$0xff] %vm555_vm1, %v5012_v60  ;;  %v4562_v19 = vld [vmem:[#allocation3 + $0x78] sm:$0xff]  ;;  %v9059_v50 = vld [vmem:[%s9174_s15 + $0x20] sm:$0xff]  }
 0x2bb   : > { %4486 = vst.msk [vmem:[#allocation3 + $0x98] sm:$0xff] %vm555_vm1, %v4454_v2  ;;  %5042 = vst.msk [vmem:[#allocation3 + $0x48] sm:$0xff] %vm555_vm1, %v5010_v51  ;;  %v4560_v20 = vld [vmem:[#allocation3 + $0x68] sm:$0xff]  ;;  %v9060_v41 = vld [vmem:[%s9174_s15 + $0x28] sm:$0xff]   ;;  %8945 = vmatprep.mubr.msk.bf16.mxu1 %vm555_vm1, %v9059_v50 }
 0x2bc   : > { %4484 = vst.msk [vmem:[#allocation3 + $0x88] sm:$0xff] %vm555_vm1, %v4452_v32  ;;  %8946 = vmatmul.mubr.msk.bf16.gmra.mrb[168].mxu1 %vm555_vm1, %v9060_v41  ;;  %v5104_v41 = vld [vmem:[#allocation3 + $0x30] sm:$0xff] }
 0x2bd   : > { %v8781_v18 = vpop.f32.mrb[108].mxu0 }
 0x2be   : > { %v8755_v6 = vpop.f32.mrb[84].mxu1  ;;  %v5015_v31 = vadd.f32 %v8781_v18, %v4561_v30  ;;  %v4922_v28 = vpop.f32.mrb[109].mxu0 }
 0x2bf   : > { %v4457_v17 = vadd.f32 %v8755_v6, %v3779_v7  ;;  %v4388_v21 = vpop.f32.mrb[85].mxu1  ;;  %v5013_v16 = vadd.f32 %v4922_v28, %v4559_v61  ;;  %v8782_v49 = vpop.f32.mrb[110].mxu0  ;;  %v9061_v6 = vld [vmem:[%s9174_s15 + $0x30] sm:$0xff]  }
 0x2c0   : > { %v4455_v62 = vadd.f32 %v4388_v21, %v3777_v29  ;;  %v8756_v55 = vpop.f32.mrb[86].mxu1  ;;  %5047 = vst.msk [vmem:[#allocation3 + $0x70] sm:$0xff] %vm555_vm1, %v5015_v31  ;;  %v5016_v38 = vadd.f32 %v8782_v49, %v4562_v19  ;;  %v4925_v44 = vpop.f32.mrb[111].mxu0  ;;  %v4565_v23 = vld [vmem:[#allocation3 + $0x90] sm:$0xff]  ;;  %v3785_v19 = vld [vmem:[#allocation3 + $0xe0] sm:$0xff]  ;;  %v3786_v49 = vld [vmem:[#allocation3 + $0xe8] sm:$0xff]  ;;  %8949 = vmatprep.mubr.msk.bf16.mxu1 %vm555_vm1, %v9061_v6 }
 0x2c1   : > { %4489 = vst.msk [vmem:[#allocation3 + $0xb0] sm:$0xff] %vm555_vm1, %v4457_v17  ;;  %v4458_v43 = vadd.f32 %v8756_v55, %v3780_v39  ;;  %v4391_v15 = vpop.f32.mrb[87].mxu1  ;;  %5045 = vst.msk [vmem:[#allocation3 + $0x60] sm:$0xff] %vm555_vm1, %v5013_v16  ;;  %v5014_v58 = vadd.f32 %v4925_v44, %v4560_v20  ;;  %v4563_v63 = vld [vmem:[#allocation3 + $0x80] sm:$0xff]  ;;  %v3788_v20 = vld [vmem:[#allocation3 + $0xf8] sm:$0xff] }
 0x2c2   : > { %4487 = vst.msk [vmem:[#allocation3 + $0xa0] sm:$0xff] %vm555_vm1, %v4455_v62  ;;  %v4456_v3 = vadd.f32 %v4391_v15, %v3778_v24  ;;  %5048 = vst.msk [vmem:[#allocation3 + $0x78] sm:$0xff] %vm555_vm1, %v5016_v38  ;;  %v4566_v12 = vld [vmem:[#allocation3 + $0x98] sm:$0xff]  ;;  %v9062_v29 = vld [vmem:[%s9174_s15 + $0x38] sm:$0xff]  }
 0x2c3   : > { %4490 = vst.msk [vmem:[#allocation3 + $0xb8] sm:$0xff] %vm555_vm1, %v4458_v43  ;;  %5046 = vst.msk [vmem:[#allocation3 + $0x68] sm:$0xff] %vm555_vm1, %v5014_v58  ;;  %v4564_v37 = vld [vmem:[#allocation3 + $0x88] sm:$0xff] }
 0x2c4   : > { %4488 = vst.msk [vmem:[#allocation3 + $0xa8] sm:$0xff] %vm555_vm1, %v4456_v3  ;;  %8950 = vmatmul.mubr.msk.bf16.gmra.mrb[172].mxu1 %vm555_vm1, %v9062_v29 }
 0x2c5   : > { %v8785_v53 = vpop.f32.mrb[112].mxu0 }
 0x2c6   : > { %v8759_v35 = vpop.f32.mrb[88].mxu1  ;;  %v5019_v8 = vadd.f32 %v8785_v53, %v4565_v23  ;;  %v4938_v4 = vpop.f32.mrb[113].mxu0 }
 0x2c7   : > { %v4461_v56 = vadd.f32 %v8759_v35, %v3783_v54  ;;  %v4404_v1 = vpop.f32.mrb[89].mxu1  ;;  %v5017_v45 = vadd.f32 %v4938_v4, %v4563_v63  ;;  %v8786_v34 = vpop.f32.mrb[114].mxu0  ;;  %v9063_v35 = vld [vmem:[%s9174_s15 + $0x40] sm:$0xff]  }
 0x2c8   : > { %v4459_v10 = vadd.f32 %v4404_v1, %v3781_v14  ;;  %v8760_v52 = vpop.f32.mrb[90].mxu1  ;;  %5051 = vst.msk [vmem:[#allocation3 + $0x90] sm:$0xff] %vm555_vm1, %v5019_v8  ;;  %v5020_v48 = vadd.f32 %v8786_v34, %v4566_v12  ;;  %v4941_v36 = vpop.f32.mrb[115].mxu0  ;;  %v4569_v42 = vld [vmem:[#allocation3 + $0xb0] sm:$0xff]  ;;  %v5098_v12 = vld [vmem:[#allocation3] sm:$0xff]  ;;  %v5099_v34 = vld [vmem:[#allocation3 + $0x8] sm:$0xff]  ;;  %8953 = vmatprep.mubr.msk.bf16.mxu1 %vm555_vm1, %v9063_v35 }
 0x2c9   : > { %4493 = vst.msk [vmem:[#allocation3 + $0xd0] sm:$0xff] %vm555_vm1, %v4461_v56  ;;  %v4462_v5 = vadd.f32 %v8760_v52, %v3784_v22  ;;  %v4407_v0 = vpop.f32.mrb[91].mxu1  ;;  %5049 = vst.msk [vmem:[#allocation3 + $0x80] sm:$0xff] %vm555_vm1, %v5017_v45  ;;  %v5018_v26 = vadd.f32 %v4941_v36, %v4564_v37  ;;  %v4567_v33 = vld [vmem:[#allocation3 + $0xa0] sm:$0xff]  ;;  %v9064_v8 = vld [vmem:[%s9174_s15 + $0x48] sm:$0xff]  }
 0x2ca   : > { %4491 = vst.msk [vmem:[#allocation3 + $0xc0] sm:$0xff] %vm555_vm1, %v4459_v10  ;;  %v4460_v47 = vadd.f32 %v4407_v0, %v3782_v59  ;;  %5052 = vst.msk [vmem:[#allocation3 + $0x98] sm:$0xff] %vm555_vm1, %v5020_v48  ;;  %v4570_v60 = vld [vmem:[#allocation3 + $0xb8] sm:$0xff] }
 0x2cb   : > { %4494 = vst.msk [vmem:[#allocation3 + $0xd8] sm:$0xff] %vm555_vm1, %v4462_v5  ;;  %5050 = vst.msk [vmem:[#allocation3 + $0x88] sm:$0xff] %vm555_vm1, %v5018_v26  ;;  %v4568_v13 = vld [vmem:[#allocation3 + $0xa8] sm:$0xff]  ;;  %v5101_v56 = vld [vmem:[#allocation3 + $0x18] sm:$0xff] }
 0x2cc   : > { %4492 = vst.msk [vmem:[#allocation3 + $0xc8] sm:$0xff] %vm555_vm1, %v4460_v47  ;;  %8954 = vmatmul.mubr.msk.bf16.gmra.mrb[176].mxu1 %vm555_vm1, %v9064_v8 }
 0x2cd   : > { %v8789_v11 = vpop.f32.mrb[116].mxu0 }
 0x2ce   : > { %v5023_v9 = vadd.f32 %v8789_v11, %v4569_v42  ;;  %v4954_v2 = vpop.f32.mrb[117].mxu0 }
 0x2cf   : > { %v5021_v27 = vadd.f32 %v4954_v2, %v4567_v33  ;;  %v8790_v51 = vpop.f32.mrb[118].mxu0  ;;  %v9065_v2 = vld [vmem:[%s9174_s15 + $0x50] sm:$0xff]  }
 0x2d0   : > { %5055 = vst.msk [vmem:[#allocation3 + $0xb0] sm:$0xff] %vm555_vm1, %v5023_v9  ;;  %v5024_v32 = vadd.f32 %v8790_v51, %v4570_v60  ;;  %v4957_v25 = vpop.f32.mrb[119].mxu0  ;;  %v4573_v28 = vld [vmem:[#allocation3 + $0xd0] sm:$0xff]  ;;  %v5102_v60 = vld [vmem:[#allocation3 + $0x20] sm:$0xff]  ;;  %8957 = vmatprep.mubr.msk.bf16.mxu1 %vm555_vm1, %v9065_v2 }
 0x2d1   : > { %5053 = vst.msk [vmem:[#allocation3 + $0xa0] sm:$0xff] %vm555_vm1, %v5021_v27  ;;  %v5022_v30 = vadd.f32 %v4957_v25, %v4568_v13  ;;  %v8763_v61 = vpop.f32.mrb[92].mxu1  ;;  %v4571_v16 = vld [vmem:[#allocation3 + $0xc0] sm:$0xff] }
 0x2d2   : > { %5056 = vst.msk [vmem:[#allocation3 + $0xb8] sm:$0xff] %vm555_vm1, %v5024_v32  ;;  %v4465_v18 = vadd.f32 %v8763_v61, %v3787_v46  ;;  %v4420_v7 = vpop.f32.mrb[93].mxu1  ;;  %v4574_v38 = vld [vmem:[#allocation3 + $0xd8] sm:$0xff]  ;;  %v9066_v13 = vld [vmem:[%s9174_s15 + $0x58] sm:$0xff]  }
 0x2d3   : > { %5054 = vst.msk [vmem:[#allocation3 + $0xa8] sm:$0xff] %vm555_vm1, %v5022_v30  ;;  %v4463_v31 = vadd.f32 %v4420_v7, %v3785_v19  ;;  %v8764_v17 = vpop.f32.mrb[94].mxu1  ;;  %v4572_v24 = vld [vmem:[#allocation3 + $0xc8] sm:$0xff]  ;;  %v5105_v32 = vld [vmem:[#allocation3 + $0x38] sm:$0xff] }
 0x2d4   : > { %4497 = vst.msk [vmem:[#allocation3 + $0xf0] sm:$0xff] %vm555_vm1, %v4465_v18  ;;  %v4466_v21 = vadd.f32 %v8764_v17, %v3788_v20  ;;  %v4423_v62 = vpop.f32.mrb[95].mxu1  ;;  %v9067_v30 = vld [vmem:[%s9174_s15 + $0x60] sm:$0xff]   ;;  %8958 = vmatmul.mubr.msk.bf16.gmra.mrb[180].mxu1 %vm555_vm1, %v9066_v13 }
 0x2d5   : > { %4495 = vst.msk [vmem:[#allocation3 + $0xe0] sm:$0xff] %vm555_vm1, %v4463_v31  ;;  %v8793_v39 = vpop.f32.mrb[120].mxu0  ;;  %v4464_v55 = vadd.f32 %v4423_v62, %v3786_v49  ;;  %v5103_v18 = vld [vmem:[#allocation3 + $0x28] sm:$0xff]  ;;  %8961 = vmatprep.mubr.msk.bf16.mxu1 %vm555_vm1, %v9067_v30 }
 0x2d6   : > { %v5027_v44 = vadd.f32 %v8793_v39, %v4573_v28  ;;  %4498 = vst.msk [vmem:[#allocation3 + $0xf8] sm:$0xff] %vm555_vm1, %v4466_v21  ;;  %v4970_v43 = vpop.f32.mrb[121].mxu0  ;;  %v5108_v39 = vld [vmem:[#allocation3 + $0x50] sm:$0xff] }
 0x2d7   : > { %v5025_v15 = vadd.f32 %v4970_v43, %v4571_v16  ;;  %4496 = vst.msk [vmem:[#allocation3 + $0xe8] sm:$0xff] %vm555_vm1, %v4464_v55  ;;  %v8794_v58 = vpop.f32.mrb[122].mxu0  ;;  %v5106_v43 = vld [vmem:[#allocation3 + $0x40] sm:$0xff] }
 0x2d8   : > { %5059 = vst.msk [vmem:[#allocation3 + $0xd0] sm:$0xff] %vm555_vm1, %v5027_v44  ;;  %v5028_v3 = vadd.f32 %v8794_v58, %v4574_v38  ;;  %v4973_v40 = vpop.f32.mrb[123].mxu0  ;;  %v9068_v38 = vld [vmem:[%s9174_s15 + $0x68] sm:$0xff]  }
 0x2d9   : > { %5057 = vst.msk [vmem:[#allocation3 + $0xc0] sm:$0xff] %vm555_vm1, %v5025_v15  ;;  %v5026_v23 = vadd.f32 %v4973_v40, %v4572_v24  ;;  %v8803_v63 = vpop.f32.mrb[96].mxu1 }
 0x2da   : > { %5060 = vst.msk [vmem:[#allocation3 + $0xd8] sm:$0xff] %vm555_vm1, %v5028_v3  ;;  %v5426_v53 = vadd.f32 %v8803_v63, %v5100_v57  ;;  %v5297_v54 = vpop.f32.mrb[97].mxu1  ;;  %v5109_v3 = vld [vmem:[#allocation3 + $0x58] sm:$0xff] }
 0x2db   : > { %5058 = vst.msk [vmem:[#allocation3 + $0xc8] sm:$0xff] %vm555_vm1, %v5026_v23  ;;  %v4577_v4 = vld [vmem:[#allocation3 + $0xf0] sm:$0xff]  ;;  %v5424_v37 = vadd.f32 %v5297_v54, %v5098_v12  ;;  %v8804_v14 = vpop.f32.mrb[98].mxu1  ;;  %v9069_v23 = vld [vmem:[%s9174_s15 + $0x70] sm:$0xff]  }
 0x2dc   : > { %5458 = vst.msk [vmem:[#allocation3 + $0x10] sm:$0xff] %vm555_vm1, %v5426_v53  ;;  %v4575_v1 = vld [vmem:[#allocation3 + $0xe0] sm:$0xff]  ;;  %v5427_v45 = vadd.f32 %v8804_v14, %v5101_v56  ;;  %v5300_v10 = vpop.f32.mrb[99].mxu1  ;;  %v5107_v53 = vld [vmem:[#allocation3 + $0x48] sm:$0xff]  ;;  %8962 = vmatmul.mubr.msk.bf16.gmra.mrb[184].mxu1 %vm555_vm1, %v9068_v38 }
 0x2dd   : > { %v8797_v22 = vpop.f32.mrb[124].mxu0  ;;  %5456 = vst.msk [vmem:[#allocation3] sm:$0xff] %vm555_vm1, %v5424_v37  ;;  %v4578_v52 = vld [vmem:[#allocation3 + $0xf8] sm:$0xff]  ;;  %v5425_v48 = vadd.f32 %v5300_v10, %v5099_v34  ;;  %8965 = vmatprep.mubr.msk.bf16.mxu1 %vm555_vm1, %v9069_v23 }
 0x2de   : > { %v5031_v36 = vadd.f32 %v8797_v22, %v4577_v4  ;;  %v4986_v5 = vpop.f32.mrb[125].mxu0  ;;  %5459 = vst.msk [vmem:[#allocation3 + $0x18] sm:$0xff] %vm555_vm1, %v5427_v45  ;;  %v4576_v59 = vld [vmem:[#allocation3 + $0xe8] sm:$0xff]  ;;  %v5112_v22 = vld [vmem:[#allocation3 + $0x70] sm:$0xff] }
 0x2df   : > { %v5029_v0 = vadd.f32 %v4986_v5, %v4575_v1  ;;  %v8798_v26 = vpop.f32.mrb[126].mxu0  ;;  %5457 = vst.msk [vmem:[#allocation3 + $0x8] sm:$0xff] %vm555_vm1, %v5425_v48  ;;  %v9070_v48 = vld [vmem:[%s9174_s15 + $0x78] sm:$0xff]   ;;  %s11167_s15 = scalar_lea.vmem %s11389_s13, %s8324_s19 }
 0x2e0   : > { %5063 = vst.msk [vmem:[#allocation3 + $0xf0] sm:$0xff] %vm555_vm1, %v5031_v36  ;;  %v5032_v47 = vadd.f32 %v8798_v26, %v4578_v52  ;;  %v4989_v50 = vpop.f32.mrb[127].mxu0  ;;  %v5110_v5 = vld [vmem:[#allocation3 + $0x60] sm:$0xff] }
 0x2e1   : > { %5061 = vst.msk [vmem:[#allocation3 + $0xe0] sm:$0xff] %vm555_vm1, %v5029_v0  ;;  %v5030_v42 = vadd.f32 %v4989_v50, %v4576_v59  ;;  %v8807_v33 = vpop.f32.mrb[100].mxu1 }
 0x2e2   : > { %5064 = vst.msk [vmem:[#allocation3 + $0xf8] sm:$0xff] %vm555_vm1, %v5032_v47  ;;  %v5430_v11 = vadd.f32 %v8807_v33, %v5104_v41  ;;  %v5313_v9 = vpop.f32.mrb[101].mxu1  ;;  %v5113_v47 = vld [vmem:[#allocation3 + $0x78] sm:$0xff]  ;;  %v5111_v33 = vld [vmem:[#allocation3 + $0x68] sm:$0xff] }
 0x2e3   : > { %5062 = vst.msk [vmem:[#allocation3 + $0xe8] sm:$0xff] %vm555_vm1, %v5030_v42  ;;  %v5428_v27 = vadd.f32 %v5313_v9, %v5102_v60  ;;  %v5538_v51 = vld [vmem:[#allocation3 + $0x10] sm:$0xff]  ;;  %v8808_v25 = vpop.f32.mrb[102].mxu1 }
 0x2e4   : > { %5462 = vst.msk [vmem:[#allocation3 + $0x30] sm:$0xff] %vm555_vm1, %v5430_v11  ;;  %v5431_v46 = vadd.f32 %v8808_v25, %v5105_v32  ;;  %v5536_v61 = vld [vmem:[#allocation3] sm:$0xff]  ;;  %v5316_v19 = vpop.f32.mrb[103].mxu1  ;;  %8966 = vmatmul.mubr.msk.bf16.gmra.mrb[188].mxu1 %vm555_vm1, %v9070_v48 }
 0x2e5   : > { %5460 = vst.msk [vmem:[#allocation3 + $0x20] sm:$0xff] %vm555_vm1, %v5428_v27  ;;  %v8837_v7 = vpop.f32.mrb[128].mxu0  ;;  %v5429_v6 = vadd.f32 %v5316_v19, %v5103_v18  ;;  %v5539_v31 = vld [vmem:[#allocation3 + $0x18] sm:$0xff]  ;;  %v5116_v18 = vld [vmem:[#allocation3 + $0x90] sm:$0xff] }
 0x2e6   : > { %v6216_v28 = vadd.f32 %v8837_v7, %v5538_v51  ;;  %5463 = vst.msk [vmem:[#allocation3 + $0x38] sm:$0xff] %vm555_vm1, %v5431_v46  ;;  %v6087_v20 = vpop.f32.mrb[129].mxu0  ;;  %v5537_v17 = vld [vmem:[#allocation3 + $0x8] sm:$0xff] }
 0x2e7   : > { %v6214_v29 = vadd.f32 %v6087_v20, %v5536_v61  ;;  %5461 = vst.msk [vmem:[#allocation3 + $0x28] sm:$0xff] %vm555_vm1, %v5429_v6  ;;  %v8838_v21 = vpop.f32.mrb[130].mxu0  ;;  %v5114_v6 = vld [vmem:[#allocation3 + $0x80] sm:$0xff] }
 0x2e8   : > { %6248 = vst.msk [vmem:[#allocation3 + $0x10] sm:$0xff] %vm555_vm1, %v6216_v28  ;;  %v6217_v16 = vadd.f32 %v8838_v21, %v5539_v31  ;;  %v6090_v49 = vpop.f32.mrb[131].mxu0 }
 0x2e9   : > { %6246 = vst.msk [vmem:[#allocation3] sm:$0xff] %vm555_vm1, %v6214_v29  ;;  %v6215_v62 = vadd.f32 %v6090_v49, %v5537_v17  ;;  %v8811_v55 = vpop.f32.mrb[104].mxu1  ;;  %v5117_v17 = vld [vmem:[#allocation3 + $0x98] sm:$0xff]  ;;  %v5115_v49 = vld [vmem:[#allocation3 + $0x88] sm:$0xff] }
 0x2ea   : > { %6249 = vst.msk [vmem:[#allocation3 + $0x18] sm:$0xff] %vm555_vm1, %v6217_v16  ;;  %v5434_v44 = vadd.f32 %v8811_v55, %v5108_v39  ;;  %v5329_v24 = vpop.f32.mrb[105].mxu1 }
 0x2eb   : > { %6247 = vst.msk [vmem:[#allocation3 + $0x8] sm:$0xff] %vm555_vm1, %v6215_v62  ;;  %v5432_v15 = vadd.f32 %v5329_v24, %v5106_v43  ;;  %v5542_v58 = vld [vmem:[#allocation3 + $0x30] sm:$0xff]  ;;  %v8812_v40 = vpop.f32.mrb[106].mxu1 }
 0x2ec   : > { %5466 = vst.msk [vmem:[#allocation3 + $0x50] sm:$0xff] %vm555_vm1, %v5434_v44  ;;  %v5435_v57 = vadd.f32 %v8812_v40, %v5109_v3  ;;  %v5540_v63 = vld [vmem:[#allocation3 + $0x20] sm:$0xff]  ;;  %v5332_v12 = vpop.f32.mrb[107].mxu1 }
 0x2ed   : > { %5464 = vst.msk [vmem:[#allocation3 + $0x40] sm:$0xff] %vm555_vm1, %v5432_v15  ;;  %v8841_v54 = vpop.f32.mrb[132].mxu0  ;;  %v5433_v35 = vadd.f32 %v5332_v12, %v5107_v53  ;;  %v5543_v8 = vld [vmem:[#allocation3 + $0x38] sm:$0xff]  ;;  %v5118_v12 = vld [vmem:[#allocation3 + $0xa0] sm:$0xff] }
 0x2ee   : > { %v6220_v4 = vadd.f32 %v8841_v54, %v5542_v58  ;;  %5467 = vst.msk [vmem:[#allocation3 + $0x58] sm:$0xff] %vm555_vm1, %v5435_v57  ;;  %v6103_v37 = vpop.f32.mrb[133].mxu0  ;;  %v5541_v56 = vld [vmem:[#allocation3 + $0x28] sm:$0xff]  ;;  %v5120_v57 = vld [vmem:[#allocation3 + $0xb0] sm:$0xff] }
 0x2ef   : > { %v6218_v14 = vadd.f32 %v6103_v37, %v5540_v63  ;;  %5465 = vst.msk [vmem:[#allocation3 + $0x48] sm:$0xff] %vm555_vm1, %v5433_v35  ;;  %v8842_v1 = vpop.f32.mrb[134].mxu0 }
 0x2f0   : > { %6252 = vst.msk [vmem:[#allocation3 + $0x30] sm:$0xff] %vm555_vm1, %v6220_v4  ;;  %v6221_v45 = vadd.f32 %v8842_v1, %v5543_v8  ;;  %v6106_v34 = vpop.f32.mrb[135].mxu0  ;;  %v5121_v8 = vld [vmem:[#allocation3 + $0xb8] sm:$0xff] }
 0x2f1   : > { %6250 = vst.msk [vmem:[#allocation3 + $0x20] sm:$0xff] %vm555_vm1, %v6218_v14  ;;  %v6219_v10 = vadd.f32 %v6106_v34, %v5541_v56  ;;  %v5119_v56 = vld [vmem:[#allocation3 + $0xa8] sm:$0xff] }
 0x2f2   : > { %6253 = vst.msk [vmem:[#allocation3 + $0x38] sm:$0xff] %vm555_vm1, %v6221_v45 }
 0x2f3   : > { %6251 = vst.msk [vmem:[#allocation3 + $0x28] sm:$0xff] %vm555_vm1, %v6219_v10  ;;  %v5546_v26 = vld [vmem:[#allocation3 + $0x50] sm:$0xff] }
 0x2f4   : > { %v8815_v52 = vpop.f32.mrb[108].mxu1  ;;  %v5544_v41 = vld [vmem:[#allocation3 + $0x40] sm:$0xff] }
 0x2f5   : > { %v5438_v36 = vadd.f32 %v8815_v52, %v5112_v22  ;;  %v5345_v59 = vpop.f32.mrb[109].mxu1  ;;  %v8845_v60 = vpop.f32.mrb[136].mxu0  ;;  %v5547_v2 = vld [vmem:[#allocation3 + $0x58] sm:$0xff] }
 0x2f6   : > { %v5436_v0 = vadd.f32 %v5345_v59, %v5110_v5  ;;  %v8816_v50 = vpop.f32.mrb[110].mxu1  ;;  %v6224_v13 = vadd.f32 %v8845_v60, %v5546_v26  ;;  %v6119_v27 = vpop.f32.mrb[137].mxu0  ;;  %v5545_v51 = vld [vmem:[#allocation3 + $0x48] sm:$0xff] }
 0x2f7   : > { %5470 = vst.msk [vmem:[#allocation3 + $0x70] sm:$0xff] %vm555_vm1, %v5438_v36  ;;  %v5439_v42 = vadd.f32 %v8816_v50, %v5113_v47  ;;  %v5348_v11 = vpop.f32.mrb[111].mxu1  ;;  %v6222_v32 = vadd.f32 %v6119_v27, %v5544_v41  ;;  %v8846_v25 = vpop.f32.mrb[138].mxu0  ;;  %v5122_v41 = vld [vmem:[#allocation3 + $0xc0] sm:$0xff]  ;;  %v5123_v27 = vld [vmem:[#allocation3 + $0xc8] sm:$0xff] }
 0x2f8   : > { %5468 = vst.msk [vmem:[#allocation3 + $0x60] sm:$0xff] %vm555_vm1, %v5436_v0  ;;  %v5437_v9 = vadd.f32 %v5348_v11, %v5111_v33  ;;  %6256 = vst.msk [vmem:[#allocation3 + $0x50] sm:$0xff] %vm555_vm1, %v6224_v13  ;;  %v6225_v30 = vadd.f32 %v8846_v25, %v5547_v2  ;;  %v6122_v46 = vpop.f32.mrb[139].mxu0  ;;  %v5124_v0 = vld [vmem:[#allocation3 + $0xd0] sm:$0xff] }
 0x2f9   : > { %5471 = vst.msk [vmem:[#allocation3 + $0x78] sm:$0xff] %vm555_vm1, %v5439_v42  ;;  %6254 = vst.msk [vmem:[#allocation3 + $0x40] sm:$0xff] %vm555_vm1, %v6222_v32  ;;  %v6223_v61 = vadd.f32 %v6122_v46, %v5545_v51 }
 0x2fa   : > { %5469 = vst.msk [vmem:[#allocation3 + $0x68] sm:$0xff] %vm555_vm1, %v5437_v9  ;;  %6257 = vst.msk [vmem:[#allocation3 + $0x58] sm:$0xff] %vm555_vm1, %v6225_v30  ;;  %v5125_v9 = vld [vmem:[#allocation3 + $0xd8] sm:$0xff] }
 0x2fb   : > { %6255 = vst.msk [vmem:[#allocation3 + $0x48] sm:$0xff] %vm555_vm1, %v6223_v61 }
 0x2fd   : > { %v8819_v19 = vpop.f32.mrb[112].mxu1 }
 0x2fe   : > { %v5442_v7 = vadd.f32 %v8819_v19, %v5116_v18  ;;  %v5361_v31 = vpop.f32.mrb[113].mxu1  ;;  %v5550_v20 = vld [vmem:[#allocation3 + $0x70] sm:$0xff] }
 0x2ff   : > { %v5440_v28 = vadd.f32 %v5361_v31, %v5114_v6  ;;  %v8820_v29 = vpop.f32.mrb[114].mxu1  ;;  %v5548_v16 = vld [vmem:[#allocation3 + $0x60] sm:$0xff]  ;;  %v5128_v18 = vld [vmem:[#allocation3 + $0xf0] sm:$0xff] }
 0x300   : > { %5474 = vst.msk [vmem:[#allocation3 + $0x90] sm:$0xff] %vm555_vm1, %v5442_v7  ;;  %v5443_v21 = vadd.f32 %v8820_v29, %v5117_v17  ;;  %v5364_v62 = vpop.f32.mrb[115].mxu1  ;;  %v8849_v39 = vpop.f32.mrb[140].mxu0  ;;  %v5551_v38 = vld [vmem:[#allocation3 + $0x78] sm:$0xff] }
 0x301   : > { %5472 = vst.msk [vmem:[#allocation3 + $0x80] sm:$0xff] %vm555_vm1, %v5440_v28  ;;  %v5441_v55 = vadd.f32 %v5364_v62, %v5115_v49  ;;  %v6228_v44 = vadd.f32 %v8849_v39, %v5550_v20  ;;  %v6135_v43 = vpop.f32.mrb[141].mxu0  ;;  %v5549_v24 = vld [vmem:[#allocation3 + $0x68] sm:$0xff]  ;;  %v5126_v20 = vld [vmem:[#allocation3 + $0xe0] sm:$0xff]  ;;  %v5129_v49 = vld [vmem:[#allocation3 + $0xf8] sm:$0xff] }
 0x302   : > { %5475 = vst.msk [vmem:[#allocation3 + $0x98] sm:$0xff] %vm555_vm1, %v5443_v21  ;;  %v6226_v15 = vadd.f32 %v6135_v43, %v5548_v16  ;;  %v8850_v58 = vpop.f32.mrb[142].mxu0 }
 0x303   : > { %5473 = vst.msk [vmem:[#allocation3 + $0x88] sm:$0xff] %vm555_vm1, %v5441_v55  ;;  %6260 = vst.msk [vmem:[#allocation3 + $0x70] sm:$0xff] %vm555_vm1, %v6228_v44  ;;  %v6229_v3 = vadd.f32 %v8850_v58, %v5551_v38  ;;  %v6138_v40 = vpop.f32.mrb[143].mxu0  ;;  %v5127_v44 = vld [vmem:[#allocation3 + $0xe8] sm:$0xff] }
 0x304   : > { %6258 = vst.msk [vmem:[#allocation3 + $0x60] sm:$0xff] %vm555_vm1, %v6226_v15  ;;  %v6227_v23 = vadd.f32 %v6138_v40, %v5549_v24 }
 0x305   : > { %6261 = vst.msk [vmem:[#allocation3 + $0x78] sm:$0xff] %vm555_vm1, %v6229_v3 }
 0x306   : > { %v8823_v63 = vpop.f32.mrb[116].mxu1  ;;  %6259 = vst.msk [vmem:[#allocation3 + $0x68] sm:$0xff] %vm555_vm1, %v6227_v23 }
 0x307   : > { %v5446_v53 = vadd.f32 %v8823_v63, %v5120_v57  ;;  %v5377_v54 = vpop.f32.mrb[117].mxu1  ;;  %v5554_v1 = vld [vmem:[#allocation3 + $0x90] sm:$0xff] }
 0x308   : > { %v5444_v35 = vadd.f32 %v5377_v54, %v5118_v12  ;;  %v8824_v4 = vpop.f32.mrb[118].mxu1  ;;  %v5552_v34 = vld [vmem:[#allocation3 + $0x80] sm:$0xff] }
 0x309   : > { %5478 = vst.msk [vmem:[#allocation3 + $0xb0] sm:$0xff] %vm555_vm1, %v5446_v53  ;;  %v5447_v37 = vadd.f32 %v8824_v4, %v5121_v8  ;;  %v5380_v14 = vpop.f32.mrb[119].mxu1  ;;  %v5555_v22 = vld [vmem:[#allocation3 + $0x98] sm:$0xff] }
 0x30a   : > { %5476 = vst.msk [vmem:[#allocation3 + $0xa0] sm:$0xff] %vm555_vm1, %v5444_v35  ;;  %v5445_v45 = vadd.f32 %v5380_v14, %v5119_v56  ;;  %v5553_v36 = vld [vmem:[#allocation3 + $0x88] sm:$0xff] }
 0x30b   : > { %5479 = vst.msk [vmem:[#allocation3 + $0xb8] sm:$0xff] %vm555_vm1, %v5447_v37  ;;  %v6328_v37 = vld [vmem:[#allocation3 + $0x10] sm:$0xff] }
 0x30c   : > { %5477 = vst.msk [vmem:[#allocation3 + $0xa8] sm:$0xff] %vm555_vm1, %v5445_v45 }
 0x30d   : > { %v8853_v10 = vpop.f32.mrb[144].mxu0 }
 0x30e   : > { %v6232_v52 = vadd.f32 %v8853_v10, %v5554_v1  ;;  %v6151_v48 = vpop.f32.mrb[145].mxu0  ;;  %v8827_v26 = vpop.f32.mrb[120].mxu1  ;;  %v6326_v1 = vld [vmem:[#allocation3] sm:$0xff]  ;;  %v6329_v10 = vld [vmem:[#allocation3 + $0x18] sm:$0xff] }
 0x30f   : > { %v6230_v5 = vadd.f32 %v6151_v48, %v5552_v34  ;;  %v8854_v59 = vpop.f32.mrb[146].mxu0  ;;  %v5450_v42 = vadd.f32 %v8827_v26, %v5124_v0  ;;  %v5393_v33 = vpop.f32.mrb[121].mxu1  ;;  %v6327_v48 = vld [vmem:[#allocation3 + $0x8] sm:$0xff] }
 0x310   : > { %6264 = vst.msk [vmem:[#allocation3 + $0x90] sm:$0xff] %vm555_vm1, %v6232_v52  ;;  %v6233_v47 = vadd.f32 %v8854_v59, %v5555_v22  ;;  %v6154_v50 = vpop.f32.mrb[147].mxu0  ;;  %v5448_v60 = vadd.f32 %v5393_v33, %v5122_v41  ;;  %v8828_v2 = vpop.f32.mrb[122].mxu1  ;;  %v5558_v25 = vld [vmem:[#allocation3 + $0xb0] sm:$0xff] }
 0x311   : > { %6262 = vst.msk [vmem:[#allocation3 + $0x80] sm:$0xff] %vm555_vm1, %v6230_v5  ;;  %v6231_v11 = vadd.f32 %v6154_v50, %v5553_v36  ;;  %5482 = vst.msk [vmem:[#allocation3 + $0xd0] sm:$0xff] %vm555_vm1, %v5450_v42  ;;  %v5451_v13 = vadd.f32 %v8828_v2, %v5125_v9  ;;  %v5396_v51 = vpop.f32.mrb[123].mxu1  ;;  %v5556_v30 = vld [vmem:[#allocation3 + $0xa0] sm:$0xff]  ;;  %v10958_v50 = vld [vmem:[%s11381_s5] ss:$0 sm:$0xff] }
 0x312   : > { %6265 = vst.msk [vmem:[#allocation3 + $0x98] sm:$0xff] %vm555_vm1, %v6233_v47  ;;  %5480 = vst.msk [vmem:[#allocation3 + $0xc0] sm:$0xff] %vm555_vm1, %v5448_v60  ;;  %v5449_v32 = vadd.f32 %v5396_v51, %v5123_v27  ;;  %v5559_v61 = vld [vmem:[#allocation3 + $0xb8] sm:$0xff]  ;;  %v6330_v27 = vld [vmem:[#allocation3 + $0x20] sm:$0xff] }
 0x313   : > { %6263 = vst.msk [vmem:[#allocation3 + $0x88] sm:$0xff] %vm555_vm1, %v6231_v11  ;;  %5483 = vst.msk [vmem:[#allocation3 + $0xd8] sm:$0xff] %vm555_vm1, %v5451_v13  ;;  %v5557_v31 = vld [vmem:[#allocation3 + $0xa8] sm:$0xff]  ;;  %v6332_v11 = vld [vmem:[#allocation3 + $0x30] sm:$0xff] }
 0x314   : > { %5481 = vst.msk [vmem:[#allocation3 + $0xc8] sm:$0xff] %vm555_vm1, %v5449_v32 }
 0x316   : > { %v8831_v19 = vpop.f32.mrb[124].mxu1 }
 0x317   : > { %v5454_v28 = vadd.f32 %v8831_v19, %v5128_v18  ;;  %v5409_v17 = vpop.f32.mrb[125].mxu1 }
 0x318   : > { %v8857_v46 = vpop.f32.mrb[148].mxu0  ;;  %v5452_v16 = vadd.f32 %v5409_v17, %v5126_v20  ;;  %v8832_v62 = vpop.f32.mrb[126].mxu1  ;;  %v5562_v58 = vld [vmem:[#allocation3 + $0xd0] sm:$0xff]  ;;  %v6331_v20 = vld [vmem:[#allocation3 + $0x28] sm:$0xff] }
 0x319   : > { %v6236_v7 = vadd.f32 %v8857_v46, %v5558_v25  ;;  %v6167_v6 = vpop.f32.mrb[149].mxu0  ;;  %5486 = vst.msk [vmem:[#allocation3 + $0xf0] sm:$0xff] %vm555_vm1, %v5454_v28  ;;  %v5455_v38 = vadd.f32 %v8832_v62, %v5129_v49  ;;  %v5412_v43 = vpop.f32.mrb[127].mxu1  ;;  %v5560_v3 = vld [vmem:[#allocation3 + $0xc0] sm:$0xff] }
 0x31a   : > { %v6234_v29 = vadd.f32 %v6167_v6, %v5556_v30  ;;  %v8858_v21 = vpop.f32.mrb[150].mxu0  ;;  %5484 = vst.msk [vmem:[#allocation3 + $0xe0] sm:$0xff] %vm555_vm1, %v5452_v16  ;;  %v5453_v15 = vadd.f32 %v5412_v43, %v5127_v44  ;;  %v5563_v23 = vld [vmem:[#allocation3 + $0xd8] sm:$0xff] }
 0x31b   : > { %6268 = vst.msk [vmem:[#allocation3 + $0xb0] sm:$0xff] %vm555_vm1, %v6236_v7  ;;  %v6237_v39 = vadd.f32 %v8858_v21, %v5559_v61  ;;  %v6170_v55 = vpop.f32.mrb[151].mxu0  ;;  %5487 = vst.msk [vmem:[#allocation3 + $0xf8] sm:$0xff] %vm555_vm1, %v5455_v38  ;;  %v5561_v53 = vld [vmem:[#allocation3 + $0xc8] sm:$0xff]  ;;  %v6333_v61 = vld [vmem:[#allocation3 + $0x38] sm:$0xff] }
 0x31c   : > { %6266 = vst.msk [vmem:[#allocation3 + $0xa0] sm:$0xff] %vm555_vm1, %v6234_v29  ;;  %v6235_v24 = vadd.f32 %v6170_v55, %v5557_v31  ;;  %5485 = vst.msk [vmem:[#allocation3 + $0xe8] sm:$0xff] %vm555_vm1, %v5453_v15  ;;  %v10964_v7 = vld [vmem:[%s11382_s6] ss:$0 sm:$0xff] }
 0x31d   : > { %6269 = vst.msk [vmem:[#allocation3 + $0xb8] sm:$0xff] %vm555_vm1, %v6237_v39 }
 0x31e   : > { %6267 = vst.msk [vmem:[#allocation3 + $0xa8] sm:$0xff] %vm555_vm1, %v6235_v24  ;;  %v6336_v24 = vld [vmem:[#allocation3 + $0x50] sm:$0xff] }
 0x320   : > { %v5566_v59 = vld [vmem:[#allocation3 + $0xf0] sm:$0xff] }
 0x321   : > { %v5564_v0 = vld [vmem:[#allocation3 + $0xe0] sm:$0xff] }
 0x322   : > { %v8861_v40 = vpop.f32.mrb[152].mxu0  ;;  %v5567_v47 = vld [vmem:[#allocation3 + $0xf8] sm:$0xff] }
 0x323   : > { %v6240_v57 = vadd.f32 %v8861_v40, %v5562_v58  ;;  %v6183_v63 = vpop.f32.mrb[153].mxu0  ;;  %v5565_v33 = vld [vmem:[#allocation3 + $0xe8] sm:$0xff]  ;;  %v6334_v40 = vld [vmem:[#allocation3 + $0x40] sm:$0xff] }
 0x324   : > { %v6238_v12 = vadd.f32 %v6183_v63, %v5560_v3  ;;  %v8862_v54 = vpop.f32.mrb[154].mxu0 }
 0x325   : > { %6272 = vst.msk [vmem:[#allocation3 + $0xd0] sm:$0xff] %vm555_vm1, %v6240_v57  ;;  %v6241_v35 = vadd.f32 %v8862_v54, %v5563_v23  ;;  %v6186_v8 = vpop.f32.mrb[155].mxu0 }
 0x326   : > { %6270 = vst.msk [vmem:[#allocation3 + $0xc0] sm:$0xff] %vm555_vm1, %v6238_v12  ;;  %v6239_v4 = vadd.f32 %v6186_v8, %v5561_v53  ;;  %v6337_v12 = vld [vmem:[#allocation3 + $0x58] sm:$0xff] }
 0x327   : > { %6273 = vst.msk [vmem:[#allocation3 + $0xd8] sm:$0xff] %vm555_vm1, %v6241_v35 }
 0x328   : > { %6271 = vst.msk [vmem:[#allocation3 + $0xc8] sm:$0xff] %vm555_vm1, %v6239_v4 }
 0x329   : > { %v8871_v56 = vpop.f32.mrb[128].mxu1 }
 0x32a   : > { %v6782_v14 = vadd.f32 %v8871_v56, %v6328_v37  ;;  %v6653_v45 = vpop.f32.mrb[129].mxu1  ;;  %v6335_v37 = vld [vmem:[#allocation3 + $0x48] sm:$0xff] }
 0x32b   : > { %v6780_v34 = vadd.f32 %v6653_v45, %v6326_v1  ;;  %v8872_v22 = vpop.f32.mrb[130].mxu1 }
 0x32c   : > { %6814 = vst.msk [vmem:[#allocation3 + $0x10] sm:$0xff] %vm555_vm1, %v6782_v14  ;;  %v6783_v52 = vadd.f32 %v8872_v22, %v6329_v10  ;;  %v6656_v36 = vpop.f32.mrb[131].mxu1 }
 0x32d   : > { %6812 = vst.msk [vmem:[#allocation3] sm:$0xff] %vm555_vm1, %v6780_v34  ;;  %v6781_v5 = vadd.f32 %v6656_v36, %v6327_v48 }
 0x32e   : > { %6815 = vst.msk [vmem:[#allocation3 + $0x18] sm:$0xff] %vm555_vm1, %v6783_v52 }
 0x32f   : > { %6813 = vst.msk [vmem:[#allocation3 + $0x8] sm:$0xff] %vm555_vm1, %v6781_v5 }
 0x331   : > { %v8865_v26 = vpop.f32.mrb[156].mxu0 }
 0x332   : > { %v6244_v42 = vadd.f32 %v8865_v26, %v5566_v59  ;;  %v6199_v41 = vpop.f32.mrb[157].mxu0 }
 0x333   : > { %v8875_v60 = vpop.f32.mrb[132].mxu1  ;;  %v6242_v9 = vadd.f32 %v6199_v41, %v5564_v0  ;;  %v8866_v2 = vpop.f32.mrb[158].mxu0  ;;  %v6846_v32 = vld [vmem:[#allocation3 + $0x10] sm:$0xff] }
 0x334   : > { %v6786_v13 = vadd.f32 %v8875_v60, %v6332_v11  ;;  %v6669_v51 = vpop.f32.mrb[133].mxu1  ;;  %6276 = vst.msk [vmem:[#allocation3 + $0xf0] sm:$0xff] %vm555_vm1, %v6244_v42  ;;  %v6245_v25 = vadd.f32 %v8866_v2, %v5567_v47  ;;  %v6202_v30 = vpop.f32.mrb[159].mxu0  ;;  %v6844_v19 = vld [vmem:[#allocation3] sm:$0xff]  ;;  %v6885_v6 = vmul.f32 %v10958_v50, %v6846_v32  ;;  %v6340_v47 = vld [vmem:[#allocation3 + $0x70] sm:$0xff] }
 0x335   : > { %v6784_v46 = vadd.f32 %v6669_v51, %v6330_v27  ;;  %v8876_v18 = vpop.f32.mrb[134].mxu1  ;;  %6274 = vst.msk [vmem:[#allocation3 + $0xe0] sm:$0xff] %vm555_vm1, %v6242_v9  ;;  %v6243_v31 = vadd.f32 %v6202_v30, %v5565_v33  ;;  %v6883_v29 = vmul.f32 %v10958_v50, %v6844_v19  ;;  %v6847_v21 = vld [vmem:[#allocation3 + $0x18] sm:$0xff]  ;;  %v6338_v11 = vld [vmem:[#allocation3 + $0x60] sm:$0xff] }
 0x336   : > { %6818 = vst.msk [vmem:[#allocation3 + $0x30] sm:$0xff] %vm555_vm1, %v6786_v13  ;;  %v6787_v28 = vadd.f32 %v8876_v18, %v6333_v61  ;;  %v6672_v17 = vpop.f32.mrb[135].mxu1  ;;  %6277 = vst.msk [vmem:[#allocation3 + $0xf8] sm:$0xff] %vm555_vm1, %v6245_v25  ;;  %v6845_v49 = vld [vmem:[#allocation3 + $0x8] sm:$0xff]  ;;  %v6886_v62 = vmul.f32 %v10958_v50, %v6847_v21  ;;  %v6924_v38 = vadd.f32 %v10964_v7, %v6885_v6  ;;  %v6341_v13 = vld [vmem:[#allocation3 + $0x78] sm:$0xff] }
 0x337   : > { %6816 = vst.msk [vmem:[#allocation3 + $0x20] sm:$0xff] %vm555_vm1, %v6784_v46  ;;  %v6785_v16 = vadd.f32 %v6672_v17, %v6331_v20  ;;  %6275 = vst.msk [vmem:[#allocation3 + $0xe8] sm:$0xff] %vm555_vm1, %v6243_v31  ;;  %v6884_v39 = vmul.f32 %v10958_v50, %v6845_v49  ;;  %v6922_v55 = vadd.f32 %v10964_v7, %v6883_v29  ;;  %v6339_v46 = vld [vmem:[#allocation3 + $0x68] sm:$0xff] }
 0x338   : > { %6819 = vst.msk [vmem:[#allocation3 + $0x38] sm:$0xff] %vm555_vm1, %v6787_v28  ;;  %v6925_v44 = vadd.f32 %v10964_v7, %v6886_v62  ;;  %v6956_v35 = vmax.f32 %v6924_v38, 0.0  ;;  %v6344_v38 = vld [vmem:[#allocation3 + $0x90] sm:$0xff] }
 0x339   : > { %6817 = vst.msk [vmem:[#allocation3 + $0x28] sm:$0xff] %vm555_vm1, %v6785_v16  ;;  %v6923_v43 = vadd.f32 %v10964_v7, %v6884_v39  ;;  %v6954_v57 = vmax.f32 %v6922_v55, 0.0 }
 0x33a   : > { %v6957_v58 = vmax.f32 %v6925_v44, 0.0 }
 0x33b   : > { %v8879_v15 = vpop.f32.mrb[136].mxu1  ;;  %v6955_v63 = vmax.f32 %v6923_v43, 0.0 }
 0x33c   : > { %v6790_v3 = vadd.f32 %v8879_v15, %v6336_v24  ;;  %v6685_v23 = vpop.f32.mrb[137].mxu1  ;;  %v6987_v10 = vpack.c.bf16 %v6957_v58, %v6956_v35  ;;  %v6342_v15 = vld [vmem:[#allocation3 + $0x80] sm:$0xff]  ;;  %v6343_v35 = vld [vmem:[#allocation3 + $0x88] sm:$0xff] }
 0x33d   : > { %v6788_v53 = vadd.f32 %v6685_v23, %v6334_v40  ;;  %v8880_v54 = vpop.f32.mrb[138].mxu1  ;;  %v6850_v8 = vld [vmem:[#allocation3 + $0x30] sm:$0xff]  ;;  %v6986_v14 = vpack.c.bf16 %v6955_v63, %v6954_v57  ;;  %v6345_v23 = vld [vmem:[#allocation3 + $0x98] sm:$0xff] }
 0x33e   : > { %6822 = vst.msk [vmem:[#allocation3 + $0x50] sm:$0xff] %vm555_vm1, %v6790_v3  ;;  %v6791_v4 = vadd.f32 %v8880_v54, %v6337_v12  ;;  %v6688_v56 = vpop.f32.mrb[139].mxu1  ;;  %v6848_v1 = vld [vmem:[#allocation3 + $0x20] sm:$0xff]  ;;  %v6889_v45 = vmul.f32 %v10958_v50, %v6850_v8 }
 0x33f   : > { %6820 = vst.msk [vmem:[#allocation3 + $0x40] sm:$0xff] %vm555_vm1, %v6788_v53  ;;  %v6789_v34 = vadd.f32 %v6688_v56, %v6335_v37  ;;  %v6887_v22 = vmul.f32 %v10958_v50, %v6848_v1  ;;  %v6851_v52 = vld [vmem:[#allocation3 + $0x38] sm:$0xff]  ;;  %8903 = vmatprep.mubr.msk.bf16.mxu0 %vm555_vm1, %v6986_v14 }
 0x340   : > { %6823 = vst.msk [vmem:[#allocation3 + $0x58] sm:$0xff] %vm555_vm1, %v6791_v4  ;;  %v6849_v48 = vld [vmem:[#allocation3 + $0x28] sm:$0xff]  ;;  %v6890_v36 = vmul.f32 %v10958_v50, %v6851_v52  ;;  %8904 = vmatmul.mubr.msk.bf16.vlgmr.msra.gmra.mrb[160].mxu0 %vm555_vm1, %v6987_v10  ;;  %v6928_v0 = vadd.f32 %v10964_v7, %v6889_v45 }
 0x341   : > { %6821 = vst.msk [vmem:[#allocation3 + $0x48] sm:$0xff] %vm555_vm1, %v6789_v34  ;;  %v6888_v5 = vmul.f32 %v10958_v50, %v6849_v48  ;;  %v6926_v59 = vadd.f32 %v10964_v7, %v6887_v22 }
 0x342   : > { %v6929_v26 = vadd.f32 %v10964_v7, %v6890_v36  ;;  %v6960_v18 = vmax.f32 %v6928_v0, 0.0  ;;  %v6348_v0 = vld [vmem:[#allocation3 + $0xb0] sm:$0xff] }
 0x343   : > { %v8883_v42 = vpop.f32.mrb[140].mxu1  ;;  %v6927_v41 = vadd.f32 %v10964_v7, %v6888_v5  ;;  %v6958_v51 = vmax.f32 %v6926_v59, 0.0 }
 0x344   : > { %v6794_v33 = vadd.f32 %v8883_v42, %v6340_v47  ;;  %v6701_v60 = vpop.f32.mrb[141].mxu1  ;;  %v6961_v9 = vmax.f32 %v6929_v26, 0.0 }
 0x345   : > { %v6792_v2 = vadd.f32 %v6701_v60, %v6338_v11  ;;  %v8884_v27 = vpop.f32.mrb[142].mxu1  ;;  %v6959_v32 = vmax.f32 %v6927_v41, 0.0  ;;  %v6854_v25 = vld [vmem:[#allocation3 + $0x50] sm:$0xff]  ;;  %v6346_v41 = vld [vmem:[#allocation3 + $0xa0] sm:$0xff] }
 0x346   : > { %6826 = vst.msk [vmem:[#allocation3 + $0x70] sm:$0xff] %vm555_vm1, %v6794_v33  ;;  %v6795_v30 = vadd.f32 %v8884_v27, %v6341_v13  ;;  %v6704_v61 = vpop.f32.mrb[143].mxu1  ;;  %v6852_v19 = vld [vmem:[#allocation3 + $0x40] sm:$0xff]  ;;  %v6893_v6 = vmul.f32 %v10958_v50, %v6854_v25  ;;  %v6989_v29 = vpack.c.bf16 %v6961_v9, %v6960_v18  ;;  %v6349_v9 = vld [vmem:[#allocation3 + $0xb8] sm:$0xff]  ;;  %v6347_v25 = vld [vmem:[#allocation3 + $0xa8] sm:$0xff] }
 0x347   : > { %6824 = vst.msk [vmem:[#allocation3 + $0x60] sm:$0xff] %vm555_vm1, %v6792_v2  ;;  %v6793_v31 = vadd.f32 %v6704_v61, %v6339_v46  ;;  %v6988_v28 = vpack.c.bf16 %v6959_v32, %v6958_v51  ;;  %v6891_v20 = vmul.f32 %v10958_v50, %v6852_v19  ;;  %v6855_v17 = vld [vmem:[#allocation3 + $0x58] sm:$0xff] }
 0x348   : > { %6827 = vst.msk [vmem:[#allocation3 + $0x78] sm:$0xff] %vm555_vm1, %v6795_v30  ;;  %v6853_v21 = vld [vmem:[#allocation3 + $0x48] sm:$0xff]  ;;  %v6894_v16 = vmul.f32 %v10958_v50, %v6855_v17  ;;  %v6932_v39 = vadd.f32 %v10964_v7, %v6893_v6 }
 0x349   : > { %6825 = vst.msk [vmem:[#allocation3 + $0x68] sm:$0xff] %vm555_vm1, %v6793_v31  ;;  %8907 = vmatprep.mubr.msk.bf16.mxu0 %vm555_vm1, %v6988_v28  ;;  %v6892_v49 = vmul.f32 %v10958_v50, %v6853_v21  ;;  %v6930_v62 = vadd.f32 %v10964_v7, %v6891_v20 }
 0x34a   : > { %8908 = vmatmul.mubr.msk.bf16.gmra.mrb[164].mxu0 %vm555_vm1, %v6989_v29  ;;  %v6933_v55 = vadd.f32 %v10964_v7, %v6894_v16  ;;  %v6964_v4 = vmax.f32 %v6932_v39, 0.0  ;;  %v6352_v39 = vld [vmem:[#allocation3 + $0xd0] sm:$0xff] }
 0x34b   : > { %v8887_v44 = vpop.f32.mrb[144].mxu1  ;;  %v6931_v43 = vadd.f32 %v10964_v7, %v6892_v49  ;;  %v6962_v63 = vmax.f32 %v6930_v62, 0.0 }
 0x34c   : > { %v6798_v24 = vadd.f32 %v8887_v44, %v6344_v38  ;;  %v6717_v58 = vpop.f32.mrb[145].mxu1  ;;  %v6965_v3 = vmax.f32 %v6933_v55, 0.0 }
 0x34d   : > { %v6796_v40 = vadd.f32 %v6717_v58, %v6342_v15  ;;  %v8888_v57 = vpop.f32.mrb[146].mxu1  ;;  %v6963_v53 = vmax.f32 %v6931_v43, 0.0  ;;  %v6858_v12 = vld [vmem:[#allocation3 + $0x70] sm:$0xff]  ;;  %v6350_v43 = vld [vmem:[#allocation3 + $0xc0] sm:$0xff] }
 0x34e   : > { %6830 = vst.msk [vmem:[#allocation3 + $0x90] sm:$0xff] %vm555_vm1, %v6798_v24  ;;  %v6799_v54 = vadd.f32 %v8888_v57, %v6345_v23  ;;  %v6720_v8 = vpop.f32.mrb[147].mxu1  ;;  %v6856_v37 = vld [vmem:[#allocation3 + $0x60] sm:$0xff]  ;;  %v6897_v56 = vmul.f32 %v10958_v50, %v6858_v12  ;;  %v6991_v10 = vpack.c.bf16 %v6965_v3, %v6964_v4  ;;  %v6353_v3 = vld [vmem:[#allocation3 + $0xd8] sm:$0xff]  ;;  %v6351_v12 = vld [vmem:[#allocation3 + $0xc8] sm:$0xff] }
 0x34f   : > { %6828 = vst.msk [vmem:[#allocation3 + $0x80] sm:$0xff] %vm555_vm1, %v6796_v40  ;;  %v6797_v14 = vadd.f32 %v6720_v8, %v6343_v35  ;;  %v6990_v1 = vpack.c.bf16 %v6963_v53, %v6962_v63  ;;  %v6895_v45 = vmul.f32 %v10958_v50, %v6856_v37  ;;  %v6859_v34 = vld [vmem:[#allocation3 + $0x78] sm:$0xff] }
 0x350   : > { %6831 = vst.msk [vmem:[#allocation3 + $0x98] sm:$0xff] %vm555_vm1, %v6799_v54  ;;  %v6857_v22 = vld [vmem:[#allocation3 + $0x68] sm:$0xff]  ;;  %v6898_v52 = vmul.f32 %v10958_v50, %v6859_v34  ;;  %v6936_v5 = vadd.f32 %v10964_v7, %v6897_v56 }
 0x351   : > { %6829 = vst.msk [vmem:[#allocation3 + $0x88] sm:$0xff] %vm555_vm1, %v6797_v14  ;;  %8911 = vmatprep.mubr.msk.bf16.mxu0 %vm555_vm1, %v6990_v1  ;;  %v6896_v48 = vmul.f32 %v10958_v50, %v6857_v22  ;;  %v6934_v36 = vadd.f32 %v10964_v7, %v6895_v45 }
 0x352   : > { %8912 = vmatmul.mubr.msk.bf16.gmra.mrb[168].mxu0 %vm555_vm1, %v6991_v10  ;;  %v6937_v59 = vadd.f32 %v10964_v7, %v6898_v52  ;;  %v6968_v46 = vmax.f32 %v6936_v5, 0.0  ;;  %v6356_v5 = vld [vmem:[#allocation3 + $0xf0] sm:$0xff] }
 0x353   : > { %v8891_v26 = vpop.f32.mrb[148].mxu1  ;;  %v6935_v47 = vadd.f32 %v10964_v7, %v6896_v48  ;;  %v6966_v13 = vmax.f32 %v6934_v36, 0.0 }
 0x354   : > { %v6802_v42 = vadd.f32 %v8891_v26, %v6348_v0  ;;  %v6733_v33 = vpop.f32.mrb[149].mxu1  ;;  %v6969_v11 = vmax.f32 %v6937_v59, 0.0 }
 0x355   : > { %v6800_v60 = vadd.f32 %v6733_v33, %v6346_v41  ;;  %v8892_v2 = vpop.f32.mrb[150].mxu1  ;;  %v6967_v27 = vmax.f32 %v6935_v47, 0.0  ;;  %v6862_v51 = vld [vmem:[#allocation3 + $0x90] sm:$0xff]  ;;  %v6354_v47 = vld [vmem:[#allocation3 + $0xe0] sm:$0xff] }
 0x356   : > { %6834 = vst.msk [vmem:[#allocation3 + $0xb0] sm:$0xff] %vm555_vm1, %v6802_v42  ;;  %v6803_v32 = vadd.f32 %v8892_v2, %v6349_v9  ;;  %v6736_v30 = vpop.f32.mrb[151].mxu1  ;;  %v6860_v61 = vld [vmem:[#allocation3 + $0x80] sm:$0xff]  ;;  %v6901_v18 = vmul.f32 %v10958_v50, %v6862_v51  ;;  %v6993_v20 = vpack.c.bf16 %v6969_v11, %v6968_v46  ;;  %v6357_v11 = vld [vmem:[#allocation3 + $0xf8] sm:$0xff]  ;;  %v6355_v51 = vld [vmem:[#allocation3 + $0xe8] sm:$0xff] }
 0x357   : > { %6832 = vst.msk [vmem:[#allocation3 + $0xa0] sm:$0xff] %vm555_vm1, %v6800_v60  ;;  %v6801_v19 = vadd.f32 %v6736_v30, %v6347_v25  ;;  %v6992_v6 = vpack.c.bf16 %v6967_v27, %v6966_v13  ;;  %v6899_v31 = vmul.f32 %v10958_v50, %v6860_v61  ;;  %v6863_v28 = vld [vmem:[#allocation3 + $0x98] sm:$0xff] }
 0x358   : > { %6835 = vst.msk [vmem:[#allocation3 + $0xb8] sm:$0xff] %vm555_vm1, %v6803_v32  ;;  %v6861_v17 = vld [vmem:[#allocation3 + $0x88] sm:$0xff]  ;;  %v6902_v29 = vmul.f32 %v10958_v50, %v6863_v28  ;;  %v6940_v49 = vadd.f32 %v10964_v7, %v6901_v18 }
 0x359   : > { %6833 = vst.msk [vmem:[#allocation3 + $0xa8] sm:$0xff] %vm555_vm1, %v6801_v19  ;;  %8915 = vmatprep.mubr.msk.bf16.mxu0 %vm555_vm1, %v6992_v6  ;;  %v6900_v21 = vmul.f32 %v10958_v50, %v6861_v17  ;;  %v6938_v16 = vadd.f32 %v10964_v7, %v6899_v31 }
 0x35a   : > { %8916 = vmatmul.mubr.msk.bf16.gmra.mrb[172].mxu0 %vm555_vm1, %v6993_v20  ;;  %v6941_v62 = vadd.f32 %v10964_v7, %v6902_v29  ;;  %v6972_v35 = vmax.f32 %v6940_v49, 0.0 }
 0x35b   : > { %v8895_v55 = vpop.f32.mrb[152].mxu1  ;;  %v6939_v38 = vadd.f32 %v10964_v7, %v6900_v21  ;;  %v6970_v23 = vmax.f32 %v6938_v16, 0.0 }
 0x35c   : > { %v6806_v44 = vadd.f32 %v8895_v55, %v6352_v39  ;;  %v6749_v24 = vpop.f32.mrb[153].mxu1  ;;  %v6973_v15 = vmax.f32 %v6941_v62, 0.0 }
 0x35d   : > { %v6804_v58 = vadd.f32 %v6749_v24, %v6350_v43  ;;  %v8896_v40 = vpop.f32.mrb[154].mxu1  ;;  %v6971_v57 = vmax.f32 %v6939_v38, 0.0  ;;  %v6866_v63 = vld [vmem:[#allocation3 + $0xb0] sm:$0xff] }
 0x35e   : > { %6838 = vst.msk [vmem:[#allocation3 + $0xd0] sm:$0xff] %vm555_vm1, %v6806_v44  ;;  %v6807_v53 = vadd.f32 %v8896_v40, %v6353_v3  ;;  %v6752_v54 = vpop.f32.mrb[155].mxu1  ;;  %v6864_v8 = vld [vmem:[#allocation3 + $0xa0] sm:$0xff]  ;;  %v6905_v4 = vmul.f32 %v10958_v50, %v6866_v63  ;;  %v6995_v45 = vpack.c.bf16 %v6973_v15, %v6972_v35 }
 0x35f   : > { %6836 = vst.msk [vmem:[#allocation3 + $0xc0] sm:$0xff] %vm555_vm1, %v6804_v58  ;;  %v6805_v37 = vadd.f32 %v6752_v54, %v6351_v12  ;;  %v6994_v56 = vpack.c.bf16 %v6971_v57, %v6970_v23  ;;  %v6903_v14 = vmul.f32 %v10958_v50, %v6864_v8  ;;  %v6867_v1 = vld [vmem:[#allocation3 + $0xb8] sm:$0xff] }
 0x360   : > { %6839 = vst.msk [vmem:[#allocation3 + $0xd8] sm:$0xff] %vm555_vm1, %v6807_v53  ;;  %v6865_v34 = vld [vmem:[#allocation3 + $0xa8] sm:$0xff]  ;;  %v6906_v10 = vmul.f32 %v10958_v50, %v6867_v1  ;;  %v6944_v48 = vadd.f32 %v10964_v7, %v6905_v4 }
 0x361   : > { %6837 = vst.msk [vmem:[#allocation3 + $0xc8] sm:$0xff] %vm555_vm1, %v6805_v37  ;;  %8919 = vmatprep.mubr.msk.bf16.mxu0 %vm555_vm1, %v6994_v56  ;;  %v6904_v22 = vmul.f32 %v10958_v50, %v6865_v34  ;;  %v6942_v52 = vadd.f32 %v10964_v7, %v6903_v14 }
 0x362   : > { %8920 = vmatmul.mubr.msk.bf16.gmra.mrb[176].mxu0 %vm555_vm1, %v6995_v45  ;;  %v6945_v36 = vadd.f32 %v10964_v7, %v6906_v10  ;;  %v6976_v25 = vmax.f32 %v6944_v48, 0.0 }
 0x363   : > { %v8899_v59 = vpop.f32.mrb[156].mxu1  ;;  %v6943_v0 = vadd.f32 %v10964_v7, %v6904_v22  ;;  %v6974_v9 = vmax.f32 %v6942_v52, 0.0 }
 0x364   : > { %v6810_v26 = vadd.f32 %v8899_v59, %v6356_v5  ;;  %v6765_v42 = vpop.f32.mrb[157].mxu1  ;;  %v6977_v41 = vmax.f32 %v6945_v36, 0.0 }
 0x365   : > { %v6808_v33 = vadd.f32 %v6765_v42, %v6354_v47  ;;  %v8900_v60 = vpop.f32.mrb[158].mxu1  ;;  %v6975_v2 = vmax.f32 %v6943_v0, 0.0  ;;  %v6870_v13 = vld [vmem:[#allocation3 + $0xd0] sm:$0xff] }
 0x366   : > { %6842 = vst.msk [vmem:[#allocation3 + $0xf0] sm:$0xff] %vm555_vm1, %v6810_v26  ;;  %v6811_v27 = vadd.f32 %v8900_v60, %v6357_v11  ;;  %v6768_v32 = vpop.f32.mrb[159].mxu1  ;;  %v6868_v30 = vld [vmem:[#allocation3 + $0xc0] sm:$0xff]  ;;  %v6909_v46 = vmul.f32 %v10958_v50, %v6870_v13  ;;  %v6997_v31 = vpack.c.bf16 %v6977_v41, %v6976_v25 }
 0x367   : > { %6840 = vst.msk [vmem:[#allocation3 + $0xe0] sm:$0xff] %vm555_vm1, %v6808_v33  ;;  %v6809_v61 = vadd.f32 %v6768_v32, %v6355_v51  ;;  %v6996_v18 = vpack.c.bf16 %v6975_v2, %v6974_v9  ;;  %v6907_v19 = vmul.f32 %v10958_v50, %v6868_v30  ;;  %v6871_v6 = vld [vmem:[#allocation3 + $0xd8] sm:$0xff] }
 0x368   : > { %6843 = vst.msk [vmem:[#allocation3 + $0xf8] sm:$0xff] %vm555_vm1, %v6811_v27  ;;  %v6869_v28 = vld [vmem:[#allocation3 + $0xc8] sm:$0xff]  ;;  %v6910_v20 = vmul.f32 %v10958_v50, %v6871_v6  ;;  %v6948_v21 = vadd.f32 %v10964_v7, %v6909_v46 }
 0x369   : > { %6841 = vst.msk [vmem:[#allocation3 + $0xe8] sm:$0xff] %vm555_vm1, %v6809_v61  ;;  %8923 = vmatprep.mubr.msk.bf16.mxu0 %vm555_vm1, %v6996_v18  ;;  %v6908_v17 = vmul.f32 %v10958_v50, %v6869_v28  ;;  %v6946_v29 = vadd.f32 %v10964_v7, %v6907_v19 }
 0x36a   : > { %8924 = vmatmul.mubr.msk.bf16.gmra.mrb[180].mxu0 %vm555_vm1, %v6997_v31  ;;  %v6949_v16 = vadd.f32 %v10964_v7, %v6910_v20  ;;  %v6980_v44 = vmax.f32 %v6948_v21, 0.0  ;;  %v11132_v31 = vld [vmem:[%s11387_s11] ss:$0 sm:$0xff] }
 0x36b   : > { %v6947_v49 = vadd.f32 %v10964_v7, %v6908_v17  ;;  %v6978_v39 = vmax.f32 %v6946_v29, 0.0  ;;  %v11138_v20 = vld [vmem:[%s11388_s12] ss:$0 sm:$0xff] }
 0x36c   : > { %v6981_v62 = vmax.f32 %v6949_v16, 0.0  ;;  %v11144_v29 = vld [vmem:[%s11384_s8] ss:$0 sm:$0xff] }
 0x36d   : > { %v6979_v55 = vmax.f32 %v6947_v49, 0.0  ;;  %v6874_v38 = vld [vmem:[#allocation3 + $0xf0] sm:$0xff]  ;;  %v11149_v16 = vld [vmem:[%s11385_s9] ss:$0 sm:$0xff] }
 0x36e   : > { %v6872_v43 = vld [vmem:[#allocation3 + $0xe0] sm:$0xff]  ;;  %v6913_v24 = vmul.f32 %v10958_v50, %v6874_v38  ;;  %v6999_v40 = vpack.c.bf16 %v6981_v62, %v6980_v44 }
 0x36f   : > { %v6998_v15 = vpack.c.bf16 %v6979_v55, %v6978_v39  ;;  %v6911_v58 = vmul.f32 %v10958_v50, %v6872_v43  ;;  %v6875_v3 = vld [vmem:[#allocation3 + $0xf8] sm:$0xff] }
 0x370   : > { %v6873_v23 = vld [vmem:[#allocation3 + $0xe8] sm:$0xff]  ;;  %v6914_v57 = vmul.f32 %v10958_v50, %v6875_v3  ;;  %v6952_v12 = vadd.f32 %v10964_v7, %v6913_v24 }
 0x371   : > { %8927 = vmatprep.mubr.msk.bf16.mxu0 %vm555_vm1, %v6998_v15  ;;  %v6912_v63 = vmul.f32 %v10958_v50, %v6873_v23  ;;  %v6950_v53 = vadd.f32 %v10964_v7, %v6911_v58 }
 0x372   : > { %8928 = vmatmul.mubr.msk.bf16.gmra.mrb[184].mxu0 %vm555_vm1, %v6999_v40  ;;  %v6953_v54 = vadd.f32 %v10964_v7, %v6914_v57  ;;  %v6984_v56 = vmax.f32 %v6952_v12, 0.0 }
 0x373   : > { %v6951_v35 = vadd.f32 %v10964_v7, %v6912_v63  ;;  %v6982_v4 = vmax.f32 %v6950_v53, 0.0 }
 0x374   : > { %v6985_v8 = vmax.f32 %v6953_v54, 0.0 }
 0x375   : > { %v6983_v37 = vmax.f32 %v6951_v35, 0.0 }
 0x376   : > { %v7001_v1 = vpack.c.bf16 %v6985_v8, %v6984_v56 }
 0x377   : > { %v7000_v14 = vpack.c.bf16 %v6983_v37, %v6982_v4 }
 0x379   : > { %8931 = vmatprep.mubr.msk.bf16.mxu0 %vm555_vm1, %v7000_v14 }
 0x37a   : > { %8932 = vmatmul.mubr.msk.bf16.gmra.mrb[188].mxu0 %vm555_vm1, %v7001_v1 }
 0x37e   : > { %v8939_v50 = vpop.f32.mrb[160].mxu1 }
 0x37f   : > { %v7491_v45 = vpop.f32.mrb[161].mxu1  ;;  %v7627_v28 = vmul.f32 %v8939_v50, %v11132_v31 }
 0x380   : > { %v8940_v34 = vpop.f32.mrb[162].mxu1  ;;  %v7625_v17 = vmul.f32 %v11132_v31, %v7491_v45 }
 0x381   : > { %v7494_v10 = vpop.f32.mrb[163].mxu1  ;;  %v7666_v49 = vadd.f32 %v11138_v20, %v7627_v28  ;;  %v7628_v62 = vmul.f32 %v8940_v34, %v11132_v31 }
 0x382   : > { %v7664_v38 = vadd.f32 %v11138_v20, %v7625_v17  ;;  %v7626_v44 = vmul.f32 %v11132_v31, %v7494_v10 }
 0x383   : > { %v7667_v57 = vadd.f32 %v11138_v20, %v7628_v62 }
 0x384   : > { %v7665_v12 = vadd.f32 %v11138_v20, %v7626_v44 }
 0x386   : > { %v8943_v22 = vpop.f32.mrb[164].mxu1 }
 0x387   : > { %v7507_v52 = vpop.f32.mrb[165].mxu1  ;;  %v7631_v8 = vmul.f32 %v8943_v22, %v11132_v31 }
 0x388   : > { %v11077_v48 = vpop.f32.mrb[166].mxu1  ;;  %v7629_v56 = vmul.f32 %v11132_v31, %v7507_v52 }
 0x389   : > { %v11079_v36 = vpop.f32.mrb[167].mxu1  ;;  %v7670_v10 = vadd.f32 %v11138_v20, %v7631_v8  ;;  %v7632_v28 = vmul.f32 %v11077_v48, %v11132_v31 }
 0x38a   : > { %v7668_v52 = vadd.f32 %v11138_v20, %v7629_v56 }
 0x38f   : > { %v11081_v7 = vpop.f32.mrb[168].mxu1 }
 0x390   : > { %v11083_v5 = vpop.f32.mrb[169].mxu1 }
 0x391   : > { %v11085_v59 = vpop.f32.mrb[170].mxu1 }
 0x392   : > { %v11087_v0 = vpop.f32.mrb[171].mxu1  ;;  %v7636_v8 = vmul.f32 %v11085_v59, %v11132_v31 }
 0x397   : > { %v11089_v26 = vpop.f32.mrb[172].mxu1 }
 0x398   : > { %v11091_v47 = vpop.f32.mrb[173].mxu1 }
 0x399   : > { %v11093_v42 = vpop.f32.mrb[174].mxu1 }
 0x39a   : > { %v11095_v41 = vpop.f32.mrb[175].mxu1 }
 0x39f   : > { %v11097_v33 = vpop.f32.mrb[176].mxu1 }
 0x3a0   : > { %v11099_v11 = vpop.f32.mrb[177].mxu1 }
 0x3a1   : > { %v11101_v60 = vpop.f32.mrb[178].mxu1 }
 0x3a2   : > { %v11103_v9 = vpop.f32.mrb[179].mxu1 }
 0x3a7   : > { %v11105_v2 = vpop.f32.mrb[180].mxu1 }
 0x3a8   : > { %v11107_v13 = vpop.f32.mrb[181].mxu1 }
 0x3a9   : > { %v11109_v27 = vpop.f32.mrb[182].mxu1 }
 0x3aa   : > { %v11111_v51 = vpop.f32.mrb[183].mxu1 }
 0x3af   : > { %v11113_v32 = vpop.f32.mrb[184].mxu1 }
 0x3b0   : > { %v11115_v25 = vpop.f32.mrb[185].mxu1 }
 0x3b1   : > { %v11117_v30 = vpop.f32.mrb[186].mxu1 }
 0x3b2   : > { %v11119_v46 = vpop.f32.mrb[187].mxu1 }
 0x3b7   : > { %v11121_v61 = vpop.f32.mrb[188].mxu1 }
 0x3b8   : > { %v11123_v18 = vpop.f32.mrb[189].mxu1 }
 0x3b9   : > { %v11125_v19 = vpop.f32.mrb[190].mxu1 }
 0x3ba   : > { %v11127_v6 = vpop.f32.mrb[191].mxu1 }
 0x413   : > { %v8905_v21 = vpop.f32.mrb[160].mxu0 }
 0x414   : > { %v7224_v39 = vmul.f32 %v8905_v21, %v11144_v29  ;;  %v7088_v55 = vpop.f32.mrb[161].mxu0  ;;  %v7630_v21 = vmul.f32 %v11132_v31, %v11079_v36 }
 0x415   : > { %v7222_v43 = vmul.f32 %v11144_v29, %v7088_v55  ;;  %v8906_v24 = vpop.f32.mrb[162].mxu0 }
 0x416   : > { %v7263_v15 = vadd.f32 %v11149_v16, %v7224_v39  ;;  %v7225_v58 = vmul.f32 %v8906_v24, %v11144_v29  ;;  %v7091_v3 = vpop.f32.mrb[163].mxu0 }
 0x417   : > { %v7261_v40 = vadd.f32 %v11149_v16, %v7222_v43  ;;  %v7223_v23 = vmul.f32 %v11144_v29, %v7091_v3  ;;  %v7671_v43 = vadd.f32 %v11138_v20, %v7632_v28 }
 0x418   : > { %v7698_v63 = vadd.f32 %v7666_v49, %v7263_v15  ;;  %v7264_v53 = vadd.f32 %v11149_v16, %v7225_v58  ;;  %v7635_v15 = vmul.f32 %v11081_v7, %v11132_v31  ;;  %v7669_v58 = vadd.f32 %v11138_v20, %v7630_v21 }
 0x419   : > { %v7696_v54 = vadd.f32 %v7664_v38, %v7261_v40  ;;  %v7262_v35 = vadd.f32 %v11149_v16, %v7223_v23  ;;  %v7633_v23 = vmul.f32 %v11132_v31, %v11083_v5 }
 0x41a   : > { %v7730_v4 = vmax.f32 %v7698_v63, 0.0  ;;  %v7699_v37 = vadd.f32 %v7667_v57, %v7264_v53  ;;  %v7674_v7 = vadd.f32 %v11138_v20, %v7635_v15 }
 0x41b   : > { %v7728_v14 = vmax.f32 %v7696_v54, 0.0  ;;  %v7697_v1 = vadd.f32 %v7665_v12, %v7262_v35  ;;  %v7672_v56 = vadd.f32 %v11138_v20, %v7633_v23 }
 0x41c   : > { %7763 = vst.msk [vmem:[%s11167_s15 + $0x10] sm:$0xff] %vm7760_vm0, %v7730_v4  ;;  %v7731_v50 = vmax.f32 %v7699_v37, 0.0 }
 0x41d   : > { %v8909_v45 = vpop.f32.mrb[164].mxu0  ;;  %7761 = vst.msk [vmem:[%s11167_s15] sm:$0xff] %vm7760_vm0, %v7728_v14  ;;  %v7729_v34 = vmax.f32 %v7697_v1, 0.0  ;;  %v7634_v14 = vmul.f32 %v11132_v31, %v11087_v0 }
 0x41e   : > { %v7228_v22 = vmul.f32 %v8909_v45, %v11144_v29  ;;  %v7104_v17 = vpop.f32.mrb[165].mxu0  ;;  %7764 = vst.msk [vmem:[%s11167_s15 + $0x18] sm:$0xff] %vm7760_vm0, %v7731_v50 }
 0x41f   : > { %v7226_v49 = vmul.f32 %v11144_v29, %v7104_v17  ;;  %v8910_v62 = vpop.f32.mrb[166].mxu0  ;;  %7762 = vst.msk [vmem:[%s11167_s15 + $0x8] sm:$0xff] %vm7760_vm0, %v7729_v34  ;;  %v7673_v21 = vadd.f32 %v11138_v20, %v7634_v14 }
 0x420   : > { %v7267_v39 = vadd.f32 %v11149_v16, %v7228_v22  ;;  %v7229_v55 = vmul.f32 %v8910_v62, %v11144_v29  ;;  %v7107_v48 = vpop.f32.mrb[167].mxu0  ;;  %v7675_v22 = vadd.f32 %v11138_v20, %v7636_v8  ;;  %v7643_v8 = vmul.f32 %v11097_v33, %v11132_v31 }
 0x421   : > { %v7265_v38 = vadd.f32 %v11149_v16, %v7226_v49  ;;  %v7227_v44 = vmul.f32 %v11144_v29, %v7107_v48 }
 0x422   : > { %v7702_v24 = vadd.f32 %v7670_v10, %v7267_v39  ;;  %v7268_v36 = vadd.f32 %v11149_v16, %v7229_v55  ;;  %v7637_v39 = vmul.f32 %v11132_v31, %v11091_v47  ;;  %v7682_v33 = vadd.f32 %v11138_v20, %v7643_v8 }
 0x423   : > { %v7700_v3 = vadd.f32 %v7668_v52, %v7265_v38  ;;  %v7266_v40 = vadd.f32 %v11149_v16, %v7227_v44  ;;  %v7639_v52 = vmul.f32 %v11089_v26, %v11132_v31 }
 0x424   : > { %v7734_v57 = vmax.f32 %v7702_v24, 0.0  ;;  %v7703_v63 = vadd.f32 %v7671_v43, %v7268_v36  ;;  %v7640_v36 = vmul.f32 %v11093_v42, %v11132_v31 }
 0x425   : > { %v7732_v53 = vmax.f32 %v7700_v3, 0.0  ;;  %v7701_v12 = vadd.f32 %v7669_v58, %v7266_v40  ;;  %v8913_v54 = vpop.f32.mrb[168].mxu0  ;;  %v7678_v26 = vadd.f32 %v11138_v20, %v7639_v52  ;;  %v7676_v3 = vadd.f32 %v11138_v20, %v7637_v39 }
 0x426   : > { %7767 = vst.msk [vmem:[%s11167_s15 + $0x30] sm:$0xff] %vm7760_vm0, %v7734_v57  ;;  %v7735_v35 = vmax.f32 %v7703_v63, 0.0  ;;  %v7232_v4 = vmul.f32 %v8913_v54, %v11144_v29  ;;  %v7120_v37 = vpop.f32.mrb[169].mxu0  ;;  %v7638_v40 = vmul.f32 %v11132_v31, %v11095_v41 }
 0x427   : > { %7765 = vst.msk [vmem:[%s11167_s15 + $0x20] sm:$0xff] %vm7760_vm0, %v7732_v53  ;;  %v7733_v5 = vmax.f32 %v7701_v12, 0.0  ;;  %v7230_v1 = vmul.f32 %v11144_v29, %v7120_v37  ;;  %v8914_v50 = vpop.f32.mrb[170].mxu0 }
 0x428   : > { %7768 = vst.msk [vmem:[%s11167_s15 + $0x38] sm:$0xff] %vm7760_vm0, %v7735_v35  ;;  %v7271_v45 = vadd.f32 %v11149_v16, %v7232_v4  ;;  %v7233_v59 = vmul.f32 %v8914_v50, %v11144_v29  ;;  %v7123_v34 = vpop.f32.mrb[171].mxu0  ;;  %v7679_v35 = vadd.f32 %v11138_v20, %v7640_v36  ;;  %v7677_v4 = vadd.f32 %v11138_v20, %v7638_v40 }
 0x429   : > { %7766 = vst.msk [vmem:[%s11167_s15 + $0x28] sm:$0xff] %vm7760_vm0, %v7733_v5  ;;  %v7269_v10 = vadd.f32 %v11149_v16, %v7230_v1  ;;  %v7231_v28 = vmul.f32 %v11144_v29, %v7123_v34  ;;  %v7645_v36 = vmul.f32 %v11132_v31, %v11107_v13 }
 0x42a   : > { %v7706_v0 = vadd.f32 %v7674_v7, %v7271_v45  ;;  %v7272_v17 = vadd.f32 %v11149_v16, %v7233_v59 }
 0x42b   : > { %v7704_v49 = vadd.f32 %v7672_v56, %v7269_v10  ;;  %v7270_v62 = vadd.f32 %v11149_v16, %v7231_v28  ;;  %v7641_v56 = vmul.f32 %v11132_v31, %v11099_v11  ;;  %v7644_v10 = vmul.f32 %v11101_v60, %v11132_v31 }
 0x42c   : > { %v7738_v55 = vmax.f32 %v7706_v0, 0.0  ;;  %v7707_v48 = vadd.f32 %v7675_v22, %v7272_v17  ;;  %v7642_v17 = vmul.f32 %v11132_v31, %v11103_v9 }
 0x42d   : > { %v7736_v38 = vmax.f32 %v7704_v49, 0.0  ;;  %v7705_v44 = vadd.f32 %v7673_v21, %v7270_v62  ;;  %v8917_v43 = vpop.f32.mrb[172].mxu0  ;;  %v7680_v0 = vadd.f32 %v11138_v20, %v7641_v56  ;;  %v7651_v56 = vmul.f32 %v11113_v32, %v11132_v31 }
 0x42e   : > { %7771 = vst.msk [vmem:[%s11167_s15 + $0x50] sm:$0xff] %vm7760_vm0, %v7738_v55  ;;  %v7739_v24 = vmax.f32 %v7707_v48, 0.0  ;;  %v7236_v15 = vmul.f32 %v8917_v43, %v11144_v29  ;;  %v7136_v58 = vpop.f32.mrb[173].mxu0  ;;  %v7683_v48 = vadd.f32 %v11138_v20, %v7644_v10  ;;  %v7681_v43 = vadd.f32 %v11138_v20, %v7642_v17 }
 0x42f   : > { %7769 = vst.msk [vmem:[%s11167_s15 + $0x40] sm:$0xff] %vm7760_vm0, %v7736_v38  ;;  %v7737_v47 = vmax.f32 %v7705_v44, 0.0  ;;  %v7234_v23 = vmul.f32 %v11144_v29, %v7136_v58  ;;  %v8918_v57 = vpop.f32.mrb[174].mxu0  ;;  %v7647_v44 = vmul.f32 %v11105_v2, %v11132_v31  ;;  %v7690_v32 = vadd.f32 %v11138_v20, %v7651_v56 }
 0x430   : > { %7772 = vst.msk [vmem:[%s11167_s15 + $0x58] sm:$0xff] %vm7760_vm0, %v7739_v24  ;;  %v7275_v63 = vadd.f32 %v11149_v16, %v7236_v15  ;;  %v7237_v42 = vmul.f32 %v8918_v57, %v11144_v29  ;;  %v7139_v53 = vpop.f32.mrb[175].mxu0  ;;  %v7648_v57 = vmul.f32 %v11109_v27, %v11132_v31 }
 0x431   : > { %7770 = vst.msk [vmem:[%s11167_s15 + $0x48] sm:$0xff] %vm7760_vm0, %v7737_v47  ;;  %v7273_v12 = vadd.f32 %v11149_v16, %v7234_v23  ;;  %v7235_v54 = vmul.f32 %v11144_v29, %v7139_v53  ;;  %v7686_v2 = vadd.f32 %v11138_v20, %v7647_v44  ;;  %v7684_v53 = vadd.f32 %v11138_v20, %v7645_v36 }
 0x432   : > { %v7710_v41 = vadd.f32 %v7678_v26, %v7275_v63  ;;  %v7276_v7 = vadd.f32 %v11149_v16, %v7237_v42  ;;  %v7655_v44 = vmul.f32 %v11121_v61, %v11132_v31  ;;  %v7653_v36 = vmul.f32 %v11132_v31, %v11123_v18 }
 0x433   : > { %v7708_v37 = vadd.f32 %v7676_v3, %v7273_v12  ;;  %v7274_v5 = vadd.f32 %v11149_v16, %v7235_v54  ;;  %v7646_v12 = vmul.f32 %v11132_v31, %v11111_v51 }
 0x434   : > { %v7742_v14 = vmax.f32 %v7710_v41, 0.0  ;;  %v7711_v1 = vadd.f32 %v7679_v35, %v7276_v7  ;;  %v7694_v61 = vadd.f32 %v11138_v20, %v7655_v44 }
 0x435   : > { %v7740_v50 = vmax.f32 %v7708_v37, 0.0  ;;  %v7709_v45 = vadd.f32 %v7677_v4, %v7274_v5  ;;  %v8921_v59 = vpop.f32.mrb[176].mxu0  ;;  %v7687_v37 = vadd.f32 %v11138_v20, %v7648_v57 }
 0x436   : > { %7775 = vst.msk [vmem:[%s11167_s15 + $0x70] sm:$0xff] %vm7760_vm0, %v7742_v14  ;;  %v7743_v34 = vmax.f32 %v7711_v1, 0.0  ;;  %v7240_v28 = vmul.f32 %v8921_v59, %v11144_v29  ;;  %v7152_v22 = vpop.f32.mrb[177].mxu0  ;;  %v7685_v14 = vadd.f32 %v11138_v20, %v7646_v12 }
 0x437   : > { %7773 = vst.msk [vmem:[%s11167_s15 + $0x60] sm:$0xff] %vm7760_vm0, %v7740_v50  ;;  %v7741_v11 = vmax.f32 %v7709_v45, 0.0  ;;  %v7238_v52 = vmul.f32 %v11144_v29, %v7152_v22  ;;  %v8922_v21 = vpop.f32.mrb[178].mxu0  ;;  %v7649_v45 = vmul.f32 %v11132_v31, %v11115_v25 }
 0x438   : > { %7776 = vst.msk [vmem:[%s11167_s15 + $0x78] sm:$0xff] %vm7760_vm0, %v7743_v34  ;;  %v7279_v49 = vadd.f32 %v11149_v16, %v7240_v28  ;;  %v7241_v60 = vmul.f32 %v8922_v21, %v11144_v29  ;;  %v7155_v62 = vpop.f32.mrb[179].mxu0  ;;  %v7650_v21 = vmul.f32 %v11132_v31, %v11119_v46 }
 0x439   : > { %7774 = vst.msk [vmem:[%s11167_s15 + $0x68] sm:$0xff] %vm7760_vm0, %v7741_v11  ;;  %v7277_v39 = vadd.f32 %v11149_v16, %v7238_v52  ;;  %v7239_v55 = vmul.f32 %v11144_v29, %v7155_v62  ;;  %v7652_v11 = vmul.f32 %v11117_v30, %v11132_v31  ;;  %v7688_v52 = vadd.f32 %v11138_v20, %v7649_v45 }
 0x43a   : > { %v7714_v9 = vadd.f32 %v7682_v33, %v7279_v49  ;;  %v7280_v38 = vadd.f32 %v11149_v16, %v7241_v60 }
 0x43b   : > { %v7712_v24 = vadd.f32 %v7680_v0, %v7277_v39  ;;  %v7278_v26 = vadd.f32 %v11149_v16, %v7239_v55 }
 0x43c   : > { %v7746_v15 = vmax.f32 %v7714_v9, 0.0  ;;  %v7715_v58 = vadd.f32 %v7683_v48, %v7280_v38  ;;  %v7691_v9 = vadd.f32 %v11138_v20, %v7652_v11 }
 0x43d   : > { %v7744_v47 = vmax.f32 %v7712_v24, 0.0  ;;  %v7713_v3 = vadd.f32 %v7681_v43, %v7278_v26  ;;  %v8925_v40 = vpop.f32.mrb[180].mxu0  ;;  %v7689_v43 = vadd.f32 %v11138_v20, %v7650_v21 }
 0x43e   : > { %7779 = vst.msk [vmem:[%s11167_s15 + $0x90] sm:$0xff] %vm7760_vm0, %v7746_v15  ;;  %v7747_v23 = vmax.f32 %v7715_v58, 0.0  ;;  %v7244_v63 = vmul.f32 %v8925_v40, %v11144_v29  ;;  %v7168_v42 = vpop.f32.mrb[181].mxu0 }
 0x43f   : > { %7777 = vst.msk [vmem:[%s11167_s15 + $0x80] sm:$0xff] %vm7760_vm0, %v7744_v47  ;;  %v7745_v13 = vmax.f32 %v7713_v3, 0.0  ;;  %v7242_v54 = vmul.f32 %v11144_v29, %v7168_v42  ;;  %v8926_v35 = vpop.f32.mrb[182].mxu0  ;;  %v7692_v42 = vadd.f32 %v11138_v20, %v7653_v36 }
 0x440   : > { %7780 = vst.msk [vmem:[%s11167_s15 + $0x98] sm:$0xff] %vm7760_vm0, %v7747_v23  ;;  %v7283_v41 = vadd.f32 %v11149_v16, %v7244_v63  ;;  %v7245_v27 = vmul.f32 %v8926_v35, %v11144_v29  ;;  %v7171_v7 = vpop.f32.mrb[183].mxu0 }
 0x441   : > { %7778 = vst.msk [vmem:[%s11167_s15 + $0x88] sm:$0xff] %vm7760_vm0, %v7745_v13  ;;  %v7281_v8 = vadd.f32 %v11149_v16, %v7242_v54  ;;  %v7243_v4 = vmul.f32 %v11144_v29, %v7171_v7  ;;  %v7654_v13 = vmul.f32 %v11132_v31, %v11127_v6 }
 0x442   : > { %v7718_v51 = vadd.f32 %v7686_v2, %v7283_v41  ;;  %v7284_v5 = vadd.f32 %v11149_v16, %v7245_v27  ;;  %v7656_v2 = vmul.f32 %v11125_v19, %v11132_v31 }
 0x443   : > { %v7716_v1 = vadd.f32 %v7684_v53, %v7281_v8  ;;  %v7282_v50 = vadd.f32 %v11149_v16, %v7243_v4  ;;  %v7693_v8 = vadd.f32 %v11138_v20, %v7654_v13 }
 0x444   : > { %v7750_v59 = vmax.f32 %v7718_v51, 0.0  ;;  %v7719_v34 = vadd.f32 %v7687_v37, %v7284_v5  ;;  %v7695_v6 = vadd.f32 %v11138_v20, %v7656_v2 }
 0x445   : > { %v7748_v33 = vmax.f32 %v7716_v1, 0.0  ;;  %v7717_v10 = vadd.f32 %v7685_v14, %v7282_v50  ;;  %v8929_v28 = vpop.f32.mrb[184].mxu0 }
 0x446   : > { %7783 = vst.msk [vmem:[%s11167_s15 + $0xb0] sm:$0xff] %vm7760_vm0, %v7750_v59  ;;  %v7751_v22 = vmax.f32 %v7719_v34, 0.0  ;;  %v7248_v0 = vmul.f32 %v8929_v28, %v11144_v29  ;;  %v7184_v17 = vpop.f32.mrb[185].mxu0 }
 0x447   : > { %7781 = vst.msk [vmem:[%s11167_s15 + $0xa0] sm:$0xff] %vm7760_vm0, %v7748_v33  ;;  %v7749_v25 = vmax.f32 %v7717_v10, 0.0  ;;  %v7246_v49 = vmul.f32 %v11144_v29, %v7184_v17  ;;  %v8930_v60 = vpop.f32.mrb[186].mxu0 }
 0x448   : > { %7784 = vst.msk [vmem:[%s11167_s15 + $0xb8] sm:$0xff] %vm7760_vm0, %v7751_v22  ;;  %v7287_v62 = vadd.f32 %v11149_v16, %v7248_v0  ;;  %v7249_v30 = vmul.f32 %v8930_v60, %v11144_v29  ;;  %v7187_v39 = vpop.f32.mrb[187].mxu0 }
 0x449   : > { %7782 = vst.msk [vmem:[%s11167_s15 + $0xa8] sm:$0xff] %vm7760_vm0, %v7749_v25  ;;  %v7285_v55 = vadd.f32 %v11149_v16, %v7246_v49  ;;  %v7247_v48 = vmul.f32 %v11144_v29, %v7187_v39 }
 0x44a   : > { %v7722_v46 = vadd.f32 %v7690_v32, %v7287_v62  ;;  %v7288_v38 = vadd.f32 %v11149_v16, %v7249_v30 }
 0x44b   : > { %v7720_v24 = vadd.f32 %v7688_v52, %v7285_v55  ;;  %v7286_v26 = vadd.f32 %v11149_v16, %v7247_v48 }
 0x44c   : > { %v7754_v15 = vmax.f32 %v7722_v46, 0.0  ;;  %v7723_v58 = vadd.f32 %v7691_v9, %v7288_v38 }
 0x44d   : > { %v7752_v47 = vmax.f32 %v7720_v24, 0.0  ;;  %v7721_v3 = vadd.f32 %v7689_v43, %v7286_v26  ;;  %v8933_v40 = vpop.f32.mrb[188].mxu0 }
 0x44e   : > { %7787 = vst.msk [vmem:[%s11167_s15 + $0xd0] sm:$0xff] %vm7760_vm0, %v7754_v15  ;;  %v7755_v23 = vmax.f32 %v7723_v58, 0.0  ;;  %v7252_v57 = vmul.f32 %v8933_v40, %v11144_v29  ;;  %v7200_v63 = vpop.f32.mrb[189].mxu0 }
 0x44f   : > { %7785 = vst.msk [vmem:[%s11167_s15 + $0xc0] sm:$0xff] %vm7760_vm0, %v7752_v47  ;;  %v7753_v18 = vmax.f32 %v7721_v3, 0.0  ;;  %v7250_v53 = vmul.f32 %v11144_v29, %v7200_v63  ;;  %v8934_v12 = vpop.f32.mrb[190].mxu0 }
 0x450   : > { %7788 = vst.msk [vmem:[%s11167_s15 + $0xd8] sm:$0xff] %vm7760_vm0, %v7755_v23  ;;  %v7291_v54 = vadd.f32 %v11149_v16, %v7252_v57  ;;  %v7253_v19 = vmul.f32 %v8934_v12, %v11144_v29  ;;  %v7203_v35 = vpop.f32.mrb[191].mxu0 }
 0x451   : > { %7786 = vst.msk [vmem:[%s11167_s15 + $0xc8] sm:$0xff] %vm7760_vm0, %v7753_v18  ;;  %v7289_v41 = vadd.f32 %v11149_v16, %v7250_v53  ;;  %v7251_v27 = vmul.f32 %v11144_v29, %v7203_v35 }
 0x452   : > { %v7726_v31 = vadd.f32 %v7694_v61, %v7291_v54  ;;  %v7292_v7 = vadd.f32 %v11149_v16, %v7253_v19 }
 0x453   : > { %v7724_v4 = vadd.f32 %v7692_v42, %v7289_v41  ;;  %v7290_v37 = vadd.f32 %v11149_v16, %v7251_v27 }
 0x454   : > { %v7758_v51 = vmax.f32 %v7726_v31, 0.0  ;;  %v7727_v5 = vadd.f32 %v7695_v6, %v7292_v7 }
 0x455   : > { %v7756_v56 = vmax.f32 %v7724_v4, 0.0  ;;  %v7725_v14 = vadd.f32 %v7693_v8, %v7290_v37 }
 0x456   : > { %7791 = vst.msk [vmem:[%s11167_s15 + $0xf0] sm:$0xff] %vm7760_vm0, %v7758_v51  ;;  %v7759_v1 = vmax.f32 %v7727_v5, 0.0 }
 0x457   : > { %7789 = vst.msk [vmem:[%s11167_s15 + $0xe0] sm:$0xff] %vm7760_vm0, %v7756_v56  ;;  %v7757_v29 = vmax.f32 %v7725_v14, 0.0 }
 0x458   : > { %7792 = vst.msk [vmem:[%s11167_s15 + $0xf8] sm:$0xff] %vm7760_vm0, %v7759_v1 }
 0x459   : > { %7790 = vst.msk [vmem:[%s11167_s15 + $0xe8] sm:$0xff] %vm7760_vm0, %v7757_v29 }
 0x45a PF: > { %s23_s25 = sadd.s32 1, %s9081_s25  }
 0x45b   : > { %p20_p4 = scmp.ge.s32.totalorder %s23_s25, 4  }
 0x45d   :  { %22 = sbr.rel (!%p20_p4) target bundleno = 1 (0x1), region = 112 }

</bundles_post_ra>
